<compile_context>
chip_gen: v6e
topology: v6e:2x2x1
jax: 0.10.0
libtpu: 0.0.40
codegen_flags: <defaults>
</compile_context>

<pallas_src>
import functools

import jax
import jax.numpy as jnp
from jax.experimental import pallas as pl
from jax.experimental.pallas import tpu as pltpu


KSIZE = 5
FC1_K = 20000       # 50 * 20 * 20
FC1_K_PAD = 20480   # multiple of FC1_K_TILE
FC1_N_PAD = 512     # 500 padded to multiple of FC1_N_TILE
FC1_K_TILE = 5120
FC1_N_TILE = 256


# ----------------------------------------------------------------------------
# Pallas kernels: y = relu?(x @ w + b)
# ----------------------------------------------------------------------------
def _mm_single_kernel(x_ref, w_ref, b_ref, o_ref, *, relu):
    # Single K-step: no accumulator scratch, write straight to the output.
    y = jnp.dot(x_ref[...], w_ref[...], preferred_element_type=jnp.float32)
    y = y + b_ref[...]
    if relu:
        y = jnp.maximum(y, 0.0)
    o_ref[...] = y.astype(o_ref.dtype)


def _mm_acc_kernel(x_ref, w_ref, b_ref, o_ref, acc_ref, *, relu):
    # Grid = (N-tiles, K-tiles); K (reduction) is the innermost axis.
    k = pl.program_id(1)

    @pl.when(k == 0)
    def _():
        acc_ref[...] = jnp.zeros_like(acc_ref)

    acc_ref[...] += jnp.dot(x_ref[...], w_ref[...],
                            preferred_element_type=jnp.float32)

    @pl.when(k == pl.num_programs(1) - 1)
    def _():
        y = acc_ref[...] + b_ref[...]
        if relu:
            y = jnp.maximum(y, 0.0)
        o_ref[...] = y.astype(o_ref.dtype)


def matmul_bias_act(x, w, b2, *, relu, k_tile=None, n_tile=None, out_dtype=None):
    """y = relu?(x @ w + b2).

    b2 is 2-D: (1, N) for a per-column bias or (M, 1) for a per-row bias.
    Tiled over K (f32 accumulator) and N (parallel across cores).
    """
    M, K = x.shape
    K2, N = w.shape
    assert K == K2, (K, K2)
    out_dtype = out_dtype or x.dtype
    k_tile = k_tile or K
    n_tile = n_tile or N
    assert K % k_tile == 0 and N % n_tile == 0
    nk, nn = K // k_tile, N // n_tile
    b2 = b2.astype(jnp.float32)
    bias_is_col = b2.shape[0] == 1

    if nk == 1:
        if bias_is_col:
            b_spec = pl.BlockSpec((1, n_tile), lambda j: (0, j))
        else:
            b_spec = pl.BlockSpec((M, 1), lambda j: (0, 0))
        kernel = functools.partial(_mm_single_kernel, relu=relu)
        return pl.pallas_call(
            kernel,
            out_shape=jax.ShapeDtypeStruct((M, N), out_dtype),
            grid_spec=pltpu.PrefetchScalarGridSpec(
                num_scalar_prefetch=0,
                grid=(nn,),
                in_specs=[
                    pl.BlockSpec((M, K), lambda j: (0, 0)),
                    pl.BlockSpec((K, n_tile), lambda j: (0, j)),
                    b_spec,
                ],
                out_specs=pl.BlockSpec((M, n_tile), lambda j: (0, j)),
            ),
            compiler_params=pltpu.CompilerParams(
                dimension_semantics=("parallel",)),
        )(x, w, b2)

    if bias_is_col:
        b_spec = pl.BlockSpec((1, n_tile), lambda j, k: (0, j))
    else:
        b_spec = pl.BlockSpec((M, 1), lambda j, k: (0, 0))
    kernel = functools.partial(_mm_acc_kernel, relu=relu)
    return pl.pallas_call(
        kernel,
        out_shape=jax.ShapeDtypeStruct((M, N), out_dtype),
        grid_spec=pltpu.PrefetchScalarGridSpec(
            num_scalar_prefetch=0,
            grid=(nn, nk),
            in_specs=[
                pl.BlockSpec((M, k_tile), lambda j, k: (0, k)),
                pl.BlockSpec((k_tile, n_tile), lambda j, k: (k, j)),
                b_spec,
            ],
            out_specs=pl.BlockSpec((M, n_tile), lambda j, k: (0, j)),
            scratch_shapes=[pltpu.VMEM((M, n_tile), jnp.float32)],
        ),
        compiler_params=pltpu.CompilerParams(
            dimension_semantics=("parallel", "arbitrary")),
    )(x, w, b2)


# ----------------------------------------------------------------------------
# Glue: channel-major im2col (pure slicing / reshape, no compute).
# ----------------------------------------------------------------------------
def im2col_cm(x_nchw, kh, kw):
    """(B, C, H, W) -> ((C*kh*kw, B*OH*OW), OH, OW).

    Row ordering (C-major, then kh, then kw) matches the PyTorch conv weight
    (OC, C, kh, kw) flattened to (OC, C*kh*kw)."""
    B, C, H, W = x_nchw.shape
    OH, OW = H - kh + 1, W - kw + 1
    cols = []
    for i in range(kh):
        for j in range(kw):
            cols.append(x_nchw[:, :, i:i + OH, j:j + OW])   # (B, C, OH, OW)
    patches = jnp.stack(cols, axis=2)                        # (B, C, kh*kw, OH, OW)
    patches = patches.transpose(1, 2, 0, 3, 4)               # (C, kh*kw, B, OH, OW)
    patches = patches.reshape(C * kh * kw, B * OH * OW)
    return patches, OH, OW


def conv2d_relu(x_nchw, w_mat, b_o, ksize):
    """Valid conv (stride 1) + bias + ReLU.

    Computed channel-major: (OC, C*k*k) @ (C*k*k, B*OH*OW) so the Pallas
    kernel's output lane dim is 800+ (lane-dense stores), not the channel
    count.  Bias is a per-row (OC, 1) add inside the kernel."""
    B = x_nchw.shape[0]
    OC = w_mat.shape[0]
    patches, OH, OW = im2col_cm(x_nchw, ksize, ksize)        # (C*k*k, B*OH*OW)
    y = matmul_bias_act(w_mat, patches, b_o.reshape(OC, 1), relu=True)
    return y.reshape(OC, B, OH, OW).transpose(1, 0, 2, 3)    # NCHW


# ----------------------------------------------------------------------------
# One-time weight preparation (hoisted out of the per-call forward).
# ----------------------------------------------------------------------------
def prepare_params(params):
    d_hidden = params["fc1_w"].shape[1]
    oc1 = params["conv1_w"].shape[0]
    oc2 = params["conv2_w"].shape[0]
    fc1_w = jnp.pad(params["fc1_w"],
                    ((0, FC1_K_PAD - FC1_K), (0, FC1_N_PAD - d_hidden)))
    fc1_b = jnp.pad(params["fc1_b"], (0, FC1_N_PAD - d_hidden))
    fc2_w = jnp.pad(params["fc2_w"], ((0, FC1_N_PAD - d_hidden), (0, 0)))
    return {
        "conv1_wm": params["conv1_w"].reshape(oc1, -1),      # (20, 25)
        "conv1_b": params["conv1_b"],
        "conv2_wm": params["conv2_w"].reshape(oc2, -1),      # (50, 500)
        "conv2_b": params["conv2_b"],
        "fc1_w": fc1_w.astype(jnp.bfloat16),                 # (20480, 512) bf16
        "fc1_b": fc1_b.astype(jnp.float32),                  # (512,)
        "fc2_w": fc2_w.astype(jnp.float32),                  # (512, 10)
        "fc2_b": params["fc2_b"].astype(jnp.float32),
    }


# ----------------------------------------------------------------------------
# Full LeNet forward.
# ----------------------------------------------------------------------------
def lenet_forward(x, p):
    # conv1 + relu  (MaxPool2d(1) is identity)
    h = conv2d_relu(x, p["conv1_wm"], p["conv1_b"], KSIZE)        # (B, 20, 24, 24)
    # conv2 + relu
    h = conv2d_relu(h, p["conv2_wm"], p["conv2_b"], KSIZE)        # (B, 50, 20, 20)
    # flatten (channel-major, same as torch.nn.Flatten on NCHW)
    B = h.shape[0]
    h = h.reshape(B, -1)                                          # (B, 20000)

    # fc1 + relu: weight is pre-padded to (20480, 512) bf16; only pad the tiny
    # activation at runtime and cast it to bf16 (f32 accumulation in-kernel).
    h = jnp.pad(h, ((0, 0), (0, FC1_K_PAD - h.shape[1]))).astype(jnp.bfloat16)
    h = matmul_bias_act(h, p["fc1_w"], p["fc1_b"].reshape(1, -1), relu=True,
                        k_tile=FC1_K_TILE, n_tile=FC1_N_TILE,
                        out_dtype=jnp.float32)                    # (B, 512)
    # columns 500..511 are exactly zero (zero weight cols, zero bias, relu(0)=0)

    # dropout: identity at inference.  TODO(synk): training-mode dropout mask.

    # fc2 (no activation; classifier_activation=None); padded rows contribute 0.
    out = matmul_bias_act(h, p["fc2_w"], p["fc2_b"].reshape(1, -1), relu=False)
    return out                                                    # (B, 10)


# ----------------------------------------------------------------------------
# Pure-JAX reference (for correctness check).
# ----------------------------------------------------------------------------
def lenet_reference(x, params):
    dn = jax.lax.conv_dimension_numbers(x.shape, params["conv1_w"].shape,
                                        ("NCHW", "OIHW", "NCHW"))
    h = jax.lax.conv_general_dilated(x, params["conv1_w"], (1, 1), "VALID",
                                     dimension_numbers=dn)
    h = jnp.maximum(h + params["conv1_b"][None, :, None, None], 0.0)
    dn2 = jax.lax.conv_dimension_numbers(h.shape, params["conv2_w"].shape,
                                         ("NCHW", "OIHW", "NCHW"))
    h = jax.lax.conv_general_dilated(h, params["conv2_w"], (1, 1), "VALID",
                                     dimension_numbers=dn2)
    h = jnp.maximum(h + params["conv2_b"][None, :, None, None], 0.0)
    h = h.reshape(h.shape[0], -1)
    h = jnp.maximum(h @ params["fc1_w"] + params["fc1_b"], 0.0)
    return h @ params["fc2_w"] + params["fc2_b"]


def init_params(key, kernel_size=5, d_hidden=500):
    ks = jax.random.split(key, 8)
    scale = 0.05
    return {
        "conv1_w": scale * jax.random.normal(ks[0], (20, 1, kernel_size, kernel_size), jnp.float32),
        "conv1_b": scale * jax.random.normal(ks[1], (20,), jnp.float32),
        "conv2_w": scale * jax.random.normal(ks[2], (50, 20, kernel_size, kernel_size), jnp.float32),
        "conv2_b": scale * jax.random.normal(ks[3], (50,), jnp.float32),
        "fc1_w": 0.01 * jax.random.normal(ks[4], (20000, d_hidden), jnp.float32),
        "fc1_b": 0.01 * jax.random.normal(ks[5], (d_hidden,), jnp.float32),
        "fc2_w": 0.05 * jax.random.normal(ks[6], (d_hidden, 10), jnp.float32),
        "fc2_b": 0.05 * jax.random.normal(ks[7], (10,), jnp.float32),
    }


if __name__ == "__main__":
    key = jax.random.PRNGKey(0)
    k_x, k_p = jax.random.split(key)

    # Input shape is pinned by fc1: 20000 = 50 * 20 * 20 -> MNIST 1x28x28.
    B = 2
    x = jax.random.normal(k_x, (B, 1, 28, 28), jnp.float32)
    params = init_params(k_p)
    prepared = prepare_params(params)   # one-time: pad/bf16/reshape weights

    out = jax.block_until_ready(jax.jit(lenet_forward)(x, prepared))
    assert out.shape == (B, 10), out.shape

    ref = jax.block_until_ready(jax.jit(lenet_reference)(x, params))
    assert jnp.allclose(out, ref, rtol=1e-2, atol=1e-2), (
        "mismatch vs reference", float(jnp.max(jnp.abs(out - ref))))

    print("KERNEL_OK")
</pallas_src>

<mosaic_0001>
module attributes {stable_mosaic.version = 11 : i64} {
  func.func @_mm_single_kernel(%arg0: i32, %arg1: memref<20x25xf32, #tpu.memory_space<vmem>>, %arg2: memref<25x1152xf32, #tpu.memory_space<vmem>>, %arg3: memref<20x1xf32, #tpu.memory_space<vmem>>, %arg4: memref<20x1152xf32, #tpu.memory_space<vmem>>) attributes {dimension_semantics = [#tpu.dimension_semantics<parallel>], iteration_bounds = array<i64: 1>, scalar_prefetch = 0 : i64, scratch_operands = 0 : i64, tpu.core_type = #tpu.core_type<tc>, window_params = [{pipeline_mode = #tpu.pipeline_mode<synchronous>, transform_indices = @transform_0, window_bounds = array<i64: 20, 25>}, {transform_indices = @transform_1, window_bounds = array<i64: 25, 1152>}, {pipeline_mode = #tpu.pipeline_mode<synchronous>, transform_indices = @transform_2, window_bounds = array<i64: 20, 1>}, {transform_indices = @transform_3, window_bounds = array<i64: 20, 1152>}]} {
    %c0 = arith.constant 0 : index
    %c0_0 = arith.constant 0 : index
    %0 = vector.load %arg1[%c0, %c0_0] : memref<20x25xf32, #tpu.memory_space<vmem>>, vector<20x25xf32>
    %c0_1 = arith.constant 0 : index
    %c0_2 = arith.constant 0 : index
    %1 = vector.load %arg2[%c0_1, %c0_2] : memref<25x1152xf32, #tpu.memory_space<vmem>>, vector<25x1152xf32>
    %cst = arith.constant dense<0.000000e+00> : vector<20x1152xf32>
    %2 = tpu.matmul %0, %1, %cst {dimension_numbers = #tpu.dot_dimension_numbers<[1], [0], [0], [1], [0, 0, 1, 1], [], []>} : vector<20x25xf32>, vector<25x1152xf32>, vector<20x1152xf32> -> vector<20x1152xf32>
    %c0_3 = arith.constant 0 : index
    %c0_4 = arith.constant 0 : index
    %3 = vector.load %arg3[%c0_3, %c0_4] : memref<20x1xf32, #tpu.memory_space<vmem>>, vector<20x1xf32>
    %4 = vector.broadcast %3 : vector<20x1xf32> to vector<20x1152xf32>
    %5 = arith.addf %2, %4 : vector<20x1152xf32>
    %cst_5 = arith.constant 0.000000e+00 : f32
    %6 = vector.broadcast %cst_5 : f32 to vector<20x1152xf32>
    %7 = arith.maximumf %5, %6 : vector<20x1152xf32>
    %c0_6 = arith.constant 0 : index
    %c0_7 = arith.constant 0 : index
    %8 = vector.load %arg4[%c0_6, %c0_7] : memref<20x1152xf32, #tpu.memory_space<vmem>>, vector<20x1152xf32>
    tpu.vector_store %arg4[%c0_6, %c0_7], %7 {strides = array<i32>} : memref<20x1152xf32, #tpu.memory_space<vmem>>, vector<20x1152xf32>,
    return
  }
  func.func @transform_0(%arg0: i32) -> (i32, i32) {
    %c0_i32 = arith.constant 0 : i32
    %c0_i32_0 = arith.constant 0 : i32
    %c0_i32_1 = arith.constant 0 : i32
    return %c0_i32, %c0_i32_0 : i32, i32
  }
  func.func @transform_1(%arg0: i32) -> (i32, i32) {
    %c0_i32 = arith.constant 0 : i32
    %c0_i32_0 = arith.constant 0 : i32
    return %c0_i32, %arg0 : i32, i32
  }
  func.func @transform_2(%arg0: i32) -> (i32, i32) {
    %c0_i32 = arith.constant 0 : i32
    %c0_i32_0 = arith.constant 0 : i32
    %c0_i32_1 = arith.constant 0 : i32
    return %c0_i32, %c0_i32_0 : i32, i32
  }
  func.func @transform_3(%arg0: i32) -> (i32, i32) {
    %c0_i32 = arith.constant 0 : i32
    %c0_i32_0 = arith.constant 0 : i32
    return %c0_i32, %arg0 : i32, i32
  }
}

module attributes {stable_mosaic.version = 11 : i64} {
  func.func @_mm_single_kernel(%arg0: i32, %arg1: memref<50x500xf32, #tpu.memory_space<vmem>>, %arg2: memref<500x800xf32, #tpu.memory_space<vmem>>, %arg3: memref<50x1xf32, #tpu.memory_space<vmem>>, %arg4: memref<50x800xf32, #tpu.memory_space<vmem>>) attributes {dimension_semantics = [#tpu.dimension_semantics<parallel>], iteration_bounds = array<i64: 1>, scalar_prefetch = 0 : i64, scratch_operands = 0 : i64, tpu.core_type = #tpu.core_type<tc>, window_params = [{pipeline_mode = #tpu.pipeline_mode<synchronous>, transform_indices = @transform_0, window_bounds = array<i64: 50, 500>}, {transform_indices = @transform_1, window_bounds = array<i64: 500, 800>}, {pipeline_mode = #tpu.pipeline_mode<synchronous>, transform_indices = @transform_2, window_bounds = array<i64: 50, 1>}, {transform_indices = @transform_3, window_bounds = array<i64: 50, 800>}]} {
    %c0 = arith.constant 0 : index
    %c0_0 = arith.constant 0 : index
    %0 = vector.load %arg1[%c0, %c0_0] : memref<50x500xf32, #tpu.memory_space<vmem>>, vector<50x500xf32>
    %c0_1 = arith.constant 0 : index
    %c0_2 = arith.constant 0 : index
    %1 = vector.load %arg2[%c0_1, %c0_2] : memref<500x800xf32, #tpu.memory_space<vmem>>, vector<500x800xf32>
    %cst = arith.constant dense<0.000000e+00> : vector<50x800xf32>
    %2 = tpu.matmul %0, %1, %cst {dimension_numbers = #tpu.dot_dimension_numbers<[1], [0], [0], [1], [0, 0, 1, 1], [], []>} : vector<50x500xf32>, vector<500x800xf32>, vector<50x800xf32> -> vector<50x800xf32>
    %c0_3 = arith.constant 0 : index
    %c0_4 = arith.constant 0 : index
    %3 = vector.load %arg3[%c0_3, %c0_4] : memref<50x1xf32, #tpu.memory_space<vmem>>, vector<50x1xf32>
    %4 = vector.broadcast %3 : vector<50x1xf32> to vector<50x800xf32>
    %5 = arith.addf %2, %4 : vector<50x800xf32>
    %cst_5 = arith.constant 0.000000e+00 : f32
    %6 = vector.broadcast %cst_5 : f32 to vector<50x800xf32>
    %7 = arith.maximumf %5, %6 : vector<50x800xf32>
    %c0_6 = arith.constant 0 : index
    %c0_7 = arith.constant 0 : index
    %8 = vector.load %arg4[%c0_6, %c0_7] : memref<50x800xf32, #tpu.memory_space<vmem>>, vector<50x800xf32>
    tpu.vector_store %arg4[%c0_6, %c0_7], %7 {strides = array<i32>} : memref<50x800xf32, #tpu.memory_space<vmem>>, vector<50x800xf32>,
    return
  }
  func.func @transform_0(%arg0: i32) -> (i32, i32) {
    %c0_i32 = arith.constant 0 : i32
    %c0_i32_0 = arith.constant 0 : i32
    %c0_i32_1 = arith.constant 0 : i32
    return %c0_i32, %c0_i32_0 : i32, i32
  }
  func.func @transform_1(%arg0: i32) -> (i32, i32) {
    %c0_i32 = arith.constant 0 : i32
    %c0_i32_0 = arith.constant 0 : i32
    return %c0_i32, %arg0 : i32, i32
  }
  func.func @transform_2(%arg0: i32) -> (i32, i32) {
    %c0_i32 = arith.constant 0 : i32
    %c0_i32_0 = arith.constant 0 : i32
    %c0_i32_1 = arith.constant 0 : i32
    return %c0_i32, %c0_i32_0 : i32, i32
  }
  func.func @transform_3(%arg0: i32) -> (i32, i32) {
    %c0_i32 = arith.constant 0 : i32
    %c0_i32_0 = arith.constant 0 : i32
    return %c0_i32, %arg0 : i32, i32
  }
}

module attributes {stable_mosaic.version = 11 : i64} {
  func.func @_mm_acc_kernel(%arg0: i32, %arg1: i32, %arg2: memref<2x5120xbf16, #tpu.memory_space<vmem>>, %arg3: memref<5120x256xbf16, #tpu.memory_space<vmem>>, %arg4: memref<1x256xf32, #tpu.memory_space<vmem>>, %arg5: memref<2x256xf32, #tpu.memory_space<vmem>>, %arg6: memref<2x256xf32, #tpu.memory_space<vmem>>) attributes {dimension_semantics = [#tpu.dimension_semantics<parallel>, #tpu.dimension_semantics<arbitrary>], iteration_bounds = array<i64: 2, 4>, scalar_prefetch = 0 : i64, scratch_operands = 1 : i64, tpu.core_type = #tpu.core_type<tc>, window_params = [{transform_indices = @transform_0, window_bounds = array<i64: 2, 5120>}, {transform_indices = @transform_1, window_bounds = array<i64: 5120, 256>}, {transform_indices = @transform_2, window_bounds = array<i64: 1, 256>}, {transform_indices = @transform_3, window_bounds = array<i64: 2, 256>}]} {
    %c0_i32 = arith.constant 0 : i32
    %0 = arith.cmpi eq, %arg1, %c0_i32 : i32
    %1 = arith.extui %0 : i1 to i32
    %c0_i32_0 = arith.constant 0 : i32
    %2 = arith.cmpi ne, %1, %c0_i32_0 : i32
    scf.if %2 {
      %cst_9 = arith.constant 0.000000e+00 : f32
      %12 = vector.broadcast %cst_9 : f32 to vector<2x256xf32>
      %c0_10 = arith.constant 0 : index
      %c0_11 = arith.constant 0 : index
      %13 = vector.load %arg6[%c0_10, %c0_11] : memref<2x256xf32, #tpu.memory_space<vmem>>, vector<2x256xf32>
      tpu.vector_store %arg6[%c0_10, %c0_11], %12 {strides = array<i32>} : memref<2x256xf32, #tpu.memory_space<vmem>>, vector<2x256xf32>,
    } else {
    }
    %c0 = arith.constant 0 : index
    %c0_1 = arith.constant 0 : index
    %3 = vector.load %arg6[%c0, %c0_1] : memref<2x256xf32, #tpu.memory_space<vmem>>, vector<2x256xf32>
    %c0_2 = arith.constant 0 : index
    %c0_3 = arith.constant 0 : index
    %4 = vector.load %arg2[%c0_2, %c0_3] : memref<2x5120xbf16, #tpu.memory_space<vmem>>, vector<2x5120xbf16>
    %c0_4 = arith.constant 0 : index
    %c0_5 = arith.constant 0 : index
    %5 = vector.load %arg3[%c0_4, %c0_5] : memref<5120x256xbf16, #tpu.memory_space<vmem>>, vector<5120x256xbf16>
    %cst = arith.constant dense<0.000000e+00> : vector<2x256xf32>
    %6 = tpu.matmul %4, %5, %cst {dimension_numbers = #tpu.dot_dimension_numbers<[1], [0], [0], [1], [0, 0, 1, 1], [], []>} : vector<2x5120xbf16>, vector<5120x256xbf16>, vector<2x256xf32> -> vector<2x256xf32>
    %7 = arith.addf %3, %6 : vector<2x256xf32>
    %c0_6 = arith.constant 0 : index
    %c0_7 = arith.constant 0 : index
    %8 = vector.load %arg6[%c0_6, %c0_7] : memref<2x256xf32, #tpu.memory_space<vmem>>, vector<2x256xf32>
    tpu.vector_store %arg6[%c0_6, %c0_7], %7 {strides = array<i32>} : memref<2x256xf32, #tpu.memory_space<vmem>>, vector<2x256xf32>,
    %c3_i32 = arith.constant 3 : i32
    %9 = arith.cmpi eq, %arg1, %c3_i32 : i32
    %10 = arith.extui %9 : i1 to i32
    %c0_i32_8 = arith.constant 0 : i32
    %11 = arith.cmpi ne, %10, %c0_i32_8 : i32
    scf.if %11 {
      %c0_9 = arith.constant 0 : index
      %c0_10 = arith.constant 0 : index
      %12 = vector.load %arg6[%c0_9, %c0_10] : memref<2x256xf32, #tpu.memory_space<vmem>>, vector<2x256xf32>
      %c0_11 = arith.constant 0 : index
      %c0_12 = arith.constant 0 : index
      %13 = vector.load %arg4[%c0_11, %c0_12] : memref<1x256xf32, #tpu.memory_space<vmem>>, vector<1x256xf32>
      %14 = vector.broadcast %13 : vector<1x256xf32> to vector<2x256xf32>
      %15 = arith.addf %12, %14 : vector<2x256xf32>
      %cst_13 = arith.constant 0.000000e+00 : f32
      %16 = vector.broadcast %cst_13 : f32 to vector<2x256xf32>
      %17 = arith.maximumf %15, %16 : vector<2x256xf32>
      %c0_14 = arith.constant 0 : index
      %c0_15 = arith.constant 0 : index
      %18 = vector.load %arg5[%c0_14, %c0_15] : memref<2x256xf32, #tpu.memory_space<vmem>>, vector<2x256xf32>
      tpu.vector_store %arg5[%c0_14, %c0_15], %17 {strides = array<i32>} : memref<2x256xf32, #tpu.memory_space<vmem>>, vector<2x256xf32>,
    } else {
    }
    return
  }
  func.func @transform_0(%arg0: i32, %arg1: i32) -> (i32, i32) {
    %c0_i32 = arith.constant 0 : i32
    %c0_i32_0 = arith.constant 0 : i32
    return %c0_i32, %arg1 : i32, i32
  }
  func.func @transform_1(%arg0: i32, %arg1: i32) -> (i32, i32) {
    %c0_i32 = arith.constant 0 : i32
    return %arg1, %arg0 : i32, i32
  }
  func.func @transform_2(%arg0: i32, %arg1: i32) -> (i32, i32) {
    %c0_i32 = arith.constant 0 : i32
    %c0_i32_0 = arith.constant 0 : i32
    return %c0_i32, %arg0 : i32, i32
  }
  func.func @transform_3(%arg0: i32, %arg1: i32) -> (i32, i32) {
    %c0_i32 = arith.constant 0 : i32
    %c0_i32_0 = arith.constant 0 : i32
    return %c0_i32, %arg0 : i32, i32
  }
}

module attributes {stable_mosaic.version = 11 : i64} {
  func.func @_mm_single_kernel(%arg0: i32, %arg1: memref<2x512xf32, #tpu.memory_space<vmem>>, %arg2: memref<512x10xf32, #tpu.memory_space<vmem>>, %arg3: memref<1x10xf32, #tpu.memory_space<vmem>>, %arg4: memref<2x10xf32, #tpu.memory_space<vmem>>) attributes {dimension_semantics = [#tpu.dimension_semantics<parallel>], iteration_bounds = array<i64: 1>, scalar_prefetch = 0 : i64, scratch_operands = 0 : i64, tpu.core_type = #tpu.core_type<tc>, window_params = [{pipeline_mode = #tpu.pipeline_mode<synchronous>, transform_indices = @transform_0, window_bounds = array<i64: 2, 512>}, {transform_indices = @transform_1, window_bounds = array<i64: 512, 10>}, {transform_indices = @transform_2, window_bounds = array<i64: 1, 10>}, {transform_indices = @transform_3, window_bounds = array<i64: 2, 10>}]} {
    %c0 = arith.constant 0 : index
    %c0_0 = arith.constant 0 : index
    %0 = vector.load %arg1[%c0, %c0_0] : memref<2x512xf32, #tpu.memory_space<vmem>>, vector<2x512xf32>
    %c0_1 = arith.constant 0 : index
    %c0_2 = arith.constant 0 : index
    %1 = vector.load %arg2[%c0_1, %c0_2] : memref<512x10xf32, #tpu.memory_space<vmem>>, vector<512x10xf32>
    %cst = arith.constant dense<0.000000e+00> : vector<2x10xf32>
    %2 = tpu.matmul %0, %1, %cst {dimension_numbers = #tpu.dot_dimension_numbers<[1], [0], [0], [1], [0, 0, 1, 1], [], []>} : vector<2x512xf32>, vector<512x10xf32>, vector<2x10xf32> -> vector<2x10xf32>
    %c0_3 = arith.constant 0 : index
    %c0_4 = arith.constant 0 : index
    %3 = vector.load %arg3[%c0_3, %c0_4] : memref<1x10xf32, #tpu.memory_space<vmem>>, vector<1x10xf32>
    %4 = vector.broadcast %3 : vector<1x10xf32> to vector<2x10xf32>
    %5 = arith.addf %2, %4 : vector<2x10xf32>
    %c0_5 = arith.constant 0 : index
    %c0_6 = arith.constant 0 : index
    %6 = vector.load %arg4[%c0_5, %c0_6] : memref<2x10xf32, #tpu.memory_space<vmem>>, vector<2x10xf32>
    tpu.vector_store %arg4[%c0_5, %c0_6], %5 {strides = array<i32>} : memref<2x10xf32, #tpu.memory_space<vmem>>, vector<2x10xf32>,
    return
  }
  func.func @transform_0(%arg0: i32) -> (i32, i32) {
    %c0_i32 = arith.constant 0 : i32
    %c0_i32_0 = arith.constant 0 : i32
    %c0_i32_1 = arith.constant 0 : i32
    return %c0_i32, %c0_i32_0 : i32, i32
  }
  func.func @transform_1(%arg0: i32) -> (i32, i32) {
    %c0_i32 = arith.constant 0 : i32
    %c0_i32_0 = arith.constant 0 : i32
    return %c0_i32, %arg0 : i32, i32
  }
  func.func @transform_2(%arg0: i32) -> (i32, i32) {
    %c0_i32 = arith.constant 0 : i32
    %c0_i32_0 = arith.constant 0 : i32
    return %c0_i32, %arg0 : i32, i32
  }
  func.func @transform_3(%arg0: i32) -> (i32, i32) {
    %c0_i32 = arith.constant 0 : i32
    %c0_i32_0 = arith.constant 0 : i32
    return %c0_i32, %arg0 : i32, i32
  }
}

</mosaic_0001>

<bundles_post_ra>
// kernel: lenet_forward.4
= control target key start
LH: loop header
LB: loop body
LE: loop exit
PB: predicated region body
PF: predicated region fallthrough
CT: control target
= control target key end

     0   :  { %8 = vsyncpa [#allocation3], 0  ;;  %s680_s12 = smov [#allocation2]   ;;  %s1006_s0 = inlined_call_operand.hbm [shape: f32[20,25], index: 0, kind: input, shape index: {}]   ;;  %s1007_s1 = inlined_call_operand.vmem [shape: f32[25,1152], index: 1, kind: input, shape index: {}]   ;;  %s1008_s2 = inlined_call_operand.vmem [shape: f32[20,1], index: 2, kind: input, shape index: {}]   ;;  %s1009_s3 = inlined_call_operand.vmem [shape: f32[20,1152], index: 3, kind: output, shape index: {}]  }
   0x1   :  { %s14_s13 = sshll.u32 %s680_s12, 4  ;;  %s15_s13 = int_to_ptr.vmem [resolvable:$true] %s14_s13 }
   0x2   :  { %s666_s14 = scalar_lea.vmem %s15_s13, 384  ;;  %p671_p1 = scmp.lt.s32.totalorder %s15_s13, %s15_s13 }
   0x3   :  { %p667_p0 = scmp.ne.s32.totalorder %s15_s13, %s666_s14  ;;  %p672_p2 = scmp.lt.s32.totalorder %s666_s14, %s666_s14 }
   0x5   :  { %p673_p3 = por %p672_p2, %p671_p1 }
   0x7   :  { %p674_p4 = pnand %p673_p3, %p667_p0 }
   0x9   :  { %677 = shalt.err (!%p674_p4)
}
   0xa   :  { %s681_s15 = smov 128   ;;  %s682_s16 = smov 8  }
   0xb   :  { %20 = dma.hbm_to_vmem [thread:$0]  %s1006_s0, 384, %s15_s13, [#allocation3], %s681_s15, %s681_s15, %s682_s16  }
   0xc   :  { %678 = dma.done.wait [#allocation3], 384  }
   0xd   :  { %679 = vsyncadd [#allocation3], 4294966912  ;;  %v683_v0 = vmov 0.0   ;;  %v684_v1 = vmov 0   ;;  %vm95_vm0 = vcmask 1040384   ;;  %v50_v4 = vld [vmem:[%s1007_s1 + $0x98] sm:$0xff] }
   0xe   :  { %199 = vmatprep.mubr.f32.mxu1 %v683_v0  ;;  %187 = vmatprep.mubr.f32.mxu0 %v683_v0  ;;  %v59_v2 = vld [vmem:[%s1007_s1 + $0xe0] sm:$0x1]  ;;  %v58_v3 = vld [vmem:[%s1007_s1 + $0xd8] sm:$0x1]  ;;  %v49_v5 = vld [vmem:[%s1007_s1 + $0x90] sm:$0xff]  ;;  %vm85_vm1 = vcmask 203776  }
   0xf   :  { %657 = vset.pattern.permute.xlu1 %v684_v1  ;;  %656 = vset.pattern.permute.xlu0 %v684_v1  ;;  %v41_v6 = vld [vmem:[%s1007_s1 + $0x50] sm:$0xff]  ;;  %v40_v7 = vld [vmem:[%s1007_s1 + $0x48] sm:$0xff]  ;;  %v31_v9 = vld [vmem:[%s1007_s1] sm:$0xff]  ;;  %vm685_vm2 = vmmov 0  }
  0x10   :  { %642 = vmatprep.subr.msk.mxu1 %vm95_vm0, %v59_v2  ;;  %594 = vmatprep.subr.msk.mxu0 %vm95_vm0, %v59_v2  ;;  %v32_v8 = vld [vmem:[%s1007_s1 + $0x8] sm:$0xff]  ;;  %v739_v10 = vld [vmem:[#allocation2 + $0x10] sm:$0xf]  ;;  %v744_v12 = vld [vmem:[#allocation2] sm:$0xff] }
  0x11   :  { %646 = vmatpush1.msk.msra.mxu1 %vm95_vm0, %v58_v3  ;;  %595 = vmatpush1.msk.msra.mxu0 %vm95_vm0, %v58_v3  ;;  %v61_v11 = vld [vmem:[%s1007_s1 + $0xf0] sm:$0x1]  ;;  %v60_v13 = vld [vmem:[%s1007_s1 + $0xe8] sm:$0x1]  ;;  %v63_v14 = vld [vmem:[%s1007_s1 + $0x100] sm:$0x1] }
  0x12   :  { %643 = vmatprep.subr.mxu1 %v50_v4  ;;  %149 = vmatprep.subr.mxu0 %v50_v4  ;;  %v52_v15 = vld [vmem:[%s1007_s1 + $0xa8] sm:$0xff]  ;;  %v62_v16 = vld [vmem:[%s1007_s1 + $0xf8] sm:$0x1]  ;;  %v51_v17 = vld [vmem:[%s1007_s1 + $0xa0] sm:$0xff] }
  0x13   :  { %647 = vmatpush1.msra.mxu1 %v49_v5  ;;  %150 = vmatpush1.msra.mxu0 %v49_v5  ;;  %v54_v18 = vld [vmem:[%s1007_s1 + $0xb8] sm:$0xff]  ;;  %v43_v19 = vld [vmem:[%s1007_s1 + $0x60] sm:$0xff]  ;;  %v53_v20 = vld [vmem:[%s1007_s1 + $0xb0] sm:$0xff] }
  0x14   :  { %644 = vmatprep.subr.mxu1 %v41_v6  ;;  %151 = vmatprep.subr.mxu0 %v41_v6  ;;  %v778_v21 = vld [vmem:[#allocation2 + $0x8] sm:$0xff]  ;;  %v42_v22 = vld [vmem:[%s1007_s1 + $0x58] sm:$0xff]  ;;  %v45_v23 = vld [vmem:[%s1007_s1 + $0x70] sm:$0xff] }
  0x15   :  { %648 = vmatpush1.msra.mxu1 %v40_v7  ;;  %152 = vmatpush1.msra.mxu0 %v40_v7  ;;  %v34_v24 = vld [vmem:[%s1007_s1 + $0x18] sm:$0xff]  ;;  %v44_v25 = vld [vmem:[%s1007_s1 + $0x68] sm:$0xff]  ;;  %v33_v26 = vld [vmem:[%s1007_s1 + $0x10] sm:$0xff] }
  0x16   :  { %645 = vmatprep.subr.mxu1 %v32_v8  ;;  %153 = vmatprep.subr.mxu0 %v32_v8  ;;  %v36_v27 = vld [vmem:[%s1007_s1 + $0x28] sm:$0xff]  ;;  %v35_v28 = vld [vmem:[%s1007_s1 + $0x20] sm:$0xff]  ;;  %v65_v29 = vld [vmem:[%s1007_s1 + $0x110] sm:$0x1] }
  0x17   :  { %649 = vmatpush1.msra.mxu1 %v31_v9  ;;  %154 = vmatpush1.msra.mxu0 %v31_v9  ;;  %v64_v30 = vld [vmem:[%s1007_s1 + $0x108] sm:$0x1]  ;;  %v66_v32 = vld [vmem:[%s1007_s1 + $0x118] sm:$0x1]  ;;  %v55_v33 = vld [vmem:[%s1007_s1 + $0xc0] sm:$0xff] }
  0x18   :  { %598 = vmatmul.mubr.msk.f32.vlgmr.msra.gmra.mxu1 %vm85_vm1, %v739_v10  ;;  %599 = vmatprep.subr.msk.mxu1 %vm95_vm0, %v61_v11  ;;  %v56_v31 = vld [vmem:[%s1007_s1 + $0xc8] sm:$0xff]  ;;  %v47_v34 = vld [vmem:[%s1007_s1 + $0x80] sm:$0xff]  ;;  %v57_v35 = vld [vmem:[%s1007_s1 + $0xd0] sm:$0xff] }
  0x19   :  { %596 = vmatmul.mubr.msk.f32.vlgmr.msra.gmra.mxu0 %vm85_vm1, %v744_v12  ;;  %600 = vmatpush1.msk.msra.mxu1 %vm95_vm0, %v60_v13  ;;  %v46_v36 = vld [vmem:[%s1007_s1 + $0x78] sm:$0xff]  ;;  %v48_v38 = vld [vmem:[%s1007_s1 + $0x88] sm:$0xff]  ;;  %v37_v39 = vld [vmem:[%s1007_s1 + $0x30] sm:$0xff] }
  0x1a   :  { %604 = vmatprep.subr.msk.mxu0 %vm95_vm0, %v63_v14  ;;  %232 = vmatprep.subr.mxu1 %v52_v15  ;;  %v38_v37 = vld [vmem:[%s1007_s1 + $0x38] sm:$0xff]  ;;  %v39_v40 = vld [vmem:[%s1007_s1 + $0x40] sm:$0xff]  ;;  %v69_v41 = vld [vmem:[%s1008_s2 + $0x10] sm:$0xf] }
  0x1b   :  { %605 = vmatpush1.msk.msra.mxu0 %vm95_vm0, %v62_v16  ;;  %233 = vmatpush1.msra.mxu1 %v51_v17  ;;  %v67_v42 = vld [vmem:[%s1008_s2] sm:$0xff]  ;;  %v68_v43 = vld [vmem:[%s1008_s2 + $0x8] sm:$0xff] }
  0x1c   :  { %315 = vmatprep.subr.mxu0 %v54_v18  ;;  %193 = vmatprep.mubr.f32.mxu0 %v683_v0 }
  0x1d   :  { %234 = vmatprep.subr.mxu1 %v43_v19  ;;  %316 = vmatpush1.msra.mxu0 %v53_v20 }
  0x1e   :  { %597 = vmatmul.mubr.msk.f32.gmra.mxu0 %vm85_vm1, %v778_v21  ;;  %235 = vmatpush1.msra.mxu1 %v42_v22 }
  0x1f   :  { %317 = vmatprep.subr.mxu0 %v45_v23  ;;  %236 = vmatprep.subr.mxu1 %v34_v24 }
  0x20   :  { %318 = vmatpush1.msra.mxu0 %v44_v25  ;;  %237 = vmatpush1.msra.mxu1 %v33_v26 }
  0x21   :  { %270 = vmatprep.mubr.f32.mxu1 %v683_v0  ;;  %319 = vmatprep.subr.mxu0 %v36_v27 }
  0x22   :  { %601 = vmatmul.mubr.msk.f32.vlgmr.msra.gmra.mxu1 %vm85_vm1, %v744_v12  ;;  %320 = vmatpush1.msra.mxu0 %v35_v28 }
  0x23   :  { %353 = vmatprep.mubr.f32.mxu0 %v683_v0  ;;  %609 = vmatprep.subr.msk.mxu1 %vm95_vm0, %v65_v29 }
  0x24   :  { %606 = vmatmul.mubr.msk.f32.vlgmr.msra.gmra.mxu0 %vm85_vm1, %v744_v12  ;;  %610 = vmatpush1.msk.msra.mxu1 %vm95_vm0, %v64_v30 }
  0x25   :  { %625 = vmatprep.subr.mxu0 %v683_v0  ;;  %276 = vmatprep.mubr.f32.mxu1 %v683_v0 }
  0x26   :  { %398 = vmatprep.subr.mxu1 %v56_v31  ;;  %626 = vmatpush3.msk.msra.mxu0 %vm95_vm0, %v66_v32 }
  0x27   :  { %602 = vmatmul.mubr.msk.f32.gmra.mxu1 %vm85_vm1, %v778_v21  ;;  %359 = vmatprep.mubr.f32.mxu0 %v683_v0 }
  0x28   :  { %399 = vmatpush1.msra.mxu1 %v55_v33  ;;  %607 = vmatmul.mubr.msk.f32.gmra.mxu0 %vm85_vm1, %v778_v21 }
  0x29   :  { %627 = vmatprep.subr.mxu0 %v683_v0  ;;  %400 = vmatprep.subr.mxu1 %v47_v34 }
  0x2a   :  { %628 = vmatpush3.msra.mxu0 %v57_v35  ;;  %282 = vmatprep.mubr.f32.mxu1 %v683_v0 }
  0x2b   :  { %401 = vmatpush1.msra.mxu1 %v46_v36  ;;  %365 = vmatprep.mubr.f32.mxu0 %v683_v0 }
  0x2c   :  { %603 = vmatmul.mubr.msk.f32.gmra.mxu1 %vm85_vm1, %v739_v10  ;;  %629 = vmatprep.subr.mxu0 %v683_v0 }
  0x2d   :  { %608 = vmatmul.mubr.msk.f32.gmra.mxu0 %vm85_vm1, %v739_v10  ;;  %402 = vmatprep.subr.mxu1 %v38_v37 }
  0x2e   :  { %630 = vmatpush3.msra.mxu0 %v48_v38  ;;  %403 = vmatpush1.msra.mxu1 %v37_v39 }
  0x2f   :  { %436 = vmatprep.mubr.f32.mxu1 %v683_v0  ;;  %631 = vmatprep.subr.mxu0 %v683_v0 }
  0x30   :  { %611 = vmatmul.mubr.msk.f32.vlgmr.msra.gmra.mxu1 %vm85_vm1, %v744_v12  ;;  %632 = vmatpush3.msra.mxu0 %v39_v40 }
  0x31   :  { %633 = vmatprep.mubr.msk.f32.mxu0 %vm685_vm2, %v683_v0  ;;  %442 = vmatprep.mubr.f32.mxu1 %v683_v0 }
  0x32   :  { %634 = vmatmul.mubr.msk.f32.vlgmr.msra.gmra.mxu0 %vm85_vm1, %v744_v12  ;;  %82 = vperm.xlu1 %657, %v69_v41  }
  0x33   :  { %636 = vmatprep.mubr.msk.f32.mxu0 %vm685_vm2, %v683_v0  ;;  %72 = vperm.xlu0 %656, %v67_v42  }
  0x34   :  { %612 = vmatmul.mubr.msk.f32.gmra.mxu1 %vm85_vm1, %v778_v21 }
  0x35   :  { %448 = vmatprep.mubr.f32.mxu1 %v683_v0 }
  0x36   :  { %637 = vmatmul.mubr.msk.f32.gmra.mxu0 %vm85_vm1, %v778_v21 }
  0x37   :  { %639 = vmatprep.mubr.msk.f32.mxu0 %vm685_vm2, %v683_v0  ;;  %77 = vperm.xlu0 %656, %v68_v43  }
  0x38   :  { %613 = vmatmul.mubr.msk.f32.gmra.mxu1 %vm85_vm1, %v739_v10 }
  0x3a   :  { %640 = vmatmul.mubr.msk.f32.gmra.mxu0 %vm85_vm1, %v739_v10 }
  0xad   :  { %v892_v44 = vpop.permute.xlu1 %82 }
  0xae   :  { %v894_v45 = vpop.permute.xlu0 %72 }
  0xb2   :  { %v900_v56 = vpop.permute.xlu0 %77 }
  0xd8   :  { %v201_v46 = vpop.f32.mrf.mxu1 }
  0xd9   :  { %v202_v47 = vadd.f32 %v201_v46, %v892_v44  ;;  %v189_v48 = vpop.f32.mrf.mxu0 }
  0xda   :  { %v203_v49 = vpop.f32.mrf.mxu1  ;;  %v190_v50 = vadd.f32 %v189_v48, %v894_v45 }
  0xdb   :  { %v553_v51 = vmax.f32 %v202_v47, 0.0  ;;  %v204_v52 = vadd.f32 %v203_v49, %v892_v44  ;;  %v191_v53 = vpop.f32.mrf.mxu0 }
  0xdc   :  { %v535_v54 = vmax.f32 %v190_v50, 0.0  ;;  %v192_v55 = vadd.f32 %v191_v53, %v894_v45 }
  0xdd   :  { %580 = vst [vmem:[%s1009_s3 + $0x90] sm:$0xf] %v553_v51  ;;  %v554_v57 = vmax.f32 %v204_v52, 0.0 }
  0xde   :  { %562 = vst [vmem:[%s1009_s3] sm:$0xff] %v535_v54  ;;  %v536_v58 = vmax.f32 %v192_v55, 0.0  ;;  %v195_v59 = vpop.f32.mrf.mxu0 }
  0xdf   :  { %581 = vst [vmem:[%s1009_s3 + $0x98] sm:$0xf] %v554_v57  ;;  %v196_v60 = vadd.f32 %v195_v59, %v900_v56 }
  0xe0   :  { %563 = vst [vmem:[%s1009_s3 + $0x8] sm:$0xff] %v536_v58  ;;  %v197_v61 = vpop.f32.mrf.mxu0 }
  0xe1   :  { %v544_v62 = vmax.f32 %v196_v60, 0.0  ;;  %v198_v63 = vadd.f32 %v197_v61, %v900_v56 }
  0xe2   :  { %v272_v0 = vpop.f32.mrf.mxu1 }
  0xe3   :  { %571 = vst [vmem:[%s1009_s3 + $0x48] sm:$0xff] %v544_v62  ;;  %v545_v1 = vmax.f32 %v198_v63, 0.0  ;;  %v273_v2 = vadd.f32 %v272_v0, %v894_v45 }
  0xe4   :  { %v355_v3 = vpop.f32.mrf.mxu0  ;;  %v274_v4 = vpop.f32.mrf.mxu1 }
  0xe5   :  { %572 = vst [vmem:[%s1009_s3 + $0x50] sm:$0xff] %v545_v1  ;;  %v537_v5 = vmax.f32 %v273_v2, 0.0  ;;  %v356_v6 = vadd.f32 %v355_v3, %v894_v45  ;;  %v275_v7 = vadd.f32 %v274_v4, %v894_v45 }
  0xe6   :  { %v357_v8 = vpop.f32.mrf.mxu0 }
  0xe7   :  { %564 = vst [vmem:[%s1009_s3 + $0x10] sm:$0xff] %v537_v5  ;;  %v539_v9 = vmax.f32 %v356_v6, 0.0  ;;  %v538_v10 = vmax.f32 %v275_v7, 0.0  ;;  %v358_v11 = vadd.f32 %v357_v8, %v894_v45  ;;  %v278_v12 = vpop.f32.mrf.mxu1 }
  0xe8   :  { %v279_v13 = vadd.f32 %v278_v12, %v900_v56  ;;  %v361_v14 = vpop.f32.mrf.mxu0 }
  0xe9   :  { %566 = vst [vmem:[%s1009_s3 + $0x20] sm:$0xff] %v539_v9  ;;  %565 = vst [vmem:[%s1009_s3 + $0x18] sm:$0xff] %v538_v10  ;;  %v540_v15 = vmax.f32 %v358_v11, 0.0  ;;  %v362_v16 = vadd.f32 %v361_v14, %v900_v56  ;;  %v280_v17 = vpop.f32.mrf.mxu1 }
  0xea   :  { %v546_v18 = vmax.f32 %v279_v13, 0.0  ;;  %v281_v19 = vadd.f32 %v280_v17, %v900_v56  ;;  %v363_v20 = vpop.f32.mrf.mxu0 }
  0xeb   :  { %567 = vst [vmem:[%s1009_s3 + $0x28] sm:$0xff] %v540_v15  ;;  %v548_v21 = vmax.f32 %v362_v16, 0.0  ;;  %v364_v22 = vadd.f32 %v363_v20, %v900_v56 }
  0xec   :  { %573 = vst [vmem:[%s1009_s3 + $0x58] sm:$0xff] %v546_v18  ;;  %v547_v23 = vmax.f32 %v281_v19, 0.0  ;;  %v284_v24 = vpop.f32.mrf.mxu1 }
  0xed   :  { %575 = vst [vmem:[%s1009_s3 + $0x68] sm:$0xff] %v548_v21  ;;  %v549_v25 = vmax.f32 %v364_v22, 0.0  ;;  %v285_v26 = vadd.f32 %v284_v24, %v892_v44  ;;  %v367_v27 = vpop.f32.mrf.mxu0 }
  0xee   :  { %574 = vst [vmem:[%s1009_s3 + $0x60] sm:$0xff] %v547_v23  ;;  %v368_v28 = vadd.f32 %v367_v27, %v892_v44  ;;  %v286_v29 = vpop.f32.mrf.mxu1 }
  0xef   :  { %576 = vst [vmem:[%s1009_s3 + $0x70] sm:$0xff] %v549_v25  ;;  %v555_v30 = vmax.f32 %v285_v26, 0.0  ;;  %v287_v31 = vadd.f32 %v286_v29, %v892_v44  ;;  %v369_v32 = vpop.f32.mrf.mxu0 }
  0xf0   :  { %v557_v33 = vmax.f32 %v368_v28, 0.0  ;;  %v370_v34 = vadd.f32 %v369_v32, %v892_v44  ;;  %v438_v35 = vpop.f32.mrf.mxu1 }
  0xf1   :  { %582 = vst [vmem:[%s1009_s3 + $0xa0] sm:$0xf] %v555_v30  ;;  %v556_v36 = vmax.f32 %v287_v31, 0.0  ;;  %v439_v37 = vadd.f32 %v438_v35, %v894_v45 }
  0xf2   :  { %584 = vst [vmem:[%s1009_s3 + $0xb0] sm:$0xf] %v557_v33  ;;  %v558_v38 = vmax.f32 %v370_v34, 0.0  ;;  %v521_v39 = vpop.f32.mrf.mxu0  ;;  %v440_v40 = vpop.f32.mrf.mxu1 }
  0xf3   :  { %583 = vst [vmem:[%s1009_s3 + $0xa8] sm:$0xf] %v556_v36  ;;  %v541_v41 = vmax.f32 %v439_v37, 0.0  ;;  %v522_v42 = vadd.f32 %v521_v39, %v894_v45  ;;  %v441_v43 = vadd.f32 %v440_v40, %v894_v45 }
  0xf4   :  { %585 = vst [vmem:[%s1009_s3 + $0xb8] sm:$0xf] %v558_v38  ;;  %v635_v46 = vpop.f32.mrf.mxu0  ;;  %v444_v47 = vpop.f32.mrf.mxu1 }
  0xf5   :  { %568 = vst [vmem:[%s1009_s3 + $0x30] sm:$0xff] %v541_v41  ;;  %v543_v48 = vmax.f32 %v522_v42, 0.0  ;;  %v542_v49 = vmax.f32 %v441_v43, 0.0  ;;  %v445_v50 = vadd.f32 %v444_v47, %v900_v56 }
  0xf6   :  { %v526_v51 = vpop.f32.mrf.mxu0  ;;  %v446_v52 = vpop.f32.mrf.mxu1 }
  0xf7   :  { %570 = vst [vmem:[%s1009_s3 + $0x40] sm:$0xff] %v543_v48  ;;  %569 = vst [vmem:[%s1009_s3 + $0x38] sm:$0xff] %v542_v49  ;;  %v550_v45 = vmax.f32 %v445_v50, 0.0  ;;  %v527_v53 = vadd.f32 %v526_v51, %v900_v56  ;;  %v447_v54 = vadd.f32 %v446_v52, %v900_v56 }
  0xf8   :  { %v638_v55 = vpop.f32.mrf.mxu0  ;;  %v450_v57 = vpop.f32.mrf.mxu1 }
  0xf9   :  { %577 = vst [vmem:[%s1009_s3 + $0x78] sm:$0xff] %v550_v45  ;;  %v552_v58 = vmax.f32 %v527_v53, 0.0  ;;  %v551_v59 = vmax.f32 %v447_v54, 0.0  ;;  %v451_v60 = vadd.f32 %v450_v57, %v892_v44 }
  0xfa   :  { %v531_v61 = vpop.f32.mrf.mxu0  ;;  %v452_v62 = vpop.f32.mrf.mxu1 }
  0xfb   :  { %579 = vst [vmem:[%s1009_s3 + $0x88] sm:$0xff] %v552_v58  ;;  %578 = vst [vmem:[%s1009_s3 + $0x80] sm:$0xff] %v551_v59  ;;  %v559_v56 = vmax.f32 %v451_v60, 0.0  ;;  %v532_v63 = vadd.f32 %v531_v61, %v892_v44  ;;  %v453_v0 = vadd.f32 %v452_v62, %v892_v44 }
  0xfc   :  { %v641_v1 = vpop.f32.mrf.mxu0 }
  0xfd   :  { %586 = vst [vmem:[%s1009_s3 + $0xc0] sm:$0xf] %v559_v56  ;;  %v561_v2 = vmax.f32 %v532_v63, 0.0  ;;  %v560_v3 = vmax.f32 %v453_v0, 0.0 }
  0xff   :  { %588 = vst [vmem:[%s1009_s3 + $0xd0] sm:$0xf] %v561_v2  ;;  %587 = vst [vmem:[%s1009_s3 + $0xc8] sm:$0xf] %v560_v3 }
 0x100   :  { %593 = vsyncpa [#allocation3], 1 }

// kernel: lenet_forward.5
= control target key start
LH: loop header
LB: loop body
LE: loop exit
PB: predicated region body
PF: predicated region fallthrough
CT: control target
= control target key end

     0   :  { %vm547_vm0 = vcmask 1043456   ;;  %vm525_vm1 = vcmask 949248   ;;  %vm1466_vm2 = vcmask 261120   ;;  %vm1509_vm3 = vcmask 254976   ;;  %s3627_s1 = inlined_call_operand.vmem [shape: f32[500,800], index: 1, kind: input, shape index: {}]   ;;  %s3628_s0 = inlined_call_operand.vmem [shape: f32[50,500], index: 0, kind: input, shape index: {}]   ;;  %s3629_s2 = inlined_call_operand.vmem [shape: f32[50,1], index: 2, kind: input, shape index: {}]   ;;  %s3630_s3 = inlined_call_operand.vmem [shape: f32[50,800], index: 3, kind: output, shape index: {}]  }
   0x1   :  { %v148_v0 = vld [vmem:[%s3627_s1 + $0x350] sm:$0xff]  ;;  %v147_v2 = vld [vmem:[%s3627_s1 + $0x348] sm:$0xff]  ;;  %v141_v4 = vld [vmem:[%s3627_s1 + $0x318] sm:$0xff] }
   0x2   :  { %v372_v1 = vld [vmem:[%s3627_s1 + $0xa50] sm:$0xff]  ;;  %569 = vmatprep.subr.mxu0 %v148_v0  ;;  %v371_v3 = vld [vmem:[%s3627_s1 + $0xa48] sm:$0xff]  ;;  %v365_v5 = vld [vmem:[%s3627_s1 + $0xa18] sm:$0xff] }
   0x3   :  { %676 = vmatprep.subr.mxu1 %v372_v1  ;;  %570 = vmatpush1.msra.mxu0 %v147_v2  ;;  %v140_v6 = vld [vmem:[%s3627_s1 + $0x310] sm:$0xff]  ;;  %v134_v8 = vld [vmem:[%s3627_s1 + $0x2e0] sm:$0xff]  ;;  %v133_v10 = vld [vmem:[%s3627_s1 + $0x2d8] sm:$0xff] }
   0x4   :  { %677 = vmatpush1.msra.mxu1 %v371_v3  ;;  %v364_v7 = vld [vmem:[%s3627_s1 + $0xa10] sm:$0xff]  ;;  %571 = vmatprep.subr.mxu0 %v141_v4  ;;  %v358_v9 = vld [vmem:[%s3627_s1 + $0x9e0] sm:$0xff]  ;;  %v357_v11 = vld [vmem:[%s3627_s1 + $0x9d8] sm:$0xff] }
   0x5   :  { %678 = vmatprep.subr.mxu1 %v365_v5  ;;  %572 = vmatpush1.msra.mxu0 %v140_v6  ;;  %v127_v12 = vld [vmem:[%s3627_s1 + $0x2a8] sm:$0xff]  ;;  %v126_v14 = vld [vmem:[%s3627_s1 + $0x2a0] sm:$0xff]  ;;  %v120_v16 = vld [vmem:[%s3627_s1 + $0x270] sm:$0xff] }
   0x6   :  { %679 = vmatpush1.msra.mxu1 %v364_v7  ;;  %v351_v13 = vld [vmem:[%s3627_s1 + $0x9a8] sm:$0xff]  ;;  %573 = vmatprep.subr.mxu0 %v134_v8  ;;  %v350_v15 = vld [vmem:[%s3627_s1 + $0x9a0] sm:$0xff]  ;;  %v344_v17 = vld [vmem:[%s3627_s1 + $0x970] sm:$0xff] }
   0x7   :  { %680 = vmatprep.subr.mxu1 %v358_v9  ;;  %574 = vmatpush1.msra.mxu0 %v133_v10  ;;  %v119_v18 = vld [vmem:[%s3627_s1 + $0x268] sm:$0xff]  ;;  %v113_v20 = vld [vmem:[%s3627_s1 + $0x238] sm:$0xff]  ;;  %v112_v22 = vld [vmem:[%s3627_s1 + $0x230] sm:$0xff] }
   0x8   :  { %681 = vmatpush1.msra.mxu1 %v357_v11  ;;  %575 = vmatprep.subr.mxu0 %v127_v12  ;;  %v343_v19 = vld [vmem:[%s3627_s1 + $0x968] sm:$0xff]  ;;  %v337_v21 = vld [vmem:[%s3627_s1 + $0x938] sm:$0xff]  ;;  %v336_v23 = vld [vmem:[%s3627_s1 + $0x930] sm:$0xff] }
   0x9   :  { %682 = vmatprep.subr.mxu1 %v351_v13  ;;  %576 = vmatpush1.msra.mxu0 %v126_v14  ;;  %v106_v24 = vld [vmem:[%s3627_s1 + $0x200] sm:$0xff]  ;;  %v105_v26 = vld [vmem:[%s3627_s1 + $0x1f8] sm:$0xff]  ;;  %v99_v28 = vld [vmem:[%s3627_s1 + $0x1c8] sm:$0xff] }
   0xa   :  { %683 = vmatpush1.msra.mxu1 %v350_v15  ;;  %577 = vmatprep.subr.mxu0 %v120_v16  ;;  %v330_v25 = vld [vmem:[%s3627_s1 + $0x900] sm:$0xff]  ;;  %v329_v27 = vld [vmem:[%s3627_s1 + $0x8f8] sm:$0xff]  ;;  %v323_v29 = vld [vmem:[%s3627_s1 + $0x8c8] sm:$0xff] }
   0xb   :  { %684 = vmatprep.subr.mxu1 %v344_v17  ;;  %578 = vmatpush1.msra.mxu0 %v119_v18  ;;  %v98_v30 = vld [vmem:[%s3627_s1 + $0x1c0] sm:$0xff]  ;;  %v92_v32 = vld [vmem:[%s3627_s1 + $0x190] sm:$0xff]  ;;  %v91_v34 = vld [vmem:[%s3627_s1 + $0x188] sm:$0xff] }
   0xc   :  { %685 = vmatpush1.msra.mxu1 %v343_v19  ;;  %579 = vmatprep.subr.mxu0 %v113_v20  ;;  %v322_v31 = vld [vmem:[%s3627_s1 + $0x8c0] sm:$0xff]  ;;  %v316_v33 = vld [vmem:[%s3627_s1 + $0x890] sm:$0xff]  ;;  %v315_v35 = vld [vmem:[%s3627_s1 + $0x888] sm:$0xff] }
   0xd   :  { %686 = vmatprep.subr.mxu1 %v337_v21  ;;  %580 = vmatpush1.msra.mxu0 %v112_v22  ;;  %v85_v36 = vld [vmem:[%s3627_s1 + $0x158] sm:$0xff]  ;;  %v84_v38 = vld [vmem:[%s3627_s1 + $0x150] sm:$0xff]  ;;  %v78_v40 = vld [vmem:[%s3627_s1 + $0x120] sm:$0xff] }
   0xe   :  { %687 = vmatpush1.msra.mxu1 %v336_v23  ;;  %581 = vmatprep.subr.mxu0 %v106_v24  ;;  %v309_v37 = vld [vmem:[%s3627_s1 + $0x858] sm:$0xff]  ;;  %v308_v39 = vld [vmem:[%s3627_s1 + $0x850] sm:$0xff]  ;;  %v302_v41 = vld [vmem:[%s3627_s1 + $0x820] sm:$0xff] }
   0xf   :  { %688 = vmatprep.subr.mxu1 %v330_v25  ;;  %582 = vmatpush1.msra.mxu0 %v105_v26  ;;  %v77_v42 = vld [vmem:[%s3627_s1 + $0x118] sm:$0xff]  ;;  %v71_v44 = vld [vmem:[%s3627_s1 + $0xe8] sm:$0xff]  ;;  %v70_v46 = vld [vmem:[%s3627_s1 + $0xe0] sm:$0xff] }
  0x10   :  { %689 = vmatpush1.msra.mxu1 %v329_v27  ;;  %583 = vmatprep.subr.mxu0 %v99_v28  ;;  %v301_v43 = vld [vmem:[%s3627_s1 + $0x818] sm:$0xff]  ;;  %v295_v45 = vld [vmem:[%s3627_s1 + $0x7e8] sm:$0xff]  ;;  %v294_v47 = vld [vmem:[%s3627_s1 + $0x7e0] sm:$0xff] }
  0x11   :  { %690 = vmatprep.subr.mxu1 %v323_v29  ;;  %584 = vmatpush1.msra.mxu0 %v98_v30  ;;  %v64_v48 = vld [vmem:[%s3627_s1 + $0xb0] sm:$0xff]  ;;  %v63_v50 = vld [vmem:[%s3627_s1 + $0xa8] sm:$0xff]  ;;  %v57_v52 = vld [vmem:[%s3627_s1 + $0x78] sm:$0xff] }
  0x12   :  { %691 = vmatpush1.msra.mxu1 %v322_v31  ;;  %585 = vmatprep.subr.mxu0 %v92_v32  ;;  %v288_v49 = vld [vmem:[%s3627_s1 + $0x7b0] sm:$0xff]  ;;  %v287_v51 = vld [vmem:[%s3627_s1 + $0x7a8] sm:$0xff]  ;;  %v281_v53 = vld [vmem:[%s3627_s1 + $0x778] sm:$0xff] }
  0x13   :  { %692 = vmatprep.subr.mxu1 %v316_v33  ;;  %586 = vmatpush1.msra.mxu0 %v91_v34  ;;  %v56_v54 = vld [vmem:[%s3627_s1 + $0x70] sm:$0xff]  ;;  %v50_v56 = vld [vmem:[%s3627_s1 + $0x40] sm:$0xff]  ;;  %v49_v58 = vld [vmem:[%s3627_s1 + $0x38] sm:$0xff] }
  0x14   :  { %693 = vmatpush1.msra.mxu1 %v315_v35  ;;  %587 = vmatprep.subr.mxu0 %v85_v36  ;;  %v280_v55 = vld [vmem:[%s3627_s1 + $0x770] sm:$0xff]  ;;  %v274_v57 = vld [vmem:[%s3627_s1 + $0x740] sm:$0xff]  ;;  %v273_v59 = vld [vmem:[%s3627_s1 + $0x738] sm:$0xff] }
  0x15   :  { %694 = vmatprep.subr.mxu1 %v309_v37  ;;  %588 = vmatpush1.msra.mxu0 %v84_v38  ;;  %v43_v60 = vld [vmem:[%s3627_s1 + $0x8] sm:$0xff]  ;;  %v42_v62 = vld [vmem:[%s3627_s1] sm:$0xff]  ;;  %v260_v0 = vld [vmem:[%s3627_s1 + $0x6d0] sm:$0xff] }
  0x16   :  { %695 = vmatpush1.msra.mxu1 %v308_v39  ;;  %589 = vmatprep.subr.mxu0 %v78_v40  ;;  %v267_v61 = vld [vmem:[%s3627_s1 + $0x708] sm:$0xff]  ;;  %v266_v63 = vld [vmem:[%s3627_s1 + $0x700] sm:$0xff]  ;;  %v477_v1 = vld [vmem:[%s3627_s1 + $0xd98] sm:$0xf] }
  0x17   :  { %696 = vmatprep.subr.mxu1 %v302_v41  ;;  %590 = vmatpush1.msra.mxu0 %v77_v42  ;;  %v259_v2 = vld [vmem:[%s3627_s1 + $0x6c8] sm:$0xff]  ;;  %v476_v3 = vld [vmem:[%s3627_s1 + $0xd90] sm:$0xf]  ;;  %v253_v4 = vld [vmem:[%s3627_s1 + $0x698] sm:$0xff] }
  0x18   :  { %697 = vmatpush1.msra.mxu1 %v301_v43  ;;  %591 = vmatprep.subr.mxu0 %v71_v44  ;;  %v470_v5 = vld [vmem:[%s3627_s1 + $0xd60] sm:$0xff]  ;;  %v252_v6 = vld [vmem:[%s3627_s1 + $0x690] sm:$0xff]  ;;  %v469_v7 = vld [vmem:[%s3627_s1 + $0xd58] sm:$0xff] }
  0x19   :  { %698 = vmatprep.subr.mxu1 %v295_v45  ;;  %592 = vmatpush1.msra.mxu0 %v70_v46  ;;  %v246_v8 = vld [vmem:[%s3627_s1 + $0x660] sm:$0xff]  ;;  %v463_v9 = vld [vmem:[%s3627_s1 + $0xd28] sm:$0xff]  ;;  %v245_v10 = vld [vmem:[%s3627_s1 + $0x658] sm:$0xff] }
  0x1a   :  { %699 = vmatpush1.msra.mxu1 %v294_v47  ;;  %593 = vmatprep.subr.mxu0 %v64_v48  ;;  %v462_v11 = vld [vmem:[%s3627_s1 + $0xd20] sm:$0xff]  ;;  %v239_v12 = vld [vmem:[%s3627_s1 + $0x628] sm:$0xff]  ;;  %v456_v13 = vld [vmem:[%s3627_s1 + $0xcf0] sm:$0xff] }
  0x1b   :  { %700 = vmatprep.subr.mxu1 %v288_v49  ;;  %594 = vmatpush1.msra.mxu0 %v63_v50  ;;  %v238_v14 = vld [vmem:[%s3627_s1 + $0x620] sm:$0xff]  ;;  %v455_v15 = vld [vmem:[%s3627_s1 + $0xce8] sm:$0xff]  ;;  %v232_v16 = vld [vmem:[%s3627_s1 + $0x5f0] sm:$0xff] }
  0x1c   :  { %701 = vmatpush1.msra.mxu1 %v287_v51  ;;  %595 = vmatprep.subr.mxu0 %v57_v52  ;;  %v449_v17 = vld [vmem:[%s3627_s1 + $0xcb8] sm:$0xff]  ;;  %v231_v18 = vld [vmem:[%s3627_s1 + $0x5e8] sm:$0xff]  ;;  %v448_v19 = vld [vmem:[%s3627_s1 + $0xcb0] sm:$0xff] }
  0x1d   :  { %702 = vmatprep.subr.mxu1 %v281_v53  ;;  %596 = vmatpush1.msra.mxu0 %v56_v54  ;;  %v225_v20 = vld [vmem:[%s3627_s1 + $0x5b8] sm:$0xff]  ;;  %v442_v21 = vld [vmem:[%s3627_s1 + $0xc80] sm:$0xff]  ;;  %v224_v22 = vld [vmem:[%s3627_s1 + $0x5b0] sm:$0xff] }
  0x1e   :  { %703 = vmatpush1.msra.mxu1 %v280_v55  ;;  %597 = vmatprep.subr.mxu0 %v50_v56  ;;  %v441_v23 = vld [vmem:[%s3627_s1 + $0xc78] sm:$0xff]  ;;  %v218_v24 = vld [vmem:[%s3627_s1 + $0x580] sm:$0xff]  ;;  %v435_v25 = vld [vmem:[%s3627_s1 + $0xc48] sm:$0xff] }
  0x1f   :  { %704 = vmatprep.subr.mxu1 %v274_v57  ;;  %598 = vmatpush1.msra.mxu0 %v49_v58  ;;  %v217_v26 = vld [vmem:[%s3627_s1 + $0x578] sm:$0xff]  ;;  %v434_v27 = vld [vmem:[%s3627_s1 + $0xc40] sm:$0xff]  ;;  %v211_v28 = vld [vmem:[%s3627_s1 + $0x548] sm:$0xff] }
  0x20   :  { %705 = vmatpush1.msra.mxu1 %v273_v59  ;;  %599 = vmatprep.subr.mxu0 %v43_v60  ;;  %v428_v29 = vld [vmem:[%s3627_s1 + $0xc10] sm:$0xff]  ;;  %v210_v30 = vld [vmem:[%s3627_s1 + $0x540] sm:$0xff]  ;;  %v427_v31 = vld [vmem:[%s3627_s1 + $0xc08] sm:$0xff] }
  0x21   :  { %706 = vmatprep.subr.mxu1 %v267_v61  ;;  %600 = vmatpush1.msra.mxu0 %v42_v62  ;;  %v204_v32 = vld [vmem:[%s3627_s1 + $0x510] sm:$0xff]  ;;  %v421_v33 = vld [vmem:[%s3627_s1 + $0xbd8] sm:$0xff]  ;;  %v203_v34 = vld [vmem:[%s3627_s1 + $0x508] sm:$0xff] }
  0x22   :  { %707 = vmatpush1.msra.mxu1 %v266_v63  ;;  %601 = vmatprep.subr.mxu0 %v260_v0  ;;  %v420_v35 = vld [vmem:[%s3627_s1 + $0xbd0] sm:$0xff]  ;;  %v197_v36 = vld [vmem:[%s3627_s1 + $0x4d8] sm:$0xff]  ;;  %v414_v37 = vld [vmem:[%s3627_s1 + $0xba0] sm:$0xff] }
  0x23   :  { %1515 = vmatprep.subr.msk.mxu1 %vm547_vm0, %v477_v1  ;;  %602 = vmatpush2.msra.mxu0 %v259_v2  ;;  %v196_v38 = vld [vmem:[%s3627_s1 + $0x4d0] sm:$0xff]  ;;  %v413_v39 = vld [vmem:[%s3627_s1 + $0xb98] sm:$0xff]  ;;  %v190_v40 = vld [vmem:[%s3627_s1 + $0x4a0] sm:$0xff] }
  0x24   :  { %1516 = vmatpush2.msk.msra.mxu1 %vm547_vm0, %v476_v3  ;;  %603 = vmatprep.subr.mxu0 %v253_v4  ;;  %v407_v41 = vld [vmem:[%s3627_s1 + $0xb68] sm:$0xff]  ;;  %v189_v42 = vld [vmem:[%s3627_s1 + $0x498] sm:$0xff]  ;;  %v406_v43 = vld [vmem:[%s3627_s1 + $0xb60] sm:$0xff] }
  0x25   :  { %712 = vmatprep.subr.mxu1 %v470_v5  ;;  %604 = vmatpush2.msra.mxu0 %v252_v6  ;;  %v183_v44 = vld [vmem:[%s3627_s1 + $0x468] sm:$0xff]  ;;  %v400_v45 = vld [vmem:[%s3627_s1 + $0xb30] sm:$0xff]  ;;  %v182_v46 = vld [vmem:[%s3627_s1 + $0x460] sm:$0xff] }
  0x26   :  { %713 = vmatpush2.msra.mxu1 %v469_v7  ;;  %605 = vmatprep.subr.mxu0 %v246_v8  ;;  %v399_v47 = vld [vmem:[%s3627_s1 + $0xb28] sm:$0xff]  ;;  %v176_v48 = vld [vmem:[%s3627_s1 + $0x430] sm:$0xff]  ;;  %v393_v49 = vld [vmem:[%s3627_s1 + $0xaf8] sm:$0xff] }
  0x27   :  { %714 = vmatprep.subr.mxu1 %v463_v9  ;;  %606 = vmatpush2.msra.mxu0 %v245_v10  ;;  %v175_v50 = vld [vmem:[%s3627_s1 + $0x428] sm:$0xff]  ;;  %v392_v51 = vld [vmem:[%s3627_s1 + $0xaf0] sm:$0xff]  ;;  %v169_v52 = vld [vmem:[%s3627_s1 + $0x3f8] sm:$0xff] }
  0x28   :  { %715 = vmatpush2.msra.mxu1 %v462_v11  ;;  %607 = vmatprep.subr.mxu0 %v239_v12  ;;  %v386_v53 = vld [vmem:[%s3627_s1 + $0xac0] sm:$0xff]  ;;  %v168_v54 = vld [vmem:[%s3627_s1 + $0x3f0] sm:$0xff]  ;;  %v385_v55 = vld [vmem:[%s3627_s1 + $0xab8] sm:$0xff] }
  0x29   :  { %716 = vmatprep.subr.mxu1 %v456_v13  ;;  %608 = vmatpush2.msra.mxu0 %v238_v14  ;;  %v162_v56 = vld [vmem:[%s3627_s1 + $0x3c0] sm:$0xff]  ;;  %v379_v57 = vld [vmem:[%s3627_s1 + $0xa88] sm:$0xff]  ;;  %v161_v58 = vld [vmem:[%s3627_s1 + $0x3b8] sm:$0xff] }
  0x2a   :  { %717 = vmatpush2.msra.mxu1 %v455_v15  ;;  %609 = vmatprep.subr.mxu0 %v232_v16  ;;  %v378_v59 = vld [vmem:[%s3627_s1 + $0xa80] sm:$0xff]  ;;  %v155_v60 = vld [vmem:[%s3627_s1 + $0x388] sm:$0xff]  ;;  %v2037_v61 = vld [vmem:[%s3628_s0 + $0x18] sm:$0xff] }
  0x2b   :  { %718 = vmatprep.subr.mxu1 %v449_v17  ;;  %610 = vmatpush2.msra.mxu0 %v231_v18  ;;  %v150_v62 = vld [vmem:[%s3627_s1 + $0x360] sm:$0xff]  ;;  %v2048_v0 = vld [vmem:[%s3628_s0 + $0x8] sm:$0xff]  ;;  %v2053_v1 = vld [vmem:[%s3628_s0 + $0x10] sm:$0xff] }
  0x2c   :  { %719 = vmatpush2.msra.mxu1 %v448_v19  ;;  %611 = vmatprep.subr.mxu0 %v225_v20  ;;  %v154_v63 = vld [vmem:[%s3627_s1 + $0x380] sm:$0xff]  ;;  %v149_v2 = vld [vmem:[%s3627_s1 + $0x358] sm:$0xff]  ;;  %v143_v4 = vld [vmem:[%s3627_s1 + $0x328] sm:$0xff] }
  0x2d   :  { %720 = vmatprep.subr.mxu1 %v442_v21  ;;  %612 = vmatpush2.msra.mxu0 %v224_v22  ;;  %v2063_v3 = vld [vmem:[%s3628_s0] sm:$0xff]  ;;  %v373_v7 = vld [vmem:[%s3627_s1 + $0xa58] sm:$0xff]  ;;  %v136_v8 = vld [vmem:[%s3627_s1 + $0x2f0] sm:$0xff] }
  0x2e   :  { %721 = vmatpush2.msra.mxu1 %v441_v23  ;;  %613 = vmatprep.subr.mxu0 %v218_v24  ;;  %v374_v5 = vld [vmem:[%s3627_s1 + $0xa60] sm:$0xff]  ;;  %v367_v9 = vld [vmem:[%s3627_s1 + $0xa28] sm:$0xff]  ;;  %v129_v12 = vld [vmem:[%s3627_s1 + $0x2b8] sm:$0xff] }
  0x2f   :  { %722 = vmatprep.subr.mxu1 %v435_v25  ;;  %614 = vmatpush2.msra.mxu0 %v217_v26  ;;  %v142_v6 = vld [vmem:[%s3627_s1 + $0x320] sm:$0xff]  ;;  %v135_v10 = vld [vmem:[%s3627_s1 + $0x2e8] sm:$0xff]  ;;  %v360_v13 = vld [vmem:[%s3627_s1 + $0x9f0] sm:$0xff] }
  0x30   :  { %723 = vmatpush2.msra.mxu1 %v434_v27  ;;  %615 = vmatprep.subr.mxu0 %v211_v28  ;;  %v366_v11 = vld [vmem:[%s3627_s1 + $0xa20] sm:$0xff]  ;;  %v128_v14 = vld [vmem:[%s3627_s1 + $0x2b0] sm:$0xff]  ;;  %v359_v15 = vld [vmem:[%s3627_s1 + $0x9e8] sm:$0xff] }
  0x31   :  { %724 = vmatprep.subr.mxu1 %v428_v29  ;;  %616 = vmatpush2.msra.mxu0 %v210_v30  ;;  %v122_v16 = vld [vmem:[%s3627_s1 + $0x280] sm:$0xff]  ;;  %v353_v17 = vld [vmem:[%s3627_s1 + $0x9b8] sm:$0xff]  ;;  %v352_v19 = vld [vmem:[%s3627_s1 + $0x9b0] sm:$0xff] }
  0x32   :  { %725 = vmatpush2.msra.mxu1 %v427_v31  ;;  %617 = vmatprep.subr.mxu0 %v204_v32  ;;  %v121_v18 = vld [vmem:[%s3627_s1 + $0x278] sm:$0xff]  ;;  %v115_v20 = vld [vmem:[%s3627_s1 + $0x248] sm:$0xff]  ;;  %v346_v21 = vld [vmem:[%s3627_s1 + $0x980] sm:$0xff] }
  0x33   :  { %726 = vmatprep.subr.mxu1 %v421_v33  ;;  %618 = vmatpush2.msra.mxu0 %v203_v34  ;;  %v114_v22 = vld [vmem:[%s3627_s1 + $0x240] sm:$0xff]  ;;  %v345_v23 = vld [vmem:[%s3627_s1 + $0x978] sm:$0xff]  ;;  %v108_v24 = vld [vmem:[%s3627_s1 + $0x210] sm:$0xff] }
  0x34   :  { %727 = vmatpush2.msra.mxu1 %v420_v35  ;;  %619 = vmatprep.subr.mxu0 %v197_v36  ;;  %v339_v25 = vld [vmem:[%s3627_s1 + $0x948] sm:$0xff]  ;;  %v338_v27 = vld [vmem:[%s3627_s1 + $0x940] sm:$0xff]  ;;  %v101_v28 = vld [vmem:[%s3627_s1 + $0x1d8] sm:$0xff] }
  0x35   :  { %728 = vmatprep.subr.mxu1 %v414_v37  ;;  %620 = vmatpush2.msra.mxu0 %v196_v38  ;;  %v107_v26 = vld [vmem:[%s3627_s1 + $0x208] sm:$0xff]  ;;  %v332_v29 = vld [vmem:[%s3627_s1 + $0x910] sm:$0xff]  ;;  %v94_v32 = vld [vmem:[%s3627_s1 + $0x1a0] sm:$0xff] }
  0x36   :  { %729 = vmatpush2.msra.mxu1 %v413_v39  ;;  %621 = vmatprep.subr.mxu0 %v190_v40  ;;  %v100_v30 = vld [vmem:[%s3627_s1 + $0x1d0] sm:$0xff]  ;;  %v331_v31 = vld [vmem:[%s3627_s1 + $0x908] sm:$0xff]  ;;  %v325_v33 = vld [vmem:[%s3627_s1 + $0x8d8] sm:$0xff] }
  0x37   :  { %730 = vmatprep.subr.mxu1 %v407_v41  ;;  %622 = vmatpush2.msra.mxu0 %v189_v42  ;;  %v93_v34 = vld [vmem:[%s3627_s1 + $0x198] sm:$0xff]  ;;  %v324_v35 = vld [vmem:[%s3627_s1 + $0x8d0] sm:$0xff]  ;;  %v87_v36 = vld [vmem:[%s3627_s1 + $0x168] sm:$0xff] }
  0x38   :  { %731 = vmatpush2.msra.mxu1 %v406_v43  ;;  %623 = vmatprep.subr.mxu0 %v183_v44  ;;  %v318_v37 = vld [vmem:[%s3627_s1 + $0x8a0] sm:$0xff]  ;;  %v317_v39 = vld [vmem:[%s3627_s1 + $0x898] sm:$0xff]  ;;  %v80_v40 = vld [vmem:[%s3627_s1 + $0x130] sm:$0xff] }
  0x39   :  { %732 = vmatprep.subr.mxu1 %v400_v45  ;;  %624 = vmatpush2.msra.mxu0 %v182_v46  ;;  %v86_v38 = vld [vmem:[%s3627_s1 + $0x160] sm:$0xff]  ;;  %v311_v41 = vld [vmem:[%s3627_s1 + $0x868] sm:$0xff]  ;;  %v73_v44 = vld [vmem:[%s3627_s1 + $0xf8] sm:$0xff] }
  0x3a   :  { %733 = vmatpush2.msra.mxu1 %v399_v47  ;;  %625 = vmatprep.subr.mxu0 %v176_v48  ;;  %v79_v42 = vld [vmem:[%s3627_s1 + $0x128] sm:$0xff]  ;;  %v310_v43 = vld [vmem:[%s3627_s1 + $0x860] sm:$0xff]  ;;  %v304_v45 = vld [vmem:[%s3627_s1 + $0x830] sm:$0xff] }
  0x3b   :  { %734 = vmatprep.subr.mxu1 %v393_v49  ;;  %626 = vmatpush2.msra.mxu0 %v175_v50  ;;  %v72_v46 = vld [vmem:[%s3627_s1 + $0xf0] sm:$0xff]  ;;  %v303_v47 = vld [vmem:[%s3627_s1 + $0x828] sm:$0xff]  ;;  %v66_v48 = vld [vmem:[%s3627_s1 + $0xc0] sm:$0xff] }
  0x3c   :  { %735 = vmatpush2.msra.mxu1 %v392_v51  ;;  %627 = vmatprep.subr.mxu0 %v169_v52  ;;  %v297_v49 = vld [vmem:[%s3627_s1 + $0x7f8] sm:$0xff]  ;;  %v296_v51 = vld [vmem:[%s3627_s1 + $0x7f0] sm:$0xff]  ;;  %v59_v52 = vld [vmem:[%s3627_s1 + $0x88] sm:$0xff] }
  0x3d   :  { %736 = vmatprep.subr.mxu1 %v386_v53  ;;  %628 = vmatpush2.msra.mxu0 %v168_v54  ;;  %v65_v50 = vld [vmem:[%s3627_s1 + $0xb8] sm:$0xff]  ;;  %v290_v53 = vld [vmem:[%s3627_s1 + $0x7c0] sm:$0xff] }
  0x3e   :  { %737 = vmatpush2.msra.mxu1 %v385_v55  ;;  %629 = vmatprep.subr.mxu0 %v162_v56  ;;  %v58_v54 = vld [vmem:[%s3627_s1 + $0x80] sm:$0xff]  ;;  %v289_v55 = vld [vmem:[%s3627_s1 + $0x7b8] sm:$0xff]  ;;  %v52_v56 = vld [vmem:[%s3627_s1 + $0x50] sm:$0xff] }
  0x3f   :  { %738 = vmatprep.subr.mxu1 %v379_v57  ;;  %630 = vmatpush2.msra.mxu0 %v161_v58  ;;  %v283_v57 = vld [vmem:[%s3627_s1 + $0x788] sm:$0xff] }
  0x40   :  { %739 = vmatpush2.msra.mxu1 %v378_v59  ;;  %631 = vmatprep.subr.mxu0 %v155_v60  ;;  %v51_v58 = vld [vmem:[%s3627_s1 + $0x48] sm:$0xff]  ;;  %v282_v59 = vld [vmem:[%s3627_s1 + $0x780] sm:$0xff]  ;;  %v45_v60 = vld [vmem:[%s3627_s1 + $0x18] sm:$0xff] }
  0x41   :  { %1517 = vmatprep.mubr.msk.f32.mxu1 %vm525_vm1, %v2037_v61  ;;  %783 = vmatprep.subr.mxu1 %v150_v62  ;;  %v276_v62 = vld [vmem:[%s3627_s1 + $0x750] sm:$0xff] }
  0x42   :  { %632 = vmatpush2.msra.mxu0 %v154_v63  ;;  %633 = vmatprep.mubr.f32.mxu0 %v2048_v0  ;;  %v44_v63 = vld [vmem:[%s3627_s1 + $0x10] sm:$0xff] }
  0x43   :  { %741 = vmatmul.mubr.f32.vlgmr.msra.gmra.mxu1 %v2053_v1  ;;  %634 = vmatmul.mubr.f32.vlgmr.msra.gmra.mxu0 %v2063_v3 }
  0x44   :  { %784 = vmatpush1.msra.mxu1 %v149_v2  ;;  %890 = vmatprep.subr.mxu0 %v374_v5  ;;  %v275_v2 = vld [vmem:[%s3627_s1 + $0x748] sm:$0xff]  ;;  %v269_v5 = vld [vmem:[%s3627_s1 + $0x718] sm:$0xff] }
  0x45   :  { %785 = vmatprep.subr.mxu1 %v143_v4  ;;  %891 = vmatpush1.msra.mxu0 %v373_v7  ;;  %v262_v4 = vld [vmem:[%s3627_s1 + $0x6e0] sm:$0xff]  ;;  %v268_v7 = vld [vmem:[%s3627_s1 + $0x710] sm:$0xff] }
  0x46   :  { %786 = vmatpush1.msra.mxu1 %v142_v6  ;;  %892 = vmatprep.subr.mxu0 %v367_v9  ;;  %v261_v6 = vld [vmem:[%s3627_s1 + $0x6d8] sm:$0xff]  ;;  %v479_v9 = vld [vmem:[%s3627_s1 + $0xda8] sm:$0xf] }
  0x47   :  { %787 = vmatprep.subr.mxu1 %v136_v8  ;;  %893 = vmatpush1.msra.mxu0 %v366_v11  ;;  %v255_v8 = vld [vmem:[%s3627_s1 + $0x6a8] sm:$0xff]  ;;  %v478_v11 = vld [vmem:[%s3627_s1 + $0xda0] sm:$0xf] }
  0x48   :  { %788 = vmatpush1.msra.mxu1 %v135_v10  ;;  %894 = vmatprep.subr.mxu0 %v360_v13  ;;  %v254_v10 = vld [vmem:[%s3627_s1 + $0x6a0] sm:$0xff]  ;;  %v472_v13 = vld [vmem:[%s3627_s1 + $0xd70] sm:$0xff] }
  0x49   :  { %789 = vmatprep.subr.mxu1 %v129_v12  ;;  %895 = vmatpush1.msra.mxu0 %v359_v15  ;;  %v248_v12 = vld [vmem:[%s3627_s1 + $0x670] sm:$0xff]  ;;  %v471_v15 = vld [vmem:[%s3627_s1 + $0xd68] sm:$0xff] }
  0x4a   :  { %790 = vmatpush1.msra.mxu1 %v128_v14  ;;  %896 = vmatprep.subr.mxu0 %v353_v17  ;;  %v247_v14 = vld [vmem:[%s3627_s1 + $0x668] sm:$0xff]  ;;  %v241_v17 = vld [vmem:[%s3627_s1 + $0x638] sm:$0xff] }
  0x4b   :  { %791 = vmatprep.subr.mxu1 %v122_v16  ;;  %897 = vmatpush1.msra.mxu0 %v352_v19  ;;  %v2289_v16 = vld [vmem:[%s3628_s0 + $0x28] sm:$0xff]  ;;  %v2300_v19 = vld [vmem:[%s3628_s0 + $0x20] sm:$0xff] }
  0x4c   :  { %792 = vmatpush1.msra.mxu1 %v121_v18  ;;  %898 = vmatprep.subr.mxu0 %v346_v21  ;;  %v465_v18 = vld [vmem:[%s3627_s1 + $0xd38] sm:$0xff]  ;;  %v240_v21 = vld [vmem:[%s3627_s1 + $0x630] sm:$0xff] }
  0x4d   :  { %793 = vmatprep.subr.mxu1 %v115_v20  ;;  %899 = vmatpush1.msra.mxu0 %v345_v23  ;;  %v2305_v20 = vld [vmem:[%s3628_s0 + $0x38] sm:$0xff]  ;;  %v2317_v23 = vld [vmem:[%s3628_s0 + $0x30] sm:$0xff] }
  0x4e   :  { %794 = vmatpush1.msra.mxu1 %v114_v22  ;;  %900 = vmatprep.subr.mxu0 %v339_v25  ;;  %v464_v22 = vld [vmem:[%s3627_s1 + $0xd30] sm:$0xff]  ;;  %v458_v25 = vld [vmem:[%s3627_s1 + $0xd00] sm:$0xff] }
  0x4f   :  { %795 = vmatprep.subr.mxu1 %v108_v24  ;;  %901 = vmatpush1.msra.mxu0 %v338_v27  ;;  %v234_v24 = vld [vmem:[%s3627_s1 + $0x600] sm:$0xff]  ;;  %v457_v27 = vld [vmem:[%s3627_s1 + $0xcf8] sm:$0xff] }
  0x50   :  { %796 = vmatpush1.msra.mxu1 %v107_v26  ;;  %902 = vmatprep.subr.mxu0 %v332_v29  ;;  %v233_v26 = vld [vmem:[%s3627_s1 + $0x5f8] sm:$0xff]  ;;  %v227_v29 = vld [vmem:[%s3627_s1 + $0x5c8] sm:$0xff] }
  0x51   :  { %797 = vmatprep.subr.mxu1 %v101_v28  ;;  %903 = vmatpush1.msra.mxu0 %v331_v31  ;;  %v2338_v28 = vld [vmem:[%s3628_s0 + $0x48] sm:$0xff]  ;;  %v2349_v31 = vld [vmem:[%s3628_s0 + $0x40] sm:$0xff] }
  0x52   :  { %798 = vmatpush1.msra.mxu1 %v100_v30  ;;  %904 = vmatprep.subr.mxu0 %v325_v33  ;;  %v451_v30 = vld [vmem:[%s3627_s1 + $0xcc8] sm:$0xff]  ;;  %v226_v33 = vld [vmem:[%s3627_s1 + $0x5c0] sm:$0xff] }
  0x53   :  { %799 = vmatprep.subr.mxu1 %v94_v32  ;;  %905 = vmatpush1.msra.mxu0 %v324_v35  ;;  %v2354_v32 = vld [vmem:[%s3628_s0 + $0x58] sm:$0xff]  ;;  %v2366_v35 = vld [vmem:[%s3628_s0 + $0x50] sm:$0xff] }
  0x54   :  { %800 = vmatpush1.msra.mxu1 %v93_v34  ;;  %906 = vmatprep.subr.mxu0 %v318_v37  ;;  %v450_v34 = vld [vmem:[%s3627_s1 + $0xcc0] sm:$0xff]  ;;  %v444_v37 = vld [vmem:[%s3627_s1 + $0xc90] sm:$0xff] }
  0x55   :  { %801 = vmatprep.subr.mxu1 %v87_v36  ;;  %907 = vmatpush1.msra.mxu0 %v317_v39  ;;  %v220_v36 = vld [vmem:[%s3627_s1 + $0x590] sm:$0xff]  ;;  %v443_v39 = vld [vmem:[%s3627_s1 + $0xc88] sm:$0xff] }
  0x56   :  { %802 = vmatpush1.msra.mxu1 %v86_v38  ;;  %908 = vmatprep.subr.mxu0 %v311_v41  ;;  %v219_v38 = vld [vmem:[%s3627_s1 + $0x588] sm:$0xff]  ;;  %v213_v41 = vld [vmem:[%s3627_s1 + $0x558] sm:$0xff] }
  0x57   :  { %803 = vmatprep.subr.mxu1 %v80_v40  ;;  %909 = vmatpush1.msra.mxu0 %v310_v43  ;;  %v2387_v40 = vld [vmem:[%s3628_s0 + $0x68] sm:$0xff]  ;;  %v2398_v43 = vld [vmem:[%s3628_s0 + $0x60] sm:$0xff] }
  0x58   :  { %804 = vmatpush1.msra.mxu1 %v79_v42  ;;  %910 = vmatprep.subr.mxu0 %v304_v45  ;;  %v437_v42 = vld [vmem:[%s3627_s1 + $0xc58] sm:$0xff]  ;;  %v212_v45 = vld [vmem:[%s3627_s1 + $0x550] sm:$0xff] }
  0x59   :  { %805 = vmatprep.subr.mxu1 %v73_v44  ;;  %911 = vmatpush1.msra.mxu0 %v303_v47  ;;  %v2403_v44 = vld [vmem:[%s3628_s0 + $0x78] sm:$0xff]  ;;  %v2415_v47 = vld [vmem:[%s3628_s0 + $0x70] sm:$0xff] }
  0x5a   :  { %806 = vmatpush1.msra.mxu1 %v72_v46  ;;  %912 = vmatprep.subr.mxu0 %v297_v49  ;;  %v436_v46 = vld [vmem:[%s3627_s1 + $0xc50] sm:$0xff]  ;;  %v430_v49 = vld [vmem:[%s3627_s1 + $0xc20] sm:$0xff] }
  0x5b   :  { %807 = vmatprep.subr.mxu1 %v66_v48  ;;  %913 = vmatpush1.msra.mxu0 %v296_v51  ;;  %v206_v48 = vld [vmem:[%s3627_s1 + $0x520] sm:$0xff]  ;;  %v429_v51 = vld [vmem:[%s3627_s1 + $0xc18] sm:$0xff] }
  0x5c   :  { %808 = vmatpush1.msra.mxu1 %v65_v50  ;;  %914 = vmatprep.subr.mxu0 %v290_v53  ;;  %v205_v50 = vld [vmem:[%s3627_s1 + $0x518] sm:$0xff]  ;;  %v199_v53 = vld [vmem:[%s3627_s1 + $0x4e8] sm:$0xff] }
  0x5d   :  { %809 = vmatprep.subr.mxu1 %v59_v52  ;;  %915 = vmatpush1.msra.mxu0 %v289_v55  ;;  %v2436_v52 = vld [vmem:[%s3628_s0 + $0x88] sm:$0xff]  ;;  %v2447_v55 = vld [vmem:[%s3628_s0 + $0x80] sm:$0xff] }
  0x5e   :  { %810 = vmatpush1.msra.mxu1 %v58_v54  ;;  %916 = vmatprep.subr.mxu0 %v283_v57  ;;  %v423_v54 = vld [vmem:[%s3627_s1 + $0xbe8] sm:$0xff]  ;;  %v198_v57 = vld [vmem:[%s3627_s1 + $0x4e0] sm:$0xff] }
  0x5f   :  { %811 = vmatprep.subr.mxu1 %v52_v56  ;;  %917 = vmatpush1.msra.mxu0 %v282_v59  ;;  %v2452_v56 = vld [vmem:[%s3628_s0 + $0x98] sm:$0xff]  ;;  %v2464_v59 = vld [vmem:[%s3628_s0 + $0x90] sm:$0xff] }
  0x60   :  { %812 = vmatpush1.msra.mxu1 %v51_v58  ;;  %918 = vmatprep.subr.mxu0 %v276_v62  ;;  %v422_v58 = vld [vmem:[%s3627_s1 + $0xbe0] sm:$0xff]  ;;  %v416_v62 = vld [vmem:[%s3627_s1 + $0xbb0] sm:$0xff] }
  0x61   :  { %813 = vmatprep.subr.mxu1 %v45_v60  ;;  %919 = vmatpush1.msra.mxu0 %v275_v2  ;;  %v192_v60 = vld [vmem:[%s3627_s1 + $0x4b0] sm:$0xff]  ;;  %v415_v2 = vld [vmem:[%s3627_s1 + $0xba8] sm:$0xff] }
  0x62   :  { %814 = vmatpush1.msra.mxu1 %v44_v63  ;;  %920 = vmatprep.subr.mxu0 %v269_v5  ;;  %v191_v63 = vld [vmem:[%s3627_s1 + $0x4a8] sm:$0xff]  ;;  %v185_v5 = vld [vmem:[%s3627_s1 + $0x478] sm:$0xff] }
  0x63   :  { %815 = vmatprep.subr.mxu1 %v262_v4  ;;  %921 = vmatpush1.msra.mxu0 %v268_v7  ;;  %v2485_v4 = vld [vmem:[%s3628_s0 + $0xa8] sm:$0xff]  ;;  %v2496_v7 = vld [vmem:[%s3628_s0 + $0xa0] sm:$0xff] }
  0x64   :  { %816 = vmatpush2.msra.mxu1 %v261_v6  ;;  %1524 = vmatprep.subr.msk.mxu0 %vm547_vm0, %v479_v9  ;;  %v409_v6 = vld [vmem:[%s3627_s1 + $0xb78] sm:$0xff]  ;;  %v184_v9 = vld [vmem:[%s3627_s1 + $0x470] sm:$0xff] }
  0x65   :  { %817 = vmatprep.subr.mxu1 %v255_v8  ;;  %1525 = vmatpush2.msk.msra.mxu0 %vm547_vm0, %v478_v11  ;;  %v2501_v8 = vld [vmem:[%s3628_s0 + $0xb8] sm:$0xff]  ;;  %v2513_v11 = vld [vmem:[%s3628_s0 + $0xb0] sm:$0xff] }
  0x66   :  { %818 = vmatpush2.msra.mxu1 %v254_v10  ;;  %926 = vmatprep.subr.mxu0 %v472_v13  ;;  %v408_v10 = vld [vmem:[%s3627_s1 + $0xb70] sm:$0xff]  ;;  %v402_v13 = vld [vmem:[%s3627_s1 + $0xb40] sm:$0xff] }
  0x67   :  { %819 = vmatprep.subr.mxu1 %v248_v12  ;;  %927 = vmatpush2.msra.mxu0 %v471_v15  ;;  %v178_v12 = vld [vmem:[%s3627_s1 + $0x440] sm:$0xff]  ;;  %v401_v15 = vld [vmem:[%s3627_s1 + $0xb38] sm:$0xff] }
  0x68   :  { %820 = vmatpush2.msra.mxu1 %v247_v14  ;;  %639 = vmatprep.mubr.f32.mxu0 %v2289_v16  ;;  %v177_v14 = vld [vmem:[%s3627_s1 + $0x438] sm:$0xff] }
  0x69   :  { %821 = vmatprep.subr.mxu1 %v241_v17  ;;  %928 = vmatprep.subr.mxu0 %v465_v18  ;;  %v2534_v17 = vld [vmem:[%s3628_s0 + $0xc8] sm:$0x3] }
  0x6a   :  { %640 = vmatmul.mubr.f32.gmra.mxu0 %v2300_v19  ;;  %1518 = vmatprep.mubr.msk.f32.mxu1 %vm525_vm1, %v2305_v20  ;;  %v171_v18 = vld [vmem:[%s3627_s1 + $0x408] sm:$0xff] }
  0x6b   :  { %822 = vmatpush2.msra.mxu1 %v240_v21  ;;  %929 = vmatpush2.msra.mxu0 %v464_v22  ;;  %v395_v21 = vld [vmem:[%s3627_s1 + $0xb08] sm:$0xff]  ;;  %v2545_v22 = vld [vmem:[%s3628_s0 + $0xc0] sm:$0x3] }
  0x6c   :  { %747 = vmatmul.mubr.f32.gmra.mxu1 %v2317_v23  ;;  %823 = vmatprep.subr.mxu1 %v234_v24  ;;  %v2550_v24 = vld [vmem:[%s3628_s0 + $0xd8] sm:$0x3] }
  0x6d   :  { %930 = vmatprep.subr.mxu0 %v458_v25  ;;  %824 = vmatpush2.msra.mxu1 %v233_v26  ;;  %v170_v25 = vld [vmem:[%s3627_s1 + $0x400] sm:$0xff] }
  0x6e   :  { %931 = vmatpush2.msra.mxu0 %v457_v27  ;;  %645 = vmatprep.mubr.f32.mxu0 %v2338_v28  ;;  %v394_v26 = vld [vmem:[%s3627_s1 + $0xb00] sm:$0xff]  ;;  %v2562_v27 = vld [vmem:[%s3628_s0 + $0xd0] sm:$0x3] }
  0x6f   :  { %825 = vmatprep.subr.mxu1 %v227_v29  ;;  %932 = vmatprep.subr.mxu0 %v451_v30  ;;  %v164_v29 = vld [vmem:[%s3627_s1 + $0x3d0] sm:$0xff] }
  0x70   :  { %646 = vmatmul.mubr.f32.gmra.mxu0 %v2349_v31  ;;  %1519 = vmatprep.mubr.msk.f32.mxu1 %vm525_vm1, %v2354_v32  ;;  %v388_v30 = vld [vmem:[%s3627_s1 + $0xad0] sm:$0xff] }
  0x71   :  { %826 = vmatpush2.msra.mxu1 %v226_v33  ;;  %933 = vmatpush2.msra.mxu0 %v450_v34  ;;  %v163_v33 = vld [vmem:[%s3627_s1 + $0x3c8] sm:$0xff] }
  0x72   :  { %753 = vmatmul.mubr.f32.gmra.mxu1 %v2366_v35  ;;  %827 = vmatprep.subr.mxu1 %v220_v36  ;;  %v387_v34 = vld [vmem:[%s3627_s1 + $0xac8] sm:$0xff]  ;;  %v157_v36 = vld [vmem:[%s3627_s1 + $0x398] sm:$0xff] }
  0x73   :  { %934 = vmatprep.subr.mxu0 %v444_v37  ;;  %828 = vmatpush2.msra.mxu1 %v219_v38  ;;  %v381_v37 = vld [vmem:[%s3627_s1 + $0xa98] sm:$0xff]  ;;  %v156_v38 = vld [vmem:[%s3627_s1 + $0x390] sm:$0xff] }
  0x74   :  { %935 = vmatpush2.msra.mxu0 %v443_v39  ;;  %651 = vmatprep.mubr.f32.mxu0 %v2387_v40  ;;  %v380_v39 = vld [vmem:[%s3627_s1 + $0xa90] sm:$0xff] }
  0x75   :  { %829 = vmatprep.subr.mxu1 %v213_v41  ;;  %936 = vmatprep.subr.mxu0 %v437_v42  ;;  %v152_v41 = vld [vmem:[%s3627_s1 + $0x370] sm:$0xff] }
  0x76   :  { %652 = vmatmul.mubr.f32.gmra.mxu0 %v2398_v43  ;;  %1520 = vmatprep.mubr.msk.f32.mxu1 %vm525_vm1, %v2403_v44  ;;  %v376_v42 = vld [vmem:[%s3627_s1 + $0xa70] sm:$0xff] }
  0x77   :  { %830 = vmatpush2.msra.mxu1 %v212_v45  ;;  %937 = vmatpush2.msra.mxu0 %v436_v46  ;;  %v151_v45 = vld [vmem:[%s3627_s1 + $0x368] sm:$0xff]  ;;  %v145_v46 = vld [vmem:[%s3627_s1 + $0x338] sm:$0xff] }
  0x78   :  { %759 = vmatmul.mubr.f32.gmra.mxu1 %v2415_v47  ;;  %831 = vmatprep.subr.mxu1 %v206_v48  ;;  %v144_v48 = vld [vmem:[%s3627_s1 + $0x330] sm:$0xff] }
  0x79   :  { %938 = vmatprep.subr.mxu0 %v430_v49  ;;  %832 = vmatpush2.msra.mxu1 %v205_v50  ;;  %v137_v49 = vld [vmem:[%s3627_s1 + $0x2f8] sm:$0xff]  ;;  %v483_v50 = vld [vmem:[%s3629_s2] sm:$0xff] }
  0x7a   :  { %939 = vmatpush2.msra.mxu0 %v429_v51  ;;  %657 = vmatprep.mubr.f32.mxu0 %v2436_v52  ;;  %v131_v51 = vld [vmem:[%s3627_s1 + $0x2c8] sm:$0xff] }
  0x7b   :  { %833 = vmatprep.subr.mxu1 %v199_v53  ;;  %940 = vmatprep.subr.mxu0 %v423_v54  ;;  %v1635_v53 = vmov 0   ;;  %v362_v54 = vld [vmem:[%s3627_s1 + $0xa00] sm:$0xff] }
  0x7c   :  { %658 = vmatmul.mubr.f32.gmra.mxu0 %v2447_v55  ;;  %1521 = vmatprep.mubr.msk.f32.mxu1 %vm525_vm1, %v2452_v56 }
  0x7d   :  { %834 = vmatpush2.msra.mxu1 %v198_v57  ;;  %941 = vmatpush2.msra.mxu0 %v422_v58  ;;  %v130_v57 = vld [vmem:[%s3627_s1 + $0x2c0] sm:$0xff]  ;;  %v361_v58 = vld [vmem:[%s3627_s1 + $0x9f8] sm:$0xff] }
  0x7e   :  { %765 = vmatmul.mubr.f32.gmra.mxu1 %v2464_v59  ;;  %835 = vmatprep.subr.mxu1 %v192_v60  ;;  %v124_v60 = vld [vmem:[%s3627_s1 + $0x290] sm:$0xff] }
  0x7f   :  { %942 = vmatprep.subr.mxu0 %v416_v62  ;;  %836 = vmatpush2.msra.mxu1 %v191_v63  ;;  %v355_v62 = vld [vmem:[%s3627_s1 + $0x9c8] sm:$0xff] }
  0x80   :  { %943 = vmatpush2.msra.mxu0 %v415_v2  ;;  %663 = vmatprep.mubr.f32.mxu0 %v2485_v4  ;;  %v123_v63 = vld [vmem:[%s3627_s1 + $0x288] sm:$0xff]  ;;  %v354_v2 = vld [vmem:[%s3627_s1 + $0x9c0] sm:$0xff] }
  0x81   :  { %837 = vmatprep.subr.mxu1 %v185_v5  ;;  %944 = vmatprep.subr.mxu0 %v409_v6  ;;  %v117_v5 = vld [vmem:[%s3627_s1 + $0x258] sm:$0xff]  ;;  %v348_v6 = vld [vmem:[%s3627_s1 + $0x990] sm:$0xff] }
  0x82   :  { %664 = vmatmul.mubr.f32.gmra.mxu0 %v2496_v7  ;;  %1522 = vmatprep.mubr.msk.f32.mxu1 %vm525_vm1, %v2501_v8 }
  0x83   :  { %838 = vmatpush2.msra.mxu1 %v184_v9  ;;  %945 = vmatpush2.msra.mxu0 %v408_v10  ;;  %v116_v9 = vld [vmem:[%s3627_s1 + $0x250] sm:$0xff]  ;;  %v347_v10 = vld [vmem:[%s3627_s1 + $0x988] sm:$0xff] }
  0x84   :  { %771 = vmatmul.mubr.f32.gmra.mxu1 %v2513_v11  ;;  %839 = vmatprep.subr.mxu1 %v178_v12  ;;  %v110_v12 = vld [vmem:[%s3627_s1 + $0x220] sm:$0xff] }
  0x85   :  { %946 = vmatprep.subr.mxu0 %v402_v13  ;;  %840 = vmatpush2.msra.mxu1 %v177_v14  ;;  %v341_v13 = vld [vmem:[%s3627_s1 + $0x958] sm:$0xff] }
  0x86   :  { %947 = vmatpush2.msra.mxu0 %v401_v15  ;;  %669 = vmatprep.mubr.f32.mxu0 %v2534_v17  ;;  %v109_v14 = vld [vmem:[%s3627_s1 + $0x218] sm:$0xff]  ;;  %v340_v15 = vld [vmem:[%s3627_s1 + $0x950] sm:$0xff] }
  0x87   :  { %841 = vmatprep.subr.mxu1 %v171_v18  ;;  %948 = vmatprep.subr.mxu0 %v395_v21  ;;  %v103_v18 = vld [vmem:[%s3627_s1 + $0x1e8] sm:$0xff]  ;;  %v334_v21 = vld [vmem:[%s3627_s1 + $0x920] sm:$0xff] }
  0x88   :  { %670 = vmatmul.mubr.f32.gmra.mxu0 %v2545_v22  ;;  %1523 = vmatprep.mubr.msk.f32.mxu1 %vm525_vm1, %v2550_v24 }
  0x89   :  { %842 = vmatpush2.msra.mxu1 %v170_v25  ;;  %949 = vmatpush2.msra.mxu0 %v394_v26  ;;  %v102_v25 = vld [vmem:[%s3627_s1 + $0x1e0] sm:$0xff]  ;;  %v333_v26 = vld [vmem:[%s3627_s1 + $0x918] sm:$0xff] }
  0x8a   :  { %777 = vmatmul.mubr.f32.gmra.mxu1 %v2562_v27  ;;  %843 = vmatprep.subr.mxu1 %v164_v29  ;;  %v96_v29 = vld [vmem:[%s3627_s1 + $0x1b0] sm:$0xff] }
  0x8b   :  { %950 = vmatprep.subr.mxu0 %v388_v30  ;;  %844 = vmatpush2.msra.mxu1 %v163_v33  ;;  %v327_v30 = vld [vmem:[%s3627_s1 + $0x8e8] sm:$0xff] }
  0x8c   :  { %951 = vmatpush2.msra.mxu0 %v387_v34  ;;  %845 = vmatprep.subr.mxu1 %v157_v36  ;;  %v95_v33 = vld [vmem:[%s3627_s1 + $0x1a8] sm:$0xff]  ;;  %v326_v34 = vld [vmem:[%s3627_s1 + $0x8e0] sm:$0xff]  ;;  %v89_v36 = vld [vmem:[%s3627_s1 + $0x178] sm:$0xff] }
  0x8d   :  { %952 = vmatprep.subr.mxu0 %v381_v37  ;;  %846 = vmatpush2.msra.mxu1 %v156_v38  ;;  %v320_v37 = vld [vmem:[%s3627_s1 + $0x8b0] sm:$0xff] }
  0x8e   :  { %847 = vmatprep.mubr.f32.mxu1 %v2048_v0  ;;  %953 = vmatpush2.msra.mxu0 %v380_v39  ;;  %v375_v0 = vld [vmem:[%s3627_s1 + $0xa68] sm:$0xff]  ;;  %v88_v38 = vld [vmem:[%s3627_s1 + $0x170] sm:$0xff] }
  0x8f   :  { %1526 = vmatprep.mubr.msk.f32.mxu0 %vm525_vm1, %v2037_v61  ;;  %848 = vmatmul.mubr.f32.vlgmr.msra.gmra.mxu1 %v2063_v3  ;;  %v369_v61 = vld [vmem:[%s3627_s1 + $0xa38] sm:$0xff]  ;;  %v138_v3 = vld [vmem:[%s3627_s1 + $0x300] sm:$0xff]  ;;  %v319_v39 = vld [vmem:[%s3627_s1 + $0x8a8] sm:$0xff] }
  0x90   :  { %955 = vmatmul.mubr.f32.vlgmr.msra.gmra.mxu0 %v2053_v1  ;;  %997 = vmatprep.subr.mxu0 %v152_v41  ;;  %v368_v1 = vld [vmem:[%s3627_s1 + $0xa30] sm:$0xff]  ;;  %v82_v41 = vld [vmem:[%s3627_s1 + $0x140] sm:$0xff] }
  0x91   :  { %1104 = vmatprep.subr.mxu1 %v376_v42  ;;  %998 = vmatpush1.msra.mxu0 %v151_v45  ;;  %v313_v42 = vld [vmem:[%s3627_s1 + $0x878] sm:$0xff] }
  0x92   :  { %1105 = vmatpush1.msra.mxu1 %v375_v0  ;;  %999 = vmatprep.subr.mxu0 %v145_v46  ;;  %v81_v45 = vld [vmem:[%s3627_s1 + $0x138] sm:$0xff]  ;;  %v312_v0 = vld [vmem:[%s3627_s1 + $0x870] sm:$0xff]  ;;  %v75_v46 = vld [vmem:[%s3627_s1 + $0x108] sm:$0xff] }
  0x93   :  { %1106 = vmatprep.subr.mxu1 %v369_v61  ;;  %1000 = vmatpush1.msra.mxu0 %v144_v48  ;;  %v306_v61 = vld [vmem:[%s3627_s1 + $0x840] sm:$0xff] }
  0x94   :  { %1605 = vset.pattern.permute.xlu0 %v1635_v53  ;;  %1001 = vmatprep.subr.mxu0 %v138_v3  ;;  %v74_v48 = vld [vmem:[%s3627_s1 + $0x100] sm:$0xff]  ;;  %v305_v3 = vld [vmem:[%s3627_s1 + $0x838] sm:$0xff] }
  0x95   :  { %1107 = vmatpush1.msra.mxu1 %v368_v1  ;;  %1002 = vmatpush1.msra.mxu0 %v137_v49  ;;  %v68_v1 = vld [vmem:[%s3627_s1 + $0xd0] sm:$0xff]  ;;  %v299_v49 = vld [vmem:[%s3627_s1 + $0x808] sm:$0xff] }
  0x96   :  { %492 = vperm.xlu0 %1605, %v483_v50   ;;  %1003 = vmatprep.subr.mxu0 %v131_v51  ;;  %v67_v50 = vld [vmem:[%s3627_s1 + $0xc8] sm:$0xff]  ;;  %v298_v51 = vld [vmem:[%s3627_s1 + $0x800] sm:$0xff] }
  0x97   :  { %1108 = vmatprep.subr.mxu1 %v362_v54  ;;  %1004 = vmatpush1.msra.mxu0 %v130_v57  ;;  %v61_v54 = vld [vmem:[%s3627_s1 + $0x98] sm:$0xff]  ;;  %v292_v57 = vld [vmem:[%s3627_s1 + $0x7d0] sm:$0xff] }
  0x98   :  { %1109 = vmatpush1.msra.mxu1 %v361_v58  ;;  %1005 = vmatprep.subr.mxu0 %v124_v60  ;;  %v60_v58 = vld [vmem:[%s3627_s1 + $0x90] sm:$0xff]  ;;  %v291_v60 = vld [vmem:[%s3627_s1 + $0x7c8] sm:$0xff] }
  0x99   :  { %1110 = vmatprep.subr.mxu1 %v355_v62  ;;  %1006 = vmatpush1.msra.mxu0 %v123_v63  ;;  %v54_v62 = vld [vmem:[%s3627_s1 + $0x60] sm:$0xff]  ;;  %v285_v63 = vld [vmem:[%s3627_s1 + $0x798] sm:$0xff] }
  0x9a   :  { %1111 = vmatpush1.msra.mxu1 %v354_v2  ;;  %1007 = vmatprep.subr.mxu0 %v117_v5  ;;  %v53_v2 = vld [vmem:[%s3627_s1 + $0x58] sm:$0xff]  ;;  %v284_v5 = vld [vmem:[%s3627_s1 + $0x790] sm:$0xff] }
  0x9b   :  { %1112 = vmatprep.subr.mxu1 %v348_v6  ;;  %1008 = vmatpush1.msra.mxu0 %v116_v9  ;;  %v47_v6 = vld [vmem:[%s3627_s1 + $0x28] sm:$0xff]  ;;  %v278_v9 = vld [vmem:[%s3627_s1 + $0x760] sm:$0xff] }
  0x9c   :  { %1113 = vmatpush1.msra.mxu1 %v347_v10  ;;  %1009 = vmatprep.subr.mxu0 %v110_v12  ;;  %v46_v10 = vld [vmem:[%s3627_s1 + $0x20] sm:$0xff]  ;;  %v277_v12 = vld [vmem:[%s3627_s1 + $0x758] sm:$0xff] }
  0x9d   :  { %1114 = vmatprep.subr.mxu1 %v341_v13  ;;  %1010 = vmatpush1.msra.mxu0 %v109_v14  ;;  %v264_v13 = vld [vmem:[%s3627_s1 + $0x6f0] sm:$0xff]  ;;  %v271_v14 = vld [vmem:[%s3627_s1 + $0x728] sm:$0xff] }
  0x9e   :  { %1115 = vmatpush1.msra.mxu1 %v340_v15  ;;  %1011 = vmatprep.subr.mxu0 %v103_v18  ;;  %v263_v15 = vld [vmem:[%s3627_s1 + $0x6e8] sm:$0xff]  ;;  %v270_v18 = vld [vmem:[%s3627_s1 + $0x720] sm:$0xff] }
  0x9f   :  { %1116 = vmatprep.subr.mxu1 %v334_v21  ;;  %1012 = vmatpush1.msra.mxu0 %v102_v25  ;;  %v257_v21 = vld [vmem:[%s3627_s1 + $0x6b8] sm:$0xff]  ;;  %v256_v25 = vld [vmem:[%s3627_s1 + $0x6b0] sm:$0xff] }
  0xa0   :  { %1117 = vmatpush1.msra.mxu1 %v333_v26  ;;  %1013 = vmatprep.subr.mxu0 %v96_v29  ;;  %v481_v26 = vld [vmem:[%s3627_s1 + $0xdb8] sm:$0xf]  ;;  %v250_v29 = vld [vmem:[%s3627_s1 + $0x680] sm:$0xff] }
  0xa1   :  { %1118 = vmatprep.subr.mxu1 %v327_v30  ;;  %1014 = vmatpush1.msra.mxu0 %v95_v33  ;;  %v249_v30 = vld [vmem:[%s3627_s1 + $0x678] sm:$0xff]  ;;  %v480_v33 = vld [vmem:[%s3627_s1 + $0xdb0] sm:$0xf] }
  0xa2   :  { %1119 = vmatpush1.msra.mxu1 %v326_v34  ;;  %1015 = vmatprep.subr.mxu0 %v89_v36  ;;  %v243_v34 = vld [vmem:[%s3627_s1 + $0x648] sm:$0xff]  ;;  %v242_v36 = vld [vmem:[%s3627_s1 + $0x640] sm:$0xff] }
  0xa3   :  { %1120 = vmatprep.subr.mxu1 %v320_v37  ;;  %1016 = vmatpush1.msra.mxu0 %v88_v38  ;;  %v473_v37 = vld [vmem:[%s3627_s1 + $0xd78] sm:$0xff]  ;;  %v467_v38 = vld [vmem:[%s3627_s1 + $0xd48] sm:$0xff] }
  0xa4   :  { %1121 = vmatpush1.msra.mxu1 %v319_v39  ;;  %1017 = vmatprep.subr.mxu0 %v82_v41  ;;  %v235_v39 = vld [vmem:[%s3627_s1 + $0x608] sm:$0xff]  ;;  %v466_v41 = vld [vmem:[%s3627_s1 + $0xd40] sm:$0xff] }
  0xa5   :  { %1122 = vmatprep.subr.mxu1 %v313_v42  ;;  %1018 = vmatpush1.msra.mxu0 %v81_v45  ;;  %v229_v42 = vld [vmem:[%s3627_s1 + $0x5d8] sm:$0xff]  ;;  %v460_v45 = vld [vmem:[%s3627_s1 + $0xd10] sm:$0xff] }
  0xa6   :  { %1123 = vmatpush1.msra.mxu1 %v312_v0  ;;  %1019 = vmatprep.subr.mxu0 %v75_v46  ;;  %v228_v0 = vld [vmem:[%s3627_s1 + $0x5d0] sm:$0xff]  ;;  %v453_v46 = vld [vmem:[%s3627_s1 + $0xcd8] sm:$0xff] }
  0xa7   :  { %1124 = vmatprep.subr.mxu1 %v306_v61  ;;  %1020 = vmatpush1.msra.mxu0 %v74_v48  ;;  %v221_v61 = vld [vmem:[%s3627_s1 + $0x598] sm:$0xff]  ;;  %v452_v48 = vld [vmem:[%s3627_s1 + $0xcd0] sm:$0xff] }
  0xa8   :  { %1125 = vmatpush1.msra.mxu1 %v305_v3  ;;  %1021 = vmatprep.subr.mxu0 %v68_v1  ;;  %v484_v3 = vld [vmem:[%s3629_s2 + $0x8] sm:$0xff] }
  0xa9   :  { %1126 = vmatprep.subr.mxu1 %v299_v49  ;;  %1022 = vmatpush1.msra.mxu0 %v67_v50  ;;  %v215_v1 = vld [vmem:[%s3627_s1 + $0x568] sm:$0xff]  ;;  %v446_v49 = vld [vmem:[%s3627_s1 + $0xca0] sm:$0xff]  ;;  %v208_v50 = vld [vmem:[%s3627_s1 + $0x530] sm:$0xff] }
  0xaa   :  { %1127 = vmatpush1.msra.mxu1 %v298_v51  ;;  %1023 = vmatprep.subr.mxu0 %v61_v54  ;;  %v439_v51 = vld [vmem:[%s3627_s1 + $0xc68] sm:$0xff] }
  0xab   :  { %1128 = vmatprep.subr.mxu1 %v292_v57  ;;  %1024 = vmatpush1.msra.mxu0 %v60_v58  ;;  %v207_v54 = vld [vmem:[%s3627_s1 + $0x528] sm:$0xff]  ;;  %v438_v57 = vld [vmem:[%s3627_s1 + $0xc60] sm:$0xff]  ;;  %v485_v58 = vld [vmem:[%s3629_s2 + $0x10] sm:$0xff] }
  0xac   :  { %1129 = vmatpush1.msra.mxu1 %v291_v60  ;;  %1025 = vmatprep.subr.mxu0 %v54_v62  ;;  %v432_v60 = vld [vmem:[%s3627_s1 + $0xc30] sm:$0xff]  ;;  %v431_v62 = vld [vmem:[%s3627_s1 + $0xc28] sm:$0xff] }
  0xad   :  { %1130 = vmatprep.subr.mxu1 %v285_v63  ;;  %1026 = vmatpush1.msra.mxu0 %v53_v2  ;;  %v425_v63 = vld [vmem:[%s3627_s1 + $0xbf8] sm:$0xff] }
  0xae   :  { %1131 = vmatpush1.msra.mxu1 %v284_v5  ;;  %1027 = vmatprep.subr.mxu0 %v47_v6  ;;  %v193_v2 = vld [vmem:[%s3627_s1 + $0x4b8] sm:$0xff]  ;;  %v424_v5 = vld [vmem:[%s3627_s1 + $0xbf0] sm:$0xff] }
  0xaf   :  { %1132 = vmatprep.subr.mxu1 %v278_v9  ;;  %1028 = vmatpush1.msra.mxu0 %v46_v10  ;;  %v486_v6 = vld [vmem:[%s3629_s2 + $0x18] sm:$0xff]  ;;  %v187_v9 = vld [vmem:[%s3627_s1 + $0x488] sm:$0xff]  ;;  %v186_v10 = vld [vmem:[%s3627_s1 + $0x480] sm:$0xff] }
  0xb0   :  { %1133 = vmatpush1.msra.mxu1 %v277_v12  ;;  %1029 = vmatprep.subr.mxu0 %v264_v13  ;;  %v417_v12 = vld [vmem:[%s3627_s1 + $0xbb8] sm:$0xff]  ;;  %v411_v13 = vld [vmem:[%s3627_s1 + $0xb88] sm:$0xff] }
  0xb1   :  { %1134 = vmatprep.subr.mxu1 %v271_v14  ;;  %1030 = vmatpush2.msra.mxu0 %v263_v15  ;;  %v179_v14 = vld [vmem:[%s3627_s1 + $0x448] sm:$0xff]  ;;  %v410_v15 = vld [vmem:[%s3627_s1 + $0xb80] sm:$0xff] }
  0xb2   :  { %1135 = vmatpush1.msra.mxu1 %v270_v18  ;;  %1031 = vmatprep.subr.mxu0 %v257_v21  ;;  %v487_v18 = vld [vmem:[%s3629_s2 + $0x20] sm:$0xff]  ;;  %v173_v21 = vld [vmem:[%s3627_s1 + $0x418] sm:$0xff] }
  0xb3   :  { %853 = vmatprep.mubr.f32.mxu1 %v2289_v16  ;;  %1032 = vmatpush2.msra.mxu0 %v256_v25  ;;  %v474_v16 = vld [vmem:[%s3627_s1 + $0xd80] sm:$0xff]  ;;  %v404_v25 = vld [vmem:[%s3627_s1 + $0xb50] sm:$0xff] }
  0xb4   :  { %1533 = vmatprep.subr.msk.mxu1 %vm547_vm0, %v481_v26  ;;  %1033 = vmatprep.subr.mxu0 %v250_v29  ;;  %v403_v26 = vld [vmem:[%s3627_s1 + $0xb48] sm:$0xff]  ;;  %v172_v29 = vld [vmem:[%s3627_s1 + $0x410] sm:$0xff] }
  0xb5   :  { %854 = vmatmul.mubr.f32.gmra.mxu1 %v2300_v19  ;;  %1034 = vmatpush2.msra.mxu0 %v249_v30  ;;  %v236_v19 = vld [vmem:[%s3627_s1 + $0x610] sm:$0xff]  ;;  %v397_v30 = vld [vmem:[%s3627_s1 + $0xb18] sm:$0xff] }
  0xb6   :  { %1534 = vmatpush2.msk.msra.mxu1 %vm547_vm0, %v480_v33  ;;  %1527 = vmatprep.mubr.msk.f32.mxu0 %vm525_vm1, %v2305_v20  ;;  %v166_v33 = vld [vmem:[%s3627_s1 + $0x3e0] sm:$0xff] }
  0xb7   :  { %1035 = vmatprep.subr.mxu0 %v243_v34  ;;  %1140 = vmatprep.subr.mxu1 %v474_v16  ;;  %v396_v34 = vld [vmem:[%s3627_s1 + $0xb10] sm:$0xff]  ;;  %v165_v16 = vld [vmem:[%s3627_s1 + $0x3d8] sm:$0xff] }
  0xb8   :  { %961 = vmatmul.mubr.f32.gmra.mxu0 %v2317_v23  ;;  %1141 = vmatpush2.msra.mxu1 %v473_v37  ;;  %v159_v37 = vld [vmem:[%s3627_s1 + $0x3a8] sm:$0xff] }
  0xb9   :  { %1036 = vmatpush2.msra.mxu0 %v242_v36  ;;  %859 = vmatprep.mubr.f32.mxu1 %v2338_v28  ;;  %v459_v28 = vld [vmem:[%s3627_s1 + $0xd08] sm:$0xff] }
  0xba   :  { %1037 = vmatprep.subr.mxu0 %v236_v19  ;;  %1142 = vmatprep.subr.mxu1 %v467_v38  ;;  %v488_v36 = vld [vmem:[%s3629_s2 + $0x28] sm:$0xff]  ;;  %v390_v19 = vld [vmem:[%s3627_s1 + $0xae0] sm:$0xff] }
  0xbb   :  { %860 = vmatmul.mubr.f32.gmra.mxu1 %v2349_v31  ;;  %1038 = vmatpush2.msra.mxu0 %v235_v39  ;;  %v222_v31 = vld [vmem:[%s3627_s1 + $0x5a0] sm:$0xff]  ;;  %v389_v39 = vld [vmem:[%s3627_s1 + $0xad8] sm:$0xff] }
  0xbc   :  { %1143 = vmatpush2.msra.mxu1 %v466_v41  ;;  %1528 = vmatprep.mubr.msk.f32.mxu0 %vm525_vm1, %v2354_v32  ;;  %v158_v38 = vld [vmem:[%s3627_s1 + $0x3a0] sm:$0xff]  ;;  %v383_v41 = vld [vmem:[%s3627_s1 + $0xaa8] sm:$0xff] }
  0xbd   :  { %1039 = vmatprep.subr.mxu0 %v229_v42  ;;  %1144 = vmatprep.subr.mxu1 %v460_v45  ;;  %v3027_v42 = vld [vmem:[%s3628_s0 + $0x8] sm:$0xff]  ;;  %v382_v45 = vld [vmem:[%s3627_s1 + $0xaa0] sm:$0xff] }
  0xbe   :  { %967 = vmatmul.mubr.f32.gmra.mxu0 %v2366_v35  ;;  %1145 = vmatpush2.msra.mxu1 %v459_v28  ;;  %v377_v28 = vld [vmem:[%s3627_s1 + $0xa78] sm:$0xff] }
  0xbf   :  { %1040 = vmatpush2.msra.mxu0 %v228_v0  ;;  %865 = vmatprep.mubr.f32.mxu1 %v2387_v40  ;;  %v445_v40 = vld [vmem:[%s3627_s1 + $0xc98] sm:$0xff]  ;;  %v3036_v0 = vld [vmem:[%s3628_s0] sm:$0xff] }
  0xc0   :  { %1041 = vmatprep.subr.mxu0 %v222_v31  ;;  %1146 = vmatprep.subr.mxu1 %v453_v46  ;;  %v489_v31 = vld [vmem:[%s3629_s2 + $0x30] sm:$0x3]  ;;  %v1636_v46 = vmov 0.0  }
  0xc1   :  { %866 = vmatmul.mubr.f32.gmra.mxu1 %v2398_v43  ;;  %1042 = vmatpush2.msra.mxu0 %v221_v61  ;;  %v214_v43 = vld [vmem:[%s3627_s1 + $0x560] sm:$0xff]  ;;  %v3049_v61 = vld [vmem:[%s3628_s0 + $0x18] sm:$0xff] }
  0xc2   :  { %1147 = vmatpush2.msra.mxu1 %v452_v48  ;;  %497 = vperm.xlu0 %1605, %v484_v3   ;;  %v370_v48 = vld [vmem:[%s3627_s1 + $0xa40] sm:$0xff]  ;;  %v265_v3 = vld [vmem:[%s3627_s1 + $0x6f8] sm:$0xff] }
  0xc3   :  { %1529 = vmatprep.mubr.msk.f32.mxu0 %vm525_vm1, %v2403_v44  ;;  %1043 = vmatprep.subr.mxu0 %v215_v1  ;;  %v153_v1 = vld [vmem:[%s3627_s1 + $0x378] sm:$0xff] }
  0xc4   :  { %1148 = vmatprep.subr.mxu1 %v446_v49  ;;  %973 = vmatmul.mubr.f32.gmra.mxu0 %v2415_v47  ;;  %v3065_v49 = vld [vmem:[%s3628_s0 + $0x10] sm:$0xff] }
  0xc5   :  { %1149 = vmatpush2.msra.mxu1 %v445_v40  ;;  %1044 = vmatpush2.msra.mxu0 %v214_v43  ;;  %v363_v40 = vld [vmem:[%s3627_s1 + $0xa08] sm:$0xff]  ;;  %v258_v43 = vld [vmem:[%s3627_s1 + $0x6c0] sm:$0xff] }
  0xc6   :  { %871 = vmatprep.mubr.f32.mxu1 %v2436_v52  ;;  %1045 = vmatprep.subr.mxu0 %v208_v50  ;;  %v201_v52 = vld [vmem:[%s3627_s1 + $0x4f8] sm:$0xff]  ;;  %v146_v50 = vld [vmem:[%s3627_s1 + $0x340] sm:$0xff] }
  0xc7   :  { %1150 = vmatprep.subr.mxu1 %v439_v51  ;;  %1606 = vset.pattern.permute.xlu1 %v1635_v53  ;;  %v194_v53 = vld [vmem:[%s3627_s1 + $0x4c0] sm:$0xff]  ;;  %v356_v51 = vld [vmem:[%s3627_s1 + $0x9d0] sm:$0xff] }
  0xc8   :  { %872 = vmatmul.mubr.f32.gmra.mxu1 %v2447_v55  ;;  %1046 = vmatpush2.msra.mxu0 %v207_v54  ;;  %v200_v55 = vld [vmem:[%s3627_s1 + $0x4f0] sm:$0xff]  ;;  %v251_v54 = vld [vmem:[%s3627_s1 + $0x688] sm:$0xff] }
  0xc9   :  { %1151 = vmatpush2.msra.mxu1 %v438_v57  ;;  %502 = vperm.xlu1 %1606, %v485_v58   ;;  %v139_v57 = vld [vmem:[%s3627_s1 + $0x308] sm:$0xff]  ;;  %v349_v58 = vld [vmem:[%s3627_s1 + $0x998] sm:$0xff] }
  0xca   :  { %1530 = vmatprep.mubr.msk.f32.mxu0 %vm525_vm1, %v2452_v56  ;;  %1047 = vmatprep.subr.mxu0 %v201_v52  ;;  %v244_v52 = vld [vmem:[%s3627_s1 + $0x650] sm:$0xff] }
  0xcb   :  { %1152 = vmatprep.subr.mxu1 %v432_v60  ;;  %979 = vmatmul.mubr.f32.gmra.mxu0 %v2464_v59  ;;  %v342_v60 = vld [vmem:[%s3627_s1 + $0x960] sm:$0xff] }
  0xcc   :  { %1153 = vmatpush2.msra.mxu1 %v431_v62  ;;  %1048 = vmatpush2.msra.mxu0 %v200_v55  ;;  %v132_v62 = vld [vmem:[%s3627_s1 + $0x2d0] sm:$0xff]  ;;  %v335_v55 = vld [vmem:[%s3627_s1 + $0x928] sm:$0xff] }
  0xcd   :  { %877 = vmatprep.mubr.f32.mxu1 %v2485_v4  ;;  %1049 = vmatprep.subr.mxu0 %v194_v53  ;;  %v418_v4 = vld [vmem:[%s3627_s1 + $0xbc0] sm:$0xff]  ;;  %v237_v53 = vld [vmem:[%s3627_s1 + $0x618] sm:$0xff] }
  0xce   :  { %1154 = vmatprep.subr.mxu1 %v425_v63  ;;  %878 = vmatmul.mubr.f32.gmra.mxu1 %v2496_v7  ;;  %v180_v7 = vld [vmem:[%s3627_s1 + $0x450] sm:$0xff]  ;;  %v125_v63 = vld [vmem:[%s3627_s1 + $0x298] sm:$0xff] }
  0xcf   :  { %1050 = vmatpush2.msra.mxu0 %v193_v2  ;;  %1155 = vmatpush2.msra.mxu1 %v424_v5  ;;  %v328_v2 = vld [vmem:[%s3627_s1 + $0x8f0] sm:$0xff]  ;;  %v321_v5 = vld [vmem:[%s3627_s1 + $0x8b8] sm:$0xff] }
  0xd0   :  { %507 = vperm.xlu1 %1606, %v486_v6   ;;  %1531 = vmatprep.mubr.msk.f32.mxu0 %vm525_vm1, %v2501_v8  ;;  %v118_v6 = vld [vmem:[%s3627_s1 + $0x260] sm:$0xff] }
  0xd1   :  { %1051 = vmatprep.subr.mxu0 %v187_v9  ;;  %1156 = vmatprep.subr.mxu1 %v418_v4  ;;  %v223_v9 = vld [vmem:[%s3627_s1 + $0x5a8] sm:$0xff] }
  0xd2   :  { %985 = vmatmul.mubr.f32.gmra.mxu0 %v2513_v11  ;;  %1157 = vmatpush2.msra.mxu1 %v417_v12  ;;  %v111_v4 = vld [vmem:[%s3627_s1 + $0x228] sm:$0xff]  ;;  %v300_v12 = vld [vmem:[%s3627_s1 + $0x810] sm:$0xff] }
  0xd3   :  { %1052 = vmatpush2.msra.mxu0 %v186_v10  ;;  %883 = vmatprep.mubr.f32.mxu1 %v2534_v17  ;;  %v307_v10 = vld [vmem:[%s3627_s1 + $0x848] sm:$0xff] }
  0xd4   :  { %1053 = vmatprep.subr.mxu0 %v180_v7  ;;  %1158 = vmatprep.subr.mxu1 %v411_v13  ;;  %v104_v7 = vld [vmem:[%s3627_s1 + $0x1f0] sm:$0xff]  ;;  %v3163_v13 = vld [vmem:[%s3628_s0 + $0x28] sm:$0xff] }
  0xd5   :  { %884 = vmatmul.mubr.f32.gmra.mxu1 %v2545_v22  ;;  %1054 = vmatpush2.msra.mxu0 %v179_v14  ;;  %v286_v14 = vld [vmem:[%s3627_s1 + $0x7a0] sm:$0xff] }
  0xd6   :  { %1159 = vmatpush2.msra.mxu1 %v410_v15  ;;  %512 = vperm.xlu0 %1605, %v487_v18   ;;  %v209_v15 = vld [vmem:[%s3627_s1 + $0x538] sm:$0xff] }
  0xd7   :  { %1532 = vmatprep.mubr.msk.f32.mxu0 %vm525_vm1, %v2550_v24  ;;  %1055 = vmatprep.subr.mxu0 %v173_v21  ;;  %v97_v18 = vld [vmem:[%s3627_s1 + $0x1b8] sm:$0xff]  ;;  %v279_v21 = vld [vmem:[%s3627_s1 + $0x768] sm:$0xff] }
  0xd8   :  { %1160 = vmatprep.subr.mxu1 %v404_v25  ;;  %991 = vmatmul.mubr.f32.gmra.mxu0 %v2562_v27  ;;  %v90_v25 = vld [vmem:[%s3627_s1 + $0x180] sm:$0xff] }
  0xd9   :  { %1161 = vmatpush2.msra.mxu1 %v403_v26  ;;  %1056 = vmatpush2.msra.mxu0 %v172_v29  ;;  %v272_v26 = vld [vmem:[%s3627_s1 + $0x730] sm:$0xff]  ;;  %v3203_v29 = vld [vmem:[%s3628_s0 + $0x48] sm:$0xff] }
  0xda   :  { %1162 = vmatprep.subr.mxu1 %v397_v30  ;;  %1057 = vmatprep.subr.mxu0 %v166_v33  ;;  %v195_v30 = vld [vmem:[%s3627_s1 + $0x4c8] sm:$0xff] }
  0xdb   :  { %1163 = vmatpush2.msra.mxu1 %v396_v34  ;;  %1058 = vmatpush2.msra.mxu0 %v165_v16  ;;  %v83_v33 = vld [vmem:[%s3627_s1 + $0x148] sm:$0xff]  ;;  %v482_v34 = vld [vmem:[%s3627_s1 + $0xdc0] sm:$0xf]  ;;  %v188_v16 = vld [vmem:[%s3627_s1 + $0x490] sm:$0xff] }
  0xdc   :  { %517 = vperm.xlu1 %1606, %v488_v36   ;;  %1059 = vmatprep.subr.mxu0 %v159_v37  ;;  %v475_v36 = vld [vmem:[%s3627_s1 + $0xd88] sm:$0xff] }
  0xdd   :  { %1164 = vmatprep.subr.mxu1 %v390_v19  ;;  %1060 = vmatpush2.msra.mxu0 %v158_v38  ;;  %v3239_v37 = vld [vmem:[%s3628_s0 + $0x68] sm:$0xff]  ;;  %v181_v19 = vld [vmem:[%s3627_s1 + $0x458] sm:$0xff] }
  0xde   :  { %1061 = vmatprep.mubr.f32.mxu0 %v3027_v42  ;;  %1165 = vmatpush2.msra.mxu1 %v389_v39  ;;  %v69_v38 = vld [vmem:[%s3627_s1 + $0xd8] sm:$0xff]  ;;  %v468_v39 = vld [vmem:[%s3627_s1 + $0xd50] sm:$0xff] }
  0xdf   :  { %1062 = vmatmul.mubr.f32.vlgmr.msra.gmra.mxu0 %v3036_v0  ;;  %1166 = vmatprep.subr.mxu1 %v383_v41  ;;  %v174_v41 = vld [vmem:[%s3627_s1 + $0x420] sm:$0xff] }
  0xe0   :  { %1311 = vmatprep.subr.mxu0 %v1636_v46  ;;  %1167 = vmatpush2.msra.mxu1 %v382_v45  ;;  %v461_v45 = vld [vmem:[%s3627_s1 + $0xd18] sm:$0xff] }
  0xe1   :  { %1535 = vmatprep.mubr.msk.f32.mxu1 %vm525_vm1, %v3049_v61  ;;  %1312 = vmatpush1.msra.mxu0 %v377_v28  ;;  %v3274_v28 = vld [vmem:[%s3628_s0 + $0x88] sm:$0xff] }
  0xe2   :  { %522 = vperm.xlu0 %1605, %v489_v31   ;;  %1169 = vmatmul.mubr.f32.vlgmr.msra.gmra.mxu1 %v3065_v49  ;;  %v167_v31 = vld [vmem:[%s3627_s1 + $0x3e8] sm:$0xff] }
  0xe3   :  { %1313 = vmatprep.subr.mxu0 %v1636_v46  ;;  %1550 = vmatprep.subr.mxu1 %v265_v3  ;;  %v55_v3 = vld [vmem:[%s3627_s1 + $0x68] sm:$0xff] }
  0xe4   :  { %1314 = vmatpush1.msra.mxu0 %v370_v48  ;;  %1551 = vmatpush3.msra.mxu1 %v153_v1  ;;  %v454_v1 = vld [vmem:[%s3627_s1 + $0xce0] sm:$0xff] }
  0xe5   :  { %1315 = vmatprep.subr.mxu0 %v1636_v46  ;;  %1552 = vmatprep.subr.mxu1 %v258_v43 }
  0xe6   :  { %1316 = vmatpush1.msra.mxu0 %v363_v40  ;;  %1553 = vmatpush3.msra.mxu1 %v146_v50  ;;  %v160_v40 = vld [vmem:[%s3627_s1 + $0x3b0] sm:$0xff] }
  0xe7   :  { %1317 = vmatprep.subr.mxu0 %v1636_v46  ;;  %1554 = vmatprep.subr.mxu1 %v251_v54  ;;  %v1619_v54 = vld [vmem:[%s3628_s0 + $0xa8] sm:$0xff] }
  0xe8   :  { %1318 = vmatpush1.msra.mxu0 %v356_v51  ;;  %1555 = vmatpush3.msra.mxu1 %v139_v57  ;;  %v447_v51 = vld [vmem:[%s3627_s1 + $0xca8] sm:$0xff] }
  0xe9   :  { %1319 = vmatprep.subr.mxu0 %v1636_v46  ;;  %1556 = vmatprep.subr.mxu1 %v244_v52  ;;  %v440_v52 = vld [vmem:[%s3627_s1 + $0xc70] sm:$0xff] }
  0xea   :  { %1320 = vmatpush1.msra.mxu0 %v349_v58  ;;  %1536 = vmatprep.mubr.msk.f32.mxu1 %vm525_vm1, %v2305_v20  ;;  %v230_v20 = vld [vmem:[%s3627_s1 + $0x5e0] sm:$0xff] }
  0xeb   :  { %1321 = vmatprep.subr.mxu0 %v1636_v46  ;;  %1557 = vmatpush3.msra.mxu1 %v132_v62 }
  0xec   :  { %1322 = vmatpush1.msra.mxu0 %v342_v60  ;;  %1175 = vmatmul.mubr.f32.gmra.mxu1 %v2317_v23  ;;  %v314_v23 = vld [vmem:[%s3627_s1 + $0x880] sm:$0xff] }
  0xed   :  { %1323 = vmatprep.subr.mxu0 %v1636_v46  ;;  %1558 = vmatprep.subr.mxu1 %v237_v53 }
  0xee   :  { %1324 = vmatpush1.msra.mxu0 %v335_v55  ;;  %1559 = vmatpush3.msra.mxu1 %v125_v63  ;;  %v1620_v55 = vld [vmem:[%s3628_s0 + $0xa0] sm:$0xff] }
  0xef   :  { %1325 = vmatprep.subr.mxu0 %v1636_v46  ;;  %1560 = vmatprep.subr.mxu1 %v230_v20 }
  0xf0   :  { %1326 = vmatpush1.msra.mxu0 %v328_v2  ;;  %1537 = vmatprep.mubr.msk.f32.mxu1 %vm525_vm1, %v2354_v32  ;;  %v216_v32 = vld [vmem:[%s3627_s1 + $0x570] sm:$0xff] }
  0xf1   :  { %1327 = vmatprep.subr.mxu0 %v1636_v46  ;;  %1561 = vmatpush3.msra.mxu1 %v118_v6  ;;  %v398_v6 = vld [vmem:[%s3627_s1 + $0xb20] sm:$0xff] }
  0xf2   :  { %1328 = vmatpush1.msra.mxu0 %v321_v5  ;;  %1181 = vmatmul.mubr.f32.gmra.mxu1 %v2366_v35  ;;  %v293_v35 = vld [vmem:[%s3627_s1 + $0x7d8] sm:$0xff] }
  0xf3   :  { %1329 = vmatprep.subr.mxu0 %v1636_v46  ;;  %1562 = vmatprep.subr.mxu1 %v223_v9  ;;  %v405_v5 = vld [vmem:[%s3627_s1 + $0xb58] sm:$0xff] }
  0xf4   :  { %1330 = vmatpush1.msra.mxu0 %v314_v23  ;;  %1563 = vmatpush3.msra.mxu1 %v111_v4  ;;  %v384_v23 = vld [vmem:[%s3627_s1 + $0xab0] sm:$0xff]  ;;  %v1621_v9 = vld [vmem:[%s3628_s0 + $0x38] sm:$0xff]  ;;  %v1622_v4 = vld [vmem:[%s3628_s0 + $0xc8] sm:$0x3] }
  0xf5   :  { %1331 = vmatprep.subr.mxu0 %v1636_v46  ;;  %1564 = vmatprep.subr.mxu1 %v216_v32  ;;  %v1625_v32 = vld [vmem:[%s3628_s0 + $0x58] sm:$0xff] }
  0xf6   :  { %1332 = vmatpush1.msra.mxu0 %v307_v10  ;;  %1067 = vmatprep.mubr.f32.mxu0 %v3163_v13 }
  0xf7   :  { %1333 = vmatprep.subr.mxu0 %v1636_v46  ;;  %1538 = vmatprep.mubr.msk.f32.mxu1 %vm525_vm1, %v2403_v44  ;;  %v3183_v44 = vld [vmem:[%s3628_s0 + $0x20] sm:$0xff] }
  0xf8   :  { %1334 = vmatpush1.msra.mxu0 %v300_v12  ;;  %1565 = vmatpush3.msra.mxu1 %v104_v7 }
  0xf9   :  { %1335 = vmatprep.subr.mxu0 %v1636_v46  ;;  %1187 = vmatmul.mubr.f32.gmra.mxu1 %v2415_v47  ;;  %v202_v47 = vld [vmem:[%s3627_s1 + $0x500] sm:$0xff] }
  0xfa   :  { %1336 = vmatpush1.msra.mxu0 %v293_v35  ;;  %1566 = vmatprep.subr.mxu1 %v209_v15  ;;  %v1626_v35 = vld [vmem:[%s3628_s0 + $0x50] sm:$0xff] }
  0xfb   :  { %1337 = vmatprep.subr.mxu0 %v1636_v46  ;;  %1068 = vmatmul.mubr.f32.gmra.mxu0 %v3183_v44 }
  0xfc   :  { %1338 = vmatpush1.msra.mxu0 %v286_v14  ;;  %1567 = vmatpush3.msra.mxu1 %v97_v18  ;;  %v1627_v14 = vld [vmem:[%s3628_s0 + $0x78] sm:$0xff]  ;;  %v1628_v18 = vld [vmem:[%s3628_s0 + $0x70] sm:$0xff] }
  0xfd   :  { %1339 = vmatprep.subr.mxu0 %v1636_v46  ;;  %1568 = vmatprep.subr.mxu1 %v202_v47  ;;  %v1629_v47 = vld [vmem:[%s3628_s0 + $0x98] sm:$0xff] }
  0xfe   :  { %1340 = vmatpush1.msra.mxu0 %v279_v21  ;;  %1073 = vmatprep.mubr.f32.mxu0 %v3203_v29 }
  0xff   :  { %1341 = vmatprep.subr.mxu0 %v1636_v46  ;;  %1539 = vmatprep.mubr.msk.f32.mxu1 %vm525_vm1, %v2452_v56  ;;  %v3224_v56 = vld [vmem:[%s3628_s0 + $0x40] sm:$0xff] }
 0x100   :  { %1569 = vmatpush3.msra.mxu1 %v90_v25  ;;  %1342 = vmatpush1.msra.mxu0 %v272_v26  ;;  %v1630_v26 = vld [vmem:[%s3628_s0 + $0x90] sm:$0xff] }
 0x101   :  { %1193 = vmatmul.mubr.f32.gmra.mxu1 %v2464_v59  ;;  %1074 = vmatmul.mubr.f32.gmra.mxu0 %v3224_v56  ;;  %v76_v59 = vld [vmem:[%s3627_s1 + $0x110] sm:$0xff] }
 0x102   :  { %1570 = vmatprep.subr.mxu1 %v195_v30  ;;  %1345 = vmatprep.subr.mxu0 %v1636_v46  ;;  %v1631_v30 = vld [vmem:[%s3628_s0 + $0xb8] sm:$0xff] }
 0x103   :  { %1571 = vmatpush3.msra.mxu1 %v83_v33  ;;  %1542 = vmatpush2.msk.msra.mxu0 %vm547_vm0, %v482_v34  ;;  %v635_v48 = vpop.f32.mrf.mxu0  ;;  %v742_v43 = vpop.f32.mrf.mxu1 }
 0x104   :  { %1572 = vmatprep.subr.mxu1 %v188_v16  ;;  %1347 = vmatprep.subr.mxu0 %v1636_v46  ;;  %v1632_v16 = vld [vmem:[%s3628_s0 + $0xb0] sm:$0xff] }
 0x105   :  { %1079 = vmatprep.mubr.f32.mxu0 %v3239_v37  ;;  %1540 = vmatprep.mubr.msk.f32.mxu1 %vm525_vm1, %v2501_v8  ;;  %v3260_v8 = vld [vmem:[%s3628_s0 + $0x60] sm:$0xff]  ;;  %v637_v50 = vpop.f32.mrf.mxu0  ;;  %v744_v58 = vpop.f32.mrf.mxu1 }
 0x106   :  { %1573 = vmatpush3.msra.mxu1 %v76_v59  ;;  %1348 = vmatpush2.msra.mxu0 %v475_v36  ;;  %v1633_v59 = vld [vmem:[%s3628_s0 + $0xd8] sm:$0x3] }
 0x107   :  { %1199 = vmatmul.mubr.f32.gmra.mxu1 %v2513_v11  ;;  %1080 = vmatmul.mubr.f32.gmra.mxu0 %v3260_v8  ;;  %v62_v11 = vld [vmem:[%s3627_s1 + $0xa0] sm:$0xff] }
 0x108   :  { %1574 = vmatprep.subr.mxu1 %v181_v19  ;;  %1349 = vmatprep.subr.mxu0 %v1636_v46 }
 0x109   :  { %1575 = vmatpush3.msra.mxu1 %v69_v38  ;;  %1350 = vmatpush2.msra.mxu0 %v468_v39 }
 0x10a   :  { %1576 = vmatprep.subr.mxu1 %v174_v41  ;;  %1351 = vmatprep.subr.mxu0 %v1636_v46 }
 0x10b   :  { %1085 = vmatprep.mubr.f32.mxu0 %v3274_v28  ;;  %1541 = vmatprep.mubr.msk.f32.mxu1 %vm525_vm1, %v2550_v24  ;;  %v3295_v24 = vld [vmem:[%s3628_s0 + $0x80] sm:$0xff] }
 0x10c   :  { %1577 = vmatpush3.msra.mxu1 %v62_v11  ;;  %1352 = vmatpush2.msra.mxu0 %v461_v45 }
 0x10d   :  { %1205 = vmatmul.mubr.f32.gmra.mxu1 %v2562_v27  ;;  %1086 = vmatmul.mubr.f32.gmra.mxu0 %v3295_v24  ;;  %v48_v27 = vld [vmem:[%s3627_s1 + $0x30] sm:$0xff] }
 0x10e   :  { %1578 = vmatprep.subr.mxu1 %v167_v31  ;;  %1353 = vmatprep.subr.mxu0 %v1636_v46 }
 0x10f   :  { %1579 = vmatpush3.msra.mxu1 %v55_v3  ;;  %1354 = vmatpush2.msra.mxu0 %v454_v1 }
 0x110   :  { %1580 = vmatprep.subr.mxu1 %v160_v40  ;;  %1355 = vmatprep.subr.mxu0 %v1636_v46 }
 0x111   :  { %1091 = vmatprep.mubr.f32.mxu0 %v1619_v54  ;;  %v3309_v57 = vpop.permute.xlu0 %492  ;;  %1581 = vmatpush3.msra.mxu1 %v48_v27 }
 0x112   :  { %1275 = vmatprep.mubr.f32.mxu1 %v3027_v42  ;;  %v638_v60 = vadd.f32 %v637_v50, %v3309_v57  ;;  %v636_v62 = vadd.f32 %v635_v48, %v3309_v57  ;;  %1356 = vmatpush2.msra.mxu0 %v447_v51  ;;  %v433_v42 = vld [vmem:[%s3627_s1 + $0xc38] sm:$0xff] }
 0x113   :  { %1276 = vmatmul.mubr.f32.vlgmr.msra.gmra.mxu1 %v3036_v0  ;;  %1092 = vmatmul.mubr.f32.gmra.mxu0 %v1620_v55  ;;  %v426_v0 = vld [vmem:[%s3627_s1 + $0xc00] sm:$0xff] }
 0x114   :  { %1357 = vmatprep.subr.mxu0 %v1636_v46  ;;  %v743_v53 = vadd.f32 %v742_v43, %v636_v62  ;;  %v745_v63 = vadd.f32 %v744_v58, %v638_v60  ;;  %1097 = vmatprep.mubr.f32.mxu0 %v2534_v17  ;;  %v419_v17 = vld [vmem:[%s3627_s1 + $0xbc8] sm:$0xff] }
 0x115   :  { %1358 = vmatpush2.msra.mxu0 %v440_v52  ;;  %1280 = vmatprep.mubr.f32.mxu1 %v3163_v13 }
 0x116   :  { %1359 = vmatprep.subr.mxu0 %v1636_v46  ;;  %v1411_v2 = vmax.f32 %v743_v53, 0.0  ;;  %v1412_v20 = vmax.f32 %v745_v63, 0.0 }
 0x117   :  { %1360 = vmatpush2.msra.mxu0 %v433_v42  ;;  %1281 = vmatmul.mubr.f32.gmra.mxu1 %v3183_v44 }
 0x118   :  { %1098 = vmatmul.mubr.f32.gmra.mxu0 %v2545_v22  ;;  %1361 = vmatprep.subr.mxu0 %v1636_v46  ;;  %1460 = vst [vmem:[%s3630_s3] sm:$0xff] %v1411_v2  ;;  %1461 = vst [vmem:[%s3630_s3 + $0x8] sm:$0xff] %v1412_v20  ;;  %v412_v22 = vld [vmem:[%s3627_s1 + $0xb90] sm:$0xff] }
 0x119   :  { %1362 = vmatpush2.msra.mxu0 %v426_v0  ;;  %1285 = vmatprep.mubr.f32.mxu1 %v3203_v29 }
 0x11a   :  { %1363 = vmatprep.subr.mxu0 %v1636_v46  ;;  %1543 = vmatprep.mubr.msk.f32.mxu0 %vm525_vm1, %v3049_v61  ;;  %v391_v61 = vld [vmem:[%s3627_s1 + $0xae8] sm:$0xff] }
 0x11b   :  { %1364 = vmatpush2.msra.mxu0 %v419_v17  ;;  %1286 = vmatmul.mubr.f32.gmra.mxu1 %v3224_v56 }
 0x11c   :  { %1365 = vmatprep.subr.mxu0 %v1636_v46  ;;  %1290 = vmatprep.mubr.f32.mxu1 %v3239_v37  ;;  %v1634_v37 = vld [vmem:[%s3628_s0 + $0xd0] sm:$0x3] }
 0x11d   :  { %1366 = vmatpush2.msra.mxu0 %v412_v22 }
 0x11e   :  { %1367 = vmatprep.subr.mxu0 %v1636_v46 }
 0x11f   :  { %1368 = vmatpush2.msra.mxu0 %v405_v5  ;;  %1291 = vmatmul.mubr.f32.gmra.mxu1 %v3260_v8 }
 0x120   :  { %1369 = vmatprep.subr.mxu0 %v1636_v46  ;;  %1295 = vmatprep.mubr.f32.mxu1 %v3274_v28 }
 0x121   :  { %1370 = vmatpush2.msra.mxu0 %v398_v6 }
 0x122   :  { %1371 = vmatprep.subr.mxu0 %v1636_v46 }
 0x123   :  { %1372 = vmatpush2.msra.mxu0 %v391_v61  ;;  %1296 = vmatmul.mubr.f32.gmra.mxu1 %v3295_v24 }
 0x124   :  { %1373 = vmatprep.subr.mxu0 %v1636_v46  ;;  %1300 = vmatprep.mubr.f32.mxu1 %v1619_v54  ;;  %v1623_v46 = vld [vmem:[%s3628_s0 + $0x30] sm:$0xff] }
 0x125   :  { %1374 = vmatpush2.msra.mxu0 %v384_v23 }
 0x126   :  { %1376 = vmatmul.mubr.f32.vlgmr.msra.gmra.mxu0 %v3065_v49  ;;  %v1624_v49 = vld [vmem:[%s3628_s0 + $0xc0] sm:$0x3] }
 0x127   :  { %1301 = vmatmul.mubr.f32.gmra.mxu1 %v1620_v55  ;;  %1544 = vmatprep.mubr.msk.f32.mxu0 %vm525_vm1, %v1621_v9 }
 0x128   :  { %1305 = vmatprep.mubr.f32.mxu1 %v1622_v4 }
 0x12a   :  { %1381 = vmatmul.mubr.f32.gmra.mxu0 %v1623_v46  ;;  %v641_v10 = vpop.f32.mrf.mxu0 }
 0x12b   :  { %1306 = vmatmul.mubr.f32.gmra.mxu1 %v1624_v49  ;;  %1545 = vmatprep.mubr.msk.f32.mxu0 %vm525_vm1, %v1625_v32 }
 0x12c   :  { %v748_v12 = vpop.f32.mrf.mxu1  ;;  %v643_v7 = vpop.f32.mrf.mxu0 }
 0x12e   :  { %1386 = vmatmul.mubr.f32.gmra.mxu0 %v1626_v35  ;;  %v750_v13 = vpop.f32.mrf.mxu1 }
 0x12f   :  { %1546 = vmatprep.mubr.msk.f32.mxu0 %vm525_vm1, %v1627_v14 }
 0x130   :  { %v647_v15 = vpop.f32.mrf.mxu0 }
 0x132   :  { %1391 = vmatmul.mubr.f32.gmra.mxu0 %v1628_v18  ;;  %v754_v44 = vpop.f32.mrf.mxu1  ;;  %v649_v21 = vpop.f32.mrf.mxu0 }
 0x133   :  { %1547 = vmatprep.mubr.msk.f32.mxu0 %vm525_vm1, %v1629_v47 }
 0x134   :  { %v756_v25 = vpop.f32.mrf.mxu1 }
 0x136   :  { %1396 = vmatmul.mubr.f32.gmra.mxu0 %v1630_v26  ;;  %v653_v29 = vpop.f32.mrf.mxu0 }
 0x137   :  { %1548 = vmatprep.mubr.msk.f32.mxu0 %vm525_vm1, %v1631_v30 }
 0x138   :  { %v760_v33 = vpop.f32.mrf.mxu1  ;;  %v655_v34 = vpop.f32.mrf.mxu0 }
 0x13a   :  { %1401 = vmatmul.mubr.f32.gmra.mxu0 %v1632_v16  ;;  %v762_v56 = vpop.f32.mrf.mxu1 }
 0x13b   :  { %1549 = vmatprep.mubr.msk.f32.mxu0 %vm525_vm1, %v1633_v59 }
 0x13c   :  { %v659_v36 = vpop.f32.mrf.mxu0 }
 0x13d   :  { %v3421_v19 = vpop.permute.xlu0 %497 }
 0x13e   :  { %1406 = vmatmul.mubr.f32.gmra.mxu0 %v1634_v37  ;;  %v766_v38 = vpop.f32.mrf.mxu1  ;;  %v642_v39 = vadd.f32 %v641_v10, %v3421_v19  ;;  %v644_v41 = vadd.f32 %v643_v7, %v3421_v19  ;;  %v661_v8 = vpop.f32.mrf.mxu0 }
 0x140   :  { %v768_v11 = vpop.f32.mrf.mxu1  ;;  %v749_v45 = vadd.f32 %v748_v12, %v642_v39  ;;  %v751_v28 = vadd.f32 %v750_v13, %v644_v41 }
 0x142   :  { %v665_v31 = vpop.f32.mrf.mxu0  ;;  %v1418_v48 = vmax.f32 %v749_v45, 0.0  ;;  %v1419_v3 = vmax.f32 %v751_v28, 0.0 }
 0x144   :  { %v772_v1 = vpop.f32.mrf.mxu1  ;;  %v667_v40 = vpop.f32.mrf.mxu0  ;;  %1468 = vst [vmem:[%s3630_s3 + $0x38] sm:$0xff] %v1418_v48  ;;  %1469 = vst [vmem:[%s3630_s3 + $0x40] sm:$0xff] %v1419_v3 }
 0x145   :  { %v3431_v43 = vpop.permute.xlu1 %502 }
 0x146   :  { %v648_v24 = vadd.f32 %v647_v15, %v3431_v43  ;;  %v650_v27 = vadd.f32 %v649_v21, %v3431_v43  ;;  %v774_v50 = vpop.f32.mrf.mxu1 }
 0x148   :  { %v755_v51 = vadd.f32 %v754_v44, %v648_v24  ;;  %v757_v54 = vadd.f32 %v756_v25, %v650_v27  ;;  %v671_v58 = vpop.f32.mrf.mxu0 }
 0x14a   :  { %v1425_v52 = vmax.f32 %v755_v51, 0.0  ;;  %v1426_v60 = vmax.f32 %v757_v54, 0.0  ;;  %v778_v62 = vpop.f32.mrf.mxu1  ;;  %v673_v63 = vpop.f32.mrf.mxu0 }
 0x14b   :  { %v3435_v55 = vpop.permute.xlu1 %507 }
 0x14c   :  { %1475 = vst [vmem:[%s3630_s3 + $0x70] sm:$0xff] %v1425_v52  ;;  %1476 = vst [vmem:[%s3630_s3 + $0x78] sm:$0xff] %v1426_v60  ;;  %v654_v42 = vadd.f32 %v653_v29, %v3435_v55  ;;  %v656_v53 = vadd.f32 %v655_v34, %v3435_v55  ;;  %v780_v0 = vpop.f32.mrf.mxu1 }
 0x14e   :  { %v761_v2 = vadd.f32 %v760_v33, %v654_v42  ;;  %v763_v20 = vadd.f32 %v762_v56, %v656_v53 }
 0x14f   :  { %v849_v5 = vpop.f32.mrf.mxu1 }
 0x150   :  { %v1432_v17 = vmax.f32 %v761_v2, 0.0  ;;  %v1433_v22 = vmax.f32 %v763_v20, 0.0  ;;  %v956_v6 = vpop.f32.mrf.mxu0  ;;  %v850_v61 = vadd.f32 %v849_v5, %v3309_v57 }
 0x151   :  { %v3452_v23 = vpop.permute.xlu0 %512  ;;  %v851_v9 = vpop.f32.mrf.mxu1 }
 0x152   :  { %1482 = vst [vmem:[%s3630_s3 + $0xa8] sm:$0xff] %v1432_v17  ;;  %1483 = vst [vmem:[%s3630_s3 + $0xb0] sm:$0xff] %v1433_v22  ;;  %v660_v4 = vadd.f32 %v659_v36, %v3452_v23  ;;  %v662_v46 = vadd.f32 %v661_v8, %v3452_v23  ;;  %v957_v10 = vadd.f32 %v956_v6, %v850_v61  ;;  %v958_v32 = vpop.f32.mrf.mxu0 }
 0x153   :  { %v852_v49 = vadd.f32 %v851_v9, %v3309_v57 }
 0x154   :  { %v767_v12 = vadd.f32 %v766_v38, %v660_v4  ;;  %v769_v7 = vadd.f32 %v768_v11, %v662_v46  ;;  %v1413_v35 = vmax.f32 %v957_v10, 0.0 }
 0x155   :  { %v959_v13 = vadd.f32 %v958_v32, %v852_v49 }
 0x156   :  { %v1439_v14 = vmax.f32 %v767_v12, 0.0  ;;  %v1440_v15 = vmax.f32 %v769_v7, 0.0  ;;  %1462 = vst [vmem:[%s3630_s3 + $0x10] sm:$0xff] %v1413_v35 }
 0x157   :  { %v3457_v18 = vpop.permute.xlu1 %517  ;;  %v1414_v44 = vmax.f32 %v959_v13, 0.0 }
 0x158   :  { %v666_v21 = vadd.f32 %v665_v31, %v3457_v18  ;;  %v668_v47 = vadd.f32 %v667_v40, %v3457_v18  ;;  %1489 = vst [vmem:[%s3630_s3 + $0xe0] sm:$0xff] %v1439_v14  ;;  %1490 = vst [vmem:[%s3630_s3 + $0xe8] sm:$0xff] %v1440_v15 }
 0x159   :  { %1463 = vst [vmem:[%s3630_s3 + $0x18] sm:$0xff] %v1414_v44 }
 0x15a   :  { %v773_v25 = vadd.f32 %v772_v1, %v666_v21  ;;  %v775_v26 = vadd.f32 %v774_v50, %v668_v47 }
 0x15c   :  { %v1446_v29 = vmax.f32 %v773_v25, 0.0  ;;  %v1447_v30 = vmax.f32 %v775_v26, 0.0 }
 0x15d   :  { %v3473_v33 = vpop.permute.xlu0 %522 }
 0x15e   :  { %1496 = vst [vmem:[%s3630_s3 + $0x118] sm:$0xff] %v1446_v29  ;;  %1497 = vst [vmem:[%s3630_s3 + $0x120] sm:$0xff] %v1447_v30  ;;  %v672_v34 = vadd.f32 %v671_v58, %v3473_v33  ;;  %v674_v16 = vadd.f32 %v673_v63, %v3473_v33 }
 0x160   :  { %v779_v56 = vadd.f32 %v778_v62, %v672_v34  ;;  %v781_v59 = vadd.f32 %v780_v0, %v674_v16 }
 0x162   :  { %v1453_v36 = vmax.f32 %v779_v56, 0.0  ;;  %v1454_v37 = vmax.f32 %v781_v59, 0.0 }
 0x164   :  { %1503 = vst [vmem:[%s3630_s3 + $0x150] sm:$0x3] %v1453_v36  ;;  %1504 = vst [vmem:[%s3630_s3 + $0x158] sm:$0x3] %v1454_v37 }
 0x175   :  { %v855_v38 = vpop.f32.mrf.mxu1 }
 0x176   :  { %v856_v39 = vadd.f32 %v855_v38, %v3421_v19 }
 0x177   :  { %v857_v41 = vpop.f32.mrf.mxu1 }
 0x178   :  { %v858_v8 = vadd.f32 %v857_v41, %v3421_v19  ;;  %v962_v11 = vpop.f32.mrf.mxu0 }
 0x179   :  { %v963_v45 = vadd.f32 %v962_v11, %v856_v39 }
 0x17a   :  { %v964_v28 = vpop.f32.mrf.mxu0 }
 0x17b   :  { %v1420_v31 = vmax.f32 %v963_v45, 0.0  ;;  %v861_v48 = vpop.f32.mrf.mxu1  ;;  %v965_v3 = vadd.f32 %v964_v28, %v858_v8 }
 0x17c   :  { %v862_v1 = vadd.f32 %v861_v48, %v3431_v43 }
 0x17d   :  { %1470 = vst [vmem:[%s3630_s3 + $0x48] sm:$0xff] %v1420_v31  ;;  %v1421_v40 = vmax.f32 %v965_v3, 0.0  ;;  %v863_v24 = vpop.f32.mrf.mxu1 }
 0x17e   :  { %v864_v27 = vadd.f32 %v863_v24, %v3431_v43  ;;  %v968_v50 = vpop.f32.mrf.mxu0 }
 0x17f   :  { %1471 = vst [vmem:[%s3630_s3 + $0x50] sm:$0xff] %v1421_v40  ;;  %v969_v51 = vadd.f32 %v968_v50, %v862_v1 }
 0x180   :  { %v970_v54 = vpop.f32.mrf.mxu0 }
 0x181   :  { %v1427_v58 = vmax.f32 %v969_v51, 0.0  ;;  %v867_v52 = vpop.f32.mrf.mxu1  ;;  %v971_v60 = vadd.f32 %v970_v54, %v864_v27 }
 0x182   :  { %v868_v62 = vadd.f32 %v867_v52, %v3435_v55 }
 0x183   :  { %1477 = vst [vmem:[%s3630_s3 + $0x80] sm:$0xff] %v1427_v58  ;;  %v1428_v42 = vmax.f32 %v971_v60, 0.0  ;;  %v869_v53 = vpop.f32.mrf.mxu1 }
 0x184   :  { %v870_v63 = vadd.f32 %v869_v53, %v3435_v55  ;;  %v974_v0 = vpop.f32.mrf.mxu0 }
 0x185   :  { %1478 = vst [vmem:[%s3630_s3 + $0x88] sm:$0xff] %v1428_v42  ;;  %v975_v2 = vadd.f32 %v974_v0, %v868_v62 }
 0x186   :  { %v976_v20 = vpop.f32.mrf.mxu0 }
 0x187   :  { %v1434_v17 = vmax.f32 %v975_v2, 0.0  ;;  %v977_v5 = vadd.f32 %v976_v20, %v870_v63 }
 0x188   :  { %v873_v22 = vpop.f32.mrf.mxu1 }
 0x189   :  { %v874_v6 = vadd.f32 %v873_v22, %v3452_v23  ;;  %1484 = vst [vmem:[%s3630_s3 + $0xb8] sm:$0xff] %v1434_v17  ;;  %v1435_v61 = vmax.f32 %v977_v5, 0.0 }
 0x18a   :  { %v875_v9 = vpop.f32.mrf.mxu1 }
 0x18b   :  { %v876_v4 = vadd.f32 %v875_v9, %v3452_v23  ;;  %1485 = vst [vmem:[%s3630_s3 + $0xc0] sm:$0xff] %v1435_v61  ;;  %v980_v46 = vpop.f32.mrf.mxu0 }
 0x18c   :  { %v981_v10 = vadd.f32 %v980_v46, %v874_v6 }
 0x18d   :  { %v982_v49 = vpop.f32.mrf.mxu0 }
 0x18e   :  { %v1441_v32 = vmax.f32 %v981_v10, 0.0  ;;  %v879_v12 = vpop.f32.mrf.mxu1  ;;  %v983_v7 = vadd.f32 %v982_v49, %v876_v4 }
 0x18f   :  { %v880_v35 = vadd.f32 %v879_v12, %v3457_v18 }
 0x190   :  { %1491 = vst [vmem:[%s3630_s3 + $0xf0] sm:$0xff] %v1441_v32  ;;  %v1442_v13 = vmax.f32 %v983_v7, 0.0  ;;  %v881_v14 = vpop.f32.mrf.mxu1 }
 0x191   :  { %v882_v15 = vadd.f32 %v881_v14, %v3457_v18 }
 0x192   :  { %v986_v44 = vpop.f32.mrf.mxu0  ;;  %1492 = vst [vmem:[%s3630_s3 + $0xf8] sm:$0xff] %v1442_v13 }
 0x193   :  { %v987_v21 = vadd.f32 %v986_v44, %v880_v35 }
 0x194   :  { %v988_v47 = vpop.f32.mrf.mxu0 }
 0x195   :  { %v1448_v25 = vmax.f32 %v987_v21, 0.0  ;;  %v885_v26 = vpop.f32.mrf.mxu1  ;;  %v989_v29 = vadd.f32 %v988_v47, %v882_v15 }
 0x196   :  { %v886_v30 = vadd.f32 %v885_v26, %v3473_v33 }
 0x197   :  { %1498 = vst [vmem:[%s3630_s3 + $0x128] sm:$0xff] %v1448_v25  ;;  %v1449_v34 = vmax.f32 %v989_v29, 0.0  ;;  %v887_v16 = vpop.f32.mrf.mxu1 }
 0x198   :  { %v888_v56 = vadd.f32 %v887_v16, %v3473_v33  ;;  %v992_v59 = vpop.f32.mrf.mxu0 }
 0x199   :  { %1499 = vst [vmem:[%s3630_s3 + $0x130] sm:$0xff] %v1449_v34  ;;  %v993_v36 = vadd.f32 %v992_v59, %v886_v30 }
 0x19a   :  { %v994_v37 = vpop.f32.mrf.mxu0 }
 0x19b   :  { %v1455_v38 = vmax.f32 %v993_v36, 0.0  ;;  %v995_v39 = vadd.f32 %v994_v37, %v888_v56 }
 0x19d   :  { %1505 = vst [vmem:[%s3630_s3 + $0x160] sm:$0x3] %v1455_v38  ;;  %v1456_v41 = vmax.f32 %v995_v39, 0.0 }
 0x19f   :  { %v1063_v8 = vpop.f32.mrf.mxu0  ;;  %1506 = vst [vmem:[%s3630_s3 + $0x168] sm:$0x3] %v1456_v41 }
 0x1a0   :  { %v1064_v11 = vadd.f32 %v1063_v8, %v3309_v57 }
 0x1a1   :  { %v1065_v45 = vpop.f32.mrf.mxu0 }
 0x1a2   :  { %v1066_v28 = vadd.f32 %v1065_v45, %v3309_v57  ;;  %v1170_v31 = vpop.f32.mrf.mxu1 }
 0x1a3   :  { %v1171_v48 = vadd.f32 %v1170_v31, %v1064_v11 }
 0x1a4   :  { %v1172_v3 = vpop.f32.mrf.mxu1 }
 0x1a5   :  { %v1415_v1 = vmax.f32 %v1171_v48, 0.0  ;;  %v1173_v40 = vadd.f32 %v1172_v3, %v1066_v28 }
 0x1a7   :  { %1464 = vst [vmem:[%s3630_s3 + $0x20] sm:$0xff] %v1415_v1  ;;  %v1416_v24 = vmax.f32 %v1173_v40, 0.0 }
 0x1a9   :  { %1465 = vst [vmem:[%s3630_s3 + $0x28] sm:$0xff] %v1416_v24 }
 0x1ac   :  { %v1176_v27 = vpop.f32.mrf.mxu1 }
 0x1ae   :  { %v1178_v50 = vpop.f32.mrf.mxu1 }
 0x1b2   :  { %v1182_v51 = vpop.f32.mrf.mxu1 }
 0x1b4   :  { %v1184_v54 = vpop.f32.mrf.mxu1 }
 0x1b9   :  { %v1188_v58 = vpop.f32.mrf.mxu1 }
 0x1bb   :  { %v1069_v52 = vpop.f32.mrf.mxu0  ;;  %v1190_v42 = vpop.f32.mrf.mxu1 }
 0x1bc   :  { %v1070_v60 = vadd.f32 %v1069_v52, %v3421_v19 }
 0x1bd   :  { %v1071_v62 = vpop.f32.mrf.mxu0 }
 0x1be   :  { %v1177_v53 = vadd.f32 %v1176_v27, %v1070_v60  ;;  %v1072_v63 = vadd.f32 %v1071_v62, %v3421_v19 }
 0x1c0   :  { %v1422_v0 = vmax.f32 %v1177_v53, 0.0  ;;  %v1179_v2 = vadd.f32 %v1178_v50, %v1072_v63 }
 0x1c1   :  { %v1194_v20 = vpop.f32.mrf.mxu1  ;;  %v1075_v22 = vpop.f32.mrf.mxu0 }
 0x1c2   :  { %1472 = vst [vmem:[%s3630_s3 + $0x58] sm:$0xff] %v1422_v0  ;;  %v1423_v17 = vmax.f32 %v1179_v2, 0.0  ;;  %v1076_v5 = vadd.f32 %v1075_v22, %v3431_v43 }
 0x1c3   :  { %v1196_v6 = vpop.f32.mrf.mxu1  ;;  %v1077_v61 = vpop.f32.mrf.mxu0 }
 0x1c4   :  { %1473 = vst [vmem:[%s3630_s3 + $0x60] sm:$0xff] %v1423_v17  ;;  %v1183_v9 = vadd.f32 %v1182_v51, %v1076_v5  ;;  %v1078_v4 = vadd.f32 %v1077_v61, %v3431_v43 }
 0x1c6   :  { %v1429_v46 = vmax.f32 %v1183_v9, 0.0  ;;  %v1185_v10 = vadd.f32 %v1184_v54, %v1078_v4 }
 0x1c7   :  { %v1200_v49 = vpop.f32.mrf.mxu1  ;;  %v1081_v32 = vpop.f32.mrf.mxu0 }
 0x1c8   :  { %1479 = vst [vmem:[%s3630_s3 + $0x90] sm:$0xff] %v1429_v46  ;;  %v1430_v12 = vmax.f32 %v1185_v10, 0.0  ;;  %v1082_v7 = vadd.f32 %v1081_v32, %v3435_v55 }
 0x1c9   :  { %v1202_v35 = vpop.f32.mrf.mxu1  ;;  %v1083_v13 = vpop.f32.mrf.mxu0 }
 0x1ca   :  { %1480 = vst [vmem:[%s3630_s3 + $0x98] sm:$0xff] %v1430_v12  ;;  %v1189_v14 = vadd.f32 %v1188_v58, %v1082_v7  ;;  %v1084_v15 = vadd.f32 %v1083_v13, %v3435_v55 }
 0x1cc   :  { %v1436_v44 = vmax.f32 %v1189_v14, 0.0  ;;  %v1191_v21 = vadd.f32 %v1190_v42, %v1084_v15 }
 0x1cd   :  { %v1206_v47 = vpop.f32.mrf.mxu1  ;;  %v1087_v25 = vpop.f32.mrf.mxu0 }
 0x1ce   :  { %1486 = vst [vmem:[%s3630_s3 + $0xc8] sm:$0xff] %v1436_v44  ;;  %v1437_v26 = vmax.f32 %v1191_v21, 0.0  ;;  %v1088_v29 = vadd.f32 %v1087_v25, %v3452_v23 }
 0x1cf   :  { %v1208_v30 = vpop.f32.mrf.mxu1  ;;  %v1089_v34 = vpop.f32.mrf.mxu0 }
 0x1d0   :  { %1487 = vst [vmem:[%s3630_s3 + $0xd0] sm:$0xff] %v1437_v26  ;;  %v1195_v16 = vadd.f32 %v1194_v20, %v1088_v29  ;;  %v1090_v56 = vadd.f32 %v1089_v34, %v3452_v23 }
 0x1d2   :  { %v1443_v59 = vmax.f32 %v1195_v16, 0.0  ;;  %v1197_v36 = vadd.f32 %v1196_v6, %v1090_v56 }
 0x1d3   :  { %v1582_v37 = vpop.f32.mrf.mxu1  ;;  %v1093_v38 = vpop.f32.mrf.mxu0 }
 0x1d4   :  { %1493 = vst [vmem:[%s3630_s3 + $0x100] sm:$0xff] %v1443_v59  ;;  %v1444_v39 = vmax.f32 %v1197_v36, 0.0  ;;  %v1094_v41 = vadd.f32 %v1093_v38, %v3457_v18 }
 0x1d5   :  { %v1583_v8 = vpop.f32.mrf.mxu1  ;;  %v1095_v11 = vpop.f32.mrf.mxu0 }
 0x1d6   :  { %1494 = vst [vmem:[%s3630_s3 + $0x108] sm:$0xff] %v1444_v39  ;;  %v1201_v45 = vadd.f32 %v1200_v49, %v1094_v41  ;;  %v1096_v28 = vadd.f32 %v1095_v11, %v3457_v18  ;;  %v1584_v63 = vadd.f32 %v1583_v8, %v1582_v37 }
 0x1d7   :  { %v1585_v31 = vpop.f32.mrf.mxu1 }
 0x1d8   :  { %v1099_v48 = vpop.f32.mrf.mxu0  ;;  %v1450_v3 = vmax.f32 %v1201_v45, 0.0  ;;  %v1203_v1 = vadd.f32 %v1202_v35, %v1096_v28  ;;  %v1278_v17 = vadd.f32 %v1584_v63, %v3309_v57 }
 0x1d9   :  { %v1100_v40 = vadd.f32 %v1099_v48, %v3473_v33  ;;  %v1586_v24 = vpop.f32.mrf.mxu1 }
 0x1da   :  { %v1101_v27 = vpop.f32.mrf.mxu0  ;;  %1500 = vst [vmem:[%s3630_s3 + $0x138] sm:$0xff] %v1450_v3  ;;  %v1451_v50 = vmax.f32 %v1203_v1, 0.0  ;;  %v1587_v20 = vadd.f32 %v1586_v24, %v1585_v31 }
 0x1db   :  { %v1207_v51 = vadd.f32 %v1206_v47, %v1100_v40  ;;  %v1102_v54 = vadd.f32 %v1101_v27, %v3473_v33  ;;  %v1588_v58 = vpop.f32.mrf.mxu1 }
 0x1dc   :  { %1501 = vst [vmem:[%s3630_s3 + $0x140] sm:$0xff] %v1451_v50  ;;  %v1283_v46 = vadd.f32 %v1587_v20, %v3421_v19 }
 0x1dd   :  { %v1457_v52 = vmax.f32 %v1207_v51, 0.0  ;;  %v1209_v60 = vadd.f32 %v1208_v30, %v1102_v54  ;;  %v1589_v62 = vpop.f32.mrf.mxu1 }
 0x1de   :  { %v1590_v9 = vadd.f32 %v1589_v62, %v1588_v58 }
 0x1df   :  { %1507 = vst [vmem:[%s3630_s3 + $0x170] sm:$0x3] %v1457_v52  ;;  %v1458_v42 = vmax.f32 %v1209_v60, 0.0  ;;  %v1591_v53 = vpop.f32.mrf.mxu1 }
 0x1e0   :  { %v1288_v35 = vadd.f32 %v1590_v9, %v3431_v43 }
 0x1e1   :  { %1508 = vst [vmem:[%s3630_s3 + $0x178] sm:$0x3] %v1458_v42  ;;  %v1592_v0 = vpop.f32.mrf.mxu1 }
 0x1e2   :  { %v1593_v7 = vadd.f32 %v1592_v0, %v1591_v53 }
 0x1e3   :  { %v1594_v2 = vpop.f32.mrf.mxu1 }
 0x1e4   :  { %v1293_v47 = vadd.f32 %v1593_v7, %v3435_v55 }
 0x1e5   :  { %v1595_v22 = vpop.f32.mrf.mxu1 }
 0x1e6   :  { %v1377_v5 = vpop.f32.mrf.mxu0  ;;  %v1596_v44 = vadd.f32 %v1595_v22, %v1594_v2 }
 0x1e7   :  { %v1378_v6 = vadd.f32 %v1377_v5, %v1278_v17  ;;  %v1597_v10 = vpop.f32.mrf.mxu1 }
 0x1e8   :  { %v1379_v61 = vpop.f32.mrf.mxu0  ;;  %v1298_v16 = vadd.f32 %v1596_v44, %v3452_v23 }
 0x1e9   :  { %v1417_v4 = vmax.f32 %v1378_v6, 0.0  ;;  %v1598_v13 = vpop.f32.mrf.mxu1 }
 0x1ea   :  { %v1382_v49 = vpop.f32.mrf.mxu0  ;;  %v1599_v30 = vadd.f32 %v1598_v13, %v1597_v10 }
 0x1eb   :  { %1467 = vst.msk [vmem:[%s3630_s3 + $0x30] sm:$0xff] %vm1466_vm2, %v1417_v4  ;;  %v1383_v32 = vadd.f32 %v1382_v49, %v1283_v46  ;;  %v1600_v25 = vpop.f32.mrf.mxu1 }
 0x1ec   :  { %v1384_v12 = vpop.f32.mrf.mxu0  ;;  %v1303_v39 = vadd.f32 %v1599_v30, %v3457_v18 }
 0x1ed   :  { %v1424_v57 = vmax.f32 %v1383_v32, 0.0  ;;  %v1601_v56 = vpop.f32.mrf.mxu1 }
 0x1ee   :  { %v1387_v14 = vpop.f32.mrf.mxu0  ;;  %v1602_v37 = vadd.f32 %v1601_v56, %v1600_v25 }
 0x1ef   :  { %1474 = vst.msk [vmem:[%s3630_s3 + $0x68] sm:$0xff] %vm1466_vm2, %v1424_v57  ;;  %v1388_v19 = vadd.f32 %v1387_v14, %v1288_v35 }
 0x1f0   :  { %v1389_v15 = vpop.f32.mrf.mxu0  ;;  %v1308_v45 = vadd.f32 %v1602_v37, %v3473_v33 }
 0x1f1   :  { %v1431_v21 = vmax.f32 %v1388_v19, 0.0 }
 0x1f2   :  { %v1392_v26 = vpop.f32.mrf.mxu0 }
 0x1f3   :  { %1481 = vst.msk [vmem:[%s3630_s3 + $0xa0] sm:$0xff] %vm1466_vm2, %v1431_v21  ;;  %v1393_v43 = vadd.f32 %v1392_v26, %v1293_v47 }
 0x1f4   :  { %v1394_v29 = vpop.f32.mrf.mxu0 }
 0x1f5   :  { %v1438_v34 = vmax.f32 %v1393_v43, 0.0 }
 0x1f6   :  { %v1397_v59 = vpop.f32.mrf.mxu0 }
 0x1f7   :  { %1488 = vst.msk [vmem:[%s3630_s3 + $0xd8] sm:$0xff] %vm1466_vm2, %v1438_v34  ;;  %v1398_v55 = vadd.f32 %v1397_v59, %v1298_v16 }
 0x1f8   :  { %v1399_v36 = vpop.f32.mrf.mxu0 }
 0x1f9   :  { %v1445_v38 = vmax.f32 %v1398_v55, 0.0 }
 0x1fa   :  { %v1402_v41 = vpop.f32.mrf.mxu0 }
 0x1fb   :  { %1495 = vst.msk [vmem:[%s3630_s3 + $0x110] sm:$0xff] %vm1466_vm2, %v1445_v38  ;;  %v1403_v23 = vadd.f32 %v1402_v41, %v1303_v39 }
 0x1fc   :  { %v1404_v8 = vpop.f32.mrf.mxu0 }
 0x1fd   :  { %v1452_v11 = vmax.f32 %v1403_v23, 0.0 }
 0x1fe   :  { %v1407_v28 = vpop.f32.mrf.mxu0 }
 0x1ff   :  { %1502 = vst.msk [vmem:[%s3630_s3 + $0x148] sm:$0xff] %vm1466_vm2, %v1452_v11  ;;  %v1408_v31 = vadd.f32 %v1407_v28, %v1308_v45 }
 0x200   :  { %v1409_v18 = vpop.f32.mrf.mxu0 }
 0x201   :  { %v1459_v48 = vmax.f32 %v1408_v31, 0.0 }
 0x203   :  { %1510 = vst.msk [vmem:[%s3630_s3 + $0x180] sm:$0x3] %vm1509_vm3, %v1459_v48 }

// kernel: lenet_forward.7
= control target key start
LH: loop header
LB: loop body
LE: loop exit
PB: predicated region body
PF: predicated region fallthrough
CT: control target
= control target key end

     0   :  { %v361_v30 = vmov 1983009808   ;;  %v92_v32 = vlaneseq  ;;  %s584_s0 = inlined_call_operand.vmem [shape: f32[2,512], index: 0, kind: input, shape index: {}]   ;;  %s585_s1 = inlined_call_operand.vmem [shape: f32[512,10], index: 1, kind: input, shape index: {}]   ;;  %s586_s2 = inlined_call_operand.vmem [shape: f32[1,10], index: 2, kind: input, shape index: {}]   ;;  %s587_s3 = inlined_call_operand.hbm [shape: f32[2,10], index: 3, kind: output, shape index: {}]  }
   0x1   :  { %v47_v0 = vld [vmem:[%s585_s1 + $0xf8] sm:$0xff]  ;;  %v46_v4 = vld [vmem:[%s585_s1 + $0xf0] sm:$0xff]  ;;  %v45_v8 = vld [vmem:[%s585_s1 + $0xe8] sm:$0xff]  ;;  %v90_v31 = vunpack.c.l.s4 %v361_v30 }
   0x2   :  { %v79_v1 = vld [vmem:[%s585_s1 + $0x1f8] sm:$0xff]  ;;  %266 = vmatprep.subr.mxu0 %v47_v0  ;;  %v78_v5 = vld [vmem:[%s585_s1 + $0x1f0] sm:$0xff]  ;;  %v77_v9 = vld [vmem:[%s585_s1 + $0x1e8] sm:$0xff]  ;;  %v93_v42 = vshrl.u32 %v92_v32, 7 }
   0x3   :  { %v31_v2 = vld [vmem:[%s585_s1 + $0x78] sm:$0xff]  ;;  %301 = vmatprep.subr.mxu1 %v79_v1  ;;  %v30_v6 = vld [vmem:[%s585_s1 + $0x70] sm:$0xff]  ;;  %v29_v10 = vld [vmem:[%s585_s1 + $0x68] sm:$0xff]  ;;  %v91_v41 = vunpack.c.0.s8 %v90_v31 }
   0x4   :  { %v63_v3 = vld [vmem:[%s585_s1 + $0x178] sm:$0xff]  ;;  %267 = vmatpush3.msra.mxu0 %v31_v2  ;;  %v62_v7 = vld [vmem:[%s585_s1 + $0x170] sm:$0xff]  ;;  %v61_v11 = vld [vmem:[%s585_s1 + $0x168] sm:$0xff] }
   0x5   :  { %302 = vmatpush3.msra.mxu1 %v63_v3  ;;  %268 = vmatprep.subr.mxu0 %v46_v4  ;;  %v44_v12 = vld [vmem:[%s585_s1 + $0xe0] sm:$0xff]  ;;  %v43_v16 = vld [vmem:[%s585_s1 + $0xd8] sm:$0xff]  ;;  %v42_v20 = vld [vmem:[%s585_s1 + $0xd0] sm:$0xff]  ;;  %v94_v52 = vsub.s32 %v91_v41, %v93_v42 }
   0x6   :  { %303 = vmatprep.subr.mxu1 %v78_v5  ;;  %269 = vmatpush3.msra.mxu0 %v30_v6  ;;  %v76_v13 = vld [vmem:[%s585_s1 + $0x1e0] sm:$0xff]  ;;  %v75_v17 = vld [vmem:[%s585_s1 + $0x1d8] sm:$0xff]  ;;  %v74_v21 = vld [vmem:[%s585_s1 + $0x1d0] sm:$0xff] }
   0x7   :  { %304 = vmatpush3.msra.mxu1 %v62_v7  ;;  %270 = vmatprep.subr.mxu0 %v45_v8  ;;  %v28_v14 = vld [vmem:[%s585_s1 + $0x60] sm:$0xff]  ;;  %v27_v18 = vld [vmem:[%s585_s1 + $0x58] sm:$0xff]  ;;  %v26_v22 = vld [vmem:[%s585_s1 + $0x50] sm:$0xff] }
   0x8   :  { %305 = vmatprep.subr.mxu1 %v77_v9  ;;  %v60_v15 = vld [vmem:[%s585_s1 + $0x160] sm:$0xff]  ;;  %271 = vmatpush3.msra.mxu0 %v29_v10  ;;  %v59_v19 = vld [vmem:[%s585_s1 + $0x158] sm:$0xff]  ;;  %v58_v23 = vld [vmem:[%s585_s1 + $0x150] sm:$0xff] }
   0x9   :  { %306 = vmatpush3.msra.mxu1 %v61_v11  ;;  %272 = vmatprep.subr.mxu0 %v44_v12  ;;  %v41_v24 = vld [vmem:[%s585_s1 + $0xc8] sm:$0xff]  ;;  %v40_v28 = vld [vmem:[%s585_s1 + $0xc0] sm:$0xff]  ;;  %v39_v35 = vld [vmem:[%s585_s1 + $0xb8] sm:$0xff] }
   0xa   :  { %307 = vmatprep.subr.mxu1 %v76_v13  ;;  %273 = vmatpush3.msra.mxu0 %v28_v14  ;;  %v73_v25 = vld [vmem:[%s585_s1 + $0x1c8] sm:$0xff]  ;;  %v72_v29 = vld [vmem:[%s585_s1 + $0x1c0] sm:$0xff]  ;;  %v71_v36 = vld [vmem:[%s585_s1 + $0x1b8] sm:$0xff] }
   0xb   :  { %308 = vmatpush3.msra.mxu1 %v60_v15  ;;  %274 = vmatprep.subr.mxu0 %v43_v16  ;;  %v25_v26 = vld [vmem:[%s585_s1 + $0x48] sm:$0xff]  ;;  %v24_v33 = vld [vmem:[%s585_s1 + $0x40] sm:$0xff]  ;;  %v23_v37 = vld [vmem:[%s585_s1 + $0x38] sm:$0xff] }
   0xc   :  { %309 = vmatprep.subr.mxu1 %v75_v17  ;;  %275 = vmatpush3.msra.mxu0 %v27_v18  ;;  %v57_v27 = vld [vmem:[%s585_s1 + $0x148] sm:$0xff]  ;;  %v56_v34 = vld [vmem:[%s585_s1 + $0x140] sm:$0xff]  ;;  %v55_v38 = vld [vmem:[%s585_s1 + $0x138] sm:$0xff] }
   0xd   :  { %310 = vmatpush3.msra.mxu1 %v59_v19  ;;  %276 = vmatprep.subr.mxu0 %v42_v20  ;;  %v38_v39 = vld [vmem:[%s585_s1 + $0xb0] sm:$0xff]  ;;  %v37_v45 = vld [vmem:[%s585_s1 + $0xa8] sm:$0xff]  ;;  %v36_v49 = vld [vmem:[%s585_s1 + $0xa0] sm:$0xff] }
   0xe   :  { %311 = vmatprep.subr.mxu1 %v74_v21  ;;  %277 = vmatpush3.msra.mxu0 %v26_v22  ;;  %v70_v40 = vld [vmem:[%s585_s1 + $0x1b0] sm:$0xff]  ;;  %v69_v46 = vld [vmem:[%s585_s1 + $0x1a8] sm:$0xff]  ;;  %v68_v50 = vld [vmem:[%s585_s1 + $0x1a0] sm:$0xff] }
   0xf   :  { %312 = vmatpush3.msra.mxu1 %v58_v23  ;;  %278 = vmatprep.subr.mxu0 %v41_v24  ;;  %v22_v43 = vld [vmem:[%s585_s1 + $0x30] sm:$0xff]  ;;  %v21_v47 = vld [vmem:[%s585_s1 + $0x28] sm:$0xff]  ;;  %v20_v51 = vld [vmem:[%s585_s1 + $0x20] sm:$0xff] }
  0x10   :  { %313 = vmatprep.subr.mxu1 %v73_v25  ;;  %279 = vmatpush3.msra.mxu0 %v25_v26  ;;  %v54_v44 = vld [vmem:[%s585_s1 + $0x130] sm:$0xff]  ;;  %v53_v48 = vld [vmem:[%s585_s1 + $0x128] sm:$0xff]  ;;  %v52_v53 = vld [vmem:[%s585_s1 + $0x120] sm:$0xff] }
  0x11   :  { %314 = vmatpush3.msra.mxu1 %v57_v27  ;;  %280 = vmatprep.subr.mxu0 %v40_v28  ;;  %v15_v54 = vld [vmem:[%s584_s0] sm:$0xff] }
  0x12   :  { %315 = vmatprep.subr.mxu1 %v72_v29  ;;  %281 = vmatpush3.msra.mxu0 %v24_v33 }
  0x13   :  { %316 = vmatpush3.msra.mxu1 %v56_v34  ;;  %282 = vmatprep.subr.mxu0 %v39_v35 }
  0x14   :  { %317 = vmatprep.subr.mxu1 %v71_v36  ;;  %283 = vmatpush3.msra.mxu0 %v23_v37 }
  0x15   :  { %318 = vmatpush3.msra.mxu1 %v55_v38  ;;  %284 = vmatprep.subr.mxu0 %v38_v39 }
  0x16   :  { %319 = vmatprep.subr.mxu1 %v70_v40  ;;  %285 = vmatpush3.msra.mxu0 %v22_v43 }
  0x17   :  { %320 = vmatpush3.msra.mxu1 %v54_v44  ;;  %286 = vmatprep.subr.mxu0 %v37_v45 }
  0x18   :  { %321 = vmatprep.subr.mxu1 %v69_v46 }
  0x19   :  { %8 = vsyncpa [#allocation3], 0  ;;  %287 = vmatpush3.msra.mxu0 %v21_v47  ;;  %322 = vmatpush3.msra.mxu1 %v53_v48  ;;  %v35_v55 = vld [vmem:[%s585_s1 + $0x98] sm:$0xff]  ;;  %v88_v57 = vcombine.high %v15_v54, %v15_v54  ;;  %v34_v60 = vld [vmem:[%s585_s1 + $0x90] sm:$0xff]  ;;  %v95_v62 = vrot.slane %v15_v54, %v94_v52  ;;  %s362_s8 = smov [#allocation2]   ;;  %vm249_vm0 = vcmask 74752  }
  0x1a   :  { %v67_v56 = vld [vmem:[%s585_s1 + $0x198] sm:$0xff]  ;;  %288 = vmatprep.subr.mxu0 %v36_v49  ;;  %323 = vmatprep.subr.mxu1 %v68_v50  ;;  %v66_v61 = vld [vmem:[%s585_s1 + $0x190] sm:$0xff]  ;;  %v33_v2 = vld [vmem:[%s585_s1 + $0x88] sm:$0xff]  ;;  %s257_s0 = sshll.u32 %s362_s8, 4  ;;  %s258_s0 = int_to_ptr.vmem [resolvable:$true] %s257_s0 }
  0x1b   :  { %v19_v58 = vld [vmem:[%s585_s1 + $0x18] sm:$0xff]  ;;  %289 = vmatpush3.msra.mxu0 %v20_v51  ;;  %324 = vmatpush3.msra.mxu1 %v52_v53  ;;  %v18_v63 = vld [vmem:[%s585_s1 + $0x10] sm:$0xff]  ;;  %v102_v1 = vrot.slane %v88_v57, %v94_v52  ;;  %v65_v3 = vld [vmem:[%s585_s1 + $0x188] sm:$0xff]  ;;  %v103_v8 = vcombine.high %v95_v62, %v95_v62  ;;  %p344_p1 = scmp.lt.s32.totalorder %s258_s0, %s258_s0 }
  0x1c   :  { %v51_v59 = vld [vmem:[%s585_s1 + $0x118] sm:$0xff]  ;;  %290 = vmatprep.subr.mxu0 %v35_v55  ;;  %325 = vmatprep.subr.mxu1 %v67_v56  ;;  %v50_v0 = vld [vmem:[%s585_s1 + $0x110] sm:$0xff]  ;;  %v17_v4 = vld [vmem:[%s585_s1 + $0x8] sm:$0xff] }
  0x1d   :  { %291 = vmatpush3.msra.mxu0 %v19_v58  ;;  %326 = vmatpush3.msra.mxu1 %v51_v59  ;;  %v49_v5 = vld [vmem:[%s585_s1 + $0x108] sm:$0xff]  ;;  %v32_v6 = vld [vmem:[%s585_s1 + $0x80] sm:$0xff]  ;;  %v104_v10 = vcombine.high %v102_v1, %v102_v1 }
  0x1e   :  { %292 = vmatprep.subr.mxu0 %v34_v60  ;;  %327 = vmatprep.subr.mxu1 %v66_v61  ;;  %v64_v7 = vld [vmem:[%s585_s1 + $0x180] sm:$0xff] }
  0x1f   :  { %293 = vmatpush3.msra.mxu0 %v18_v63  ;;  %328 = vmatpush3.msra.mxu1 %v50_v0  ;;  %v16_v9 = vld [vmem:[%s585_s1] sm:$0xff] }
  0x20   :  { %294 = vmatprep.subr.mxu0 %v33_v2  ;;  %329 = vmatprep.subr.mxu1 %v65_v3  ;;  %v48_v11 = vld [vmem:[%s585_s1 + $0x100] sm:$0xff]  ;;  %s339_s1 = scalar_lea.vmem %s258_s0, 32 }
  0x21   :  { %295 = vmatpush3.msra.mxu0 %v17_v4  ;;  %330 = vmatpush3.msra.mxu1 %v49_v5  ;;  %v265_v14 = vld [vmem:[%s586_s2] ss:$0 sm:$0xff]  ;;  %p340_p0 = scmp.ne.s32.totalorder %s258_s0, %s339_s1  ;;  %p345_p2 = scmp.lt.s32.totalorder %s339_s1, %s339_s1 }
  0x22   :  { %296 = vmatprep.subr.mxu0 %v32_v6  ;;  %331 = vmatprep.subr.mxu1 %v64_v7 }
  0x23   :  { %297 = vmatpush3.msra.mxu0 %v16_v9  ;;  %173 = vmatprep.mubr.f32.mxu0 %v103_v8  ;;  %p346_p3 = por %p345_p2, %p344_p1 }
  0x24   :  { %332 = vmatpush3.msra.mxu1 %v48_v11  ;;  %243 = vmatprep.mubr.f32.mxu1 %v104_v10 }
  0x25   :  { %174 = vmatmul.mubr.f32.vlgmr.msra.gmra.mxu0 %v95_v62  ;;  %244 = vmatmul.mubr.f32.vlgmr.msra.gmra.mxu1 %v102_v1  ;;  %p347_p4 = pnand %p346_p3, %p340_p0 }
  0xe5   :  { %v298_v12 = vpop.f32.mrf.mxu0  ;;  %v333_v13 = vpop.f32.mrf.mxu1 }
  0xe7   :  { %v299_v15 = vpop.f32.mrf.mxu0  ;;  %v334_v16 = vpop.f32.mrf.mxu1 }
  0xe8   :  { %v300_v17 = vadd.f32 %v299_v15, %v298_v12  ;;  %v335_v19 = vadd.f32 %v334_v16, %v333_v13 }
  0xea   :  { %v176_v18 = vadd.f32 %v300_v17, %v265_v14 }
  0xec   :  { %v246_v20 = vadd.f32 %v335_v19, %v176_v18 }
  0xee   :  { %250 = vst.msk [vmem:[#allocation2] sm:$0x3] %vm249_vm0, %v246_v20 }
  0xef   :  { %350 = shalt.err (!%p347_p4)
}
  0xf0   :  { %260 = dma.vmem_to_hbm [thread:$0]  %s258_s0, 32, %s587_s3, [#allocation3]  }
  0xf1   :  { %359 = dma.done.wait [#allocation3], 32  }
  0xf2   :  { %360 = vsyncadd [#allocation3], 4294967264 }
  0xf3   :  { %264 = vsyncpa [#allocation3], 1 }

// kernel: lenet_forward.6
= control target key start
LH: loop header
LB: loop body
LE: loop exit
PB: predicated region body
PF: predicated region fallthrough
CT: control target
= control target key end

     0   :  { %s12287_s12 = smov 0   ;;  %s12289_s13 = smov 0   ;;  %s14468_s0 = inlined_call_operand.vmem [shape: bf16[2,20480], index: 0, kind: input, shape index: {}]   ;;  %s14469_s1 = inlined_call_operand.vmem [shape: bf16[20480,512], index: 1, kind: input, shape index: {}]   ;;  %s14470_s2 = inlined_call_operand.vmem [shape: f32[1,512], index: 2, kind: input, shape index: {}]   ;;  %s14471_s3 = inlined_call_operand.vmem [shape: f32[2,512], index: 3, kind: output, shape index: {}]  }
   0x1   :  { %s12291_s14 = smov 0   ;;  %s12293_s15 = smov 0  }
   0x2   :  { %s12295_s16 = smov 0   ;;  %s12297_s17 = smov 0  }
   0x3   :  { %s12299_s18 = smov 0  }
   0x4 LB: > { %s22_s19 = sadd.s32 1, %s12254_s16  ;;  %s25_s20 = sadd.s32 1, %s12258_s17  ;;  %s12262_s18 = sphi %s12299_s18, %s13_s18   ;;  %s12258_s17 = sphi %s12297_s17, %s14477_s17   ;;  %s12254_s16 = sphi %s12295_s16, %s14476_s16   ;;  %s12250_s15 = sphi %s12293_s15, %s14475_s15   ;;  %s12246_s14 = sphi %s12291_s14, %s14474_s14   ;;  %s12242_s13 = sphi %s12289_s13, %s14473_s13   ;;  %s12238_s12 = sphi %s12287_s12, %s14472_s12  }
   0x5   : > { %p23_p0 = scmp.ge.s32.totalorder %s22_s19, 4  ;;  %p67_p1 = scmp.ne.s32.totalorder %s12242_s13, %s12238_s12 }
   0x6   : > { %p68_p2 = scmp.eq.s32.totalorder %s12262_s18, 0  ;;  %s60_s24 = sadd.s32 1, %s12242_s13 }
   0x7   : > { %s14479_s19 = smov (%p23_p0, %s22_s19), 0  ;;  %s14481_s20 = smov (!%p23_p0, %s25_s20), %s12258_s17 }
   0x8   : > { %p69_p3 = por %p68_p2, %p67_p1  ;;  %p27_p4 = scmp.ge.s32.totalorder %s14481_s20, 2 }
   0x9   : > { %s55_s21 = ssub.s32 %s12254_s16, %s14479_s19  ;;  %p10529_p6 = scmp.ge.s32.totalorder %s12262_s18, 8 }
   0xa   : > { %s14483_s20 = smov (%p27_p4, %s14481_s20), 0 }
   0xb   : > { %s56_s22 = ssub.s32 %s12258_s17, %s14483_s20  ;;  %145 = sbr.rel (%p10529_p6) target bundleno = 344 (0x158), region = 16 }
   0xc   : > { %s57_s23 = sor.u32 %s56_s22, %s55_s21 }
   0xd   : > { %p58_p5 = scmp.eq.s32.totalorder %s57_s23, 0 }
   0xf   : > { %s12338_s25 = scalar_select %p58_p5, %s12242_s13, %s60_s24  }
  0x10   : > { %156 = sbr.rel (!%p69_p3) target bundleno = 344 (0x158), region = 24  ;;  %s158_s26 = sand.u32 (%p69_p3), 1, %s12242_s13  }
  0x11   : > { %s11182_s27 = smul.u32 (%p69_p3), 5120, %s158_s26  ;;  %s10530_s28 = sshll.u32 (%p69_p3), %s12258_s17, 1 }
  0x12   : > { %s11181_s29 = smul.u32 (%p69_p3), 2560, %s12254_s16 }
  0x13   : > { %s12352_s8 = scalar_lea.vmem (%p69_p3), [#allocation3], %s11182_s27 }
  0x14   : > { %s164_s30 = sadd.s32 (%p69_p3), %s11181_s29, %s10530_s28 }
  0x15   : > { %s10532_s4 = sshll.u32 %s164_s30, 2 }
  0x16   : > { %s12347_s7 = scalar_lea.vmem %s14469_s1, %s10532_s4 }
  0x17   : > { %v1476_v0 = vld [vmem:[%s12347_s7] sm:$0xff]  ;;  %v1478_v1 = vld [vmem:[%s12347_s7 + $0x10] sm:$0xff] }
  0x18   : > { %v1480_v2 = vld [vmem:[%s12347_s7 + $0x20] sm:$0xff]  ;;  %1477 = vst [vmem:[%s12352_s8] sm:$0xff] %v1476_v0  ;;  %1479 = vst [vmem:[%s12352_s8 + $0x8] sm:$0xff] %v1478_v1  ;;  %v1482_v3 = vld [vmem:[%s12347_s7 + $0x30] sm:$0xff] }
  0x19   : > { %1481 = vst [vmem:[%s12352_s8 + $0x10] sm:$0xff] %v1480_v2  ;;  %v1484_v4 = vld [vmem:[%s12347_s7 + $0x40] sm:$0xff]  ;;  %v1486_v5 = vld [vmem:[%s12347_s7 + $0x50] sm:$0xff]  ;;  %1483 = vst [vmem:[%s12352_s8 + $0x18] sm:$0xff] %v1482_v3 }
  0x1a   : > { %1485 = vst [vmem:[%s12352_s8 + $0x20] sm:$0xff] %v1484_v4  ;;  %1487 = vst [vmem:[%s12352_s8 + $0x28] sm:$0xff] %v1486_v5  ;;  %v1488_v6 = vld [vmem:[%s12347_s7 + $0x60] sm:$0xff]  ;;  %v1490_v7 = vld [vmem:[%s12347_s7 + $0x70] sm:$0xff] }
  0x1b   : > { %v1492_v8 = vld [vmem:[%s12347_s7 + $0x80] sm:$0xff]  ;;  %1489 = vst [vmem:[%s12352_s8 + $0x30] sm:$0xff] %v1488_v6  ;;  %1491 = vst [vmem:[%s12352_s8 + $0x38] sm:$0xff] %v1490_v7  ;;  %v1494_v9 = vld [vmem:[%s12347_s7 + $0x90] sm:$0xff] }
  0x1c   : > { %1493 = vst [vmem:[%s12352_s8 + $0x40] sm:$0xff] %v1492_v8  ;;  %v1496_v10 = vld [vmem:[%s12347_s7 + $0xa0] sm:$0xff]  ;;  %v1498_v11 = vld [vmem:[%s12347_s7 + $0xb0] sm:$0xff]  ;;  %1495 = vst [vmem:[%s12352_s8 + $0x48] sm:$0xff] %v1494_v9 }
  0x1d   : > { %1497 = vst [vmem:[%s12352_s8 + $0x50] sm:$0xff] %v1496_v10  ;;  %1499 = vst [vmem:[%s12352_s8 + $0x58] sm:$0xff] %v1498_v11  ;;  %v1500_v12 = vld [vmem:[%s12347_s7 + $0xc0] sm:$0xff]  ;;  %v1502_v13 = vld [vmem:[%s12347_s7 + $0xd0] sm:$0xff] }
  0x1e   : > { %v1504_v14 = vld [vmem:[%s12347_s7 + $0xe0] sm:$0xff]  ;;  %1501 = vst [vmem:[%s12352_s8 + $0x60] sm:$0xff] %v1500_v12  ;;  %1503 = vst [vmem:[%s12352_s8 + $0x68] sm:$0xff] %v1502_v13  ;;  %v1506_v15 = vld [vmem:[%s12347_s7 + $0xf0] sm:$0xff] }
  0x1f   : > { %1505 = vst [vmem:[%s12352_s8 + $0x70] sm:$0xff] %v1504_v14  ;;  %v1508_v16 = vld [vmem:[%s12347_s7 + $0x100] sm:$0xff]  ;;  %v1510_v17 = vld [vmem:[%s12347_s7 + $0x110] sm:$0xff]  ;;  %1507 = vst [vmem:[%s12352_s8 + $0x78] sm:$0xff] %v1506_v15 }
  0x20   : > { %1509 = vst [vmem:[%s12352_s8 + $0x80] sm:$0xff] %v1508_v16  ;;  %1511 = vst [vmem:[%s12352_s8 + $0x88] sm:$0xff] %v1510_v17  ;;  %v1512_v18 = vld [vmem:[%s12347_s7 + $0x120] sm:$0xff]  ;;  %v1514_v19 = vld [vmem:[%s12347_s7 + $0x130] sm:$0xff] }
  0x21   : > { %v1516_v20 = vld [vmem:[%s12347_s7 + $0x140] sm:$0xff]  ;;  %1513 = vst [vmem:[%s12352_s8 + $0x90] sm:$0xff] %v1512_v18  ;;  %1515 = vst [vmem:[%s12352_s8 + $0x98] sm:$0xff] %v1514_v19  ;;  %v1518_v21 = vld [vmem:[%s12347_s7 + $0x150] sm:$0xff] }
  0x22   : > { %1517 = vst [vmem:[%s12352_s8 + $0xa0] sm:$0xff] %v1516_v20  ;;  %v1520_v22 = vld [vmem:[%s12347_s7 + $0x160] sm:$0xff]  ;;  %v1522_v23 = vld [vmem:[%s12347_s7 + $0x170] sm:$0xff]  ;;  %1519 = vst [vmem:[%s12352_s8 + $0xa8] sm:$0xff] %v1518_v21 }
  0x23   : > { %1521 = vst [vmem:[%s12352_s8 + $0xb0] sm:$0xff] %v1520_v22  ;;  %1523 = vst [vmem:[%s12352_s8 + $0xb8] sm:$0xff] %v1522_v23  ;;  %v1524_v24 = vld [vmem:[%s12347_s7 + $0x180] sm:$0xff]  ;;  %v1526_v25 = vld [vmem:[%s12347_s7 + $0x190] sm:$0xff] }
  0x24   : > { %v1528_v26 = vld [vmem:[%s12347_s7 + $0x1a0] sm:$0xff]  ;;  %1525 = vst [vmem:[%s12352_s8 + $0xc0] sm:$0xff] %v1524_v24  ;;  %1527 = vst [vmem:[%s12352_s8 + $0xc8] sm:$0xff] %v1526_v25  ;;  %v1530_v27 = vld [vmem:[%s12347_s7 + $0x1b0] sm:$0xff] }
  0x25   : > { %1529 = vst [vmem:[%s12352_s8 + $0xd0] sm:$0xff] %v1528_v26  ;;  %v1532_v28 = vld [vmem:[%s12347_s7 + $0x1c0] sm:$0xff]  ;;  %v1534_v29 = vld [vmem:[%s12347_s7 + $0x1d0] sm:$0xff]  ;;  %1531 = vst [vmem:[%s12352_s8 + $0xd8] sm:$0xff] %v1530_v27 }
  0x26   : > { %1533 = vst [vmem:[%s12352_s8 + $0xe0] sm:$0xff] %v1532_v28  ;;  %1535 = vst [vmem:[%s12352_s8 + $0xe8] sm:$0xff] %v1534_v29  ;;  %v1536_v30 = vld [vmem:[%s12347_s7 + $0x1e0] sm:$0xff]  ;;  %v1538_v31 = vld [vmem:[%s12347_s7 + $0x1f0] sm:$0xff] }
  0x27   : > { %v1540_v32 = vld [vmem:[%s12347_s7 + $0x200] sm:$0xff]  ;;  %1537 = vst [vmem:[%s12352_s8 + $0xf0] sm:$0xff] %v1536_v30  ;;  %1539 = vst [vmem:[%s12352_s8 + $0xf8] sm:$0xff] %v1538_v31  ;;  %v1542_v33 = vld [vmem:[%s12347_s7 + $0x210] sm:$0xff] }
  0x28   : > { %1541 = vst [vmem:[%s12352_s8 + $0x100] sm:$0xff] %v1540_v32  ;;  %v1544_v34 = vld [vmem:[%s12347_s7 + $0x220] sm:$0xff]  ;;  %v1546_v35 = vld [vmem:[%s12347_s7 + $0x230] sm:$0xff]  ;;  %1543 = vst [vmem:[%s12352_s8 + $0x108] sm:$0xff] %v1542_v33 }
  0x29   : > { %1545 = vst [vmem:[%s12352_s8 + $0x110] sm:$0xff] %v1544_v34  ;;  %1547 = vst [vmem:[%s12352_s8 + $0x118] sm:$0xff] %v1546_v35  ;;  %v1548_v36 = vld [vmem:[%s12347_s7 + $0x240] sm:$0xff]  ;;  %v1550_v37 = vld [vmem:[%s12347_s7 + $0x250] sm:$0xff] }
  0x2a   : > { %v1552_v38 = vld [vmem:[%s12347_s7 + $0x260] sm:$0xff]  ;;  %1549 = vst [vmem:[%s12352_s8 + $0x120] sm:$0xff] %v1548_v36  ;;  %1551 = vst [vmem:[%s12352_s8 + $0x128] sm:$0xff] %v1550_v37  ;;  %v1554_v39 = vld [vmem:[%s12347_s7 + $0x270] sm:$0xff] }
  0x2b   : > { %1553 = vst [vmem:[%s12352_s8 + $0x130] sm:$0xff] %v1552_v38  ;;  %v1556_v40 = vld [vmem:[%s12347_s7 + $0x280] sm:$0xff]  ;;  %v1558_v41 = vld [vmem:[%s12347_s7 + $0x290] sm:$0xff]  ;;  %1555 = vst [vmem:[%s12352_s8 + $0x138] sm:$0xff] %v1554_v39 }
  0x2c   : > { %1557 = vst [vmem:[%s12352_s8 + $0x140] sm:$0xff] %v1556_v40  ;;  %1559 = vst [vmem:[%s12352_s8 + $0x148] sm:$0xff] %v1558_v41  ;;  %v1560_v42 = vld [vmem:[%s12347_s7 + $0x2a0] sm:$0xff]  ;;  %v1562_v43 = vld [vmem:[%s12347_s7 + $0x2b0] sm:$0xff] }
  0x2d   : > { %v1564_v44 = vld [vmem:[%s12347_s7 + $0x2c0] sm:$0xff]  ;;  %1561 = vst [vmem:[%s12352_s8 + $0x150] sm:$0xff] %v1560_v42  ;;  %1563 = vst [vmem:[%s12352_s8 + $0x158] sm:$0xff] %v1562_v43  ;;  %v1566_v45 = vld [vmem:[%s12347_s7 + $0x2d0] sm:$0xff] }
  0x2e   : > { %1565 = vst [vmem:[%s12352_s8 + $0x160] sm:$0xff] %v1564_v44  ;;  %v1568_v46 = vld [vmem:[%s12347_s7 + $0x2e0] sm:$0xff]  ;;  %v1570_v47 = vld [vmem:[%s12347_s7 + $0x2f0] sm:$0xff]  ;;  %1567 = vst [vmem:[%s12352_s8 + $0x168] sm:$0xff] %v1566_v45 }
  0x2f   : > { %1569 = vst [vmem:[%s12352_s8 + $0x170] sm:$0xff] %v1568_v46  ;;  %1571 = vst [vmem:[%s12352_s8 + $0x178] sm:$0xff] %v1570_v47  ;;  %v1572_v48 = vld [vmem:[%s12347_s7 + $0x300] sm:$0xff]  ;;  %v1574_v49 = vld [vmem:[%s12347_s7 + $0x310] sm:$0xff] }
  0x30   : > { %v1576_v50 = vld [vmem:[%s12347_s7 + $0x320] sm:$0xff]  ;;  %1573 = vst [vmem:[%s12352_s8 + $0x180] sm:$0xff] %v1572_v48  ;;  %1575 = vst [vmem:[%s12352_s8 + $0x188] sm:$0xff] %v1574_v49  ;;  %v1578_v51 = vld [vmem:[%s12347_s7 + $0x330] sm:$0xff] }
  0x31   : > { %1577 = vst [vmem:[%s12352_s8 + $0x190] sm:$0xff] %v1576_v50  ;;  %v1580_v52 = vld [vmem:[%s12347_s7 + $0x340] sm:$0xff]  ;;  %v1582_v53 = vld [vmem:[%s12347_s7 + $0x350] sm:$0xff]  ;;  %1579 = vst [vmem:[%s12352_s8 + $0x198] sm:$0xff] %v1578_v51 }
  0x32   : > { %1581 = vst [vmem:[%s12352_s8 + $0x1a0] sm:$0xff] %v1580_v52  ;;  %1583 = vst [vmem:[%s12352_s8 + $0x1a8] sm:$0xff] %v1582_v53  ;;  %v1584_v54 = vld [vmem:[%s12347_s7 + $0x360] sm:$0xff]  ;;  %v1586_v55 = vld [vmem:[%s12347_s7 + $0x370] sm:$0xff] }
  0x33   : > { %v1588_v56 = vld [vmem:[%s12347_s7 + $0x380] sm:$0xff]  ;;  %1585 = vst [vmem:[%s12352_s8 + $0x1b0] sm:$0xff] %v1584_v54  ;;  %1587 = vst [vmem:[%s12352_s8 + $0x1b8] sm:$0xff] %v1586_v55  ;;  %v1590_v57 = vld [vmem:[%s12347_s7 + $0x390] sm:$0xff] }
  0x34   : > { %1589 = vst [vmem:[%s12352_s8 + $0x1c0] sm:$0xff] %v1588_v56  ;;  %v1592_v58 = vld [vmem:[%s12347_s7 + $0x3a0] sm:$0xff]  ;;  %v1594_v59 = vld [vmem:[%s12347_s7 + $0x3b0] sm:$0xff]  ;;  %1591 = vst [vmem:[%s12352_s8 + $0x1c8] sm:$0xff] %v1590_v57 }
  0x35   : > { %1593 = vst [vmem:[%s12352_s8 + $0x1d0] sm:$0xff] %v1592_v58  ;;  %1595 = vst [vmem:[%s12352_s8 + $0x1d8] sm:$0xff] %v1594_v59  ;;  %v1596_v60 = vld [vmem:[%s12347_s7 + $0x3c0] sm:$0xff]  ;;  %v1598_v61 = vld [vmem:[%s12347_s7 + $0x3d0] sm:$0xff] }
  0x36   : > { %v1600_v62 = vld [vmem:[%s12347_s7 + $0x3e0] sm:$0xff]  ;;  %1597 = vst [vmem:[%s12352_s8 + $0x1e0] sm:$0xff] %v1596_v60  ;;  %1599 = vst [vmem:[%s12352_s8 + $0x1e8] sm:$0xff] %v1598_v61  ;;  %v1602_v63 = vld [vmem:[%s12347_s7 + $0x3f0] sm:$0xff] }
  0x37   : > { %1601 = vst [vmem:[%s12352_s8 + $0x1f0] sm:$0xff] %v1600_v62  ;;  %v1604_v0 = vld [vmem:[%s12347_s7 + $0x400] sm:$0xff]  ;;  %v1606_v1 = vld [vmem:[%s12347_s7 + $0x410] sm:$0xff]  ;;  %1603 = vst [vmem:[%s12352_s8 + $0x1f8] sm:$0xff] %v1602_v63 }
  0x38   : > { %1605 = vst [vmem:[%s12352_s8 + $0x200] sm:$0xff] %v1604_v0  ;;  %1607 = vst [vmem:[%s12352_s8 + $0x208] sm:$0xff] %v1606_v1  ;;  %v1608_v2 = vld [vmem:[%s12347_s7 + $0x420] sm:$0xff]  ;;  %v1610_v3 = vld [vmem:[%s12347_s7 + $0x430] sm:$0xff] }
  0x39   : > { %v1612_v4 = vld [vmem:[%s12347_s7 + $0x440] sm:$0xff]  ;;  %1609 = vst [vmem:[%s12352_s8 + $0x210] sm:$0xff] %v1608_v2  ;;  %1611 = vst [vmem:[%s12352_s8 + $0x218] sm:$0xff] %v1610_v3  ;;  %v1614_v5 = vld [vmem:[%s12347_s7 + $0x450] sm:$0xff] }
  0x3a   : > { %1613 = vst [vmem:[%s12352_s8 + $0x220] sm:$0xff] %v1612_v4  ;;  %v1616_v6 = vld [vmem:[%s12347_s7 + $0x460] sm:$0xff]  ;;  %v1618_v7 = vld [vmem:[%s12347_s7 + $0x470] sm:$0xff]  ;;  %1615 = vst [vmem:[%s12352_s8 + $0x228] sm:$0xff] %v1614_v5 }
  0x3b   : > { %1617 = vst [vmem:[%s12352_s8 + $0x230] sm:$0xff] %v1616_v6  ;;  %1619 = vst [vmem:[%s12352_s8 + $0x238] sm:$0xff] %v1618_v7  ;;  %v1620_v8 = vld [vmem:[%s12347_s7 + $0x480] sm:$0xff]  ;;  %v1622_v9 = vld [vmem:[%s12347_s7 + $0x490] sm:$0xff] }
  0x3c   : > { %v1624_v10 = vld [vmem:[%s12347_s7 + $0x4a0] sm:$0xff]  ;;  %1621 = vst [vmem:[%s12352_s8 + $0x240] sm:$0xff] %v1620_v8  ;;  %1623 = vst [vmem:[%s12352_s8 + $0x248] sm:$0xff] %v1622_v9  ;;  %v1626_v11 = vld [vmem:[%s12347_s7 + $0x4b0] sm:$0xff] }
  0x3d   : > { %1625 = vst [vmem:[%s12352_s8 + $0x250] sm:$0xff] %v1624_v10  ;;  %v1628_v12 = vld [vmem:[%s12347_s7 + $0x4c0] sm:$0xff]  ;;  %v1630_v13 = vld [vmem:[%s12347_s7 + $0x4d0] sm:$0xff]  ;;  %1627 = vst [vmem:[%s12352_s8 + $0x258] sm:$0xff] %v1626_v11 }
  0x3e   : > { %1629 = vst [vmem:[%s12352_s8 + $0x260] sm:$0xff] %v1628_v12  ;;  %1631 = vst [vmem:[%s12352_s8 + $0x268] sm:$0xff] %v1630_v13  ;;  %v1632_v14 = vld [vmem:[%s12347_s7 + $0x4e0] sm:$0xff]  ;;  %v1634_v15 = vld [vmem:[%s12347_s7 + $0x4f0] sm:$0xff] }
  0x3f   : > { %v1636_v16 = vld [vmem:[%s12347_s7 + $0x500] sm:$0xff]  ;;  %1633 = vst [vmem:[%s12352_s8 + $0x270] sm:$0xff] %v1632_v14  ;;  %1635 = vst [vmem:[%s12352_s8 + $0x278] sm:$0xff] %v1634_v15  ;;  %v1638_v17 = vld [vmem:[%s12347_s7 + $0x510] sm:$0xff] }
  0x40   : > { %1637 = vst [vmem:[%s12352_s8 + $0x280] sm:$0xff] %v1636_v16  ;;  %v1640_v18 = vld [vmem:[%s12347_s7 + $0x520] sm:$0xff]  ;;  %v1642_v19 = vld [vmem:[%s12347_s7 + $0x530] sm:$0xff]  ;;  %1639 = vst [vmem:[%s12352_s8 + $0x288] sm:$0xff] %v1638_v17 }
  0x41   : > { %1641 = vst [vmem:[%s12352_s8 + $0x290] sm:$0xff] %v1640_v18  ;;  %1643 = vst [vmem:[%s12352_s8 + $0x298] sm:$0xff] %v1642_v19  ;;  %v1644_v20 = vld [vmem:[%s12347_s7 + $0x540] sm:$0xff]  ;;  %v1646_v21 = vld [vmem:[%s12347_s7 + $0x550] sm:$0xff] }
  0x42   : > { %v1648_v22 = vld [vmem:[%s12347_s7 + $0x560] sm:$0xff]  ;;  %1645 = vst [vmem:[%s12352_s8 + $0x2a0] sm:$0xff] %v1644_v20  ;;  %1647 = vst [vmem:[%s12352_s8 + $0x2a8] sm:$0xff] %v1646_v21  ;;  %v1650_v23 = vld [vmem:[%s12347_s7 + $0x570] sm:$0xff] }
  0x43   : > { %1649 = vst [vmem:[%s12352_s8 + $0x2b0] sm:$0xff] %v1648_v22  ;;  %v1652_v24 = vld [vmem:[%s12347_s7 + $0x580] sm:$0xff]  ;;  %v1654_v25 = vld [vmem:[%s12347_s7 + $0x590] sm:$0xff]  ;;  %1651 = vst [vmem:[%s12352_s8 + $0x2b8] sm:$0xff] %v1650_v23 }
  0x44   : > { %1653 = vst [vmem:[%s12352_s8 + $0x2c0] sm:$0xff] %v1652_v24  ;;  %1655 = vst [vmem:[%s12352_s8 + $0x2c8] sm:$0xff] %v1654_v25  ;;  %v1656_v26 = vld [vmem:[%s12347_s7 + $0x5a0] sm:$0xff]  ;;  %v1658_v27 = vld [vmem:[%s12347_s7 + $0x5b0] sm:$0xff] }
  0x45   : > { %v1660_v28 = vld [vmem:[%s12347_s7 + $0x5c0] sm:$0xff]  ;;  %1657 = vst [vmem:[%s12352_s8 + $0x2d0] sm:$0xff] %v1656_v26  ;;  %1659 = vst [vmem:[%s12352_s8 + $0x2d8] sm:$0xff] %v1658_v27  ;;  %v1662_v29 = vld [vmem:[%s12347_s7 + $0x5d0] sm:$0xff] }
  0x46   : > { %1661 = vst [vmem:[%s12352_s8 + $0x2e0] sm:$0xff] %v1660_v28  ;;  %v1664_v30 = vld [vmem:[%s12347_s7 + $0x5e0] sm:$0xff]  ;;  %v1666_v31 = vld [vmem:[%s12347_s7 + $0x5f0] sm:$0xff]  ;;  %1663 = vst [vmem:[%s12352_s8 + $0x2e8] sm:$0xff] %v1662_v29 }
  0x47   : > { %1665 = vst [vmem:[%s12352_s8 + $0x2f0] sm:$0xff] %v1664_v30  ;;  %1667 = vst [vmem:[%s12352_s8 + $0x2f8] sm:$0xff] %v1666_v31  ;;  %v1668_v32 = vld [vmem:[%s12347_s7 + $0x600] sm:$0xff]  ;;  %v1670_v33 = vld [vmem:[%s12347_s7 + $0x610] sm:$0xff] }
  0x48   : > { %v1672_v34 = vld [vmem:[%s12347_s7 + $0x620] sm:$0xff]  ;;  %1669 = vst [vmem:[%s12352_s8 + $0x300] sm:$0xff] %v1668_v32  ;;  %1671 = vst [vmem:[%s12352_s8 + $0x308] sm:$0xff] %v1670_v33  ;;  %v1674_v35 = vld [vmem:[%s12347_s7 + $0x630] sm:$0xff] }
  0x49   : > { %1673 = vst [vmem:[%s12352_s8 + $0x310] sm:$0xff] %v1672_v34  ;;  %v1676_v36 = vld [vmem:[%s12347_s7 + $0x640] sm:$0xff]  ;;  %v1678_v37 = vld [vmem:[%s12347_s7 + $0x650] sm:$0xff]  ;;  %1675 = vst [vmem:[%s12352_s8 + $0x318] sm:$0xff] %v1674_v35 }
  0x4a   : > { %1677 = vst [vmem:[%s12352_s8 + $0x320] sm:$0xff] %v1676_v36  ;;  %1679 = vst [vmem:[%s12352_s8 + $0x328] sm:$0xff] %v1678_v37  ;;  %v1680_v38 = vld [vmem:[%s12347_s7 + $0x660] sm:$0xff]  ;;  %v1682_v39 = vld [vmem:[%s12347_s7 + $0x670] sm:$0xff] }
  0x4b   : > { %v1684_v40 = vld [vmem:[%s12347_s7 + $0x680] sm:$0xff]  ;;  %1681 = vst [vmem:[%s12352_s8 + $0x330] sm:$0xff] %v1680_v38  ;;  %1683 = vst [vmem:[%s12352_s8 + $0x338] sm:$0xff] %v1682_v39  ;;  %v1686_v41 = vld [vmem:[%s12347_s7 + $0x690] sm:$0xff] }
  0x4c   : > { %1685 = vst [vmem:[%s12352_s8 + $0x340] sm:$0xff] %v1684_v40  ;;  %v1688_v42 = vld [vmem:[%s12347_s7 + $0x6a0] sm:$0xff]  ;;  %v1690_v43 = vld [vmem:[%s12347_s7 + $0x6b0] sm:$0xff]  ;;  %1687 = vst [vmem:[%s12352_s8 + $0x348] sm:$0xff] %v1686_v41 }
  0x4d   : > { %1689 = vst [vmem:[%s12352_s8 + $0x350] sm:$0xff] %v1688_v42  ;;  %1691 = vst [vmem:[%s12352_s8 + $0x358] sm:$0xff] %v1690_v43  ;;  %v1692_v44 = vld [vmem:[%s12347_s7 + $0x6c0] sm:$0xff]  ;;  %v1694_v45 = vld [vmem:[%s12347_s7 + $0x6d0] sm:$0xff] }
  0x4e   : > { %v1696_v46 = vld [vmem:[%s12347_s7 + $0x6e0] sm:$0xff]  ;;  %1693 = vst [vmem:[%s12352_s8 + $0x360] sm:$0xff] %v1692_v44  ;;  %1695 = vst [vmem:[%s12352_s8 + $0x368] sm:$0xff] %v1694_v45  ;;  %v1698_v47 = vld [vmem:[%s12347_s7 + $0x6f0] sm:$0xff] }
  0x4f   : > { %1697 = vst [vmem:[%s12352_s8 + $0x370] sm:$0xff] %v1696_v46  ;;  %v1700_v48 = vld [vmem:[%s12347_s7 + $0x700] sm:$0xff]  ;;  %v1702_v49 = vld [vmem:[%s12347_s7 + $0x710] sm:$0xff]  ;;  %1699 = vst [vmem:[%s12352_s8 + $0x378] sm:$0xff] %v1698_v47 }
  0x50   : > { %1701 = vst [vmem:[%s12352_s8 + $0x380] sm:$0xff] %v1700_v48  ;;  %1703 = vst [vmem:[%s12352_s8 + $0x388] sm:$0xff] %v1702_v49  ;;  %v1704_v50 = vld [vmem:[%s12347_s7 + $0x720] sm:$0xff]  ;;  %v1706_v51 = vld [vmem:[%s12347_s7 + $0x730] sm:$0xff] }
  0x51   : > { %v1708_v52 = vld [vmem:[%s12347_s7 + $0x740] sm:$0xff]  ;;  %1705 = vst [vmem:[%s12352_s8 + $0x390] sm:$0xff] %v1704_v50  ;;  %1707 = vst [vmem:[%s12352_s8 + $0x398] sm:$0xff] %v1706_v51  ;;  %v1710_v53 = vld [vmem:[%s12347_s7 + $0x750] sm:$0xff] }
  0x52   : > { %1709 = vst [vmem:[%s12352_s8 + $0x3a0] sm:$0xff] %v1708_v52  ;;  %v1712_v54 = vld [vmem:[%s12347_s7 + $0x760] sm:$0xff]  ;;  %v1714_v55 = vld [vmem:[%s12347_s7 + $0x770] sm:$0xff]  ;;  %1711 = vst [vmem:[%s12352_s8 + $0x3a8] sm:$0xff] %v1710_v53 }
  0x53   : > { %1713 = vst [vmem:[%s12352_s8 + $0x3b0] sm:$0xff] %v1712_v54  ;;  %1715 = vst [vmem:[%s12352_s8 + $0x3b8] sm:$0xff] %v1714_v55  ;;  %v1716_v56 = vld [vmem:[%s12347_s7 + $0x780] sm:$0xff]  ;;  %v1718_v57 = vld [vmem:[%s12347_s7 + $0x790] sm:$0xff] }
  0x54   : > { %v1720_v58 = vld [vmem:[%s12347_s7 + $0x7a0] sm:$0xff]  ;;  %1717 = vst [vmem:[%s12352_s8 + $0x3c0] sm:$0xff] %v1716_v56  ;;  %1719 = vst [vmem:[%s12352_s8 + $0x3c8] sm:$0xff] %v1718_v57  ;;  %v1722_v59 = vld [vmem:[%s12347_s7 + $0x7b0] sm:$0xff] }
  0x55   : > { %1721 = vst [vmem:[%s12352_s8 + $0x3d0] sm:$0xff] %v1720_v58  ;;  %v1724_v60 = vld [vmem:[%s12347_s7 + $0x7c0] sm:$0xff]  ;;  %v1726_v61 = vld [vmem:[%s12347_s7 + $0x7d0] sm:$0xff]  ;;  %1723 = vst [vmem:[%s12352_s8 + $0x3d8] sm:$0xff] %v1722_v59 }
  0x56   : > { %1725 = vst [vmem:[%s12352_s8 + $0x3e0] sm:$0xff] %v1724_v60  ;;  %1727 = vst [vmem:[%s12352_s8 + $0x3e8] sm:$0xff] %v1726_v61  ;;  %v1728_v62 = vld [vmem:[%s12347_s7 + $0x7e0] sm:$0xff]  ;;  %v1730_v63 = vld [vmem:[%s12347_s7 + $0x7f0] sm:$0xff] }
  0x57   : > { %v1732_v0 = vld [vmem:[%s12347_s7 + $0x800] sm:$0xff]  ;;  %1729 = vst [vmem:[%s12352_s8 + $0x3f0] sm:$0xff] %v1728_v62  ;;  %1731 = vst [vmem:[%s12352_s8 + $0x3f8] sm:$0xff] %v1730_v63  ;;  %v1734_v1 = vld [vmem:[%s12347_s7 + $0x810] sm:$0xff] }
  0x58   : > { %1733 = vst [vmem:[%s12352_s8 + $0x400] sm:$0xff] %v1732_v0  ;;  %v1736_v2 = vld [vmem:[%s12347_s7 + $0x820] sm:$0xff]  ;;  %v1738_v3 = vld [vmem:[%s12347_s7 + $0x830] sm:$0xff]  ;;  %1735 = vst [vmem:[%s12352_s8 + $0x408] sm:$0xff] %v1734_v1 }
  0x59   : > { %1737 = vst [vmem:[%s12352_s8 + $0x410] sm:$0xff] %v1736_v2  ;;  %1739 = vst [vmem:[%s12352_s8 + $0x418] sm:$0xff] %v1738_v3  ;;  %v1740_v4 = vld [vmem:[%s12347_s7 + $0x840] sm:$0xff]  ;;  %v1742_v5 = vld [vmem:[%s12347_s7 + $0x850] sm:$0xff] }
  0x5a   : > { %v1744_v6 = vld [vmem:[%s12347_s7 + $0x860] sm:$0xff]  ;;  %1741 = vst [vmem:[%s12352_s8 + $0x420] sm:$0xff] %v1740_v4  ;;  %1743 = vst [vmem:[%s12352_s8 + $0x428] sm:$0xff] %v1742_v5  ;;  %v1746_v7 = vld [vmem:[%s12347_s7 + $0x870] sm:$0xff] }
  0x5b   : > { %1745 = vst [vmem:[%s12352_s8 + $0x430] sm:$0xff] %v1744_v6  ;;  %v1748_v8 = vld [vmem:[%s12347_s7 + $0x880] sm:$0xff]  ;;  %v1750_v9 = vld [vmem:[%s12347_s7 + $0x890] sm:$0xff]  ;;  %1747 = vst [vmem:[%s12352_s8 + $0x438] sm:$0xff] %v1746_v7 }
  0x5c   : > { %1749 = vst [vmem:[%s12352_s8 + $0x440] sm:$0xff] %v1748_v8  ;;  %1751 = vst [vmem:[%s12352_s8 + $0x448] sm:$0xff] %v1750_v9  ;;  %v1752_v10 = vld [vmem:[%s12347_s7 + $0x8a0] sm:$0xff]  ;;  %v1754_v11 = vld [vmem:[%s12347_s7 + $0x8b0] sm:$0xff] }
  0x5d   : > { %v1756_v12 = vld [vmem:[%s12347_s7 + $0x8c0] sm:$0xff]  ;;  %1753 = vst [vmem:[%s12352_s8 + $0x450] sm:$0xff] %v1752_v10  ;;  %1755 = vst [vmem:[%s12352_s8 + $0x458] sm:$0xff] %v1754_v11  ;;  %v1758_v13 = vld [vmem:[%s12347_s7 + $0x8d0] sm:$0xff] }
  0x5e   : > { %1757 = vst [vmem:[%s12352_s8 + $0x460] sm:$0xff] %v1756_v12  ;;  %v1760_v14 = vld [vmem:[%s12347_s7 + $0x8e0] sm:$0xff]  ;;  %v1762_v15 = vld [vmem:[%s12347_s7 + $0x8f0] sm:$0xff]  ;;  %1759 = vst [vmem:[%s12352_s8 + $0x468] sm:$0xff] %v1758_v13 }
  0x5f   : > { %1761 = vst [vmem:[%s12352_s8 + $0x470] sm:$0xff] %v1760_v14  ;;  %1763 = vst [vmem:[%s12352_s8 + $0x478] sm:$0xff] %v1762_v15  ;;  %v1764_v16 = vld [vmem:[%s12347_s7 + $0x900] sm:$0xff]  ;;  %v1766_v17 = vld [vmem:[%s12347_s7 + $0x910] sm:$0xff] }
  0x60   : > { %v1768_v18 = vld [vmem:[%s12347_s7 + $0x920] sm:$0xff]  ;;  %1765 = vst [vmem:[%s12352_s8 + $0x480] sm:$0xff] %v1764_v16  ;;  %1767 = vst [vmem:[%s12352_s8 + $0x488] sm:$0xff] %v1766_v17  ;;  %v1770_v19 = vld [vmem:[%s12347_s7 + $0x930] sm:$0xff] }
  0x61   : > { %1769 = vst [vmem:[%s12352_s8 + $0x490] sm:$0xff] %v1768_v18  ;;  %v1772_v20 = vld [vmem:[%s12347_s7 + $0x940] sm:$0xff]  ;;  %v1774_v21 = vld [vmem:[%s12347_s7 + $0x950] sm:$0xff]  ;;  %1771 = vst [vmem:[%s12352_s8 + $0x498] sm:$0xff] %v1770_v19 }
  0x62   : > { %1773 = vst [vmem:[%s12352_s8 + $0x4a0] sm:$0xff] %v1772_v20  ;;  %1775 = vst [vmem:[%s12352_s8 + $0x4a8] sm:$0xff] %v1774_v21  ;;  %v1776_v22 = vld [vmem:[%s12347_s7 + $0x960] sm:$0xff]  ;;  %v1778_v23 = vld [vmem:[%s12347_s7 + $0x970] sm:$0xff] }
  0x63   : > { %v1780_v24 = vld [vmem:[%s12347_s7 + $0x980] sm:$0xff]  ;;  %1777 = vst [vmem:[%s12352_s8 + $0x4b0] sm:$0xff] %v1776_v22  ;;  %1779 = vst [vmem:[%s12352_s8 + $0x4b8] sm:$0xff] %v1778_v23  ;;  %v1782_v25 = vld [vmem:[%s12347_s7 + $0x990] sm:$0xff] }
  0x64   : > { %1781 = vst [vmem:[%s12352_s8 + $0x4c0] sm:$0xff] %v1780_v24  ;;  %v1784_v26 = vld [vmem:[%s12347_s7 + $0x9a0] sm:$0xff]  ;;  %v1786_v27 = vld [vmem:[%s12347_s7 + $0x9b0] sm:$0xff]  ;;  %1783 = vst [vmem:[%s12352_s8 + $0x4c8] sm:$0xff] %v1782_v25 }
  0x65   : > { %1785 = vst [vmem:[%s12352_s8 + $0x4d0] sm:$0xff] %v1784_v26  ;;  %1787 = vst [vmem:[%s12352_s8 + $0x4d8] sm:$0xff] %v1786_v27  ;;  %v1788_v28 = vld [vmem:[%s12347_s7 + $0x9c0] sm:$0xff]  ;;  %v1790_v29 = vld [vmem:[%s12347_s7 + $0x9d0] sm:$0xff] }
  0x66   : > { %v1792_v30 = vld [vmem:[%s12347_s7 + $0x9e0] sm:$0xff]  ;;  %1789 = vst [vmem:[%s12352_s8 + $0x4e0] sm:$0xff] %v1788_v28  ;;  %1791 = vst [vmem:[%s12352_s8 + $0x4e8] sm:$0xff] %v1790_v29  ;;  %v1794_v31 = vld [vmem:[%s12347_s7 + $0x9f0] sm:$0xff] }
  0x67   : > { %1793 = vst [vmem:[%s12352_s8 + $0x4f0] sm:$0xff] %v1792_v30  ;;  %v1796_v32 = vld [vmem:[%s12347_s7 + $0xa00] sm:$0xff]  ;;  %v1798_v33 = vld [vmem:[%s12347_s7 + $0xa10] sm:$0xff]  ;;  %1795 = vst [vmem:[%s12352_s8 + $0x4f8] sm:$0xff] %v1794_v31 }
  0x68   : > { %1797 = vst [vmem:[%s12352_s8 + $0x500] sm:$0xff] %v1796_v32  ;;  %1799 = vst [vmem:[%s12352_s8 + $0x508] sm:$0xff] %v1798_v33  ;;  %v1800_v34 = vld [vmem:[%s12347_s7 + $0xa20] sm:$0xff]  ;;  %v1802_v35 = vld [vmem:[%s12347_s7 + $0xa30] sm:$0xff] }
  0x69   : > { %v1804_v36 = vld [vmem:[%s12347_s7 + $0xa40] sm:$0xff]  ;;  %1801 = vst [vmem:[%s12352_s8 + $0x510] sm:$0xff] %v1800_v34  ;;  %1803 = vst [vmem:[%s12352_s8 + $0x518] sm:$0xff] %v1802_v35  ;;  %v1806_v37 = vld [vmem:[%s12347_s7 + $0xa50] sm:$0xff] }
  0x6a   : > { %1805 = vst [vmem:[%s12352_s8 + $0x520] sm:$0xff] %v1804_v36  ;;  %v1808_v38 = vld [vmem:[%s12347_s7 + $0xa60] sm:$0xff]  ;;  %v1810_v39 = vld [vmem:[%s12347_s7 + $0xa70] sm:$0xff]  ;;  %1807 = vst [vmem:[%s12352_s8 + $0x528] sm:$0xff] %v1806_v37 }
  0x6b   : > { %1809 = vst [vmem:[%s12352_s8 + $0x530] sm:$0xff] %v1808_v38  ;;  %1811 = vst [vmem:[%s12352_s8 + $0x538] sm:$0xff] %v1810_v39  ;;  %v1812_v40 = vld [vmem:[%s12347_s7 + $0xa80] sm:$0xff]  ;;  %v1814_v41 = vld [vmem:[%s12347_s7 + $0xa90] sm:$0xff] }
  0x6c   : > { %v1816_v42 = vld [vmem:[%s12347_s7 + $0xaa0] sm:$0xff]  ;;  %1813 = vst [vmem:[%s12352_s8 + $0x540] sm:$0xff] %v1812_v40  ;;  %1815 = vst [vmem:[%s12352_s8 + $0x548] sm:$0xff] %v1814_v41  ;;  %v1818_v43 = vld [vmem:[%s12347_s7 + $0xab0] sm:$0xff] }
  0x6d   : > { %1817 = vst [vmem:[%s12352_s8 + $0x550] sm:$0xff] %v1816_v42  ;;  %v1820_v44 = vld [vmem:[%s12347_s7 + $0xac0] sm:$0xff]  ;;  %v1822_v45 = vld [vmem:[%s12347_s7 + $0xad0] sm:$0xff]  ;;  %1819 = vst [vmem:[%s12352_s8 + $0x558] sm:$0xff] %v1818_v43 }
  0x6e   : > { %1821 = vst [vmem:[%s12352_s8 + $0x560] sm:$0xff] %v1820_v44  ;;  %1823 = vst [vmem:[%s12352_s8 + $0x568] sm:$0xff] %v1822_v45  ;;  %v1824_v46 = vld [vmem:[%s12347_s7 + $0xae0] sm:$0xff]  ;;  %v1826_v47 = vld [vmem:[%s12347_s7 + $0xaf0] sm:$0xff] }
  0x6f   : > { %v1828_v48 = vld [vmem:[%s12347_s7 + $0xb00] sm:$0xff]  ;;  %1825 = vst [vmem:[%s12352_s8 + $0x570] sm:$0xff] %v1824_v46  ;;  %1827 = vst [vmem:[%s12352_s8 + $0x578] sm:$0xff] %v1826_v47  ;;  %v1830_v49 = vld [vmem:[%s12347_s7 + $0xb10] sm:$0xff] }
  0x70   : > { %1829 = vst [vmem:[%s12352_s8 + $0x580] sm:$0xff] %v1828_v48  ;;  %v1832_v50 = vld [vmem:[%s12347_s7 + $0xb20] sm:$0xff]  ;;  %v1834_v51 = vld [vmem:[%s12347_s7 + $0xb30] sm:$0xff]  ;;  %1831 = vst [vmem:[%s12352_s8 + $0x588] sm:$0xff] %v1830_v49 }
  0x71   : > { %1833 = vst [vmem:[%s12352_s8 + $0x590] sm:$0xff] %v1832_v50  ;;  %1835 = vst [vmem:[%s12352_s8 + $0x598] sm:$0xff] %v1834_v51  ;;  %v1836_v52 = vld [vmem:[%s12347_s7 + $0xb40] sm:$0xff]  ;;  %v1838_v53 = vld [vmem:[%s12347_s7 + $0xb50] sm:$0xff] }
  0x72   : > { %v1840_v54 = vld [vmem:[%s12347_s7 + $0xb60] sm:$0xff]  ;;  %1837 = vst [vmem:[%s12352_s8 + $0x5a0] sm:$0xff] %v1836_v52  ;;  %1839 = vst [vmem:[%s12352_s8 + $0x5a8] sm:$0xff] %v1838_v53  ;;  %v1842_v55 = vld [vmem:[%s12347_s7 + $0xb70] sm:$0xff] }
  0x73   : > { %1841 = vst [vmem:[%s12352_s8 + $0x5b0] sm:$0xff] %v1840_v54  ;;  %v1844_v56 = vld [vmem:[%s12347_s7 + $0xb80] sm:$0xff]  ;;  %v1846_v57 = vld [vmem:[%s12347_s7 + $0xb90] sm:$0xff]  ;;  %1843 = vst [vmem:[%s12352_s8 + $0x5b8] sm:$0xff] %v1842_v55 }
  0x74   : > { %1845 = vst [vmem:[%s12352_s8 + $0x5c0] sm:$0xff] %v1844_v56  ;;  %1847 = vst [vmem:[%s12352_s8 + $0x5c8] sm:$0xff] %v1846_v57  ;;  %v1848_v58 = vld [vmem:[%s12347_s7 + $0xba0] sm:$0xff]  ;;  %v1850_v59 = vld [vmem:[%s12347_s7 + $0xbb0] sm:$0xff] }
  0x75   : > { %v1852_v60 = vld [vmem:[%s12347_s7 + $0xbc0] sm:$0xff]  ;;  %1849 = vst [vmem:[%s12352_s8 + $0x5d0] sm:$0xff] %v1848_v58  ;;  %1851 = vst [vmem:[%s12352_s8 + $0x5d8] sm:$0xff] %v1850_v59  ;;  %v1854_v61 = vld [vmem:[%s12347_s7 + $0xbd0] sm:$0xff] }
  0x76   : > { %1853 = vst [vmem:[%s12352_s8 + $0x5e0] sm:$0xff] %v1852_v60  ;;  %v1856_v62 = vld [vmem:[%s12347_s7 + $0xbe0] sm:$0xff]  ;;  %v1858_v63 = vld [vmem:[%s12347_s7 + $0xbf0] sm:$0xff]  ;;  %1855 = vst [vmem:[%s12352_s8 + $0x5e8] sm:$0xff] %v1854_v61 }
  0x77   : > { %1857 = vst [vmem:[%s12352_s8 + $0x5f0] sm:$0xff] %v1856_v62  ;;  %1859 = vst [vmem:[%s12352_s8 + $0x5f8] sm:$0xff] %v1858_v63  ;;  %v1860_v0 = vld [vmem:[%s12347_s7 + $0xc00] sm:$0xff]  ;;  %v1862_v1 = vld [vmem:[%s12347_s7 + $0xc10] sm:$0xff] }
  0x78   : > { %v1864_v2 = vld [vmem:[%s12347_s7 + $0xc20] sm:$0xff]  ;;  %1861 = vst [vmem:[%s12352_s8 + $0x600] sm:$0xff] %v1860_v0  ;;  %1863 = vst [vmem:[%s12352_s8 + $0x608] sm:$0xff] %v1862_v1  ;;  %v1866_v3 = vld [vmem:[%s12347_s7 + $0xc30] sm:$0xff] }
  0x79   : > { %1865 = vst [vmem:[%s12352_s8 + $0x610] sm:$0xff] %v1864_v2  ;;  %v1868_v4 = vld [vmem:[%s12347_s7 + $0xc40] sm:$0xff]  ;;  %v1870_v5 = vld [vmem:[%s12347_s7 + $0xc50] sm:$0xff]  ;;  %1867 = vst [vmem:[%s12352_s8 + $0x618] sm:$0xff] %v1866_v3 }
  0x7a   : > { %1869 = vst [vmem:[%s12352_s8 + $0x620] sm:$0xff] %v1868_v4  ;;  %1871 = vst [vmem:[%s12352_s8 + $0x628] sm:$0xff] %v1870_v5  ;;  %v1872_v6 = vld [vmem:[%s12347_s7 + $0xc60] sm:$0xff]  ;;  %v1874_v7 = vld [vmem:[%s12347_s7 + $0xc70] sm:$0xff] }
  0x7b   : > { %v1876_v8 = vld [vmem:[%s12347_s7 + $0xc80] sm:$0xff]  ;;  %1873 = vst [vmem:[%s12352_s8 + $0x630] sm:$0xff] %v1872_v6  ;;  %1875 = vst [vmem:[%s12352_s8 + $0x638] sm:$0xff] %v1874_v7  ;;  %v1878_v9 = vld [vmem:[%s12347_s7 + $0xc90] sm:$0xff] }
  0x7c   : > { %1877 = vst [vmem:[%s12352_s8 + $0x640] sm:$0xff] %v1876_v8  ;;  %v1880_v10 = vld [vmem:[%s12347_s7 + $0xca0] sm:$0xff]  ;;  %v1882_v11 = vld [vmem:[%s12347_s7 + $0xcb0] sm:$0xff]  ;;  %1879 = vst [vmem:[%s12352_s8 + $0x648] sm:$0xff] %v1878_v9 }
  0x7d   : > { %1881 = vst [vmem:[%s12352_s8 + $0x650] sm:$0xff] %v1880_v10  ;;  %1883 = vst [vmem:[%s12352_s8 + $0x658] sm:$0xff] %v1882_v11  ;;  %v1884_v12 = vld [vmem:[%s12347_s7 + $0xcc0] sm:$0xff]  ;;  %v1886_v13 = vld [vmem:[%s12347_s7 + $0xcd0] sm:$0xff] }
  0x7e   : > { %v1888_v14 = vld [vmem:[%s12347_s7 + $0xce0] sm:$0xff]  ;;  %1885 = vst [vmem:[%s12352_s8 + $0x660] sm:$0xff] %v1884_v12  ;;  %1887 = vst [vmem:[%s12352_s8 + $0x668] sm:$0xff] %v1886_v13  ;;  %v1890_v15 = vld [vmem:[%s12347_s7 + $0xcf0] sm:$0xff] }
  0x7f   : > { %1889 = vst [vmem:[%s12352_s8 + $0x670] sm:$0xff] %v1888_v14  ;;  %v1892_v16 = vld [vmem:[%s12347_s7 + $0xd00] sm:$0xff]  ;;  %v1894_v17 = vld [vmem:[%s12347_s7 + $0xd10] sm:$0xff]  ;;  %1891 = vst [vmem:[%s12352_s8 + $0x678] sm:$0xff] %v1890_v15 }
  0x80   : > { %1893 = vst [vmem:[%s12352_s8 + $0x680] sm:$0xff] %v1892_v16  ;;  %1895 = vst [vmem:[%s12352_s8 + $0x688] sm:$0xff] %v1894_v17  ;;  %v1896_v18 = vld [vmem:[%s12347_s7 + $0xd20] sm:$0xff]  ;;  %v1898_v19 = vld [vmem:[%s12347_s7 + $0xd30] sm:$0xff] }
  0x81   : > { %v1900_v20 = vld [vmem:[%s12347_s7 + $0xd40] sm:$0xff]  ;;  %1897 = vst [vmem:[%s12352_s8 + $0x690] sm:$0xff] %v1896_v18  ;;  %1899 = vst [vmem:[%s12352_s8 + $0x698] sm:$0xff] %v1898_v19  ;;  %v1902_v21 = vld [vmem:[%s12347_s7 + $0xd50] sm:$0xff] }
  0x82   : > { %1901 = vst [vmem:[%s12352_s8 + $0x6a0] sm:$0xff] %v1900_v20  ;;  %v1904_v22 = vld [vmem:[%s12347_s7 + $0xd60] sm:$0xff]  ;;  %v1906_v23 = vld [vmem:[%s12347_s7 + $0xd70] sm:$0xff]  ;;  %1903 = vst [vmem:[%s12352_s8 + $0x6a8] sm:$0xff] %v1902_v21 }
  0x83   : > { %1905 = vst [vmem:[%s12352_s8 + $0x6b0] sm:$0xff] %v1904_v22  ;;  %1907 = vst [vmem:[%s12352_s8 + $0x6b8] sm:$0xff] %v1906_v23  ;;  %v1908_v24 = vld [vmem:[%s12347_s7 + $0xd80] sm:$0xff]  ;;  %v1910_v25 = vld [vmem:[%s12347_s7 + $0xd90] sm:$0xff] }
  0x84   : > { %v1912_v26 = vld [vmem:[%s12347_s7 + $0xda0] sm:$0xff]  ;;  %1909 = vst [vmem:[%s12352_s8 + $0x6c0] sm:$0xff] %v1908_v24  ;;  %1911 = vst [vmem:[%s12352_s8 + $0x6c8] sm:$0xff] %v1910_v25  ;;  %v1914_v27 = vld [vmem:[%s12347_s7 + $0xdb0] sm:$0xff] }
  0x85   : > { %1913 = vst [vmem:[%s12352_s8 + $0x6d0] sm:$0xff] %v1912_v26  ;;  %v1916_v28 = vld [vmem:[%s12347_s7 + $0xdc0] sm:$0xff]  ;;  %v1918_v29 = vld [vmem:[%s12347_s7 + $0xdd0] sm:$0xff]  ;;  %1915 = vst [vmem:[%s12352_s8 + $0x6d8] sm:$0xff] %v1914_v27 }
  0x86   : > { %1917 = vst [vmem:[%s12352_s8 + $0x6e0] sm:$0xff] %v1916_v28  ;;  %1919 = vst [vmem:[%s12352_s8 + $0x6e8] sm:$0xff] %v1918_v29  ;;  %v1920_v30 = vld [vmem:[%s12347_s7 + $0xde0] sm:$0xff]  ;;  %v1922_v31 = vld [vmem:[%s12347_s7 + $0xdf0] sm:$0xff] }
  0x87   : > { %v1924_v32 = vld [vmem:[%s12347_s7 + $0xe00] sm:$0xff]  ;;  %1921 = vst [vmem:[%s12352_s8 + $0x6f0] sm:$0xff] %v1920_v30  ;;  %1923 = vst [vmem:[%s12352_s8 + $0x6f8] sm:$0xff] %v1922_v31  ;;  %v1926_v33 = vld [vmem:[%s12347_s7 + $0xe10] sm:$0xff] }
  0x88   : > { %1925 = vst [vmem:[%s12352_s8 + $0x700] sm:$0xff] %v1924_v32  ;;  %v1928_v34 = vld [vmem:[%s12347_s7 + $0xe20] sm:$0xff]  ;;  %v1930_v35 = vld [vmem:[%s12347_s7 + $0xe30] sm:$0xff]  ;;  %1927 = vst [vmem:[%s12352_s8 + $0x708] sm:$0xff] %v1926_v33 }
  0x89   : > { %1929 = vst [vmem:[%s12352_s8 + $0x710] sm:$0xff] %v1928_v34  ;;  %1931 = vst [vmem:[%s12352_s8 + $0x718] sm:$0xff] %v1930_v35  ;;  %v1932_v36 = vld [vmem:[%s12347_s7 + $0xe40] sm:$0xff]  ;;  %v1934_v37 = vld [vmem:[%s12347_s7 + $0xe50] sm:$0xff] }
  0x8a   : > { %v1936_v38 = vld [vmem:[%s12347_s7 + $0xe60] sm:$0xff]  ;;  %1933 = vst [vmem:[%s12352_s8 + $0x720] sm:$0xff] %v1932_v36  ;;  %1935 = vst [vmem:[%s12352_s8 + $0x728] sm:$0xff] %v1934_v37  ;;  %v1938_v39 = vld [vmem:[%s12347_s7 + $0xe70] sm:$0xff] }
  0x8b   : > { %1937 = vst [vmem:[%s12352_s8 + $0x730] sm:$0xff] %v1936_v38  ;;  %v1940_v40 = vld [vmem:[%s12347_s7 + $0xe80] sm:$0xff]  ;;  %v1942_v41 = vld [vmem:[%s12347_s7 + $0xe90] sm:$0xff]  ;;  %1939 = vst [vmem:[%s12352_s8 + $0x738] sm:$0xff] %v1938_v39 }
  0x8c   : > { %1941 = vst [vmem:[%s12352_s8 + $0x740] sm:$0xff] %v1940_v40  ;;  %1943 = vst [vmem:[%s12352_s8 + $0x748] sm:$0xff] %v1942_v41  ;;  %v1944_v42 = vld [vmem:[%s12347_s7 + $0xea0] sm:$0xff]  ;;  %v1946_v43 = vld [vmem:[%s12347_s7 + $0xeb0] sm:$0xff] }
  0x8d   : > { %v1948_v44 = vld [vmem:[%s12347_s7 + $0xec0] sm:$0xff]  ;;  %1945 = vst [vmem:[%s12352_s8 + $0x750] sm:$0xff] %v1944_v42  ;;  %1947 = vst [vmem:[%s12352_s8 + $0x758] sm:$0xff] %v1946_v43  ;;  %v1950_v45 = vld [vmem:[%s12347_s7 + $0xed0] sm:$0xff] }
  0x8e   : > { %1949 = vst [vmem:[%s12352_s8 + $0x760] sm:$0xff] %v1948_v44  ;;  %v1952_v46 = vld [vmem:[%s12347_s7 + $0xee0] sm:$0xff]  ;;  %v1954_v47 = vld [vmem:[%s12347_s7 + $0xef0] sm:$0xff]  ;;  %1951 = vst [vmem:[%s12352_s8 + $0x768] sm:$0xff] %v1950_v45 }
  0x8f   : > { %1953 = vst [vmem:[%s12352_s8 + $0x770] sm:$0xff] %v1952_v46  ;;  %1955 = vst [vmem:[%s12352_s8 + $0x778] sm:$0xff] %v1954_v47  ;;  %v1956_v48 = vld [vmem:[%s12347_s7 + $0xf00] sm:$0xff]  ;;  %v1958_v49 = vld [vmem:[%s12347_s7 + $0xf10] sm:$0xff] }
  0x90   : > { %v1960_v50 = vld [vmem:[%s12347_s7 + $0xf20] sm:$0xff]  ;;  %1957 = vst [vmem:[%s12352_s8 + $0x780] sm:$0xff] %v1956_v48  ;;  %1959 = vst [vmem:[%s12352_s8 + $0x788] sm:$0xff] %v1958_v49  ;;  %v1962_v51 = vld [vmem:[%s12347_s7 + $0xf30] sm:$0xff] }
  0x91   : > { %1961 = vst [vmem:[%s12352_s8 + $0x790] sm:$0xff] %v1960_v50  ;;  %v1964_v52 = vld [vmem:[%s12347_s7 + $0xf40] sm:$0xff]  ;;  %v1966_v53 = vld [vmem:[%s12347_s7 + $0xf50] sm:$0xff]  ;;  %1963 = vst [vmem:[%s12352_s8 + $0x798] sm:$0xff] %v1962_v51 }
  0x92   : > { %1965 = vst [vmem:[%s12352_s8 + $0x7a0] sm:$0xff] %v1964_v52  ;;  %1967 = vst [vmem:[%s12352_s8 + $0x7a8] sm:$0xff] %v1966_v53  ;;  %v1968_v54 = vld [vmem:[%s12347_s7 + $0xf60] sm:$0xff]  ;;  %v1970_v55 = vld [vmem:[%s12347_s7 + $0xf70] sm:$0xff] }
  0x93   : > { %v1972_v56 = vld [vmem:[%s12347_s7 + $0xf80] sm:$0xff]  ;;  %1969 = vst [vmem:[%s12352_s8 + $0x7b0] sm:$0xff] %v1968_v54  ;;  %1971 = vst [vmem:[%s12352_s8 + $0x7b8] sm:$0xff] %v1970_v55  ;;  %v1974_v57 = vld [vmem:[%s12347_s7 + $0xf90] sm:$0xff] }
  0x94   : > { %1973 = vst [vmem:[%s12352_s8 + $0x7c0] sm:$0xff] %v1972_v56  ;;  %v1976_v58 = vld [vmem:[%s12347_s7 + $0xfa0] sm:$0xff]  ;;  %v1978_v59 = vld [vmem:[%s12347_s7 + $0xfb0] sm:$0xff]  ;;  %1975 = vst [vmem:[%s12352_s8 + $0x7c8] sm:$0xff] %v1974_v57 }
  0x95   : > { %1977 = vst [vmem:[%s12352_s8 + $0x7d0] sm:$0xff] %v1976_v58  ;;  %1979 = vst [vmem:[%s12352_s8 + $0x7d8] sm:$0xff] %v1978_v59  ;;  %v1980_v60 = vld [vmem:[%s12347_s7 + $0xfc0] sm:$0xff]  ;;  %v1982_v61 = vld [vmem:[%s12347_s7 + $0xfd0] sm:$0xff] }
  0x96   : > { %v1984_v62 = vld [vmem:[%s12347_s7 + $0xfe0] sm:$0xff]  ;;  %1981 = vst [vmem:[%s12352_s8 + $0x7e0] sm:$0xff] %v1980_v60  ;;  %1983 = vst [vmem:[%s12352_s8 + $0x7e8] sm:$0xff] %v1982_v61  ;;  %v1986_v63 = vld [vmem:[%s12347_s7 + $0xff0] sm:$0xff] }
  0x97   : > { %1985 = vst [vmem:[%s12352_s8 + $0x7f0] sm:$0xff] %v1984_v62  ;;  %v1988_v0 = vld [vmem:[%s12347_s7 + $0x1000] sm:$0xff]  ;;  %v1990_v1 = vld [vmem:[%s12347_s7 + $0x1010] sm:$0xff]  ;;  %1987 = vst [vmem:[%s12352_s8 + $0x7f8] sm:$0xff] %v1986_v63 }
  0x98   : > { %1989 = vst [vmem:[%s12352_s8 + $0x800] sm:$0xff] %v1988_v0  ;;  %1991 = vst [vmem:[%s12352_s8 + $0x808] sm:$0xff] %v1990_v1  ;;  %v1992_v2 = vld [vmem:[%s12347_s7 + $0x1020] sm:$0xff]  ;;  %v1994_v3 = vld [vmem:[%s12347_s7 + $0x1030] sm:$0xff] }
  0x99   : > { %v1996_v4 = vld [vmem:[%s12347_s7 + $0x1040] sm:$0xff]  ;;  %1993 = vst [vmem:[%s12352_s8 + $0x810] sm:$0xff] %v1992_v2  ;;  %1995 = vst [vmem:[%s12352_s8 + $0x818] sm:$0xff] %v1994_v3  ;;  %v1998_v5 = vld [vmem:[%s12347_s7 + $0x1050] sm:$0xff] }
  0x9a   : > { %1997 = vst [vmem:[%s12352_s8 + $0x820] sm:$0xff] %v1996_v4  ;;  %v2000_v6 = vld [vmem:[%s12347_s7 + $0x1060] sm:$0xff]  ;;  %v2002_v7 = vld [vmem:[%s12347_s7 + $0x1070] sm:$0xff]  ;;  %1999 = vst [vmem:[%s12352_s8 + $0x828] sm:$0xff] %v1998_v5 }
  0x9b   : > { %2001 = vst [vmem:[%s12352_s8 + $0x830] sm:$0xff] %v2000_v6  ;;  %2003 = vst [vmem:[%s12352_s8 + $0x838] sm:$0xff] %v2002_v7  ;;  %v2004_v8 = vld [vmem:[%s12347_s7 + $0x1080] sm:$0xff]  ;;  %v2006_v9 = vld [vmem:[%s12347_s7 + $0x1090] sm:$0xff] }
  0x9c   : > { %v2008_v10 = vld [vmem:[%s12347_s7 + $0x10a0] sm:$0xff]  ;;  %2005 = vst [vmem:[%s12352_s8 + $0x840] sm:$0xff] %v2004_v8  ;;  %2007 = vst [vmem:[%s12352_s8 + $0x848] sm:$0xff] %v2006_v9  ;;  %v2010_v11 = vld [vmem:[%s12347_s7 + $0x10b0] sm:$0xff] }
  0x9d   : > { %2009 = vst [vmem:[%s12352_s8 + $0x850] sm:$0xff] %v2008_v10  ;;  %v2012_v12 = vld [vmem:[%s12347_s7 + $0x10c0] sm:$0xff]  ;;  %v2014_v13 = vld [vmem:[%s12347_s7 + $0x10d0] sm:$0xff]  ;;  %2011 = vst [vmem:[%s12352_s8 + $0x858] sm:$0xff] %v2010_v11 }
  0x9e   : > { %2013 = vst [vmem:[%s12352_s8 + $0x860] sm:$0xff] %v2012_v12  ;;  %2015 = vst [vmem:[%s12352_s8 + $0x868] sm:$0xff] %v2014_v13  ;;  %v2016_v14 = vld [vmem:[%s12347_s7 + $0x10e0] sm:$0xff]  ;;  %v2018_v15 = vld [vmem:[%s12347_s7 + $0x10f0] sm:$0xff] }
  0x9f   : > { %v2020_v16 = vld [vmem:[%s12347_s7 + $0x1100] sm:$0xff]  ;;  %2017 = vst [vmem:[%s12352_s8 + $0x870] sm:$0xff] %v2016_v14  ;;  %2019 = vst [vmem:[%s12352_s8 + $0x878] sm:$0xff] %v2018_v15  ;;  %v2022_v17 = vld [vmem:[%s12347_s7 + $0x1110] sm:$0xff] }
  0xa0   : > { %2021 = vst [vmem:[%s12352_s8 + $0x880] sm:$0xff] %v2020_v16  ;;  %v2024_v18 = vld [vmem:[%s12347_s7 + $0x1120] sm:$0xff]  ;;  %v2026_v19 = vld [vmem:[%s12347_s7 + $0x1130] sm:$0xff]  ;;  %2023 = vst [vmem:[%s12352_s8 + $0x888] sm:$0xff] %v2022_v17 }
  0xa1   : > { %2025 = vst [vmem:[%s12352_s8 + $0x890] sm:$0xff] %v2024_v18  ;;  %2027 = vst [vmem:[%s12352_s8 + $0x898] sm:$0xff] %v2026_v19  ;;  %v2028_v20 = vld [vmem:[%s12347_s7 + $0x1140] sm:$0xff]  ;;  %v2030_v21 = vld [vmem:[%s12347_s7 + $0x1150] sm:$0xff] }
  0xa2   : > { %v2032_v22 = vld [vmem:[%s12347_s7 + $0x1160] sm:$0xff]  ;;  %2029 = vst [vmem:[%s12352_s8 + $0x8a0] sm:$0xff] %v2028_v20  ;;  %2031 = vst [vmem:[%s12352_s8 + $0x8a8] sm:$0xff] %v2030_v21  ;;  %v2034_v23 = vld [vmem:[%s12347_s7 + $0x1170] sm:$0xff] }
  0xa3   : > { %2033 = vst [vmem:[%s12352_s8 + $0x8b0] sm:$0xff] %v2032_v22  ;;  %v2036_v24 = vld [vmem:[%s12347_s7 + $0x1180] sm:$0xff]  ;;  %v2038_v25 = vld [vmem:[%s12347_s7 + $0x1190] sm:$0xff]  ;;  %2035 = vst [vmem:[%s12352_s8 + $0x8b8] sm:$0xff] %v2034_v23 }
  0xa4   : > { %2037 = vst [vmem:[%s12352_s8 + $0x8c0] sm:$0xff] %v2036_v24  ;;  %2039 = vst [vmem:[%s12352_s8 + $0x8c8] sm:$0xff] %v2038_v25  ;;  %v2040_v26 = vld [vmem:[%s12347_s7 + $0x11a0] sm:$0xff]  ;;  %v2042_v27 = vld [vmem:[%s12347_s7 + $0x11b0] sm:$0xff] }
  0xa5   : > { %v2044_v28 = vld [vmem:[%s12347_s7 + $0x11c0] sm:$0xff]  ;;  %2041 = vst [vmem:[%s12352_s8 + $0x8d0] sm:$0xff] %v2040_v26  ;;  %2043 = vst [vmem:[%s12352_s8 + $0x8d8] sm:$0xff] %v2042_v27  ;;  %v2046_v29 = vld [vmem:[%s12347_s7 + $0x11d0] sm:$0xff] }
  0xa6   : > { %2045 = vst [vmem:[%s12352_s8 + $0x8e0] sm:$0xff] %v2044_v28  ;;  %v2048_v30 = vld [vmem:[%s12347_s7 + $0x11e0] sm:$0xff]  ;;  %v2050_v31 = vld [vmem:[%s12347_s7 + $0x11f0] sm:$0xff]  ;;  %2047 = vst [vmem:[%s12352_s8 + $0x8e8] sm:$0xff] %v2046_v29 }
  0xa7   : > { %2049 = vst [vmem:[%s12352_s8 + $0x8f0] sm:$0xff] %v2048_v30  ;;  %2051 = vst [vmem:[%s12352_s8 + $0x8f8] sm:$0xff] %v2050_v31  ;;  %v2052_v32 = vld [vmem:[%s12347_s7 + $0x1200] sm:$0xff]  ;;  %v2054_v33 = vld [vmem:[%s12347_s7 + $0x1210] sm:$0xff] }
  0xa8   : > { %v2056_v34 = vld [vmem:[%s12347_s7 + $0x1220] sm:$0xff]  ;;  %2053 = vst [vmem:[%s12352_s8 + $0x900] sm:$0xff] %v2052_v32  ;;  %2055 = vst [vmem:[%s12352_s8 + $0x908] sm:$0xff] %v2054_v33  ;;  %v2058_v35 = vld [vmem:[%s12347_s7 + $0x1230] sm:$0xff] }
  0xa9   : > { %2057 = vst [vmem:[%s12352_s8 + $0x910] sm:$0xff] %v2056_v34  ;;  %v2060_v36 = vld [vmem:[%s12347_s7 + $0x1240] sm:$0xff]  ;;  %v2062_v37 = vld [vmem:[%s12347_s7 + $0x1250] sm:$0xff]  ;;  %2059 = vst [vmem:[%s12352_s8 + $0x918] sm:$0xff] %v2058_v35 }
  0xaa   : > { %2061 = vst [vmem:[%s12352_s8 + $0x920] sm:$0xff] %v2060_v36  ;;  %2063 = vst [vmem:[%s12352_s8 + $0x928] sm:$0xff] %v2062_v37  ;;  %v2064_v38 = vld [vmem:[%s12347_s7 + $0x1260] sm:$0xff]  ;;  %v2066_v39 = vld [vmem:[%s12347_s7 + $0x1270] sm:$0xff] }
  0xab   : > { %v2068_v40 = vld [vmem:[%s12347_s7 + $0x1280] sm:$0xff]  ;;  %2065 = vst [vmem:[%s12352_s8 + $0x930] sm:$0xff] %v2064_v38  ;;  %2067 = vst [vmem:[%s12352_s8 + $0x938] sm:$0xff] %v2066_v39  ;;  %v2070_v41 = vld [vmem:[%s12347_s7 + $0x1290] sm:$0xff] }
  0xac   : > { %2069 = vst [vmem:[%s12352_s8 + $0x940] sm:$0xff] %v2068_v40  ;;  %v2072_v42 = vld [vmem:[%s12347_s7 + $0x12a0] sm:$0xff]  ;;  %v2074_v43 = vld [vmem:[%s12347_s7 + $0x12b0] sm:$0xff]  ;;  %2071 = vst [vmem:[%s12352_s8 + $0x948] sm:$0xff] %v2070_v41 }
  0xad   : > { %2073 = vst [vmem:[%s12352_s8 + $0x950] sm:$0xff] %v2072_v42  ;;  %2075 = vst [vmem:[%s12352_s8 + $0x958] sm:$0xff] %v2074_v43  ;;  %v2076_v44 = vld [vmem:[%s12347_s7 + $0x12c0] sm:$0xff]  ;;  %v2078_v45 = vld [vmem:[%s12347_s7 + $0x12d0] sm:$0xff] }
  0xae   : > { %v2080_v46 = vld [vmem:[%s12347_s7 + $0x12e0] sm:$0xff]  ;;  %2077 = vst [vmem:[%s12352_s8 + $0x960] sm:$0xff] %v2076_v44  ;;  %2079 = vst [vmem:[%s12352_s8 + $0x968] sm:$0xff] %v2078_v45  ;;  %v2082_v47 = vld [vmem:[%s12347_s7 + $0x12f0] sm:$0xff] }
  0xaf   : > { %2081 = vst [vmem:[%s12352_s8 + $0x970] sm:$0xff] %v2080_v46  ;;  %v2084_v48 = vld [vmem:[%s12347_s7 + $0x1300] sm:$0xff]  ;;  %v2086_v49 = vld [vmem:[%s12347_s7 + $0x1310] sm:$0xff]  ;;  %2083 = vst [vmem:[%s12352_s8 + $0x978] sm:$0xff] %v2082_v47 }
  0xb0   : > { %2085 = vst [vmem:[%s12352_s8 + $0x980] sm:$0xff] %v2084_v48  ;;  %2087 = vst [vmem:[%s12352_s8 + $0x988] sm:$0xff] %v2086_v49  ;;  %v2088_v50 = vld [vmem:[%s12347_s7 + $0x1320] sm:$0xff]  ;;  %v2090_v51 = vld [vmem:[%s12347_s7 + $0x1330] sm:$0xff] }
  0xb1   : > { %v2092_v52 = vld [vmem:[%s12347_s7 + $0x1340] sm:$0xff]  ;;  %2089 = vst [vmem:[%s12352_s8 + $0x990] sm:$0xff] %v2088_v50  ;;  %2091 = vst [vmem:[%s12352_s8 + $0x998] sm:$0xff] %v2090_v51  ;;  %v2094_v53 = vld [vmem:[%s12347_s7 + $0x1350] sm:$0xff] }
  0xb2   : > { %2093 = vst [vmem:[%s12352_s8 + $0x9a0] sm:$0xff] %v2092_v52  ;;  %v2096_v54 = vld [vmem:[%s12347_s7 + $0x1360] sm:$0xff]  ;;  %v2098_v55 = vld [vmem:[%s12347_s7 + $0x1370] sm:$0xff]  ;;  %2095 = vst [vmem:[%s12352_s8 + $0x9a8] sm:$0xff] %v2094_v53 }
  0xb3   : > { %2097 = vst [vmem:[%s12352_s8 + $0x9b0] sm:$0xff] %v2096_v54  ;;  %2099 = vst [vmem:[%s12352_s8 + $0x9b8] sm:$0xff] %v2098_v55  ;;  %v2100_v56 = vld [vmem:[%s12347_s7 + $0x1380] sm:$0xff]  ;;  %v2102_v57 = vld [vmem:[%s12347_s7 + $0x1390] sm:$0xff] }
  0xb4   : > { %v2104_v58 = vld [vmem:[%s12347_s7 + $0x13a0] sm:$0xff]  ;;  %2101 = vst [vmem:[%s12352_s8 + $0x9c0] sm:$0xff] %v2100_v56  ;;  %2103 = vst [vmem:[%s12352_s8 + $0x9c8] sm:$0xff] %v2102_v57  ;;  %v2106_v59 = vld [vmem:[%s12347_s7 + $0x13b0] sm:$0xff] }
  0xb5   : > { %2105 = vst [vmem:[%s12352_s8 + $0x9d0] sm:$0xff] %v2104_v58  ;;  %v2108_v60 = vld [vmem:[%s12347_s7 + $0x13c0] sm:$0xff]  ;;  %v2110_v61 = vld [vmem:[%s12347_s7 + $0x13d0] sm:$0xff]  ;;  %2107 = vst [vmem:[%s12352_s8 + $0x9d8] sm:$0xff] %v2106_v59 }
  0xb6   : > { %2109 = vst [vmem:[%s12352_s8 + $0x9e0] sm:$0xff] %v2108_v60  ;;  %2111 = vst [vmem:[%s12352_s8 + $0x9e8] sm:$0xff] %v2110_v61  ;;  %v2112_v62 = vld [vmem:[%s12347_s7 + $0x13e0] sm:$0xff]  ;;  %v2114_v63 = vld [vmem:[%s12347_s7 + $0x13f0] sm:$0xff] }
  0xb7   : > { %v2116_v0 = vld [vmem:[%s12347_s7 + $0x1400] sm:$0xff]  ;;  %2113 = vst [vmem:[%s12352_s8 + $0x9f0] sm:$0xff] %v2112_v62  ;;  %2115 = vst [vmem:[%s12352_s8 + $0x9f8] sm:$0xff] %v2114_v63  ;;  %v2118_v1 = vld [vmem:[%s12347_s7 + $0x1410] sm:$0xff] }
  0xb8   : > { %2117 = vst [vmem:[%s12352_s8 + $0xa00] sm:$0xff] %v2116_v0  ;;  %v2120_v2 = vld [vmem:[%s12347_s7 + $0x1420] sm:$0xff]  ;;  %v2122_v3 = vld [vmem:[%s12347_s7 + $0x1430] sm:$0xff]  ;;  %2119 = vst [vmem:[%s12352_s8 + $0xa08] sm:$0xff] %v2118_v1 }
  0xb9   : > { %2121 = vst [vmem:[%s12352_s8 + $0xa10] sm:$0xff] %v2120_v2  ;;  %2123 = vst [vmem:[%s12352_s8 + $0xa18] sm:$0xff] %v2122_v3  ;;  %v2124_v4 = vld [vmem:[%s12347_s7 + $0x1440] sm:$0xff]  ;;  %v2126_v5 = vld [vmem:[%s12347_s7 + $0x1450] sm:$0xff] }
  0xba   : > { %v2128_v6 = vld [vmem:[%s12347_s7 + $0x1460] sm:$0xff]  ;;  %2125 = vst [vmem:[%s12352_s8 + $0xa20] sm:$0xff] %v2124_v4  ;;  %2127 = vst [vmem:[%s12352_s8 + $0xa28] sm:$0xff] %v2126_v5  ;;  %v2130_v7 = vld [vmem:[%s12347_s7 + $0x1470] sm:$0xff] }
  0xbb   : > { %2129 = vst [vmem:[%s12352_s8 + $0xa30] sm:$0xff] %v2128_v6  ;;  %v2132_v8 = vld [vmem:[%s12347_s7 + $0x1480] sm:$0xff]  ;;  %v2134_v9 = vld [vmem:[%s12347_s7 + $0x1490] sm:$0xff]  ;;  %2131 = vst [vmem:[%s12352_s8 + $0xa38] sm:$0xff] %v2130_v7 }
  0xbc   : > { %2133 = vst [vmem:[%s12352_s8 + $0xa40] sm:$0xff] %v2132_v8  ;;  %2135 = vst [vmem:[%s12352_s8 + $0xa48] sm:$0xff] %v2134_v9  ;;  %v2136_v10 = vld [vmem:[%s12347_s7 + $0x14a0] sm:$0xff]  ;;  %v2138_v11 = vld [vmem:[%s12347_s7 + $0x14b0] sm:$0xff] }
  0xbd   : > { %v2140_v12 = vld [vmem:[%s12347_s7 + $0x14c0] sm:$0xff]  ;;  %2137 = vst [vmem:[%s12352_s8 + $0xa50] sm:$0xff] %v2136_v10  ;;  %2139 = vst [vmem:[%s12352_s8 + $0xa58] sm:$0xff] %v2138_v11  ;;  %v2142_v13 = vld [vmem:[%s12347_s7 + $0x14d0] sm:$0xff] }
  0xbe   : > { %2141 = vst [vmem:[%s12352_s8 + $0xa60] sm:$0xff] %v2140_v12  ;;  %v2144_v14 = vld [vmem:[%s12347_s7 + $0x14e0] sm:$0xff]  ;;  %v2146_v15 = vld [vmem:[%s12347_s7 + $0x14f0] sm:$0xff]  ;;  %2143 = vst [vmem:[%s12352_s8 + $0xa68] sm:$0xff] %v2142_v13 }
  0xbf   : > { %2145 = vst [vmem:[%s12352_s8 + $0xa70] sm:$0xff] %v2144_v14  ;;  %2147 = vst [vmem:[%s12352_s8 + $0xa78] sm:$0xff] %v2146_v15  ;;  %v2148_v16 = vld [vmem:[%s12347_s7 + $0x1500] sm:$0xff]  ;;  %v2150_v17 = vld [vmem:[%s12347_s7 + $0x1510] sm:$0xff] }
  0xc0   : > { %v2152_v18 = vld [vmem:[%s12347_s7 + $0x1520] sm:$0xff]  ;;  %2149 = vst [vmem:[%s12352_s8 + $0xa80] sm:$0xff] %v2148_v16  ;;  %2151 = vst [vmem:[%s12352_s8 + $0xa88] sm:$0xff] %v2150_v17  ;;  %v2154_v19 = vld [vmem:[%s12347_s7 + $0x1530] sm:$0xff] }
  0xc1   : > { %2153 = vst [vmem:[%s12352_s8 + $0xa90] sm:$0xff] %v2152_v18  ;;  %v2156_v20 = vld [vmem:[%s12347_s7 + $0x1540] sm:$0xff]  ;;  %v2158_v21 = vld [vmem:[%s12347_s7 + $0x1550] sm:$0xff]  ;;  %2155 = vst [vmem:[%s12352_s8 + $0xa98] sm:$0xff] %v2154_v19 }
  0xc2   : > { %2157 = vst [vmem:[%s12352_s8 + $0xaa0] sm:$0xff] %v2156_v20  ;;  %2159 = vst [vmem:[%s12352_s8 + $0xaa8] sm:$0xff] %v2158_v21  ;;  %v2160_v22 = vld [vmem:[%s12347_s7 + $0x1560] sm:$0xff]  ;;  %v2162_v23 = vld [vmem:[%s12347_s7 + $0x1570] sm:$0xff] }
  0xc3   : > { %v2164_v24 = vld [vmem:[%s12347_s7 + $0x1580] sm:$0xff]  ;;  %2161 = vst [vmem:[%s12352_s8 + $0xab0] sm:$0xff] %v2160_v22  ;;  %2163 = vst [vmem:[%s12352_s8 + $0xab8] sm:$0xff] %v2162_v23  ;;  %v2166_v25 = vld [vmem:[%s12347_s7 + $0x1590] sm:$0xff] }
  0xc4   : > { %2165 = vst [vmem:[%s12352_s8 + $0xac0] sm:$0xff] %v2164_v24  ;;  %v2168_v26 = vld [vmem:[%s12347_s7 + $0x15a0] sm:$0xff]  ;;  %v2170_v27 = vld [vmem:[%s12347_s7 + $0x15b0] sm:$0xff]  ;;  %2167 = vst [vmem:[%s12352_s8 + $0xac8] sm:$0xff] %v2166_v25 }
  0xc5   : > { %2169 = vst [vmem:[%s12352_s8 + $0xad0] sm:$0xff] %v2168_v26  ;;  %2171 = vst [vmem:[%s12352_s8 + $0xad8] sm:$0xff] %v2170_v27  ;;  %v2172_v28 = vld [vmem:[%s12347_s7 + $0x15c0] sm:$0xff]  ;;  %v2174_v29 = vld [vmem:[%s12347_s7 + $0x15d0] sm:$0xff] }
  0xc6   : > { %v2176_v30 = vld [vmem:[%s12347_s7 + $0x15e0] sm:$0xff]  ;;  %2173 = vst [vmem:[%s12352_s8 + $0xae0] sm:$0xff] %v2172_v28  ;;  %2175 = vst [vmem:[%s12352_s8 + $0xae8] sm:$0xff] %v2174_v29  ;;  %v2178_v31 = vld [vmem:[%s12347_s7 + $0x15f0] sm:$0xff] }
  0xc7   : > { %2177 = vst [vmem:[%s12352_s8 + $0xaf0] sm:$0xff] %v2176_v30  ;;  %v2180_v32 = vld [vmem:[%s12347_s7 + $0x1600] sm:$0xff]  ;;  %v2182_v33 = vld [vmem:[%s12347_s7 + $0x1610] sm:$0xff]  ;;  %2179 = vst [vmem:[%s12352_s8 + $0xaf8] sm:$0xff] %v2178_v31 }
  0xc8   : > { %2181 = vst [vmem:[%s12352_s8 + $0xb00] sm:$0xff] %v2180_v32  ;;  %2183 = vst [vmem:[%s12352_s8 + $0xb08] sm:$0xff] %v2182_v33  ;;  %v2184_v34 = vld [vmem:[%s12347_s7 + $0x1620] sm:$0xff]  ;;  %v2186_v35 = vld [vmem:[%s12347_s7 + $0x1630] sm:$0xff] }
  0xc9   : > { %v2188_v36 = vld [vmem:[%s12347_s7 + $0x1640] sm:$0xff]  ;;  %2185 = vst [vmem:[%s12352_s8 + $0xb10] sm:$0xff] %v2184_v34  ;;  %2187 = vst [vmem:[%s12352_s8 + $0xb18] sm:$0xff] %v2186_v35  ;;  %v2190_v37 = vld [vmem:[%s12347_s7 + $0x1650] sm:$0xff] }
  0xca   : > { %2189 = vst [vmem:[%s12352_s8 + $0xb20] sm:$0xff] %v2188_v36  ;;  %v2192_v38 = vld [vmem:[%s12347_s7 + $0x1660] sm:$0xff]  ;;  %v2194_v39 = vld [vmem:[%s12347_s7 + $0x1670] sm:$0xff]  ;;  %2191 = vst [vmem:[%s12352_s8 + $0xb28] sm:$0xff] %v2190_v37 }
  0xcb   : > { %2193 = vst [vmem:[%s12352_s8 + $0xb30] sm:$0xff] %v2192_v38  ;;  %2195 = vst [vmem:[%s12352_s8 + $0xb38] sm:$0xff] %v2194_v39  ;;  %v2196_v40 = vld [vmem:[%s12347_s7 + $0x1680] sm:$0xff]  ;;  %v2198_v41 = vld [vmem:[%s12347_s7 + $0x1690] sm:$0xff] }
  0xcc   : > { %v2200_v42 = vld [vmem:[%s12347_s7 + $0x16a0] sm:$0xff]  ;;  %2197 = vst [vmem:[%s12352_s8 + $0xb40] sm:$0xff] %v2196_v40  ;;  %2199 = vst [vmem:[%s12352_s8 + $0xb48] sm:$0xff] %v2198_v41  ;;  %v2202_v43 = vld [vmem:[%s12347_s7 + $0x16b0] sm:$0xff] }
  0xcd   : > { %2201 = vst [vmem:[%s12352_s8 + $0xb50] sm:$0xff] %v2200_v42  ;;  %v2204_v44 = vld [vmem:[%s12347_s7 + $0x16c0] sm:$0xff]  ;;  %v2206_v45 = vld [vmem:[%s12347_s7 + $0x16d0] sm:$0xff]  ;;  %2203 = vst [vmem:[%s12352_s8 + $0xb58] sm:$0xff] %v2202_v43 }
  0xce   : > { %2205 = vst [vmem:[%s12352_s8 + $0xb60] sm:$0xff] %v2204_v44  ;;  %2207 = vst [vmem:[%s12352_s8 + $0xb68] sm:$0xff] %v2206_v45  ;;  %v2208_v46 = vld [vmem:[%s12347_s7 + $0x16e0] sm:$0xff]  ;;  %v2210_v47 = vld [vmem:[%s12347_s7 + $0x16f0] sm:$0xff] }
  0xcf   : > { %v2212_v48 = vld [vmem:[%s12347_s7 + $0x1700] sm:$0xff]  ;;  %2209 = vst [vmem:[%s12352_s8 + $0xb70] sm:$0xff] %v2208_v46  ;;  %2211 = vst [vmem:[%s12352_s8 + $0xb78] sm:$0xff] %v2210_v47  ;;  %v2214_v49 = vld [vmem:[%s12347_s7 + $0x1710] sm:$0xff] }
  0xd0   : > { %2213 = vst [vmem:[%s12352_s8 + $0xb80] sm:$0xff] %v2212_v48  ;;  %v2216_v50 = vld [vmem:[%s12347_s7 + $0x1720] sm:$0xff]  ;;  %v2218_v51 = vld [vmem:[%s12347_s7 + $0x1730] sm:$0xff]  ;;  %2215 = vst [vmem:[%s12352_s8 + $0xb88] sm:$0xff] %v2214_v49 }
  0xd1   : > { %2217 = vst [vmem:[%s12352_s8 + $0xb90] sm:$0xff] %v2216_v50  ;;  %2219 = vst [vmem:[%s12352_s8 + $0xb98] sm:$0xff] %v2218_v51  ;;  %v2220_v52 = vld [vmem:[%s12347_s7 + $0x1740] sm:$0xff]  ;;  %v2222_v53 = vld [vmem:[%s12347_s7 + $0x1750] sm:$0xff] }
  0xd2   : > { %v2224_v54 = vld [vmem:[%s12347_s7 + $0x1760] sm:$0xff]  ;;  %2221 = vst [vmem:[%s12352_s8 + $0xba0] sm:$0xff] %v2220_v52  ;;  %2223 = vst [vmem:[%s12352_s8 + $0xba8] sm:$0xff] %v2222_v53  ;;  %v2226_v55 = vld [vmem:[%s12347_s7 + $0x1770] sm:$0xff] }
  0xd3   : > { %2225 = vst [vmem:[%s12352_s8 + $0xbb0] sm:$0xff] %v2224_v54  ;;  %v2228_v56 = vld [vmem:[%s12347_s7 + $0x1780] sm:$0xff]  ;;  %v2230_v57 = vld [vmem:[%s12347_s7 + $0x1790] sm:$0xff]  ;;  %2227 = vst [vmem:[%s12352_s8 + $0xbb8] sm:$0xff] %v2226_v55 }
  0xd4   : > { %2229 = vst [vmem:[%s12352_s8 + $0xbc0] sm:$0xff] %v2228_v56  ;;  %2231 = vst [vmem:[%s12352_s8 + $0xbc8] sm:$0xff] %v2230_v57  ;;  %v2232_v58 = vld [vmem:[%s12347_s7 + $0x17a0] sm:$0xff]  ;;  %v2234_v59 = vld [vmem:[%s12347_s7 + $0x17b0] sm:$0xff] }
  0xd5   : > { %v2236_v60 = vld [vmem:[%s12347_s7 + $0x17c0] sm:$0xff]  ;;  %2233 = vst [vmem:[%s12352_s8 + $0xbd0] sm:$0xff] %v2232_v58  ;;  %2235 = vst [vmem:[%s12352_s8 + $0xbd8] sm:$0xff] %v2234_v59  ;;  %v2238_v61 = vld [vmem:[%s12347_s7 + $0x17d0] sm:$0xff] }
  0xd6   : > { %2237 = vst [vmem:[%s12352_s8 + $0xbe0] sm:$0xff] %v2236_v60  ;;  %v2240_v62 = vld [vmem:[%s12347_s7 + $0x17e0] sm:$0xff]  ;;  %v2242_v63 = vld [vmem:[%s12347_s7 + $0x17f0] sm:$0xff]  ;;  %2239 = vst [vmem:[%s12352_s8 + $0xbe8] sm:$0xff] %v2238_v61 }
  0xd7   : > { %2241 = vst [vmem:[%s12352_s8 + $0xbf0] sm:$0xff] %v2240_v62  ;;  %2243 = vst [vmem:[%s12352_s8 + $0xbf8] sm:$0xff] %v2242_v63  ;;  %v2244_v0 = vld [vmem:[%s12347_s7 + $0x1800] sm:$0xff]  ;;  %v2246_v1 = vld [vmem:[%s12347_s7 + $0x1810] sm:$0xff] }
  0xd8   : > { %v2248_v2 = vld [vmem:[%s12347_s7 + $0x1820] sm:$0xff]  ;;  %2245 = vst [vmem:[%s12352_s8 + $0xc00] sm:$0xff] %v2244_v0  ;;  %2247 = vst [vmem:[%s12352_s8 + $0xc08] sm:$0xff] %v2246_v1  ;;  %v2250_v3 = vld [vmem:[%s12347_s7 + $0x1830] sm:$0xff] }
  0xd9   : > { %2249 = vst [vmem:[%s12352_s8 + $0xc10] sm:$0xff] %v2248_v2  ;;  %v2252_v4 = vld [vmem:[%s12347_s7 + $0x1840] sm:$0xff]  ;;  %v2254_v5 = vld [vmem:[%s12347_s7 + $0x1850] sm:$0xff]  ;;  %2251 = vst [vmem:[%s12352_s8 + $0xc18] sm:$0xff] %v2250_v3 }
  0xda   : > { %2253 = vst [vmem:[%s12352_s8 + $0xc20] sm:$0xff] %v2252_v4  ;;  %2255 = vst [vmem:[%s12352_s8 + $0xc28] sm:$0xff] %v2254_v5  ;;  %v2256_v6 = vld [vmem:[%s12347_s7 + $0x1860] sm:$0xff]  ;;  %v2258_v7 = vld [vmem:[%s12347_s7 + $0x1870] sm:$0xff] }
  0xdb   : > { %v2260_v8 = vld [vmem:[%s12347_s7 + $0x1880] sm:$0xff]  ;;  %2257 = vst [vmem:[%s12352_s8 + $0xc30] sm:$0xff] %v2256_v6  ;;  %2259 = vst [vmem:[%s12352_s8 + $0xc38] sm:$0xff] %v2258_v7  ;;  %v2262_v9 = vld [vmem:[%s12347_s7 + $0x1890] sm:$0xff] }
  0xdc   : > { %2261 = vst [vmem:[%s12352_s8 + $0xc40] sm:$0xff] %v2260_v8  ;;  %v2264_v10 = vld [vmem:[%s12347_s7 + $0x18a0] sm:$0xff]  ;;  %v2266_v11 = vld [vmem:[%s12347_s7 + $0x18b0] sm:$0xff]  ;;  %2263 = vst [vmem:[%s12352_s8 + $0xc48] sm:$0xff] %v2262_v9 }
  0xdd   : > { %2265 = vst [vmem:[%s12352_s8 + $0xc50] sm:$0xff] %v2264_v10  ;;  %2267 = vst [vmem:[%s12352_s8 + $0xc58] sm:$0xff] %v2266_v11  ;;  %v2268_v12 = vld [vmem:[%s12347_s7 + $0x18c0] sm:$0xff]  ;;  %v2270_v13 = vld [vmem:[%s12347_s7 + $0x18d0] sm:$0xff] }
  0xde   : > { %v2272_v14 = vld [vmem:[%s12347_s7 + $0x18e0] sm:$0xff]  ;;  %2269 = vst [vmem:[%s12352_s8 + $0xc60] sm:$0xff] %v2268_v12  ;;  %2271 = vst [vmem:[%s12352_s8 + $0xc68] sm:$0xff] %v2270_v13  ;;  %v2274_v15 = vld [vmem:[%s12347_s7 + $0x18f0] sm:$0xff] }
  0xdf   : > { %2273 = vst [vmem:[%s12352_s8 + $0xc70] sm:$0xff] %v2272_v14  ;;  %v2276_v16 = vld [vmem:[%s12347_s7 + $0x1900] sm:$0xff]  ;;  %v2278_v17 = vld [vmem:[%s12347_s7 + $0x1910] sm:$0xff]  ;;  %2275 = vst [vmem:[%s12352_s8 + $0xc78] sm:$0xff] %v2274_v15 }
  0xe0   : > { %2277 = vst [vmem:[%s12352_s8 + $0xc80] sm:$0xff] %v2276_v16  ;;  %2279 = vst [vmem:[%s12352_s8 + $0xc88] sm:$0xff] %v2278_v17  ;;  %v2280_v18 = vld [vmem:[%s12347_s7 + $0x1920] sm:$0xff]  ;;  %v2282_v19 = vld [vmem:[%s12347_s7 + $0x1930] sm:$0xff] }
  0xe1   : > { %v2284_v20 = vld [vmem:[%s12347_s7 + $0x1940] sm:$0xff]  ;;  %2281 = vst [vmem:[%s12352_s8 + $0xc90] sm:$0xff] %v2280_v18  ;;  %2283 = vst [vmem:[%s12352_s8 + $0xc98] sm:$0xff] %v2282_v19  ;;  %v2286_v21 = vld [vmem:[%s12347_s7 + $0x1950] sm:$0xff] }
  0xe2   : > { %2285 = vst [vmem:[%s12352_s8 + $0xca0] sm:$0xff] %v2284_v20  ;;  %v2288_v22 = vld [vmem:[%s12347_s7 + $0x1960] sm:$0xff]  ;;  %v2290_v23 = vld [vmem:[%s12347_s7 + $0x1970] sm:$0xff]  ;;  %2287 = vst [vmem:[%s12352_s8 + $0xca8] sm:$0xff] %v2286_v21 }
  0xe3   : > { %2289 = vst [vmem:[%s12352_s8 + $0xcb0] sm:$0xff] %v2288_v22  ;;  %2291 = vst [vmem:[%s12352_s8 + $0xcb8] sm:$0xff] %v2290_v23  ;;  %v2292_v24 = vld [vmem:[%s12347_s7 + $0x1980] sm:$0xff]  ;;  %v2294_v25 = vld [vmem:[%s12347_s7 + $0x1990] sm:$0xff] }
  0xe4   : > { %v2296_v26 = vld [vmem:[%s12347_s7 + $0x19a0] sm:$0xff]  ;;  %2293 = vst [vmem:[%s12352_s8 + $0xcc0] sm:$0xff] %v2292_v24  ;;  %2295 = vst [vmem:[%s12352_s8 + $0xcc8] sm:$0xff] %v2294_v25  ;;  %v2298_v27 = vld [vmem:[%s12347_s7 + $0x19b0] sm:$0xff] }
  0xe5   : > { %2297 = vst [vmem:[%s12352_s8 + $0xcd0] sm:$0xff] %v2296_v26  ;;  %v2300_v28 = vld [vmem:[%s12347_s7 + $0x19c0] sm:$0xff]  ;;  %v2302_v29 = vld [vmem:[%s12347_s7 + $0x19d0] sm:$0xff]  ;;  %2299 = vst [vmem:[%s12352_s8 + $0xcd8] sm:$0xff] %v2298_v27 }
  0xe6   : > { %2301 = vst [vmem:[%s12352_s8 + $0xce0] sm:$0xff] %v2300_v28  ;;  %2303 = vst [vmem:[%s12352_s8 + $0xce8] sm:$0xff] %v2302_v29  ;;  %v2304_v30 = vld [vmem:[%s12347_s7 + $0x19e0] sm:$0xff]  ;;  %v2306_v31 = vld [vmem:[%s12347_s7 + $0x19f0] sm:$0xff] }
  0xe7   : > { %v2308_v32 = vld [vmem:[%s12347_s7 + $0x1a00] sm:$0xff]  ;;  %2305 = vst [vmem:[%s12352_s8 + $0xcf0] sm:$0xff] %v2304_v30  ;;  %2307 = vst [vmem:[%s12352_s8 + $0xcf8] sm:$0xff] %v2306_v31  ;;  %v2310_v33 = vld [vmem:[%s12347_s7 + $0x1a10] sm:$0xff] }
  0xe8   : > { %2309 = vst [vmem:[%s12352_s8 + $0xd00] sm:$0xff] %v2308_v32  ;;  %v2312_v34 = vld [vmem:[%s12347_s7 + $0x1a20] sm:$0xff]  ;;  %v2314_v35 = vld [vmem:[%s12347_s7 + $0x1a30] sm:$0xff]  ;;  %2311 = vst [vmem:[%s12352_s8 + $0xd08] sm:$0xff] %v2310_v33 }
  0xe9   : > { %2313 = vst [vmem:[%s12352_s8 + $0xd10] sm:$0xff] %v2312_v34  ;;  %2315 = vst [vmem:[%s12352_s8 + $0xd18] sm:$0xff] %v2314_v35  ;;  %v2316_v36 = vld [vmem:[%s12347_s7 + $0x1a40] sm:$0xff]  ;;  %v2318_v37 = vld [vmem:[%s12347_s7 + $0x1a50] sm:$0xff] }
  0xea   : > { %v2320_v38 = vld [vmem:[%s12347_s7 + $0x1a60] sm:$0xff]  ;;  %2317 = vst [vmem:[%s12352_s8 + $0xd20] sm:$0xff] %v2316_v36  ;;  %2319 = vst [vmem:[%s12352_s8 + $0xd28] sm:$0xff] %v2318_v37  ;;  %v2322_v39 = vld [vmem:[%s12347_s7 + $0x1a70] sm:$0xff] }
  0xeb   : > { %2321 = vst [vmem:[%s12352_s8 + $0xd30] sm:$0xff] %v2320_v38  ;;  %v2324_v40 = vld [vmem:[%s12347_s7 + $0x1a80] sm:$0xff]  ;;  %v2326_v41 = vld [vmem:[%s12347_s7 + $0x1a90] sm:$0xff]  ;;  %2323 = vst [vmem:[%s12352_s8 + $0xd38] sm:$0xff] %v2322_v39 }
  0xec   : > { %2325 = vst [vmem:[%s12352_s8 + $0xd40] sm:$0xff] %v2324_v40  ;;  %2327 = vst [vmem:[%s12352_s8 + $0xd48] sm:$0xff] %v2326_v41  ;;  %v2328_v42 = vld [vmem:[%s12347_s7 + $0x1aa0] sm:$0xff]  ;;  %v2330_v43 = vld [vmem:[%s12347_s7 + $0x1ab0] sm:$0xff] }
  0xed   : > { %v2332_v44 = vld [vmem:[%s12347_s7 + $0x1ac0] sm:$0xff]  ;;  %2329 = vst [vmem:[%s12352_s8 + $0xd50] sm:$0xff] %v2328_v42  ;;  %2331 = vst [vmem:[%s12352_s8 + $0xd58] sm:$0xff] %v2330_v43  ;;  %v2334_v45 = vld [vmem:[%s12347_s7 + $0x1ad0] sm:$0xff] }
  0xee   : > { %2333 = vst [vmem:[%s12352_s8 + $0xd60] sm:$0xff] %v2332_v44  ;;  %v2336_v46 = vld [vmem:[%s12347_s7 + $0x1ae0] sm:$0xff]  ;;  %v2338_v47 = vld [vmem:[%s12347_s7 + $0x1af0] sm:$0xff]  ;;  %2335 = vst [vmem:[%s12352_s8 + $0xd68] sm:$0xff] %v2334_v45 }
  0xef   : > { %2337 = vst [vmem:[%s12352_s8 + $0xd70] sm:$0xff] %v2336_v46  ;;  %2339 = vst [vmem:[%s12352_s8 + $0xd78] sm:$0xff] %v2338_v47  ;;  %v2340_v48 = vld [vmem:[%s12347_s7 + $0x1b00] sm:$0xff]  ;;  %v2342_v49 = vld [vmem:[%s12347_s7 + $0x1b10] sm:$0xff] }
  0xf0   : > { %v2344_v50 = vld [vmem:[%s12347_s7 + $0x1b20] sm:$0xff]  ;;  %2341 = vst [vmem:[%s12352_s8 + $0xd80] sm:$0xff] %v2340_v48  ;;  %2343 = vst [vmem:[%s12352_s8 + $0xd88] sm:$0xff] %v2342_v49  ;;  %v2346_v51 = vld [vmem:[%s12347_s7 + $0x1b30] sm:$0xff] }
  0xf1   : > { %2345 = vst [vmem:[%s12352_s8 + $0xd90] sm:$0xff] %v2344_v50  ;;  %v2348_v52 = vld [vmem:[%s12347_s7 + $0x1b40] sm:$0xff]  ;;  %v2350_v53 = vld [vmem:[%s12347_s7 + $0x1b50] sm:$0xff]  ;;  %2347 = vst [vmem:[%s12352_s8 + $0xd98] sm:$0xff] %v2346_v51 }
  0xf2   : > { %2349 = vst [vmem:[%s12352_s8 + $0xda0] sm:$0xff] %v2348_v52  ;;  %2351 = vst [vmem:[%s12352_s8 + $0xda8] sm:$0xff] %v2350_v53  ;;  %v2352_v54 = vld [vmem:[%s12347_s7 + $0x1b60] sm:$0xff]  ;;  %v2354_v55 = vld [vmem:[%s12347_s7 + $0x1b70] sm:$0xff] }
  0xf3   : > { %v2356_v56 = vld [vmem:[%s12347_s7 + $0x1b80] sm:$0xff]  ;;  %2353 = vst [vmem:[%s12352_s8 + $0xdb0] sm:$0xff] %v2352_v54  ;;  %2355 = vst [vmem:[%s12352_s8 + $0xdb8] sm:$0xff] %v2354_v55  ;;  %v2358_v57 = vld [vmem:[%s12347_s7 + $0x1b90] sm:$0xff] }
  0xf4   : > { %2357 = vst [vmem:[%s12352_s8 + $0xdc0] sm:$0xff] %v2356_v56  ;;  %v2360_v58 = vld [vmem:[%s12347_s7 + $0x1ba0] sm:$0xff]  ;;  %v2362_v59 = vld [vmem:[%s12347_s7 + $0x1bb0] sm:$0xff]  ;;  %2359 = vst [vmem:[%s12352_s8 + $0xdc8] sm:$0xff] %v2358_v57 }
  0xf5   : > { %2361 = vst [vmem:[%s12352_s8 + $0xdd0] sm:$0xff] %v2360_v58  ;;  %2363 = vst [vmem:[%s12352_s8 + $0xdd8] sm:$0xff] %v2362_v59  ;;  %v2364_v60 = vld [vmem:[%s12347_s7 + $0x1bc0] sm:$0xff]  ;;  %v2366_v61 = vld [vmem:[%s12347_s7 + $0x1bd0] sm:$0xff] }
  0xf6   : > { %v2368_v62 = vld [vmem:[%s12347_s7 + $0x1be0] sm:$0xff]  ;;  %2365 = vst [vmem:[%s12352_s8 + $0xde0] sm:$0xff] %v2364_v60  ;;  %2367 = vst [vmem:[%s12352_s8 + $0xde8] sm:$0xff] %v2366_v61  ;;  %v2370_v63 = vld [vmem:[%s12347_s7 + $0x1bf0] sm:$0xff] }
  0xf7   : > { %2369 = vst [vmem:[%s12352_s8 + $0xdf0] sm:$0xff] %v2368_v62  ;;  %v2372_v0 = vld [vmem:[%s12347_s7 + $0x1c00] sm:$0xff]  ;;  %v2374_v1 = vld [vmem:[%s12347_s7 + $0x1c10] sm:$0xff]  ;;  %2371 = vst [vmem:[%s12352_s8 + $0xdf8] sm:$0xff] %v2370_v63 }
  0xf8   : > { %2373 = vst [vmem:[%s12352_s8 + $0xe00] sm:$0xff] %v2372_v0  ;;  %2375 = vst [vmem:[%s12352_s8 + $0xe08] sm:$0xff] %v2374_v1  ;;  %v2376_v2 = vld [vmem:[%s12347_s7 + $0x1c20] sm:$0xff]  ;;  %v2378_v3 = vld [vmem:[%s12347_s7 + $0x1c30] sm:$0xff] }
  0xf9   : > { %v2380_v4 = vld [vmem:[%s12347_s7 + $0x1c40] sm:$0xff]  ;;  %2377 = vst [vmem:[%s12352_s8 + $0xe10] sm:$0xff] %v2376_v2  ;;  %2379 = vst [vmem:[%s12352_s8 + $0xe18] sm:$0xff] %v2378_v3  ;;  %v2382_v5 = vld [vmem:[%s12347_s7 + $0x1c50] sm:$0xff] }
  0xfa   : > { %2381 = vst [vmem:[%s12352_s8 + $0xe20] sm:$0xff] %v2380_v4  ;;  %v2384_v6 = vld [vmem:[%s12347_s7 + $0x1c60] sm:$0xff]  ;;  %v2386_v7 = vld [vmem:[%s12347_s7 + $0x1c70] sm:$0xff]  ;;  %2383 = vst [vmem:[%s12352_s8 + $0xe28] sm:$0xff] %v2382_v5 }
  0xfb   : > { %2385 = vst [vmem:[%s12352_s8 + $0xe30] sm:$0xff] %v2384_v6  ;;  %2387 = vst [vmem:[%s12352_s8 + $0xe38] sm:$0xff] %v2386_v7  ;;  %v2388_v8 = vld [vmem:[%s12347_s7 + $0x1c80] sm:$0xff]  ;;  %v2390_v9 = vld [vmem:[%s12347_s7 + $0x1c90] sm:$0xff] }
  0xfc   : > { %v2392_v10 = vld [vmem:[%s12347_s7 + $0x1ca0] sm:$0xff]  ;;  %2389 = vst [vmem:[%s12352_s8 + $0xe40] sm:$0xff] %v2388_v8  ;;  %2391 = vst [vmem:[%s12352_s8 + $0xe48] sm:$0xff] %v2390_v9  ;;  %v2394_v11 = vld [vmem:[%s12347_s7 + $0x1cb0] sm:$0xff] }
  0xfd   : > { %2393 = vst [vmem:[%s12352_s8 + $0xe50] sm:$0xff] %v2392_v10  ;;  %v2396_v12 = vld [vmem:[%s12347_s7 + $0x1cc0] sm:$0xff]  ;;  %v2398_v13 = vld [vmem:[%s12347_s7 + $0x1cd0] sm:$0xff]  ;;  %2395 = vst [vmem:[%s12352_s8 + $0xe58] sm:$0xff] %v2394_v11 }
  0xfe   : > { %2397 = vst [vmem:[%s12352_s8 + $0xe60] sm:$0xff] %v2396_v12  ;;  %2399 = vst [vmem:[%s12352_s8 + $0xe68] sm:$0xff] %v2398_v13  ;;  %v2400_v14 = vld [vmem:[%s12347_s7 + $0x1ce0] sm:$0xff]  ;;  %v2402_v15 = vld [vmem:[%s12347_s7 + $0x1cf0] sm:$0xff] }
  0xff   : > { %v2404_v16 = vld [vmem:[%s12347_s7 + $0x1d00] sm:$0xff]  ;;  %2401 = vst [vmem:[%s12352_s8 + $0xe70] sm:$0xff] %v2400_v14  ;;  %2403 = vst [vmem:[%s12352_s8 + $0xe78] sm:$0xff] %v2402_v15  ;;  %v2406_v17 = vld [vmem:[%s12347_s7 + $0x1d10] sm:$0xff] }
 0x100   : > { %2405 = vst [vmem:[%s12352_s8 + $0xe80] sm:$0xff] %v2404_v16  ;;  %v2408_v18 = vld [vmem:[%s12347_s7 + $0x1d20] sm:$0xff]  ;;  %v2410_v19 = vld [vmem:[%s12347_s7 + $0x1d30] sm:$0xff]  ;;  %2407 = vst [vmem:[%s12352_s8 + $0xe88] sm:$0xff] %v2406_v17 }
 0x101   : > { %2409 = vst [vmem:[%s12352_s8 + $0xe90] sm:$0xff] %v2408_v18  ;;  %2411 = vst [vmem:[%s12352_s8 + $0xe98] sm:$0xff] %v2410_v19  ;;  %v2412_v20 = vld [vmem:[%s12347_s7 + $0x1d40] sm:$0xff]  ;;  %v2414_v21 = vld [vmem:[%s12347_s7 + $0x1d50] sm:$0xff] }
 0x102   : > { %v2416_v22 = vld [vmem:[%s12347_s7 + $0x1d60] sm:$0xff]  ;;  %2413 = vst [vmem:[%s12352_s8 + $0xea0] sm:$0xff] %v2412_v20  ;;  %2415 = vst [vmem:[%s12352_s8 + $0xea8] sm:$0xff] %v2414_v21  ;;  %v2418_v23 = vld [vmem:[%s12347_s7 + $0x1d70] sm:$0xff] }
 0x103   : > { %2417 = vst [vmem:[%s12352_s8 + $0xeb0] sm:$0xff] %v2416_v22  ;;  %v2420_v24 = vld [vmem:[%s12347_s7 + $0x1d80] sm:$0xff]  ;;  %v2422_v25 = vld [vmem:[%s12347_s7 + $0x1d90] sm:$0xff]  ;;  %2419 = vst [vmem:[%s12352_s8 + $0xeb8] sm:$0xff] %v2418_v23 }
 0x104   : > { %2421 = vst [vmem:[%s12352_s8 + $0xec0] sm:$0xff] %v2420_v24  ;;  %2423 = vst [vmem:[%s12352_s8 + $0xec8] sm:$0xff] %v2422_v25  ;;  %v2424_v26 = vld [vmem:[%s12347_s7 + $0x1da0] sm:$0xff]  ;;  %v2426_v27 = vld [vmem:[%s12347_s7 + $0x1db0] sm:$0xff] }
 0x105   : > { %v2428_v28 = vld [vmem:[%s12347_s7 + $0x1dc0] sm:$0xff]  ;;  %2425 = vst [vmem:[%s12352_s8 + $0xed0] sm:$0xff] %v2424_v26  ;;  %2427 = vst [vmem:[%s12352_s8 + $0xed8] sm:$0xff] %v2426_v27  ;;  %v2430_v29 = vld [vmem:[%s12347_s7 + $0x1dd0] sm:$0xff] }
 0x106   : > { %2429 = vst [vmem:[%s12352_s8 + $0xee0] sm:$0xff] %v2428_v28  ;;  %v2432_v30 = vld [vmem:[%s12347_s7 + $0x1de0] sm:$0xff]  ;;  %v2434_v31 = vld [vmem:[%s12347_s7 + $0x1df0] sm:$0xff]  ;;  %2431 = vst [vmem:[%s12352_s8 + $0xee8] sm:$0xff] %v2430_v29 }
 0x107   : > { %2433 = vst [vmem:[%s12352_s8 + $0xef0] sm:$0xff] %v2432_v30  ;;  %2435 = vst [vmem:[%s12352_s8 + $0xef8] sm:$0xff] %v2434_v31  ;;  %v2436_v32 = vld [vmem:[%s12347_s7 + $0x1e00] sm:$0xff]  ;;  %v2438_v33 = vld [vmem:[%s12347_s7 + $0x1e10] sm:$0xff] }
 0x108   : > { %v2440_v34 = vld [vmem:[%s12347_s7 + $0x1e20] sm:$0xff]  ;;  %2437 = vst [vmem:[%s12352_s8 + $0xf00] sm:$0xff] %v2436_v32  ;;  %2439 = vst [vmem:[%s12352_s8 + $0xf08] sm:$0xff] %v2438_v33  ;;  %v2442_v35 = vld [vmem:[%s12347_s7 + $0x1e30] sm:$0xff] }
 0x109   : > { %2441 = vst [vmem:[%s12352_s8 + $0xf10] sm:$0xff] %v2440_v34  ;;  %v2444_v36 = vld [vmem:[%s12347_s7 + $0x1e40] sm:$0xff]  ;;  %v2446_v37 = vld [vmem:[%s12347_s7 + $0x1e50] sm:$0xff]  ;;  %2443 = vst [vmem:[%s12352_s8 + $0xf18] sm:$0xff] %v2442_v35 }
 0x10a   : > { %2445 = vst [vmem:[%s12352_s8 + $0xf20] sm:$0xff] %v2444_v36  ;;  %2447 = vst [vmem:[%s12352_s8 + $0xf28] sm:$0xff] %v2446_v37  ;;  %v2448_v38 = vld [vmem:[%s12347_s7 + $0x1e60] sm:$0xff]  ;;  %v2450_v39 = vld [vmem:[%s12347_s7 + $0x1e70] sm:$0xff] }
 0x10b   : > { %v2452_v40 = vld [vmem:[%s12347_s7 + $0x1e80] sm:$0xff]  ;;  %2449 = vst [vmem:[%s12352_s8 + $0xf30] sm:$0xff] %v2448_v38  ;;  %2451 = vst [vmem:[%s12352_s8 + $0xf38] sm:$0xff] %v2450_v39  ;;  %v2454_v41 = vld [vmem:[%s12347_s7 + $0x1e90] sm:$0xff] }
 0x10c   : > { %2453 = vst [vmem:[%s12352_s8 + $0xf40] sm:$0xff] %v2452_v40  ;;  %v2456_v42 = vld [vmem:[%s12347_s7 + $0x1ea0] sm:$0xff]  ;;  %v2458_v43 = vld [vmem:[%s12347_s7 + $0x1eb0] sm:$0xff]  ;;  %2455 = vst [vmem:[%s12352_s8 + $0xf48] sm:$0xff] %v2454_v41 }
 0x10d   : > { %2457 = vst [vmem:[%s12352_s8 + $0xf50] sm:$0xff] %v2456_v42  ;;  %2459 = vst [vmem:[%s12352_s8 + $0xf58] sm:$0xff] %v2458_v43  ;;  %v2460_v44 = vld [vmem:[%s12347_s7 + $0x1ec0] sm:$0xff]  ;;  %v2462_v45 = vld [vmem:[%s12347_s7 + $0x1ed0] sm:$0xff] }
 0x10e   : > { %v2464_v46 = vld [vmem:[%s12347_s7 + $0x1ee0] sm:$0xff]  ;;  %2461 = vst [vmem:[%s12352_s8 + $0xf60] sm:$0xff] %v2460_v44  ;;  %2463 = vst [vmem:[%s12352_s8 + $0xf68] sm:$0xff] %v2462_v45  ;;  %v2466_v47 = vld [vmem:[%s12347_s7 + $0x1ef0] sm:$0xff] }
 0x10f   : > { %2465 = vst [vmem:[%s12352_s8 + $0xf70] sm:$0xff] %v2464_v46  ;;  %v2468_v48 = vld [vmem:[%s12347_s7 + $0x1f00] sm:$0xff]  ;;  %v2470_v49 = vld [vmem:[%s12347_s7 + $0x1f10] sm:$0xff]  ;;  %2467 = vst [vmem:[%s12352_s8 + $0xf78] sm:$0xff] %v2466_v47 }
 0x110   : > { %2469 = vst [vmem:[%s12352_s8 + $0xf80] sm:$0xff] %v2468_v48  ;;  %2471 = vst [vmem:[%s12352_s8 + $0xf88] sm:$0xff] %v2470_v49  ;;  %v2472_v50 = vld [vmem:[%s12347_s7 + $0x1f20] sm:$0xff]  ;;  %v2474_v51 = vld [vmem:[%s12347_s7 + $0x1f30] sm:$0xff] }
 0x111   : > { %v2476_v52 = vld [vmem:[%s12347_s7 + $0x1f40] sm:$0xff]  ;;  %2473 = vst [vmem:[%s12352_s8 + $0xf90] sm:$0xff] %v2472_v50  ;;  %2475 = vst [vmem:[%s12352_s8 + $0xf98] sm:$0xff] %v2474_v51  ;;  %v2478_v53 = vld [vmem:[%s12347_s7 + $0x1f50] sm:$0xff] }
 0x112   : > { %2477 = vst [vmem:[%s12352_s8 + $0xfa0] sm:$0xff] %v2476_v52  ;;  %v2480_v54 = vld [vmem:[%s12347_s7 + $0x1f60] sm:$0xff]  ;;  %v2482_v55 = vld [vmem:[%s12347_s7 + $0x1f70] sm:$0xff]  ;;  %2479 = vst [vmem:[%s12352_s8 + $0xfa8] sm:$0xff] %v2478_v53 }
 0x113   : > { %2481 = vst [vmem:[%s12352_s8 + $0xfb0] sm:$0xff] %v2480_v54  ;;  %2483 = vst [vmem:[%s12352_s8 + $0xfb8] sm:$0xff] %v2482_v55  ;;  %v2484_v56 = vld [vmem:[%s12347_s7 + $0x1f80] sm:$0xff]  ;;  %v2486_v57 = vld [vmem:[%s12347_s7 + $0x1f90] sm:$0xff] }
 0x114   : > { %v2488_v58 = vld [vmem:[%s12347_s7 + $0x1fa0] sm:$0xff]  ;;  %2485 = vst [vmem:[%s12352_s8 + $0xfc0] sm:$0xff] %v2484_v56  ;;  %2487 = vst [vmem:[%s12352_s8 + $0xfc8] sm:$0xff] %v2486_v57  ;;  %v2490_v59 = vld [vmem:[%s12347_s7 + $0x1fb0] sm:$0xff] }
 0x115   : > { %2489 = vst [vmem:[%s12352_s8 + $0xfd0] sm:$0xff] %v2488_v58  ;;  %v2492_v60 = vld [vmem:[%s12347_s7 + $0x1fc0] sm:$0xff]  ;;  %v2494_v61 = vld [vmem:[%s12347_s7 + $0x1fd0] sm:$0xff]  ;;  %2491 = vst [vmem:[%s12352_s8 + $0xfd8] sm:$0xff] %v2490_v59 }
 0x116   : > { %2493 = vst [vmem:[%s12352_s8 + $0xfe0] sm:$0xff] %v2492_v60  ;;  %2495 = vst [vmem:[%s12352_s8 + $0xfe8] sm:$0xff] %v2494_v61  ;;  %v2496_v62 = vld [vmem:[%s12347_s7 + $0x1fe0] sm:$0xff]  ;;  %v2498_v63 = vld [vmem:[%s12347_s7 + $0x1ff0] sm:$0xff] }
 0x117   : > { %v2500_v0 = vld [vmem:[%s12347_s7 + $0x2000] sm:$0xff]  ;;  %2497 = vst [vmem:[%s12352_s8 + $0xff0] sm:$0xff] %v2496_v62  ;;  %2499 = vst [vmem:[%s12352_s8 + $0xff8] sm:$0xff] %v2498_v63  ;;  %v2502_v1 = vld [vmem:[%s12347_s7 + $0x2010] sm:$0xff] }
 0x118   : > { %2501 = vst [vmem:[%s12352_s8 + $0x1000] sm:$0xff] %v2500_v0  ;;  %v2504_v2 = vld [vmem:[%s12347_s7 + $0x2020] sm:$0xff]  ;;  %v2506_v3 = vld [vmem:[%s12347_s7 + $0x2030] sm:$0xff]  ;;  %2503 = vst [vmem:[%s12352_s8 + $0x1008] sm:$0xff] %v2502_v1 }
 0x119   : > { %2505 = vst [vmem:[%s12352_s8 + $0x1010] sm:$0xff] %v2504_v2  ;;  %2507 = vst [vmem:[%s12352_s8 + $0x1018] sm:$0xff] %v2506_v3  ;;  %v2508_v4 = vld [vmem:[%s12347_s7 + $0x2040] sm:$0xff]  ;;  %v2510_v5 = vld [vmem:[%s12347_s7 + $0x2050] sm:$0xff] }
 0x11a   : > { %v2512_v6 = vld [vmem:[%s12347_s7 + $0x2060] sm:$0xff]  ;;  %2509 = vst [vmem:[%s12352_s8 + $0x1020] sm:$0xff] %v2508_v4  ;;  %2511 = vst [vmem:[%s12352_s8 + $0x1028] sm:$0xff] %v2510_v5  ;;  %v2514_v7 = vld [vmem:[%s12347_s7 + $0x2070] sm:$0xff] }
 0x11b   : > { %2513 = vst [vmem:[%s12352_s8 + $0x1030] sm:$0xff] %v2512_v6  ;;  %v2516_v8 = vld [vmem:[%s12347_s7 + $0x2080] sm:$0xff]  ;;  %v2518_v9 = vld [vmem:[%s12347_s7 + $0x2090] sm:$0xff]  ;;  %2515 = vst [vmem:[%s12352_s8 + $0x1038] sm:$0xff] %v2514_v7 }
 0x11c   : > { %2517 = vst [vmem:[%s12352_s8 + $0x1040] sm:$0xff] %v2516_v8  ;;  %2519 = vst [vmem:[%s12352_s8 + $0x1048] sm:$0xff] %v2518_v9  ;;  %v2520_v10 = vld [vmem:[%s12347_s7 + $0x20a0] sm:$0xff]  ;;  %v2522_v11 = vld [vmem:[%s12347_s7 + $0x20b0] sm:$0xff] }
 0x11d   : > { %v2524_v12 = vld [vmem:[%s12347_s7 + $0x20c0] sm:$0xff]  ;;  %2521 = vst [vmem:[%s12352_s8 + $0x1050] sm:$0xff] %v2520_v10  ;;  %2523 = vst [vmem:[%s12352_s8 + $0x1058] sm:$0xff] %v2522_v11  ;;  %v2526_v13 = vld [vmem:[%s12347_s7 + $0x20d0] sm:$0xff] }
 0x11e   : > { %2525 = vst [vmem:[%s12352_s8 + $0x1060] sm:$0xff] %v2524_v12  ;;  %v2528_v14 = vld [vmem:[%s12347_s7 + $0x20e0] sm:$0xff]  ;;  %v2530_v15 = vld [vmem:[%s12347_s7 + $0x20f0] sm:$0xff]  ;;  %2527 = vst [vmem:[%s12352_s8 + $0x1068] sm:$0xff] %v2526_v13 }
 0x11f   : > { %2529 = vst [vmem:[%s12352_s8 + $0x1070] sm:$0xff] %v2528_v14  ;;  %2531 = vst [vmem:[%s12352_s8 + $0x1078] sm:$0xff] %v2530_v15  ;;  %v2532_v16 = vld [vmem:[%s12347_s7 + $0x2100] sm:$0xff]  ;;  %v2534_v17 = vld [vmem:[%s12347_s7 + $0x2110] sm:$0xff] }
 0x120   : > { %v2536_v18 = vld [vmem:[%s12347_s7 + $0x2120] sm:$0xff]  ;;  %2533 = vst [vmem:[%s12352_s8 + $0x1080] sm:$0xff] %v2532_v16  ;;  %2535 = vst [vmem:[%s12352_s8 + $0x1088] sm:$0xff] %v2534_v17  ;;  %v2538_v19 = vld [vmem:[%s12347_s7 + $0x2130] sm:$0xff] }
 0x121   : > { %2537 = vst [vmem:[%s12352_s8 + $0x1090] sm:$0xff] %v2536_v18  ;;  %v2540_v20 = vld [vmem:[%s12347_s7 + $0x2140] sm:$0xff]  ;;  %v2542_v21 = vld [vmem:[%s12347_s7 + $0x2150] sm:$0xff]  ;;  %2539 = vst [vmem:[%s12352_s8 + $0x1098] sm:$0xff] %v2538_v19 }
 0x122   : > { %2541 = vst [vmem:[%s12352_s8 + $0x10a0] sm:$0xff] %v2540_v20  ;;  %2543 = vst [vmem:[%s12352_s8 + $0x10a8] sm:$0xff] %v2542_v21  ;;  %v2544_v22 = vld [vmem:[%s12347_s7 + $0x2160] sm:$0xff]  ;;  %v2546_v23 = vld [vmem:[%s12347_s7 + $0x2170] sm:$0xff] }
 0x123   : > { %v2548_v24 = vld [vmem:[%s12347_s7 + $0x2180] sm:$0xff]  ;;  %2545 = vst [vmem:[%s12352_s8 + $0x10b0] sm:$0xff] %v2544_v22  ;;  %2547 = vst [vmem:[%s12352_s8 + $0x10b8] sm:$0xff] %v2546_v23  ;;  %v2550_v25 = vld [vmem:[%s12347_s7 + $0x2190] sm:$0xff] }
 0x124   : > { %2549 = vst [vmem:[%s12352_s8 + $0x10c0] sm:$0xff] %v2548_v24  ;;  %v2552_v26 = vld [vmem:[%s12347_s7 + $0x21a0] sm:$0xff]  ;;  %v2554_v27 = vld [vmem:[%s12347_s7 + $0x21b0] sm:$0xff]  ;;  %2551 = vst [vmem:[%s12352_s8 + $0x10c8] sm:$0xff] %v2550_v25 }
 0x125   : > { %2553 = vst [vmem:[%s12352_s8 + $0x10d0] sm:$0xff] %v2552_v26  ;;  %2555 = vst [vmem:[%s12352_s8 + $0x10d8] sm:$0xff] %v2554_v27  ;;  %v2556_v28 = vld [vmem:[%s12347_s7 + $0x21c0] sm:$0xff]  ;;  %v2558_v29 = vld [vmem:[%s12347_s7 + $0x21d0] sm:$0xff] }
 0x126   : > { %v2560_v30 = vld [vmem:[%s12347_s7 + $0x21e0] sm:$0xff]  ;;  %2557 = vst [vmem:[%s12352_s8 + $0x10e0] sm:$0xff] %v2556_v28  ;;  %2559 = vst [vmem:[%s12352_s8 + $0x10e8] sm:$0xff] %v2558_v29  ;;  %v2562_v31 = vld [vmem:[%s12347_s7 + $0x21f0] sm:$0xff] }
 0x127   : > { %2561 = vst [vmem:[%s12352_s8 + $0x10f0] sm:$0xff] %v2560_v30  ;;  %v2564_v32 = vld [vmem:[%s12347_s7 + $0x2200] sm:$0xff]  ;;  %v2566_v33 = vld [vmem:[%s12347_s7 + $0x2210] sm:$0xff]  ;;  %2563 = vst [vmem:[%s12352_s8 + $0x10f8] sm:$0xff] %v2562_v31 }
 0x128   : > { %2565 = vst [vmem:[%s12352_s8 + $0x1100] sm:$0xff] %v2564_v32  ;;  %2567 = vst [vmem:[%s12352_s8 + $0x1108] sm:$0xff] %v2566_v33  ;;  %v2568_v34 = vld [vmem:[%s12347_s7 + $0x2220] sm:$0xff]  ;;  %v2570_v35 = vld [vmem:[%s12347_s7 + $0x2230] sm:$0xff] }
 0x129   : > { %v2572_v36 = vld [vmem:[%s12347_s7 + $0x2240] sm:$0xff]  ;;  %2569 = vst [vmem:[%s12352_s8 + $0x1110] sm:$0xff] %v2568_v34  ;;  %2571 = vst [vmem:[%s12352_s8 + $0x1118] sm:$0xff] %v2570_v35  ;;  %v2574_v37 = vld [vmem:[%s12347_s7 + $0x2250] sm:$0xff] }
 0x12a   : > { %2573 = vst [vmem:[%s12352_s8 + $0x1120] sm:$0xff] %v2572_v36  ;;  %v2576_v38 = vld [vmem:[%s12347_s7 + $0x2260] sm:$0xff]  ;;  %v2578_v39 = vld [vmem:[%s12347_s7 + $0x2270] sm:$0xff]  ;;  %2575 = vst [vmem:[%s12352_s8 + $0x1128] sm:$0xff] %v2574_v37 }
 0x12b   : > { %2577 = vst [vmem:[%s12352_s8 + $0x1130] sm:$0xff] %v2576_v38  ;;  %2579 = vst [vmem:[%s12352_s8 + $0x1138] sm:$0xff] %v2578_v39  ;;  %v2580_v40 = vld [vmem:[%s12347_s7 + $0x2280] sm:$0xff]  ;;  %v2582_v41 = vld [vmem:[%s12347_s7 + $0x2290] sm:$0xff] }
 0x12c   : > { %v2584_v42 = vld [vmem:[%s12347_s7 + $0x22a0] sm:$0xff]  ;;  %2581 = vst [vmem:[%s12352_s8 + $0x1140] sm:$0xff] %v2580_v40  ;;  %2583 = vst [vmem:[%s12352_s8 + $0x1148] sm:$0xff] %v2582_v41  ;;  %v2586_v43 = vld [vmem:[%s12347_s7 + $0x22b0] sm:$0xff] }
 0x12d   : > { %2585 = vst [vmem:[%s12352_s8 + $0x1150] sm:$0xff] %v2584_v42  ;;  %v2588_v44 = vld [vmem:[%s12347_s7 + $0x22c0] sm:$0xff]  ;;  %v2590_v45 = vld [vmem:[%s12347_s7 + $0x22d0] sm:$0xff]  ;;  %2587 = vst [vmem:[%s12352_s8 + $0x1158] sm:$0xff] %v2586_v43 }
 0x12e   : > { %2589 = vst [vmem:[%s12352_s8 + $0x1160] sm:$0xff] %v2588_v44  ;;  %2591 = vst [vmem:[%s12352_s8 + $0x1168] sm:$0xff] %v2590_v45  ;;  %v2592_v46 = vld [vmem:[%s12347_s7 + $0x22e0] sm:$0xff]  ;;  %v2594_v47 = vld [vmem:[%s12347_s7 + $0x22f0] sm:$0xff] }
 0x12f   : > { %v2596_v48 = vld [vmem:[%s12347_s7 + $0x2300] sm:$0xff]  ;;  %2593 = vst [vmem:[%s12352_s8 + $0x1170] sm:$0xff] %v2592_v46  ;;  %2595 = vst [vmem:[%s12352_s8 + $0x1178] sm:$0xff] %v2594_v47  ;;  %v2598_v49 = vld [vmem:[%s12347_s7 + $0x2310] sm:$0xff] }
 0x130   : > { %2597 = vst [vmem:[%s12352_s8 + $0x1180] sm:$0xff] %v2596_v48  ;;  %v2600_v50 = vld [vmem:[%s12347_s7 + $0x2320] sm:$0xff]  ;;  %v2602_v51 = vld [vmem:[%s12347_s7 + $0x2330] sm:$0xff]  ;;  %2599 = vst [vmem:[%s12352_s8 + $0x1188] sm:$0xff] %v2598_v49 }
 0x131   : > { %2601 = vst [vmem:[%s12352_s8 + $0x1190] sm:$0xff] %v2600_v50  ;;  %2603 = vst [vmem:[%s12352_s8 + $0x1198] sm:$0xff] %v2602_v51  ;;  %v2604_v52 = vld [vmem:[%s12347_s7 + $0x2340] sm:$0xff]  ;;  %v2606_v53 = vld [vmem:[%s12347_s7 + $0x2350] sm:$0xff] }
 0x132   : > { %v2608_v54 = vld [vmem:[%s12347_s7 + $0x2360] sm:$0xff]  ;;  %2605 = vst [vmem:[%s12352_s8 + $0x11a0] sm:$0xff] %v2604_v52  ;;  %2607 = vst [vmem:[%s12352_s8 + $0x11a8] sm:$0xff] %v2606_v53  ;;  %v2610_v55 = vld [vmem:[%s12347_s7 + $0x2370] sm:$0xff] }
 0x133   : > { %2609 = vst [vmem:[%s12352_s8 + $0x11b0] sm:$0xff] %v2608_v54  ;;  %v2612_v56 = vld [vmem:[%s12347_s7 + $0x2380] sm:$0xff]  ;;  %v2614_v57 = vld [vmem:[%s12347_s7 + $0x2390] sm:$0xff]  ;;  %2611 = vst [vmem:[%s12352_s8 + $0x11b8] sm:$0xff] %v2610_v55 }
 0x134   : > { %2613 = vst [vmem:[%s12352_s8 + $0x11c0] sm:$0xff] %v2612_v56  ;;  %2615 = vst [vmem:[%s12352_s8 + $0x11c8] sm:$0xff] %v2614_v57  ;;  %v2616_v58 = vld [vmem:[%s12347_s7 + $0x23a0] sm:$0xff]  ;;  %v2618_v59 = vld [vmem:[%s12347_s7 + $0x23b0] sm:$0xff] }
 0x135   : > { %v2620_v60 = vld [vmem:[%s12347_s7 + $0x23c0] sm:$0xff]  ;;  %2617 = vst [vmem:[%s12352_s8 + $0x11d0] sm:$0xff] %v2616_v58  ;;  %2619 = vst [vmem:[%s12352_s8 + $0x11d8] sm:$0xff] %v2618_v59  ;;  %v2622_v61 = vld [vmem:[%s12347_s7 + $0x23d0] sm:$0xff] }
 0x136   : > { %2621 = vst [vmem:[%s12352_s8 + $0x11e0] sm:$0xff] %v2620_v60  ;;  %v2624_v62 = vld [vmem:[%s12347_s7 + $0x23e0] sm:$0xff]  ;;  %v2626_v63 = vld [vmem:[%s12347_s7 + $0x23f0] sm:$0xff]  ;;  %2623 = vst [vmem:[%s12352_s8 + $0x11e8] sm:$0xff] %v2622_v61 }
 0x137   : > { %2625 = vst [vmem:[%s12352_s8 + $0x11f0] sm:$0xff] %v2624_v62  ;;  %2627 = vst [vmem:[%s12352_s8 + $0x11f8] sm:$0xff] %v2626_v63  ;;  %v2628_v0 = vld [vmem:[%s12347_s7 + $0x2400] sm:$0xff]  ;;  %v2630_v1 = vld [vmem:[%s12347_s7 + $0x2410] sm:$0xff] }
 0x138   : > { %v2632_v2 = vld [vmem:[%s12347_s7 + $0x2420] sm:$0xff]  ;;  %2629 = vst [vmem:[%s12352_s8 + $0x1200] sm:$0xff] %v2628_v0  ;;  %2631 = vst [vmem:[%s12352_s8 + $0x1208] sm:$0xff] %v2630_v1  ;;  %v2634_v3 = vld [vmem:[%s12347_s7 + $0x2430] sm:$0xff] }
 0x139   : > { %2633 = vst [vmem:[%s12352_s8 + $0x1210] sm:$0xff] %v2632_v2  ;;  %v2636_v4 = vld [vmem:[%s12347_s7 + $0x2440] sm:$0xff]  ;;  %v2638_v5 = vld [vmem:[%s12347_s7 + $0x2450] sm:$0xff]  ;;  %2635 = vst [vmem:[%s12352_s8 + $0x1218] sm:$0xff] %v2634_v3 }
 0x13a   : > { %2637 = vst [vmem:[%s12352_s8 + $0x1220] sm:$0xff] %v2636_v4  ;;  %2639 = vst [vmem:[%s12352_s8 + $0x1228] sm:$0xff] %v2638_v5  ;;  %v2640_v6 = vld [vmem:[%s12347_s7 + $0x2460] sm:$0xff]  ;;  %v2642_v7 = vld [vmem:[%s12347_s7 + $0x2470] sm:$0xff] }
 0x13b   : > { %v2644_v8 = vld [vmem:[%s12347_s7 + $0x2480] sm:$0xff]  ;;  %2641 = vst [vmem:[%s12352_s8 + $0x1230] sm:$0xff] %v2640_v6  ;;  %2643 = vst [vmem:[%s12352_s8 + $0x1238] sm:$0xff] %v2642_v7  ;;  %v2646_v9 = vld [vmem:[%s12347_s7 + $0x2490] sm:$0xff] }
 0x13c   : > { %2645 = vst [vmem:[%s12352_s8 + $0x1240] sm:$0xff] %v2644_v8  ;;  %v2648_v10 = vld [vmem:[%s12347_s7 + $0x24a0] sm:$0xff]  ;;  %v2650_v11 = vld [vmem:[%s12347_s7 + $0x24b0] sm:$0xff]  ;;  %2647 = vst [vmem:[%s12352_s8 + $0x1248] sm:$0xff] %v2646_v9 }
 0x13d   : > { %2649 = vst [vmem:[%s12352_s8 + $0x1250] sm:$0xff] %v2648_v10  ;;  %2651 = vst [vmem:[%s12352_s8 + $0x1258] sm:$0xff] %v2650_v11  ;;  %v2652_v12 = vld [vmem:[%s12347_s7 + $0x24c0] sm:$0xff]  ;;  %v2654_v13 = vld [vmem:[%s12347_s7 + $0x24d0] sm:$0xff] }
 0x13e   : > { %v2656_v14 = vld [vmem:[%s12347_s7 + $0x24e0] sm:$0xff]  ;;  %2653 = vst [vmem:[%s12352_s8 + $0x1260] sm:$0xff] %v2652_v12  ;;  %2655 = vst [vmem:[%s12352_s8 + $0x1268] sm:$0xff] %v2654_v13  ;;  %v2658_v15 = vld [vmem:[%s12347_s7 + $0x24f0] sm:$0xff] }
 0x13f   : > { %2657 = vst [vmem:[%s12352_s8 + $0x1270] sm:$0xff] %v2656_v14  ;;  %v2660_v16 = vld [vmem:[%s12347_s7 + $0x2500] sm:$0xff]  ;;  %v2662_v17 = vld [vmem:[%s12347_s7 + $0x2510] sm:$0xff]  ;;  %2659 = vst [vmem:[%s12352_s8 + $0x1278] sm:$0xff] %v2658_v15 }
 0x140   : > { %2661 = vst [vmem:[%s12352_s8 + $0x1280] sm:$0xff] %v2660_v16  ;;  %2663 = vst [vmem:[%s12352_s8 + $0x1288] sm:$0xff] %v2662_v17  ;;  %v2664_v18 = vld [vmem:[%s12347_s7 + $0x2520] sm:$0xff]  ;;  %v2666_v19 = vld [vmem:[%s12347_s7 + $0x2530] sm:$0xff] }
 0x141   : > { %v2668_v20 = vld [vmem:[%s12347_s7 + $0x2540] sm:$0xff]  ;;  %2665 = vst [vmem:[%s12352_s8 + $0x1290] sm:$0xff] %v2664_v18  ;;  %2667 = vst [vmem:[%s12352_s8 + $0x1298] sm:$0xff] %v2666_v19  ;;  %v2670_v21 = vld [vmem:[%s12347_s7 + $0x2550] sm:$0xff] }
 0x142   : > { %2669 = vst [vmem:[%s12352_s8 + $0x12a0] sm:$0xff] %v2668_v20  ;;  %v2672_v22 = vld [vmem:[%s12347_s7 + $0x2560] sm:$0xff]  ;;  %v2674_v23 = vld [vmem:[%s12347_s7 + $0x2570] sm:$0xff]  ;;  %2671 = vst [vmem:[%s12352_s8 + $0x12a8] sm:$0xff] %v2670_v21 }
 0x143   : > { %2673 = vst [vmem:[%s12352_s8 + $0x12b0] sm:$0xff] %v2672_v22  ;;  %2675 = vst [vmem:[%s12352_s8 + $0x12b8] sm:$0xff] %v2674_v23  ;;  %v2676_v24 = vld [vmem:[%s12347_s7 + $0x2580] sm:$0xff]  ;;  %v2678_v25 = vld [vmem:[%s12347_s7 + $0x2590] sm:$0xff] }
 0x144   : > { %v2680_v26 = vld [vmem:[%s12347_s7 + $0x25a0] sm:$0xff]  ;;  %2677 = vst [vmem:[%s12352_s8 + $0x12c0] sm:$0xff] %v2676_v24  ;;  %2679 = vst [vmem:[%s12352_s8 + $0x12c8] sm:$0xff] %v2678_v25  ;;  %v2682_v27 = vld [vmem:[%s12347_s7 + $0x25b0] sm:$0xff] }
 0x145   : > { %2681 = vst [vmem:[%s12352_s8 + $0x12d0] sm:$0xff] %v2680_v26  ;;  %v2684_v28 = vld [vmem:[%s12347_s7 + $0x25c0] sm:$0xff]  ;;  %v2686_v29 = vld [vmem:[%s12347_s7 + $0x25d0] sm:$0xff]  ;;  %2683 = vst [vmem:[%s12352_s8 + $0x12d8] sm:$0xff] %v2682_v27 }
 0x146   : > { %2685 = vst [vmem:[%s12352_s8 + $0x12e0] sm:$0xff] %v2684_v28  ;;  %2687 = vst [vmem:[%s12352_s8 + $0x12e8] sm:$0xff] %v2686_v29  ;;  %v2688_v30 = vld [vmem:[%s12347_s7 + $0x25e0] sm:$0xff]  ;;  %v2690_v31 = vld [vmem:[%s12347_s7 + $0x25f0] sm:$0xff] }
 0x147   : > { %v2692_v32 = vld [vmem:[%s12347_s7 + $0x2600] sm:$0xff]  ;;  %2689 = vst [vmem:[%s12352_s8 + $0x12f0] sm:$0xff] %v2688_v30  ;;  %2691 = vst [vmem:[%s12352_s8 + $0x12f8] sm:$0xff] %v2690_v31  ;;  %v2694_v33 = vld [vmem:[%s12347_s7 + $0x2610] sm:$0xff] }
 0x148   : > { %2693 = vst [vmem:[%s12352_s8 + $0x1300] sm:$0xff] %v2692_v32  ;;  %v2696_v34 = vld [vmem:[%s12347_s7 + $0x2620] sm:$0xff]  ;;  %v2698_v35 = vld [vmem:[%s12347_s7 + $0x2630] sm:$0xff]  ;;  %2695 = vst [vmem:[%s12352_s8 + $0x1308] sm:$0xff] %v2694_v33 }
 0x149   : > { %2697 = vst [vmem:[%s12352_s8 + $0x1310] sm:$0xff] %v2696_v34  ;;  %2699 = vst [vmem:[%s12352_s8 + $0x1318] sm:$0xff] %v2698_v35  ;;  %v2700_v36 = vld [vmem:[%s12347_s7 + $0x2640] sm:$0xff]  ;;  %v2702_v37 = vld [vmem:[%s12347_s7 + $0x2650] sm:$0xff] }
 0x14a   : > { %v2704_v38 = vld [vmem:[%s12347_s7 + $0x2660] sm:$0xff]  ;;  %2701 = vst [vmem:[%s12352_s8 + $0x1320] sm:$0xff] %v2700_v36  ;;  %2703 = vst [vmem:[%s12352_s8 + $0x1328] sm:$0xff] %v2702_v37  ;;  %v2706_v39 = vld [vmem:[%s12347_s7 + $0x2670] sm:$0xff] }
 0x14b   : > { %2705 = vst [vmem:[%s12352_s8 + $0x1330] sm:$0xff] %v2704_v38  ;;  %v2708_v40 = vld [vmem:[%s12347_s7 + $0x2680] sm:$0xff]  ;;  %v2710_v41 = vld [vmem:[%s12347_s7 + $0x2690] sm:$0xff]  ;;  %2707 = vst [vmem:[%s12352_s8 + $0x1338] sm:$0xff] %v2706_v39 }
 0x14c   : > { %2709 = vst [vmem:[%s12352_s8 + $0x1340] sm:$0xff] %v2708_v40  ;;  %2711 = vst [vmem:[%s12352_s8 + $0x1348] sm:$0xff] %v2710_v41  ;;  %v2712_v42 = vld [vmem:[%s12347_s7 + $0x26a0] sm:$0xff]  ;;  %v2714_v43 = vld [vmem:[%s12347_s7 + $0x26b0] sm:$0xff] }
 0x14d   : > { %v2716_v44 = vld [vmem:[%s12347_s7 + $0x26c0] sm:$0xff]  ;;  %2713 = vst [vmem:[%s12352_s8 + $0x1350] sm:$0xff] %v2712_v42  ;;  %2715 = vst [vmem:[%s12352_s8 + $0x1358] sm:$0xff] %v2714_v43  ;;  %v2718_v45 = vld [vmem:[%s12347_s7 + $0x26d0] sm:$0xff] }
 0x14e   : > { %2717 = vst [vmem:[%s12352_s8 + $0x1360] sm:$0xff] %v2716_v44  ;;  %v2720_v46 = vld [vmem:[%s12347_s7 + $0x26e0] sm:$0xff]  ;;  %v2722_v47 = vld [vmem:[%s12347_s7 + $0x26f0] sm:$0xff]  ;;  %2719 = vst [vmem:[%s12352_s8 + $0x1368] sm:$0xff] %v2718_v45 }
 0x14f   : > { %2721 = vst [vmem:[%s12352_s8 + $0x1370] sm:$0xff] %v2720_v46  ;;  %2723 = vst [vmem:[%s12352_s8 + $0x1378] sm:$0xff] %v2722_v47  ;;  %v2724_v48 = vld [vmem:[%s12347_s7 + $0x2700] sm:$0xff]  ;;  %v2726_v49 = vld [vmem:[%s12347_s7 + $0x2710] sm:$0xff] }
 0x150   : > { %v2728_v50 = vld [vmem:[%s12347_s7 + $0x2720] sm:$0xff]  ;;  %2725 = vst [vmem:[%s12352_s8 + $0x1380] sm:$0xff] %v2724_v48  ;;  %2727 = vst [vmem:[%s12352_s8 + $0x1388] sm:$0xff] %v2726_v49  ;;  %v2730_v51 = vld [vmem:[%s12347_s7 + $0x2730] sm:$0xff] }
 0x151   : > { %2729 = vst [vmem:[%s12352_s8 + $0x1390] sm:$0xff] %v2728_v50  ;;  %v2732_v52 = vld [vmem:[%s12347_s7 + $0x2740] sm:$0xff]  ;;  %v2734_v53 = vld [vmem:[%s12347_s7 + $0x2750] sm:$0xff]  ;;  %2731 = vst [vmem:[%s12352_s8 + $0x1398] sm:$0xff] %v2730_v51 }
 0x152   : > { %2733 = vst [vmem:[%s12352_s8 + $0x13a0] sm:$0xff] %v2732_v52  ;;  %2735 = vst [vmem:[%s12352_s8 + $0x13a8] sm:$0xff] %v2734_v53  ;;  %v2736_v54 = vld [vmem:[%s12347_s7 + $0x2760] sm:$0xff]  ;;  %v2738_v55 = vld [vmem:[%s12347_s7 + $0x2770] sm:$0xff] }
 0x153   : > { %v2740_v56 = vld [vmem:[%s12347_s7 + $0x2780] sm:$0xff]  ;;  %2737 = vst [vmem:[%s12352_s8 + $0x13b0] sm:$0xff] %v2736_v54  ;;  %2739 = vst [vmem:[%s12352_s8 + $0x13b8] sm:$0xff] %v2738_v55  ;;  %v2742_v57 = vld [vmem:[%s12347_s7 + $0x2790] sm:$0xff] }
 0x154   : > { %2741 = vst [vmem:[%s12352_s8 + $0x13c0] sm:$0xff] %v2740_v56  ;;  %v2744_v58 = vld [vmem:[%s12347_s7 + $0x27a0] sm:$0xff]  ;;  %v2746_v59 = vld [vmem:[%s12347_s7 + $0x27b0] sm:$0xff]  ;;  %2743 = vst [vmem:[%s12352_s8 + $0x13c8] sm:$0xff] %v2742_v57 }
 0x155   : > { %2745 = vst [vmem:[%s12352_s8 + $0x13d0] sm:$0xff] %v2744_v58  ;;  %2747 = vst [vmem:[%s12352_s8 + $0x13d8] sm:$0xff] %v2746_v59  ;;  %v2748_v60 = vld [vmem:[%s12347_s7 + $0x27c0] sm:$0xff]  ;;  %v2750_v61 = vld [vmem:[%s12347_s7 + $0x27d0] sm:$0xff] }
 0x156   : > { %v2752_v62 = vld [vmem:[%s12347_s7 + $0x27e0] sm:$0xff]  ;;  %2749 = vst [vmem:[%s12352_s8 + $0x13e0] sm:$0xff] %v2748_v60  ;;  %2751 = vst [vmem:[%s12352_s8 + $0x13e8] sm:$0xff] %v2750_v61  ;;  %v2754_v63 = vld [vmem:[%s12347_s7 + $0x27f0] sm:$0xff] }
 0x157   : > { %2753 = vst [vmem:[%s12352_s8 + $0x13f0] sm:$0xff] %v2752_v62  ;;  %2755 = vst [vmem:[%s12352_s8 + $0x13f8] sm:$0xff] %v2754_v63 }
 0x158 PF: > { %p10533_p7 = scmp.ge.s32.totalorder %s12262_s18, 1  ;;  %p5365_p8 = scmp.lt.s32.totalorder %s12262_s18, 9 }
 0x15a   : > { %p5366_p9 = pnand %p10533_p7, %p5365_p8 }
 0x15b   : > { %s5372_s9 = sand.u32 (!%p5366_p9), 1, %s12238_s12   ;;  %s5403_s10 = smul.u32 (!%p5366_p9), 40, %s12246_s14 }
 0x15c   : > { %5369 = sbr.rel (%p5366_p9) target bundleno = 1222 (0x4c6), region = 80  ;;  %s10534_s21 = sshll.u32 (!%p5366_p9), %s12250_s15, 1 }
 0x15d   : > { %s11183_s11 = smul.u32 (!%p5366_p9), 5120, %s5372_s9  ;;  %p5404_p10 = scmp.lt.s32.totalorder (!%p5366_p9), %s5403_s10, 159 }
 0x15e   : > { %p5411_p11 = scmp.lt.s32.totalorder (!%p5366_p9), %s10534_s21, 3  ;;  %p10537_p12 = scmp.ne.s32.totalorder (!%p5366_p9), %s12246_s14, 0 }
 0x15f   : > { %s13653_s4 = scalar_lea.vmem (!%p5366_p9), [#allocation3], %s11183_s11 }
 0x161   : > { %s14485_s10 = smov (!%p5404_p10, %s5403_s10), 159  ;;  %s14487_s21 = smov (!%p5411_p11, %s10534_s21), 3 }
 0x162   : > { %s13641_s24 = scalar_lea.vmem %s14468_s0, %s14485_s10  ;;  %s5413_s28 = scalar_lea.vmem %s14470_s2, %s14487_s21 }
 0x163   : > { %s10536_s12 = sshll.u32 %s14487_s21, 1  ;;  %5424 = sbr.rel (%p10537_p12) target bundleno = 362 (0x16a), region = 88 }
 0x164   : > { %s13651_s15 = scalar_lea.vmem %s14471_s3, %s10536_s12 }
 0x168   : > { %v12264_v0 = vmov 0.0  }
 0x169   : > { %5425 = vst [vmem:[#allocation2] sm:$0xf] %v12264_v0 }
 0x16a PF: > { %v11243_v1 = vld [vmem:[%s13653_s4 + $0x74] ss:$8 sps:$4 sm:$0xff]   ;;  %v11247_v3 = vld [vmem:[%s13653_s4 + $0x70] ss:$8 sps:$4 sm:$0xff]   ;;  %v11249_v5 = vld [vmem:[%s13653_s4 + $0x64] ss:$8 sps:$4 sm:$0xff]   ;;  %v6081_v39 = vlaneseq }
 0x16b   : > { %v11245_v2 = vld [vmem:[%s13653_s4 + $0x174] ss:$8 sps:$4 sm:$0xff]   ;;  %9562 = vmatprep.subr.bf16.mxu0 %v11243_v1  ;;  %v11248_v4 = vld [vmem:[%s13653_s4 + $0x170] ss:$8 sps:$4 sm:$0xff]   ;;  %v11251_v6 = vld [vmem:[%s13653_s4 + $0x164] ss:$8 sps:$4 sm:$0xff]  }
 0x16c   : > { %9603 = vmatprep.subr.bf16.mxu1 %v11245_v2  ;;  %9563 = vmatpush1.bf16.msra.mxu0 %v11247_v3  ;;  %v11253_v7 = vld [vmem:[%s13653_s4 + $0x60] ss:$8 sps:$4 sm:$0xff]   ;;  %v11255_v9 = vld [vmem:[%s13653_s4 + $0x54] ss:$8 sps:$4 sm:$0xff]   ;;  %v11259_v11 = vld [vmem:[%s13653_s4 + $0x50] ss:$8 sps:$4 sm:$0xff]  }
 0x16d   : > { %9604 = vmatpush1.bf16.msra.mxu1 %v11248_v4  ;;  %9564 = vmatprep.subr.bf16.mxu0 %v11249_v5  ;;  %v11254_v8 = vld [vmem:[%s13653_s4 + $0x160] ss:$8 sps:$4 sm:$0xff]   ;;  %v11257_v10 = vld [vmem:[%s13653_s4 + $0x154] ss:$8 sps:$4 sm:$0xff]   ;;  %v11260_v12 = vld [vmem:[%s13653_s4 + $0x150] ss:$8 sps:$4 sm:$0xff]  }
 0x16e   : > { %9605 = vmatprep.subr.bf16.mxu1 %v11251_v6  ;;  %v11261_v13 = vld [vmem:[%s13653_s4 + $0x44] ss:$8 sps:$4 sm:$0xff]   ;;  %v11265_v15 = vld [vmem:[%s13653_s4 + $0x40] ss:$8 sps:$4 sm:$0xff]   ;;  %v11267_v17 = vld [vmem:[%s13653_s4 + $0x34] ss:$8 sps:$4 sm:$0xff]  }
 0x16f   : > { %v11263_v14 = vld [vmem:[%s13653_s4 + $0x144] ss:$8 sps:$4 sm:$0xff]   ;;  %v11266_v16 = vld [vmem:[%s13653_s4 + $0x140] ss:$8 sps:$4 sm:$0xff]   ;;  %v11269_v18 = vld [vmem:[%s13653_s4 + $0x134] ss:$8 sps:$4 sm:$0xff]  }
 0x170   : > { %9565 = vmatpush1.bf16.msra.mxu0 %v11253_v7  ;;  %v11271_v19 = vld [vmem:[%s13653_s4 + $0x30] ss:$8 sps:$4 sm:$0xff]   ;;  %v11273_v21 = vld [vmem:[%s13653_s4 + $0x24] ss:$8 sps:$4 sm:$0xff]   ;;  %v11277_v23 = vld [vmem:[%s13653_s4 + $0x20] ss:$8 sps:$4 sm:$0xff]  }
 0x171   : > { %9606 = vmatpush1.bf16.msra.mxu1 %v11254_v8  ;;  %9566 = vmatprep.subr.bf16.mxu0 %v11255_v9  ;;  %v11272_v20 = vld [vmem:[%s13653_s4 + $0x130] ss:$8 sps:$4 sm:$0xff]   ;;  %v11275_v22 = vld [vmem:[%s13653_s4 + $0x124] ss:$8 sps:$4 sm:$0xff]   ;;  %v11278_v24 = vld [vmem:[%s13653_s4 + $0x120] ss:$8 sps:$4 sm:$0xff]  }
 0x172   : > { %9607 = vmatprep.subr.bf16.mxu1 %v11257_v10  ;;  %v11279_v25 = vld [vmem:[%s13653_s4 + $0x14] ss:$8 sps:$4 sm:$0xff]   ;;  %v11283_v27 = vld [vmem:[%s13653_s4 + $0x10] ss:$8 sps:$4 sm:$0xff]   ;;  %v11285_v29 = vld [vmem:[%s13653_s4 + $0x4] ss:$8 sps:$4 sm:$0xff]  }
 0x173   : > { %v11281_v26 = vld [vmem:[%s13653_s4 + $0x114] ss:$8 sps:$4 sm:$0xff]   ;;  %v11284_v28 = vld [vmem:[%s13653_s4 + $0x110] ss:$8 sps:$4 sm:$0xff]   ;;  %v11287_v30 = vld [vmem:[%s13653_s4 + $0x104] ss:$8 sps:$4 sm:$0xff]  }
 0x174   : > { %9567 = vmatpush1.bf16.msra.mxu0 %v11259_v11  ;;  %v11289_v31 = vld [vmem:[%s13653_s4] ss:$8 sps:$4 sm:$0xff]   ;;  %v11291_v33 = vld [vmem:[%s13653_s4 + $0xf4] ss:$8 sps:$4 sm:$0xff]   ;;  %v11295_v35 = vld [vmem:[%s13653_s4 + $0xf0] ss:$8 sps:$4 sm:$0xff]  }
 0x175   : > { %9608 = vmatpush1.bf16.msra.mxu1 %v11260_v12  ;;  %9568 = vmatprep.subr.bf16.mxu0 %v11261_v13  ;;  %v11290_v32 = vld [vmem:[%s13653_s4 + $0x100] ss:$8 sps:$4 sm:$0xff]   ;;  %v11293_v34 = vld [vmem:[%s13653_s4 + $0x1f4] ss:$8 sps:$4 sm:$0xff]   ;;  %v11296_v36 = vld [vmem:[%s13653_s4 + $0x1f0] ss:$8 sps:$4 sm:$0xff]  }
 0x176   : > { %9609 = vmatprep.subr.bf16.mxu1 %v11263_v14  ;;  %v12265_v37 = vmov 1966171168   ;;  %v11297_v40 = vld [vmem:[%s13653_s4 + $0xe4] ss:$8 sps:$4 sm:$0xff]   ;;  %v11301_v42 = vld [vmem:[%s13653_s4 + $0xe0] ss:$8 sps:$4 sm:$0xff]  }
 0x177   : > { %v6079_v38 = vunpack.c.l.s4 %v12265_v37  ;;  %v11299_v41 = vld [vmem:[%s13653_s4 + $0x1e4] ss:$8 sps:$4 sm:$0xff]   ;;  %v13695_v44 = vshrl.u32 %v6081_v39, 7  ;;  %v11302_v45 = vld [vmem:[%s13653_s4 + $0x1e0] ss:$8 sps:$4 sm:$0xff]   ;;  %p11178_p13 = scmp.ne.s32.totalorder %s12246_s14, 3 }
 0x178   : > { %9569 = vmatpush1.bf16.msra.mxu0 %v11265_v15  ;;  %v11303_v46 = vld [vmem:[%s13653_s4 + $0xd4] ss:$8 sps:$4 sm:$0xff]   ;;  %v11307_v48 = vld [vmem:[%s13653_s4 + $0xd0] ss:$8 sps:$4 sm:$0xff]   ;;  %v11309_v51 = vld [vmem:[%s13653_s4 + $0xc4] ss:$8 sps:$4 sm:$0xff]  }
 0x179   : > { %9610 = vmatpush1.bf16.msra.mxu1 %v11266_v16  ;;  %9570 = vmatprep.subr.bf16.mxu0 %v11267_v17  ;;  %v6080_v43 = vunpack.c.0.s8 %v6079_v38  ;;  %v11305_v47 = vld [vmem:[%s13653_s4 + $0x1d4] ss:$8 sps:$4 sm:$0xff]   ;;  %v11308_v49 = vld [vmem:[%s13653_s4 + $0x1d0] ss:$8 sps:$4 sm:$0xff]   ;;  %v11311_v52 = vld [vmem:[%s13653_s4 + $0x1c4] ss:$8 sps:$4 sm:$0xff]  }
 0x17a   : > { %9611 = vmatprep.subr.bf16.mxu1 %v11269_v18  ;;  %v5427_v53 = vld [vmem:[%s13641_s24] sm:$0xff]  ;;  %v11319_v60 = vld [vmem:[%s13653_s4 + $0xb0] ss:$8 sps:$4 sm:$0xff]   ;;  %v11321_v63 = vld [vmem:[%s13653_s4 + $0xa4] ss:$8 sps:$4 sm:$0xff]  }
 0x17b   : > { %v13703_v50 = vsub.s32 %v6080_v43, %v13695_v44  ;;  %v11313_v54 = vld [vmem:[%s13653_s4 + $0xc0] ss:$8 sps:$4 sm:$0xff]   ;;  %v11315_v57 = vld [vmem:[%s13653_s4 + $0xb4] ss:$8 sps:$4 sm:$0xff]   ;;  %v11320_v62 = vld [vmem:[%s13653_s4 + $0x1b0] ss:$8 sps:$4 sm:$0xff]   ;;  %v6077_v2 = vcombine.high %v5427_v53, %v5427_v53 }
 0x17c   : > { %9571 = vmatpush1.bf16.msra.mxu0 %v11271_v19  ;;  %v11314_v56 = vld [vmem:[%s13653_s4 + $0x1c0] ss:$8 sps:$4 sm:$0xff]   ;;  %v11317_v58 = vld [vmem:[%s13653_s4 + $0x1b4] ss:$8 sps:$4 sm:$0xff]   ;;  %v11323_v0 = vld [vmem:[%s13653_s4 + $0x1a4] ss:$8 sps:$4 sm:$0xff]  }
 0x17d   : > { %9612 = vmatpush1.bf16.msra.mxu1 %v11272_v20  ;;  %9572 = vmatprep.subr.bf16.mxu0 %v11273_v21  ;;  %v6084_v55 = vrot.slane %v5427_v53, %v13703_v50  ;;  %v11325_v3 = vld [vmem:[%s13653_s4 + $0xa0] ss:$8 sps:$4 sm:$0xff]   ;;  %v11327_v5 = vld [vmem:[%s13653_s4 + $0x94] ss:$8 sps:$4 sm:$0xff]   ;;  %v13723_v7 = vrot.slane %v6077_v2, %v13703_v50  ;;  %v11331_v8 = vld [vmem:[%s13653_s4 + $0x90] ss:$8 sps:$4 sm:$0xff]  }
 0x17e   : > { %9613 = vmatprep.subr.bf16.mxu1 %v11275_v22  ;;  %v11326_v4 = vld [vmem:[%s13653_s4 + $0x1a0] ss:$8 sps:$4 sm:$0xff]   ;;  %v11329_v6 = vld [vmem:[%s13653_s4 + $0x194] ss:$8 sps:$4 sm:$0xff]   ;;  %v11332_v9 = vld [vmem:[%s13653_s4 + $0x190] ss:$8 sps:$4 sm:$0xff]  }
 0x17f   : > { %v6092_v59 = vcombine.high %v6084_v55, %v6084_v55  ;;  %v11333_v10 = vld [vmem:[%s13653_s4 + $0x84] ss:$8 sps:$4 sm:$0xff]   ;;  %v6093_v12 = vcombine.high %v13723_v7, %v13723_v7  ;;  %v11337_v13 = vld [vmem:[%s13653_s4 + $0x80] ss:$8 sps:$4 sm:$0xff]   ;;  %v6100_v14 = vrot.slane %v6084_v55, %v13703_v50  ;;  %v11342_v16 = vld [vmem:[%s13653_s4 + $0x274] ss:$8 sps:$4 sm:$0xff]  }
 0x180   : > { %9573 = vmatpush1.bf16.msra.mxu0 %v11277_v23  ;;  %v11335_v11 = vld [vmem:[%s13653_s4 + $0x184] ss:$8 sps:$4 sm:$0xff]   ;;  %v11338_v15 = vld [vmem:[%s13653_s4 + $0x180] ss:$8 sps:$4 sm:$0xff]   ;;  %v11345_v17 = vld [vmem:[%s13653_s4 + $0x374] ss:$8 sps:$4 sm:$0xff]  }
 0x181   : > { %9614 = vmatpush1.bf16.msra.mxu1 %v11278_v24  ;;  %9574 = vmatprep.subr.bf16.mxu0 %v11279_v25  ;;  %v6114_v61 = vrot.slane %v6092_v59, %v13703_v50  ;;  %v6121_v18 = vrot.slane %v6093_v12, %v13703_v50  ;;  %v6122_v19 = vcombine.high %v6100_v14, %v6100_v14  ;;  %v11340_v20 = vld [vmem:[%s13653_s4 + $0x270] ss:$8 sps:$4 sm:$0xff]   ;;  %v11348_v22 = vld [vmem:[%s13653_s4 + $0x264] ss:$8 sps:$4 sm:$0xff]   ;;  %v11346_v25 = vld [vmem:[%s13653_s4 + $0x260] ss:$8 sps:$4 sm:$0xff]  }
 0x182   : > { %9615 = vmatprep.subr.bf16.mxu1 %v11281_v26  ;;  %v11343_v21 = vld [vmem:[%s13653_s4 + $0x370] ss:$8 sps:$4 sm:$0xff]   ;;  %v11351_v23 = vld [vmem:[%s13653_s4 + $0x364] ss:$8 sps:$4 sm:$0xff]   ;;  %v11349_v26 = vld [vmem:[%s13653_s4 + $0x360] ss:$8 sps:$4 sm:$0xff]  }
 0x183   : > { %v6124_v1 = vcombine.high %v6114_v61, %v6114_v61  ;;  %9594 = vmatprep.mubr.bf16.mxu0 %v6114_v61  ;;  %v6125_v24 = vcombine.high %v6121_v18, %v6121_v18  ;;  %v11364_v37 = vld [vmem:[%s13653_s4 + $0x230] ss:$8 sps:$4 sm:$0xff]   ;;  %v11372_v39 = vld [vmem:[%s13653_s4 + $0x224] ss:$8 sps:$4 sm:$0xff]   ;;  %v11378_v43 = vld [vmem:[%s13653_s4 + $0x214] ss:$8 sps:$4 sm:$0xff]  }
 0x184   : > { %9575 = vmatpush1.bf16.msra.mxu0 %v11283_v27  ;;  %v11354_v27 = vld [vmem:[%s13653_s4 + $0x254] ss:$8 sps:$4 sm:$0xff]   ;;  %v11367_v38 = vld [vmem:[%s13653_s4 + $0x330] ss:$8 sps:$4 sm:$0xff]   ;;  %v11394_v59 = vld [vmem:[%s13653_s4 + $0x2e0] ss:$8 sps:$4 sm:$0xff]  }
 0x185   : > { %9616 = vmatpush1.bf16.msra.mxu1 %v11284_v28  ;;  %9576 = vmatprep.subr.bf16.mxu0 %v11285_v29  ;;  %v11357_v28 = vld [vmem:[%s13653_s4 + $0x354] ss:$8 sps:$4 sm:$0xff]   ;;  %v11352_v29 = vld [vmem:[%s13653_s4 + $0x250] ss:$8 sps:$4 sm:$0xff]   ;;  %v11411_v2 = vld [vmem:[%s13653_s4 + $0x3c4] ss:$8 sps:$4 sm:$0xff]  }
 0x186   : > { %9617 = vmatprep.subr.bf16.mxu1 %v11287_v30  ;;  %9635 = vmatprep.mubr.bf16.mxu1 %v6124_v1  ;;  %v11355_v30 = vld [vmem:[%s13653_s4 + $0x350] ss:$8 sps:$4 sm:$0xff]   ;;  %v11390_v53 = vld [vmem:[%s13653_s4 + $0x2f4] ss:$8 sps:$4 sm:$0xff]   ;;  %v11408_v1 = vld [vmem:[%s13653_s4 + $0x2c4] ss:$8 sps:$4 sm:$0xff]  }
 0x187   : > { %v11388_v55 = vld [vmem:[%s13653_s4 + $0x2f0] ss:$8 sps:$4 sm:$0xff]   ;;  %v11402_v61 = vld [vmem:[%s13653_s4 + $0x2d4] ss:$8 sps:$4 sm:$0xff]   ;;  %v11418_v12 = vld [vmem:[%s13653_s4 + $0x2a0] ss:$8 sps:$4 sm:$0xff]  }
 0x188   : > { %9577 = vmatpush1.bf16.msra.mxu0 %v11289_v31  ;;  %v11360_v31 = vld [vmem:[%s13653_s4 + $0x244] ss:$8 sps:$4 sm:$0xff]  }
 0x189   : > { %9618 = vmatpush1.bf16.msra.mxu1 %v11290_v32  ;;  %9578 = vmatprep.subr.bf16.mxu0 %v11291_v33  ;;  %v11363_v32 = vld [vmem:[%s13653_s4 + $0x344] ss:$8 sps:$4 sm:$0xff]   ;;  %v11358_v33 = vld [vmem:[%s13653_s4 + $0x240] ss:$8 sps:$4 sm:$0xff]  }
 0x18a   : > { %9619 = vmatprep.subr.bf16.mxu1 %v11293_v34  ;;  %v11361_v34 = vld [vmem:[%s13653_s4 + $0x340] ss:$8 sps:$4 sm:$0xff]  }
 0x18c   : > { %9579 = vmatpush2.bf16.msra.mxu0 %v11295_v35  ;;  %v11366_v35 = vld [vmem:[%s13653_s4 + $0x234] ss:$8 sps:$4 sm:$0xff]  }
 0x18d   : > { %9620 = vmatpush2.bf16.msra.mxu1 %v11296_v36  ;;  %9580 = vmatprep.subr.bf16.mxu0 %v11297_v40  ;;  %v11369_v36 = vld [vmem:[%s13653_s4 + $0x334] ss:$8 sps:$4 sm:$0xff]   ;;  %v11375_v40 = vld [vmem:[%s13653_s4 + $0x324] ss:$8 sps:$4 sm:$0xff]  }
 0x18e   : > { %9621 = vmatprep.subr.bf16.mxu1 %v11299_v41  ;;  %v11370_v41 = vld [vmem:[%s13653_s4 + $0x220] ss:$8 sps:$4 sm:$0xff]  }
 0x190   : > { %9581 = vmatpush2.bf16.msra.mxu0 %v11301_v42  ;;  %v11373_v42 = vld [vmem:[%s13653_s4 + $0x320] ss:$8 sps:$4 sm:$0xff]  }
 0x191   : > { %9622 = vmatpush2.bf16.msra.mxu1 %v11302_v45  ;;  %9582 = vmatprep.subr.bf16.mxu0 %v11303_v46  ;;  %v11381_v45 = vld [vmem:[%s13653_s4 + $0x314] ss:$8 sps:$4 sm:$0xff]   ;;  %v11376_v46 = vld [vmem:[%s13653_s4 + $0x210] ss:$8 sps:$4 sm:$0xff]  }
 0x192   : > { %9623 = vmatprep.subr.bf16.mxu1 %v11305_v47  ;;  %v11379_v47 = vld [vmem:[%s13653_s4 + $0x310] ss:$8 sps:$4 sm:$0xff]  }
 0x194   : > { %9583 = vmatpush2.bf16.msra.mxu0 %v11307_v48  ;;  %v11384_v48 = vld [vmem:[%s13653_s4 + $0x204] ss:$8 sps:$4 sm:$0xff]  }
 0x195   : > { %9624 = vmatpush2.bf16.msra.mxu1 %v11308_v49  ;;  %9584 = vmatprep.subr.bf16.mxu0 %v11309_v51  ;;  %v11387_v49 = vld [vmem:[%s13653_s4 + $0x304] ss:$8 sps:$4 sm:$0xff]   ;;  %v11382_v51 = vld [vmem:[%s13653_s4 + $0x200] ss:$8 sps:$4 sm:$0xff]  }
 0x196   : > { %9625 = vmatprep.subr.bf16.mxu1 %v11311_v52  ;;  %v11385_v52 = vld [vmem:[%s13653_s4 + $0x300] ss:$8 sps:$4 sm:$0xff]  }
 0x198   : > { %9585 = vmatpush2.bf16.msra.mxu0 %v11313_v54  ;;  %v11393_v54 = vld [vmem:[%s13653_s4 + $0x3f4] ss:$8 sps:$4 sm:$0xff]  }
 0x199   : > { %9626 = vmatpush2.bf16.msra.mxu1 %v11314_v56  ;;  %9586 = vmatprep.subr.bf16.mxu0 %v11315_v57  ;;  %v11391_v56 = vld [vmem:[%s13653_s4 + $0x3f0] ss:$8 sps:$4 sm:$0xff]   ;;  %v11396_v57 = vld [vmem:[%s13653_s4 + $0x2e4] ss:$8 sps:$4 sm:$0xff]  }
 0x19a   : > { %9627 = vmatprep.subr.bf16.mxu1 %v11317_v58  ;;  %v11399_v58 = vld [vmem:[%s13653_s4 + $0x3e4] ss:$8 sps:$4 sm:$0xff]  }
 0x19c   : > { %9587 = vmatpush2.bf16.msra.mxu0 %v11319_v60  ;;  %v11397_v60 = vld [vmem:[%s13653_s4 + $0x3e0] ss:$8 sps:$4 sm:$0xff]  }
 0x19d   : > { %9628 = vmatpush2.bf16.msra.mxu1 %v11320_v62  ;;  %9588 = vmatprep.subr.bf16.mxu0 %v11321_v63  ;;  %v11405_v62 = vld [vmem:[%s13653_s4 + $0x3d4] ss:$8 sps:$4 sm:$0xff]   ;;  %v11400_v63 = vld [vmem:[%s13653_s4 + $0x2d0] ss:$8 sps:$4 sm:$0xff]  }
 0x19e   : > { %9629 = vmatprep.subr.bf16.mxu1 %v11323_v0  ;;  %v11403_v0 = vld [vmem:[%s13653_s4 + $0x3d0] ss:$8 sps:$4 sm:$0xff]  }
 0x1a0   : > { %9589 = vmatpush2.bf16.msra.mxu0 %v11325_v3  ;;  %v11406_v3 = vld [vmem:[%s13653_s4 + $0x2c0] ss:$8 sps:$4 sm:$0xff]  }
 0x1a1   : > { %9630 = vmatpush2.bf16.msra.mxu1 %v11326_v4  ;;  %9590 = vmatprep.subr.bf16.mxu0 %v11327_v5  ;;  %v11409_v4 = vld [vmem:[%s13653_s4 + $0x3c0] ss:$8 sps:$4 sm:$0xff]   ;;  %v11414_v5 = vld [vmem:[%s13653_s4 + $0x2b4] ss:$8 sps:$4 sm:$0xff]  }
 0x1a2   : > { %9631 = vmatprep.subr.bf16.mxu1 %v11329_v6  ;;  %v11417_v6 = vld [vmem:[%s13653_s4 + $0x3b4] ss:$8 sps:$4 sm:$0xff]  }
 0x1a4   : > { %9591 = vmatpush2.bf16.msra.mxu0 %v11331_v8  ;;  %v11412_v8 = vld [vmem:[%s13653_s4 + $0x2b0] ss:$8 sps:$4 sm:$0xff]  }
 0x1a5   : > { %9632 = vmatpush2.bf16.msra.mxu1 %v11332_v9  ;;  %9592 = vmatprep.subr.bf16.mxu0 %v11333_v10  ;;  %v11415_v9 = vld [vmem:[%s13653_s4 + $0x3b0] ss:$8 sps:$4 sm:$0xff]   ;;  %v11420_v10 = vld [vmem:[%s13653_s4 + $0x2a4] ss:$8 sps:$4 sm:$0xff]  }
 0x1a6   : > { %9633 = vmatprep.subr.bf16.mxu1 %v11335_v11  ;;  %v11423_v11 = vld [vmem:[%s13653_s4 + $0x3a4] ss:$8 sps:$4 sm:$0xff]  }
 0x1a8   : > { %9593 = vmatpush2.bf16.msra.mxu0 %v11337_v13  ;;  %v11421_v13 = vld [vmem:[%s13653_s4 + $0x3a0] ss:$8 sps:$4 sm:$0xff]  }
 0x1a9   : > { %9634 = vmatpush2.bf16.msra.mxu1 %v11338_v15  ;;  %9644 = vmatprep.subr.bf16.mxu0 %v11342_v16  ;;  %v11429_v15 = vld [vmem:[%s13653_s4 + $0x394] ss:$8 sps:$4 sm:$0xff]   ;;  %v11424_v16 = vld [vmem:[%s13653_s4 + $0x290] ss:$8 sps:$4 sm:$0xff]  }
 0x1aa   : > { %9685 = vmatprep.subr.bf16.mxu1 %v11345_v17  ;;  %v11427_v17 = vld [vmem:[%s13653_s4 + $0x390] ss:$8 sps:$4 sm:$0xff]  }
 0x1ab   : > { %9595 = vmatmul.mubr.bf16.vlgmr.msra.gmra.mxu0 %v6100_v14  ;;  %v11426_v14 = vld [vmem:[%s13653_s4 + $0x294] ss:$8 sps:$4 sm:$0xff]  }
 0x1ac   : > { %9636 = vmatmul.mubr.bf16.vlgmr.msra.gmra.mxu1 %v6122_v19  ;;  %9645 = vmatpush1.bf16.msra.mxu0 %v11340_v20  ;;  %v11435_v19 = vld [vmem:[%s13653_s4 + $0x384] ss:$8 sps:$4 sm:$0xff]   ;;  %v11430_v20 = vld [vmem:[%s13653_s4 + $0x280] ss:$8 sps:$4 sm:$0xff]  }
 0x1ad   : > { %9686 = vmatpush1.bf16.msra.mxu1 %v11343_v21  ;;  %9646 = vmatprep.subr.bf16.mxu0 %v11348_v22  ;;  %v6107_v21 = vrot.slane %v13723_v7, %v13703_v50  ;;  %v11433_v22 = vld [vmem:[%s13653_s4 + $0x380] ss:$8 sps:$4 sm:$0xff]   ;;  %v11444_v7 = vld [vmem:[%s13653_s4 + $0x464] ss:$8 sps:$4 sm:$0xff]  }
 0x1ae   : > { %9687 = vmatprep.subr.bf16.mxu1 %v11351_v23  ;;  %9676 = vmatprep.mubr.bf16.mxu0 %v6121_v18  ;;  %v11432_v18 = vld [vmem:[%s13653_s4 + $0x284] ss:$8 sps:$4 sm:$0xff]   ;;  %v11438_v23 = vld [vmem:[%s13653_s4 + $0x474] ss:$8 sps:$4 sm:$0xff]  }
 0x1af   : > { %9717 = vmatprep.mubr.bf16.mxu1 %v6125_v24  ;;  %v11441_v24 = vld [vmem:[%s13653_s4 + $0x574] ss:$8 sps:$4 sm:$0xff]  }
 0x1b0   : > { %9647 = vmatpush1.bf16.msra.mxu0 %v11346_v25  ;;  %v6123_v25 = vcombine.high %v6107_v21, %v6107_v21 }
 0x1b1   : > { %9688 = vmatpush1.bf16.msra.mxu1 %v11349_v26  ;;  %9648 = vmatprep.subr.bf16.mxu0 %v11354_v27  ;;  %v11436_v26 = vld [vmem:[%s13653_s4 + $0x470] ss:$8 sps:$4 sm:$0xff]  }
 0x1b2   : > { %9689 = vmatprep.subr.bf16.mxu1 %v11357_v28  ;;  %v11439_v27 = vld [vmem:[%s13653_s4 + $0x570] ss:$8 sps:$4 sm:$0xff]   ;;  %v13806_v28 = vld [vmem:[%s13641_s24 + $0x8] sm:$0xff] }
 0x1b4   : > { %9649 = vmatpush1.bf16.msra.mxu0 %v11352_v29  ;;  %v11447_v29 = vld [vmem:[%s13653_s4 + $0x564] ss:$8 sps:$4 sm:$0xff]  }
 0x1b5   : > { %9690 = vmatpush1.bf16.msra.mxu1 %v11355_v30  ;;  %9650 = vmatprep.subr.bf16.mxu0 %v11360_v31  ;;  %v13812_v30 = vrot.slane %v13806_v28, %v13703_v50 }
 0x1b6   : > { %9691 = vmatprep.subr.bf16.mxu1 %v11363_v32  ;;  %v11442_v32 = vld [vmem:[%s13653_s4 + $0x460] ss:$8 sps:$4 sm:$0xff]  }
 0x1b7   : > { %v6141_v31 = vcombine.high %v13812_v30, %v13812_v30 }
 0x1b8   : > { %9651 = vmatpush1.bf16.msra.mxu0 %v11358_v33  ;;  %v11445_v33 = vld [vmem:[%s13653_s4 + $0x560] ss:$8 sps:$4 sm:$0xff]  }
 0x1b9   : > { %9692 = vmatpush1.bf16.msra.mxu1 %v11361_v34  ;;  %9652 = vmatprep.subr.bf16.mxu0 %v11366_v35  ;;  %v11450_v34 = vld [vmem:[%s13653_s4 + $0x454] ss:$8 sps:$4 sm:$0xff]  }
 0x1ba   : > { %9693 = vmatprep.subr.bf16.mxu1 %v11369_v36  ;;  %v11453_v35 = vld [vmem:[%s13653_s4 + $0x554] ss:$8 sps:$4 sm:$0xff]   ;;  %v6163_v36 = vrot.slane %v6141_v31, %v13703_v50 }
 0x1bc   : > { %9653 = vmatpush1.bf16.msra.mxu0 %v11364_v37  ;;  %v6173_v37 = vcombine.high %v6163_v36, %v6163_v36 }
 0x1bd   : > { %9694 = vmatpush1.bf16.msra.mxu1 %v11367_v38  ;;  %9654 = vmatprep.subr.bf16.mxu0 %v11372_v39  ;;  %v11448_v38 = vld [vmem:[%s13653_s4 + $0x450] ss:$8 sps:$4 sm:$0xff]  }
 0x1be   : > { %9695 = vmatprep.subr.bf16.mxu1 %v11375_v40  ;;  %v11451_v39 = vld [vmem:[%s13653_s4 + $0x550] ss:$8 sps:$4 sm:$0xff]   ;;  %v11456_v40 = vld [vmem:[%s13653_s4 + $0x444] ss:$8 sps:$4 sm:$0xff]  }
 0x1c0   : > { %9655 = vmatpush1.bf16.msra.mxu0 %v11370_v41  ;;  %v11459_v41 = vld [vmem:[%s13653_s4 + $0x544] ss:$8 sps:$4 sm:$0xff]  }
 0x1c1   : > { %9696 = vmatpush1.bf16.msra.mxu1 %v11373_v42  ;;  %9656 = vmatprep.subr.bf16.mxu0 %v11378_v43  ;;  %v11454_v42 = vld [vmem:[%s13653_s4 + $0x440] ss:$8 sps:$4 sm:$0xff]  }
 0x1c2   : > { %9697 = vmatprep.subr.bf16.mxu1 %v11381_v45  ;;  %v11457_v43 = vld [vmem:[%s13653_s4 + $0x540] ss:$8 sps:$4 sm:$0xff]   ;;  %v11462_v45 = vld [vmem:[%s13653_s4 + $0x434] ss:$8 sps:$4 sm:$0xff]  }
 0x1c4   : > { %9657 = vmatpush1.bf16.msra.mxu0 %v11376_v46  ;;  %v11465_v46 = vld [vmem:[%s13653_s4 + $0x534] ss:$8 sps:$4 sm:$0xff]  }
 0x1c5   : > { %9698 = vmatpush1.bf16.msra.mxu1 %v11379_v47  ;;  %9658 = vmatprep.subr.bf16.mxu0 %v11384_v48  ;;  %v11460_v47 = vld [vmem:[%s13653_s4 + $0x430] ss:$8 sps:$4 sm:$0xff]  }
 0x1c6   : > { %9699 = vmatprep.subr.bf16.mxu1 %v11387_v49  ;;  %v11463_v48 = vld [vmem:[%s13653_s4 + $0x530] ss:$8 sps:$4 sm:$0xff]   ;;  %v11468_v49 = vld [vmem:[%s13653_s4 + $0x424] ss:$8 sps:$4 sm:$0xff]  }
 0x1c8   : > { %9659 = vmatpush1.bf16.msra.mxu0 %v11382_v51  ;;  %v11471_v51 = vld [vmem:[%s13653_s4 + $0x524] ss:$8 sps:$4 sm:$0xff]  }
 0x1c9   : > { %9700 = vmatpush1.bf16.msra.mxu1 %v11385_v52  ;;  %9660 = vmatprep.subr.bf16.mxu0 %v11390_v53  ;;  %v11466_v52 = vld [vmem:[%s13653_s4 + $0x420] ss:$8 sps:$4 sm:$0xff]  }
 0x1ca   : > { %9701 = vmatprep.subr.bf16.mxu1 %v11393_v54  ;;  %v11469_v53 = vld [vmem:[%s13653_s4 + $0x520] ss:$8 sps:$4 sm:$0xff]   ;;  %v11474_v54 = vld [vmem:[%s13653_s4 + $0x414] ss:$8 sps:$4 sm:$0xff]  }
 0x1cc   : > { %9661 = vmatpush2.bf16.msra.mxu0 %v11388_v55  ;;  %v11477_v55 = vld [vmem:[%s13653_s4 + $0x514] ss:$8 sps:$4 sm:$0xff]  }
 0x1cd   : > { %9702 = vmatpush2.bf16.msra.mxu1 %v11391_v56  ;;  %9662 = vmatprep.subr.bf16.mxu0 %v11396_v57  ;;  %v11472_v56 = vld [vmem:[%s13653_s4 + $0x410] ss:$8 sps:$4 sm:$0xff]  }
 0x1ce   : > { %9703 = vmatprep.subr.bf16.mxu1 %v11399_v58  ;;  %v11475_v57 = vld [vmem:[%s13653_s4 + $0x510] ss:$8 sps:$4 sm:$0xff]   ;;  %v11480_v58 = vld [vmem:[%s13653_s4 + $0x404] ss:$8 sps:$4 sm:$0xff]  }
 0x1d0   : > { %9663 = vmatpush2.bf16.msra.mxu0 %v11394_v59  ;;  %v11483_v59 = vld [vmem:[%s13653_s4 + $0x504] ss:$8 sps:$4 sm:$0xff]  }
 0x1d1   : > { %9704 = vmatpush2.bf16.msra.mxu1 %v11397_v60  ;;  %9664 = vmatprep.subr.bf16.mxu0 %v11402_v61  ;;  %v11478_v60 = vld [vmem:[%s13653_s4 + $0x400] ss:$8 sps:$4 sm:$0xff]  }
 0x1d2   : > { %9705 = vmatprep.subr.bf16.mxu1 %v11405_v62  ;;  %v11481_v61 = vld [vmem:[%s13653_s4 + $0x500] ss:$8 sps:$4 sm:$0xff]   ;;  %v11486_v62 = vld [vmem:[%s13653_s4 + $0x4f4] ss:$8 sps:$4 sm:$0xff]  }
 0x1d4   : > { %9665 = vmatpush2.bf16.msra.mxu0 %v11400_v63  ;;  %v11489_v63 = vld [vmem:[%s13653_s4 + $0x5f4] ss:$8 sps:$4 sm:$0xff]  }
 0x1d5   : > { %9706 = vmatpush2.bf16.msra.mxu1 %v11403_v0  ;;  %9666 = vmatprep.subr.bf16.mxu0 %v11408_v1  ;;  %v11484_v0 = vld [vmem:[%s13653_s4 + $0x4f0] ss:$8 sps:$4 sm:$0xff]  }
 0x1d6   : > { %9707 = vmatprep.subr.bf16.mxu1 %v11411_v2  ;;  %v11487_v1 = vld [vmem:[%s13653_s4 + $0x5f0] ss:$8 sps:$4 sm:$0xff]   ;;  %v11492_v2 = vld [vmem:[%s13653_s4 + $0x4e4] ss:$8 sps:$4 sm:$0xff]  }
 0x1d8   : > { %9667 = vmatpush2.bf16.msra.mxu0 %v11406_v3  ;;  %v11495_v3 = vld [vmem:[%s13653_s4 + $0x5e4] ss:$8 sps:$4 sm:$0xff]  }
 0x1d9   : > { %9708 = vmatpush2.bf16.msra.mxu1 %v11409_v4  ;;  %9668 = vmatprep.subr.bf16.mxu0 %v11414_v5  ;;  %v11490_v4 = vld [vmem:[%s13653_s4 + $0x4e0] ss:$8 sps:$4 sm:$0xff]  }
 0x1da   : > { %9709 = vmatprep.subr.bf16.mxu1 %v11417_v6  ;;  %v11493_v5 = vld [vmem:[%s13653_s4 + $0x5e0] ss:$8 sps:$4 sm:$0xff]   ;;  %v11498_v6 = vld [vmem:[%s13653_s4 + $0x4d4] ss:$8 sps:$4 sm:$0xff]  }
 0x1dc   : > { %9669 = vmatpush2.bf16.msra.mxu0 %v11412_v8  ;;  %v11501_v8 = vld [vmem:[%s13653_s4 + $0x5d4] ss:$8 sps:$4 sm:$0xff]  }
 0x1dd   : > { %9710 = vmatpush2.bf16.msra.mxu1 %v11415_v9  ;;  %9670 = vmatprep.subr.bf16.mxu0 %v11420_v10  ;;  %v11496_v9 = vld [vmem:[%s13653_s4 + $0x4d0] ss:$8 sps:$4 sm:$0xff]  }
 0x1de   : > { %9711 = vmatprep.subr.bf16.mxu1 %v11423_v11  ;;  %v11499_v10 = vld [vmem:[%s13653_s4 + $0x5d0] ss:$8 sps:$4 sm:$0xff]   ;;  %v11504_v11 = vld [vmem:[%s13653_s4 + $0x4c4] ss:$8 sps:$4 sm:$0xff]  }
 0x1e0   : > { %9671 = vmatpush2.bf16.msra.mxu0 %v11418_v12  ;;  %v11507_v12 = vld [vmem:[%s13653_s4 + $0x5c4] ss:$8 sps:$4 sm:$0xff]  }
 0x1e1   : > { %9712 = vmatpush2.bf16.msra.mxu1 %v11421_v13  ;;  %9672 = vmatprep.subr.bf16.mxu0 %v11426_v14  ;;  %v11502_v13 = vld [vmem:[%s13653_s4 + $0x4c0] ss:$8 sps:$4 sm:$0xff]  }
 0x1e2   : > { %9713 = vmatprep.subr.bf16.mxu1 %v11429_v15  ;;  %v11505_v14 = vld [vmem:[%s13653_s4 + $0x5c0] ss:$8 sps:$4 sm:$0xff]   ;;  %v11510_v15 = vld [vmem:[%s13653_s4 + $0x4b4] ss:$8 sps:$4 sm:$0xff]  }
 0x1e4   : > { %9673 = vmatpush2.bf16.msra.mxu0 %v11424_v16  ;;  %v11513_v16 = vld [vmem:[%s13653_s4 + $0x5b4] ss:$8 sps:$4 sm:$0xff]  }
 0x1e5   : > { %9714 = vmatpush2.bf16.msra.mxu1 %v11427_v17  ;;  %9674 = vmatprep.subr.bf16.mxu0 %v11432_v18  ;;  %v11508_v17 = vld [vmem:[%s13653_s4 + $0x4b0] ss:$8 sps:$4 sm:$0xff]  }
 0x1e6   : > { %9715 = vmatprep.subr.bf16.mxu1 %v11435_v19  ;;  %v11511_v18 = vld [vmem:[%s13653_s4 + $0x5b0] ss:$8 sps:$4 sm:$0xff]   ;;  %v11516_v19 = vld [vmem:[%s13653_s4 + $0x4a4] ss:$8 sps:$4 sm:$0xff]  }
 0x1e8   : > { %9675 = vmatpush2.bf16.msra.mxu0 %v11430_v20  ;;  %v11519_v20 = vld [vmem:[%s13653_s4 + $0x5a4] ss:$8 sps:$4 sm:$0xff]  }
 0x1e9   : > { %9716 = vmatpush2.bf16.msra.mxu1 %v11433_v22  ;;  %9726 = vmatprep.subr.bf16.mxu0 %v11438_v23  ;;  %v11514_v22 = vld [vmem:[%s13653_s4 + $0x4a0] ss:$8 sps:$4 sm:$0xff]  }
 0x1ea   : > { %9767 = vmatprep.subr.bf16.mxu1 %v11441_v24  ;;  %v11517_v23 = vld [vmem:[%s13653_s4 + $0x5a0] ss:$8 sps:$4 sm:$0xff]   ;;  %v11522_v24 = vld [vmem:[%s13653_s4 + $0x494] ss:$8 sps:$4 sm:$0xff]  }
 0x1eb   : > { %9677 = vmatmul.mubr.bf16.vlgmr.msra.gmra.mxu0 %v6107_v21  ;;  %v6126_v21 = vcombine.high %v13806_v28, %v13806_v28  ;;  %v11523_v28 = vld [vmem:[%s13653_s4 + $0x590] ss:$8 sps:$4 sm:$0xff]  }
 0x1ec   : > { %9718 = vmatmul.mubr.bf16.vlgmr.msra.gmra.mxu1 %v6123_v25  ;;  %9727 = vmatpush1.bf16.msra.mxu0 %v11436_v26  ;;  %v11525_v25 = vld [vmem:[%s13653_s4 + $0x594] ss:$8 sps:$4 sm:$0xff]  }
 0x1ed   : > { %9768 = vmatpush1.bf16.msra.mxu1 %v11439_v27  ;;  %9728 = vmatprep.subr.bf16.mxu0 %v11444_v7  ;;  %v13872_v26 = vrot.slane %v6126_v21, %v13703_v50  ;;  %v11520_v27 = vld [vmem:[%s13653_s4 + $0x490] ss:$8 sps:$4 sm:$0xff]   ;;  %v11528_v7 = vld [vmem:[%s13653_s4 + $0x484] ss:$8 sps:$4 sm:$0xff]  }
 0x1ee   : > { %9769 = vmatprep.subr.bf16.mxu1 %v11447_v29  ;;  %9758 = vmatprep.mubr.bf16.mxu0 %v6163_v36  ;;  %v11531_v29 = vld [vmem:[%s13653_s4 + $0x584] ss:$8 sps:$4 sm:$0xff]   ;;  %v11537_v36 = vld [vmem:[%s13653_s4 + $0x774] ss:$8 sps:$4 sm:$0xff]  }
 0x1ef   : > { %9799 = vmatprep.mubr.bf16.mxu1 %v6173_v37  ;;  %v6142_v31 = vcombine.high %v13872_v26, %v13872_v26  ;;  %v11603_v21 = vld [vmem:[%s13653_s4 + $0x7c4] ss:$8 sps:$4 sm:$0xff]  }
 0x1f0   : > { %9729 = vmatpush1.bf16.msra.mxu0 %v11442_v32  ;;  %v6149_v32 = vrot.slane %v13812_v30, %v13703_v50  ;;  %v11535_v30 = vld [vmem:[%s13653_s4 + $0x770] ss:$8 sps:$4 sm:$0xff]  }
 0x1f1   : > { %9770 = vmatpush1.bf16.msra.mxu1 %v11445_v33  ;;  %9730 = vmatprep.subr.bf16.mxu0 %v11450_v34  ;;  %v11526_v33 = vld [vmem:[%s13653_s4 + $0x480] ss:$8 sps:$4 sm:$0xff]   ;;  %v6170_v37 = vrot.slane %v6142_v31, %v13703_v50 }
 0x1f2   : > { %9771 = vmatprep.subr.bf16.mxu1 %v11453_v35  ;;  %v11529_v34 = vld [vmem:[%s13653_s4 + $0x580] ss:$8 sps:$4 sm:$0xff]   ;;  %v11534_v35 = vld [vmem:[%s13653_s4 + $0x674] ss:$8 sps:$4 sm:$0xff]  }
 0x1f3   : > { %v11610_v31 = vld [vmem:[%s13653_s4 + $0x6a0] ss:$8 sps:$4 sm:$0xff]  }
 0x1f4   : > { %9731 = vmatpush1.bf16.msra.mxu0 %v11448_v38  ;;  %v6171_v38 = vcombine.high %v6149_v32, %v6149_v32 }
 0x1f5   : > { %9772 = vmatpush1.bf16.msra.mxu1 %v11451_v39  ;;  %9732 = vmatprep.subr.bf16.mxu0 %v11456_v40  ;;  %v11532_v39 = vld [vmem:[%s13653_s4 + $0x670] ss:$8 sps:$4 sm:$0xff]   ;;  %v11540_v40 = vld [vmem:[%s13653_s4 + $0x664] ss:$8 sps:$4 sm:$0xff]  }
 0x1f6   : > { %9773 = vmatprep.subr.bf16.mxu1 %v11459_v41  ;;  %v11543_v41 = vld [vmem:[%s13653_s4 + $0x764] ss:$8 sps:$4 sm:$0xff]  }
 0x1f8   : > { %9733 = vmatpush1.bf16.msra.mxu0 %v11454_v42  ;;  %v6174_v42 = vcombine.high %v6170_v37, %v6170_v37 }
 0x1f9   : > { %9774 = vmatpush1.bf16.msra.mxu1 %v11457_v43  ;;  %9734 = vmatprep.subr.bf16.mxu0 %v11462_v45  ;;  %v11538_v43 = vld [vmem:[%s13653_s4 + $0x660] ss:$8 sps:$4 sm:$0xff]  }
 0x1fa   : > { %9775 = vmatprep.subr.bf16.mxu1 %v11465_v46  ;;  %v11541_v45 = vld [vmem:[%s13653_s4 + $0x760] ss:$8 sps:$4 sm:$0xff]   ;;  %v11546_v46 = vld [vmem:[%s13653_s4 + $0x654] ss:$8 sps:$4 sm:$0xff]  }
 0x1fc   : > { %9735 = vmatpush1.bf16.msra.mxu0 %v11460_v47  ;;  %v11549_v47 = vld [vmem:[%s13653_s4 + $0x754] ss:$8 sps:$4 sm:$0xff]  }
 0x1fd   : > { %9776 = vmatpush1.bf16.msra.mxu1 %v11463_v48  ;;  %9736 = vmatprep.subr.bf16.mxu0 %v11468_v49  ;;  %v11544_v48 = vld [vmem:[%s13653_s4 + $0x650] ss:$8 sps:$4 sm:$0xff]  }
 0x1fe   : > { %9777 = vmatprep.subr.bf16.mxu1 %v11471_v51  ;;  %v11547_v49 = vld [vmem:[%s13653_s4 + $0x750] ss:$8 sps:$4 sm:$0xff]   ;;  %v11552_v51 = vld [vmem:[%s13653_s4 + $0x644] ss:$8 sps:$4 sm:$0xff]  }
 0x200   : > { %9737 = vmatpush1.bf16.msra.mxu0 %v11466_v52  ;;  %v11555_v52 = vld [vmem:[%s13653_s4 + $0x744] ss:$8 sps:$4 sm:$0xff]  }
 0x201   : > { %9778 = vmatpush1.bf16.msra.mxu1 %v11469_v53  ;;  %9738 = vmatprep.subr.bf16.mxu0 %v11474_v54  ;;  %v11550_v53 = vld [vmem:[%s13653_s4 + $0x640] ss:$8 sps:$4 sm:$0xff]  }
 0x202   : > { %9779 = vmatprep.subr.bf16.mxu1 %v11477_v55  ;;  %v11553_v54 = vld [vmem:[%s13653_s4 + $0x740] ss:$8 sps:$4 sm:$0xff]   ;;  %v11558_v55 = vld [vmem:[%s13653_s4 + $0x634] ss:$8 sps:$4 sm:$0xff]  }
 0x204   : > { %9739 = vmatpush1.bf16.msra.mxu0 %v11472_v56  ;;  %v11561_v56 = vld [vmem:[%s13653_s4 + $0x734] ss:$8 sps:$4 sm:$0xff]  }
 0x205   : > { %9780 = vmatpush1.bf16.msra.mxu1 %v11475_v57  ;;  %9740 = vmatprep.subr.bf16.mxu0 %v11480_v58  ;;  %v11556_v57 = vld [vmem:[%s13653_s4 + $0x630] ss:$8 sps:$4 sm:$0xff]  }
 0x206   : > { %9781 = vmatprep.subr.bf16.mxu1 %v11483_v59  ;;  %v11559_v58 = vld [vmem:[%s13653_s4 + $0x730] ss:$8 sps:$4 sm:$0xff]   ;;  %v11564_v59 = vld [vmem:[%s13653_s4 + $0x624] ss:$8 sps:$4 sm:$0xff]  }
 0x208   : > { %9741 = vmatpush1.bf16.msra.mxu0 %v11478_v60  ;;  %v11567_v60 = vld [vmem:[%s13653_s4 + $0x724] ss:$8 sps:$4 sm:$0xff]  }
 0x209   : > { %9782 = vmatpush1.bf16.msra.mxu1 %v11481_v61  ;;  %9742 = vmatprep.subr.bf16.mxu0 %v11486_v62  ;;  %v11562_v61 = vld [vmem:[%s13653_s4 + $0x620] ss:$8 sps:$4 sm:$0xff]  }
 0x20a   : > { %9783 = vmatprep.subr.bf16.mxu1 %v11489_v63  ;;  %v11565_v62 = vld [vmem:[%s13653_s4 + $0x720] ss:$8 sps:$4 sm:$0xff]   ;;  %v11570_v63 = vld [vmem:[%s13653_s4 + $0x614] ss:$8 sps:$4 sm:$0xff]  }
 0x20c   : > { %9743 = vmatpush2.bf16.msra.mxu0 %v11484_v0  ;;  %v11573_v0 = vld [vmem:[%s13653_s4 + $0x714] ss:$8 sps:$4 sm:$0xff]  }
 0x20d   : > { %9784 = vmatpush2.bf16.msra.mxu1 %v11487_v1  ;;  %9744 = vmatprep.subr.bf16.mxu0 %v11492_v2  ;;  %v11568_v1 = vld [vmem:[%s13653_s4 + $0x610] ss:$8 sps:$4 sm:$0xff]  }
 0x20e   : > { %9785 = vmatprep.subr.bf16.mxu1 %v11495_v3  ;;  %v11571_v2 = vld [vmem:[%s13653_s4 + $0x710] ss:$8 sps:$4 sm:$0xff]   ;;  %v11576_v3 = vld [vmem:[%s13653_s4 + $0x604] ss:$8 sps:$4 sm:$0xff]  }
 0x210   : > { %9745 = vmatpush2.bf16.msra.mxu0 %v11490_v4  ;;  %v11579_v4 = vld [vmem:[%s13653_s4 + $0x704] ss:$8 sps:$4 sm:$0xff]  }
 0x211   : > { %9786 = vmatpush2.bf16.msra.mxu1 %v11493_v5  ;;  %9746 = vmatprep.subr.bf16.mxu0 %v11498_v6  ;;  %v11574_v5 = vld [vmem:[%s13653_s4 + $0x600] ss:$8 sps:$4 sm:$0xff]  }
 0x212   : > { %9787 = vmatprep.subr.bf16.mxu1 %v11501_v8  ;;  %v11577_v6 = vld [vmem:[%s13653_s4 + $0x700] ss:$8 sps:$4 sm:$0xff]   ;;  %v11582_v8 = vld [vmem:[%s13653_s4 + $0x6f4] ss:$8 sps:$4 sm:$0xff]  }
 0x214   : > { %9747 = vmatpush2.bf16.msra.mxu0 %v11496_v9  ;;  %v11585_v9 = vld [vmem:[%s13653_s4 + $0x7f4] ss:$8 sps:$4 sm:$0xff]  }
 0x215   : > { %9788 = vmatpush2.bf16.msra.mxu1 %v11499_v10  ;;  %9748 = vmatprep.subr.bf16.mxu0 %v11504_v11  ;;  %v11580_v10 = vld [vmem:[%s13653_s4 + $0x6f0] ss:$8 sps:$4 sm:$0xff]  }
 0x216   : > { %9789 = vmatprep.subr.bf16.mxu1 %v11507_v12  ;;  %v11583_v11 = vld [vmem:[%s13653_s4 + $0x7f0] ss:$8 sps:$4 sm:$0xff]   ;;  %v11588_v12 = vld [vmem:[%s13653_s4 + $0x6e4] ss:$8 sps:$4 sm:$0xff]  }
 0x218   : > { %9749 = vmatpush2.bf16.msra.mxu0 %v11502_v13  ;;  %v11591_v13 = vld [vmem:[%s13653_s4 + $0x7e4] ss:$8 sps:$4 sm:$0xff]  }
 0x219   : > { %9790 = vmatpush2.bf16.msra.mxu1 %v11505_v14  ;;  %9750 = vmatprep.subr.bf16.mxu0 %v11510_v15  ;;  %v11586_v14 = vld [vmem:[%s13653_s4 + $0x6e0] ss:$8 sps:$4 sm:$0xff]  }
 0x21a   : > { %9791 = vmatprep.subr.bf16.mxu1 %v11513_v16  ;;  %v11589_v15 = vld [vmem:[%s13653_s4 + $0x7e0] ss:$8 sps:$4 sm:$0xff]   ;;  %v11594_v16 = vld [vmem:[%s13653_s4 + $0x6d4] ss:$8 sps:$4 sm:$0xff]  }
 0x21c   : > { %9751 = vmatpush2.bf16.msra.mxu0 %v11508_v17  ;;  %v11597_v17 = vld [vmem:[%s13653_s4 + $0x7d4] ss:$8 sps:$4 sm:$0xff]  }
 0x21d   : > { %9792 = vmatpush2.bf16.msra.mxu1 %v11511_v18  ;;  %9752 = vmatprep.subr.bf16.mxu0 %v11516_v19  ;;  %v11592_v18 = vld [vmem:[%s13653_s4 + $0x6d0] ss:$8 sps:$4 sm:$0xff]  }
 0x21e   : > { %9793 = vmatprep.subr.bf16.mxu1 %v11519_v20  ;;  %v11595_v19 = vld [vmem:[%s13653_s4 + $0x7d0] ss:$8 sps:$4 sm:$0xff]   ;;  %v11600_v20 = vld [vmem:[%s13653_s4 + $0x6c4] ss:$8 sps:$4 sm:$0xff]  }
 0x220   : > { %9753 = vmatpush2.bf16.msra.mxu0 %v11514_v22  ;;  %v11598_v22 = vld [vmem:[%s13653_s4 + $0x6c0] ss:$8 sps:$4 sm:$0xff]  }
 0x221   : > { %9794 = vmatpush2.bf16.msra.mxu1 %v11517_v23  ;;  %9754 = vmatprep.subr.bf16.mxu0 %v11522_v24  ;;  %v11601_v23 = vld [vmem:[%s13653_s4 + $0x7c0] ss:$8 sps:$4 sm:$0xff]   ;;  %v11606_v24 = vld [vmem:[%s13653_s4 + $0x6b4] ss:$8 sps:$4 sm:$0xff]  }
 0x222   : > { %9795 = vmatprep.subr.bf16.mxu1 %v11525_v25  ;;  %v11609_v25 = vld [vmem:[%s13653_s4 + $0x7b4] ss:$8 sps:$4 sm:$0xff]  }
 0x224   : > { %9755 = vmatpush2.bf16.msra.mxu0 %v11520_v27  ;;  %v11604_v27 = vld [vmem:[%s13653_s4 + $0x6b0] ss:$8 sps:$4 sm:$0xff]  }
 0x225   : > { %9796 = vmatpush2.bf16.msra.mxu1 %v11523_v28  ;;  %9756 = vmatprep.subr.bf16.mxu0 %v11528_v7  ;;  %v11607_v28 = vld [vmem:[%s13653_s4 + $0x7b0] ss:$8 sps:$4 sm:$0xff]   ;;  %v11612_v7 = vld [vmem:[%s13653_s4 + $0x6a4] ss:$8 sps:$4 sm:$0xff]  }
 0x226   : > { %9797 = vmatprep.subr.bf16.mxu1 %v11531_v29  ;;  %v11615_v29 = vld [vmem:[%s13653_s4 + $0x7a4] ss:$8 sps:$4 sm:$0xff]  }
 0x228   : > { %9757 = vmatpush2.bf16.msra.mxu0 %v11526_v33  ;;  %v11613_v33 = vld [vmem:[%s13653_s4 + $0x7a0] ss:$8 sps:$4 sm:$0xff]  }
 0x229   : > { %9798 = vmatpush2.bf16.msra.mxu1 %v11529_v34  ;;  %9808 = vmatprep.subr.bf16.mxu0 %v11534_v35  ;;  %v11618_v34 = vld [vmem:[%s13653_s4 + $0x694] ss:$8 sps:$4 sm:$0xff]  }
 0x22a   : > { %9849 = vmatprep.subr.bf16.mxu1 %v11537_v36  ;;  %v11621_v35 = vld [vmem:[%s13653_s4 + $0x794] ss:$8 sps:$4 sm:$0xff]  }
 0x22b   : > { %9759 = vmatmul.mubr.bf16.vlgmr.msra.gmra.mxu0 %v6149_v32  ;;  %v13941_v32 = vld [vmem:[%s13641_s24 + $0x10] sm:$0xff] }
 0x22c   : > { %9800 = vmatmul.mubr.bf16.vlgmr.msra.gmra.mxu1 %v6171_v38  ;;  %9809 = vmatpush1.bf16.msra.mxu0 %v11532_v39  ;;  %v13948_v36 = vrot.slane %v13941_v32, %v13703_v50  ;;  %v11619_v38 = vld [vmem:[%s13653_s4 + $0x790] ss:$8 sps:$4 sm:$0xff]   ;;  %v11624_v39 = vld [vmem:[%s13653_s4 + $0x684] ss:$8 sps:$4 sm:$0xff]  }
 0x22d   : > { %9850 = vmatpush1.bf16.msra.mxu1 %v11535_v30  ;;  %9810 = vmatprep.subr.bf16.mxu0 %v11540_v40  ;;  %v11627_v30 = vld [vmem:[%s13653_s4 + $0x784] ss:$8 sps:$4 sm:$0xff]  }
 0x22e   : > { %9851 = vmatprep.subr.bf16.mxu1 %v11543_v41  ;;  %9840 = vmatprep.mubr.bf16.mxu0 %v6170_v37  ;;  %v11616_v37 = vld [vmem:[%s13653_s4 + $0x690] ss:$8 sps:$4 sm:$0xff]   ;;  %v6190_v40 = vcombine.high %v13948_v36, %v13948_v36  ;;  %v11622_v41 = vld [vmem:[%s13653_s4 + $0x680] ss:$8 sps:$4 sm:$0xff]  }
 0x22f   : > { %9881 = vmatprep.mubr.bf16.mxu1 %v6174_v42  ;;  %v6156_v42 = vrot.slane %v13872_v26, %v13703_v50  ;;  %v11640_v26 = vld [vmem:[%s13653_s4 + $0x964] ss:$8 sps:$4 sm:$0xff]  }
 0x230   : > { %9811 = vmatpush1.bf16.msra.mxu0 %v11538_v43  ;;  %v11625_v43 = vld [vmem:[%s13653_s4 + $0x780] ss:$8 sps:$4 sm:$0xff]  }
 0x231   : > { %9852 = vmatpush1.bf16.msra.mxu1 %v11541_v45  ;;  %9812 = vmatprep.subr.bf16.mxu0 %v11546_v46  ;;  %v11631_v45 = vld [vmem:[%s13653_s4 + $0x874] ss:$8 sps:$4 sm:$0xff]  }
 0x232   : > { %9853 = vmatprep.subr.bf16.mxu1 %v11549_v47  ;;  %v11634_v46 = vld [vmem:[%s13653_s4 + $0x974] ss:$8 sps:$4 sm:$0xff]   ;;  %v6212_v47 = vrot.slane %v6190_v40, %v13703_v50  ;;  %v11692_v40 = vld [vmem:[%s13653_s4 + $0x9d0] ss:$8 sps:$4 sm:$0xff]  }
 0x234   : > { %9813 = vmatpush1.bf16.msra.mxu0 %v11544_v48  ;;  %v6172_v48 = vcombine.high %v6156_v42, %v6156_v42 }
 0x235   : > { %9854 = vmatpush1.bf16.msra.mxu1 %v11547_v49  ;;  %9814 = vmatprep.subr.bf16.mxu0 %v11552_v51  ;;  %v11629_v49 = vld [vmem:[%s13653_s4 + $0x870] ss:$8 sps:$4 sm:$0xff]  }
 0x236   : > { %9855 = vmatprep.subr.bf16.mxu1 %v11555_v52  ;;  %v11632_v51 = vld [vmem:[%s13653_s4 + $0x970] ss:$8 sps:$4 sm:$0xff]   ;;  %v11637_v52 = vld [vmem:[%s13653_s4 + $0x864] ss:$8 sps:$4 sm:$0xff]  }
 0x238   : > { %9815 = vmatpush1.bf16.msra.mxu0 %v11550_v53  ;;  %v6222_v53 = vcombine.high %v6212_v47, %v6212_v47 }
 0x239   : > { %9856 = vmatpush1.bf16.msra.mxu1 %v11553_v54  ;;  %9816 = vmatprep.subr.bf16.mxu0 %v11558_v55 }
 0x23a   : > { %9857 = vmatprep.subr.bf16.mxu1 %v11561_v56  ;;  %v11635_v56 = vld [vmem:[%s13653_s4 + $0x860] ss:$8 sps:$4 sm:$0xff]  }
 0x23c   : > { %9817 = vmatpush1.bf16.msra.mxu0 %v11556_v57  ;;  %v11638_v57 = vld [vmem:[%s13653_s4 + $0x960] ss:$8 sps:$4 sm:$0xff]  }
 0x23d   : > { %9858 = vmatpush1.bf16.msra.mxu1 %v11559_v58  ;;  %9818 = vmatprep.subr.bf16.mxu0 %v11564_v59 }
 0x23e   : > { %9859 = vmatprep.subr.bf16.mxu1 %v11567_v60 }
 0x240   : > { %9819 = vmatpush1.bf16.msra.mxu0 %v11562_v61  ;;  %v11643_v61 = vld [vmem:[%s13653_s4 + $0x854] ss:$8 sps:$4 sm:$0xff]  }
 0x241   : > { %9860 = vmatpush1.bf16.msra.mxu1 %v11565_v62  ;;  %9820 = vmatprep.subr.bf16.mxu0 %v11570_v63  ;;  %v11646_v62 = vld [vmem:[%s13653_s4 + $0x954] ss:$8 sps:$4 sm:$0xff]  }
 0x242   : > { %9861 = vmatprep.subr.bf16.mxu1 %v11573_v0  ;;  %v11641_v0 = vld [vmem:[%s13653_s4 + $0x850] ss:$8 sps:$4 sm:$0xff]  }
 0x244   : > { %9821 = vmatpush1.bf16.msra.mxu0 %v11568_v1  ;;  %v11644_v1 = vld [vmem:[%s13653_s4 + $0x950] ss:$8 sps:$4 sm:$0xff]  }
 0x245   : > { %9862 = vmatpush1.bf16.msra.mxu1 %v11571_v2  ;;  %9822 = vmatprep.subr.bf16.mxu0 %v11576_v3 }
 0x246   : > { %9863 = vmatprep.subr.bf16.mxu1 %v11579_v4 }
 0x248   : > { %9823 = vmatpush1.bf16.msra.mxu0 %v11574_v5 }
 0x249   : > { %9864 = vmatpush1.bf16.msra.mxu1 %v11577_v6  ;;  %9824 = vmatprep.subr.bf16.mxu0 %v11582_v8  ;;  %v11649_v6 = vld [vmem:[%s13653_s4 + $0x844] ss:$8 sps:$4 sm:$0xff]  }
 0x24a   : > { %9865 = vmatprep.subr.bf16.mxu1 %v11585_v9  ;;  %v11652_v8 = vld [vmem:[%s13653_s4 + $0x944] ss:$8 sps:$4 sm:$0xff]   ;;  %v11647_v9 = vld [vmem:[%s13653_s4 + $0x840] ss:$8 sps:$4 sm:$0xff]  }
 0x24c   : > { %9825 = vmatpush2.bf16.msra.mxu0 %v11580_v10  ;;  %v11650_v10 = vld [vmem:[%s13653_s4 + $0x940] ss:$8 sps:$4 sm:$0xff]  }
 0x24d   : > { %9866 = vmatpush2.bf16.msra.mxu1 %v11583_v11  ;;  %9826 = vmatprep.subr.bf16.mxu0 %v11588_v12  ;;  %v11655_v11 = vld [vmem:[%s13653_s4 + $0x834] ss:$8 sps:$4 sm:$0xff]  }
 0x24e   : > { %9867 = vmatprep.subr.bf16.mxu1 %v11591_v13  ;;  %v11658_v12 = vld [vmem:[%s13653_s4 + $0x934] ss:$8 sps:$4 sm:$0xff]   ;;  %v11653_v13 = vld [vmem:[%s13653_s4 + $0x830] ss:$8 sps:$4 sm:$0xff]  }
 0x250   : > { %9827 = vmatpush2.bf16.msra.mxu0 %v11586_v14  ;;  %v11656_v14 = vld [vmem:[%s13653_s4 + $0x930] ss:$8 sps:$4 sm:$0xff]  }
 0x251   : > { %9868 = vmatpush2.bf16.msra.mxu1 %v11589_v15  ;;  %9828 = vmatprep.subr.bf16.mxu0 %v11594_v16  ;;  %v11661_v15 = vld [vmem:[%s13653_s4 + $0x824] ss:$8 sps:$4 sm:$0xff]  }
 0x252   : > { %9869 = vmatprep.subr.bf16.mxu1 %v11597_v17  ;;  %v11664_v16 = vld [vmem:[%s13653_s4 + $0x924] ss:$8 sps:$4 sm:$0xff]   ;;  %v11659_v17 = vld [vmem:[%s13653_s4 + $0x820] ss:$8 sps:$4 sm:$0xff]  }
 0x254   : > { %9829 = vmatpush2.bf16.msra.mxu0 %v11592_v18  ;;  %v11662_v18 = vld [vmem:[%s13653_s4 + $0x920] ss:$8 sps:$4 sm:$0xff]  }
 0x255   : > { %9870 = vmatpush2.bf16.msra.mxu1 %v11595_v19  ;;  %9830 = vmatprep.subr.bf16.mxu0 %v11600_v20  ;;  %v11667_v19 = vld [vmem:[%s13653_s4 + $0x814] ss:$8 sps:$4 sm:$0xff]  }
 0x256   : > { %9871 = vmatprep.subr.bf16.mxu1 %v11603_v21  ;;  %v11670_v20 = vld [vmem:[%s13653_s4 + $0x914] ss:$8 sps:$4 sm:$0xff]   ;;  %v11665_v21 = vld [vmem:[%s13653_s4 + $0x810] ss:$8 sps:$4 sm:$0xff]  }
 0x258   : > { %9831 = vmatpush2.bf16.msra.mxu0 %v11598_v22  ;;  %v11668_v22 = vld [vmem:[%s13653_s4 + $0x910] ss:$8 sps:$4 sm:$0xff]  }
 0x259   : > { %9872 = vmatpush2.bf16.msra.mxu1 %v11601_v23  ;;  %9832 = vmatprep.subr.bf16.mxu0 %v11606_v24  ;;  %v11673_v23 = vld [vmem:[%s13653_s4 + $0x804] ss:$8 sps:$4 sm:$0xff]  }
 0x25a   : > { %9873 = vmatprep.subr.bf16.mxu1 %v11609_v25  ;;  %v11676_v24 = vld [vmem:[%s13653_s4 + $0x904] ss:$8 sps:$4 sm:$0xff]   ;;  %v11671_v25 = vld [vmem:[%s13653_s4 + $0x800] ss:$8 sps:$4 sm:$0xff]  }
 0x25c   : > { %9833 = vmatpush2.bf16.msra.mxu0 %v11604_v27  ;;  %v11674_v27 = vld [vmem:[%s13653_s4 + $0x900] ss:$8 sps:$4 sm:$0xff]  }
 0x25d   : > { %9874 = vmatpush2.bf16.msra.mxu1 %v11607_v28  ;;  %9834 = vmatprep.subr.bf16.mxu0 %v11612_v7  ;;  %v11679_v28 = vld [vmem:[%s13653_s4 + $0x8f4] ss:$8 sps:$4 sm:$0xff]  }
 0x25e   : > { %9875 = vmatprep.subr.bf16.mxu1 %v11615_v29  ;;  %v11682_v7 = vld [vmem:[%s13653_s4 + $0x9f4] ss:$8 sps:$4 sm:$0xff]   ;;  %v11677_v29 = vld [vmem:[%s13653_s4 + $0x8f0] ss:$8 sps:$4 sm:$0xff]  }
 0x260   : > { %9835 = vmatpush2.bf16.msra.mxu0 %v11610_v31  ;;  %v11680_v31 = vld [vmem:[%s13653_s4 + $0x9f0] ss:$8 sps:$4 sm:$0xff]  }
 0x261   : > { %9876 = vmatpush2.bf16.msra.mxu1 %v11613_v33  ;;  %9836 = vmatprep.subr.bf16.mxu0 %v11618_v34  ;;  %v11685_v33 = vld [vmem:[%s13653_s4 + $0x8e4] ss:$8 sps:$4 sm:$0xff]  }
 0x262   : > { %9877 = vmatprep.subr.bf16.mxu1 %v11621_v35  ;;  %v11688_v34 = vld [vmem:[%s13653_s4 + $0x9e4] ss:$8 sps:$4 sm:$0xff]   ;;  %v11683_v35 = vld [vmem:[%s13653_s4 + $0x8e0] ss:$8 sps:$4 sm:$0xff]  }
 0x264   : > { %9837 = vmatpush2.bf16.msra.mxu0 %v11616_v37  ;;  %v11686_v37 = vld [vmem:[%s13653_s4 + $0x9e0] ss:$8 sps:$4 sm:$0xff]  }
 0x265   : > { %9878 = vmatpush2.bf16.msra.mxu1 %v11619_v38  ;;  %9838 = vmatprep.subr.bf16.mxu0 %v11624_v39  ;;  %v11691_v38 = vld [vmem:[%s13653_s4 + $0x8d4] ss:$8 sps:$4 sm:$0xff]  }
 0x266   : > { %9879 = vmatprep.subr.bf16.mxu1 %v11627_v30  ;;  %v11694_v39 = vld [vmem:[%s13653_s4 + $0x9d4] ss:$8 sps:$4 sm:$0xff]   ;;  %v11689_v30 = vld [vmem:[%s13653_s4 + $0x8d0] ss:$8 sps:$4 sm:$0xff]  }
 0x268   : > { %9839 = vmatpush2.bf16.msra.mxu0 %v11622_v41  ;;  %v11697_v41 = vld [vmem:[%s13653_s4 + $0x8c4] ss:$8 sps:$4 sm:$0xff]  }
 0x269   : > { %9880 = vmatpush2.bf16.msra.mxu1 %v11625_v43  ;;  %9890 = vmatprep.subr.bf16.mxu0 %v11631_v45  ;;  %v11695_v43 = vld [vmem:[%s13653_s4 + $0x8c0] ss:$8 sps:$4 sm:$0xff]  }
 0x26a   : > { %9931 = vmatprep.subr.bf16.mxu1 %v11634_v46  ;;  %v11698_v45 = vld [vmem:[%s13653_s4 + $0x9c0] ss:$8 sps:$4 sm:$0xff]   ;;  %v11703_v46 = vld [vmem:[%s13653_s4 + $0x8b4] ss:$8 sps:$4 sm:$0xff]  }
 0x26b   : > { %v9596_v54 = vpop.f32.mrf.mxu0  ;;  %9841 = vmatmul.mubr.bf16.vlgmr.msra.gmra.mxu0 %v6156_v42  ;;  %v11700_v42 = vld [vmem:[%s13653_s4 + $0x9c4] ss:$8 sps:$4 sm:$0xff]  }
 0x26c   : > { %v9637_v55 = vpop.f32.mrf.mxu1  ;;  %9882 = vmatmul.mubr.bf16.vlgmr.msra.gmra.mxu1 %v6172_v48  ;;  %9891 = vmatpush1.bf16.msra.mxu0 %v11629_v49  ;;  %v11701_v48 = vld [vmem:[%s13653_s4 + $0x8b0] ss:$8 sps:$4 sm:$0xff]  }
 0x26d   : > { %v13969_v58 = vadd.f32 %v9637_v55, %v9596_v54  ;;  %9932 = vmatpush1.bf16.msra.mxu1 %v11632_v51  ;;  %v9598_v59 = vpop.f32.mrf.mxu0  ;;  %9892 = vmatprep.subr.bf16.mxu0 %v11637_v52  ;;  %v11704_v49 = vld [vmem:[%s13653_s4 + $0x9b0] ss:$8 sps:$4 sm:$0xff]   ;;  %v11709_v51 = vld [vmem:[%s13653_s4 + $0x8a4] ss:$8 sps:$4 sm:$0xff]   ;;  %v11710_v54 = vld [vmem:[%s13653_s4 + $0x9a0] ss:$8 sps:$4 sm:$0xff]  }
 0x26e   : > { %v9639_v60 = vpop.f32.mrf.mxu1  ;;  %9933 = vmatprep.subr.bf16.mxu1 %v11640_v26  ;;  %9922 = vmatprep.mubr.bf16.mxu0 %v6212_v47  ;;  %v11706_v47 = vld [vmem:[%s13653_s4 + $0x9b4] ss:$8 sps:$4 sm:$0xff]   ;;  %v11712_v52 = vld [vmem:[%s13653_s4 + $0x9a4] ss:$8 sps:$4 sm:$0xff]   ;;  %v6175_v26 = vcombine.high %v13941_v32, %v13941_v32  ;;  %v11713_v32 = vld [vmem:[%s13653_s4 + $0x890] ss:$8 sps:$4 sm:$0xff]  }
 0x26f   : > { %v13973_v63 = vadd.f32 %v9639_v60, %v9598_v59  ;;  %9963 = vmatprep.mubr.bf16.mxu1 %v6222_v53  ;;  %v9600_v2 = vpop.f32.mrf.mxu0  ;;  %v11707_v53 = vld [vmem:[%s13653_s4 + $0x8a0] ss:$8 sps:$4 sm:$0xff]   ;;  %v11715_v55 = vld [vmem:[%s13653_s4 + $0x894] ss:$8 sps:$4 sm:$0xff]   ;;  %v11716_v59 = vld [vmem:[%s13653_s4 + $0x990] ss:$8 sps:$4 sm:$0xff]  }
 0x270   : > { %v9641_v3 = vpop.f32.mrf.mxu1  ;;  %9893 = vmatpush1.bf16.msra.mxu0 %v11635_v56  ;;  %v11718_v56 = vld [vmem:[%s13653_s4 + $0x994] ss:$8 sps:$4 sm:$0xff]   ;;  %v11721_v60 = vld [vmem:[%s13653_s4 + $0x884] ss:$8 sps:$4 sm:$0xff]   ;;  %v11722_v2 = vld [vmem:[%s13653_s4 + $0x980] ss:$8 sps:$4 sm:$0xff]  }
 0x271   : > { %9934 = vmatpush1.bf16.msra.mxu1 %v11638_v57  ;;  %v9601_v4 = vpop.f32.mrf.mxu0  ;;  %9894 = vmatprep.subr.bf16.mxu0 %v11643_v61  ;;  %v14026_v57 = vrot.slane %v6175_v26, %v13703_v50  ;;  %v11724_v61 = vld [vmem:[%s13653_s4 + $0x984] ss:$8 sps:$4 sm:$0xff]   ;;  %v11727_v3 = vld [vmem:[%s13653_s4 + $0xa74] ss:$8 sps:$4 sm:$0xff]  }
 0x272   : > { %v9642_v5 = vpop.f32.mrf.mxu1  ;;  %9935 = vmatprep.subr.bf16.mxu1 %v11646_v62  ;;  %v11730_v4 = vld [vmem:[%s13653_s4 + $0xb74] ss:$8 sps:$4 sm:$0xff]  }
 0x273   : > { %v6191_v62 = vcombine.high %v14026_v57, %v14026_v57  ;;  %v11725_v5 = vld [vmem:[%s13653_s4 + $0xa70] ss:$8 sps:$4 sm:$0xff]   ;;  %v11778_v26 = vld [vmem:[%s13653_s4 + $0xbf4] ss:$8 sps:$4 sm:$0xff]  }
 0x274   : > { %9895 = vmatpush1.bf16.msra.mxu0 %v11641_v0  ;;  %v6198_v0 = vrot.slane %v13948_v36, %v13703_v50  ;;  %v11733_v36 = vld [vmem:[%s13653_s4 + $0xa64] ss:$8 sps:$4 sm:$0xff]  }
 0x275   : > { %9936 = vmatpush1.bf16.msra.mxu1 %v11644_v1  ;;  %9896 = vmatprep.subr.bf16.mxu0 %v11649_v6  ;;  %v11719_v1 = vld [vmem:[%s13653_s4 + $0x880] ss:$8 sps:$4 sm:$0xff]   ;;  %v11728_v6 = vld [vmem:[%s13653_s4 + $0xb70] ss:$8 sps:$4 sm:$0xff]  }
 0x276   : > { %9937 = vmatprep.subr.bf16.mxu1 %v11652_v8  ;;  %v6219_v8 = vrot.slane %v6191_v62, %v13703_v50  ;;  %v11785_v62 = vld [vmem:[%s13653_s4 + $0xad0] ss:$8 sps:$4 sm:$0xff]  }
 0x278   : > { %9897 = vmatpush1.bf16.msra.mxu0 %v11647_v9  ;;  %v6220_v9 = vcombine.high %v6198_v0, %v6198_v0 }
 0x279   : > { %9938 = vmatpush1.bf16.msra.mxu1 %v11650_v10  ;;  %9898 = vmatprep.subr.bf16.mxu0 %v11655_v11  ;;  %v11736_v10 = vld [vmem:[%s13653_s4 + $0xb64] ss:$8 sps:$4 sm:$0xff]   ;;  %v11731_v11 = vld [vmem:[%s13653_s4 + $0xa60] ss:$8 sps:$4 sm:$0xff]  }
 0x27a   : > { %9939 = vmatprep.subr.bf16.mxu1 %v11658_v12  ;;  %v11734_v12 = vld [vmem:[%s13653_s4 + $0xb60] ss:$8 sps:$4 sm:$0xff]  }
 0x27c   : > { %9899 = vmatpush1.bf16.msra.mxu0 %v11653_v13  ;;  %v6223_v13 = vcombine.high %v6219_v8, %v6219_v8 }
 0x27d   : > { %9940 = vmatpush1.bf16.msra.mxu1 %v11656_v14  ;;  %9900 = vmatprep.subr.bf16.mxu0 %v11661_v15 }
 0x27e   : > { %9941 = vmatprep.subr.bf16.mxu1 %v11664_v16 }
 0x280   : > { %9901 = vmatpush1.bf16.msra.mxu0 %v11659_v17 }
 0x281   : > { %9942 = vmatpush1.bf16.msra.mxu1 %v11662_v18  ;;  %9902 = vmatprep.subr.bf16.mxu0 %v11667_v19  ;;  %v11739_v19 = vld [vmem:[%s13653_s4 + $0xa54] ss:$8 sps:$4 sm:$0xff]  }
 0x282   : > { %9943 = vmatprep.subr.bf16.mxu1 %v11670_v20  ;;  %v11742_v20 = vld [vmem:[%s13653_s4 + $0xb54] ss:$8 sps:$4 sm:$0xff]  }
 0x284   : > { %9903 = vmatpush1.bf16.msra.mxu0 %v11665_v21 }
 0x285   : > { %9944 = vmatpush1.bf16.msra.mxu1 %v11668_v22  ;;  %9904 = vmatprep.subr.bf16.mxu0 %v11673_v23  ;;  %v11737_v23 = vld [vmem:[%s13653_s4 + $0xa50] ss:$8 sps:$4 sm:$0xff]  }
 0x286   : > { %9945 = vmatprep.subr.bf16.mxu1 %v11676_v24  ;;  %v11740_v24 = vld [vmem:[%s13653_s4 + $0xb50] ss:$8 sps:$4 sm:$0xff]  }
 0x288   : > { %9905 = vmatpush1.bf16.msra.mxu0 %v11671_v25 }
 0x289   : > { %9946 = vmatpush1.bf16.msra.mxu1 %v11674_v27  ;;  %9906 = vmatprep.subr.bf16.mxu0 %v11679_v28 }
 0x28a   : > { %9947 = vmatprep.subr.bf16.mxu1 %v11682_v7 }
 0x28c   : > { %9907 = vmatpush2.bf16.msra.mxu0 %v11677_v29  ;;  %v11748_v29 = vld [vmem:[%s13653_s4 + $0xb44] ss:$8 sps:$4 sm:$0xff]  }
 0x28d   : > { %9948 = vmatpush2.bf16.msra.mxu1 %v11680_v31  ;;  %9908 = vmatprep.subr.bf16.mxu0 %v11685_v33  ;;  %v11743_v31 = vld [vmem:[%s13653_s4 + $0xa40] ss:$8 sps:$4 sm:$0xff]  }
 0x28e   : > { %9949 = vmatprep.subr.bf16.mxu1 %v11688_v34  ;;  %v11746_v33 = vld [vmem:[%s13653_s4 + $0xb40] ss:$8 sps:$4 sm:$0xff]   ;;  %v11751_v34 = vld [vmem:[%s13653_s4 + $0xa34] ss:$8 sps:$4 sm:$0xff]  }
 0x290   : > { %9909 = vmatpush2.bf16.msra.mxu0 %v11683_v35  ;;  %v11754_v35 = vld [vmem:[%s13653_s4 + $0xb34] ss:$8 sps:$4 sm:$0xff]  }
 0x291   : > { %9950 = vmatpush2.bf16.msra.mxu1 %v11686_v37  ;;  %9910 = vmatprep.subr.bf16.mxu0 %v11691_v38  ;;  %v11749_v37 = vld [vmem:[%s13653_s4 + $0xa30] ss:$8 sps:$4 sm:$0xff]  }
 0x292   : > { %9951 = vmatprep.subr.bf16.mxu1 %v11694_v39  ;;  %v11752_v38 = vld [vmem:[%s13653_s4 + $0xb30] ss:$8 sps:$4 sm:$0xff]   ;;  %v11757_v39 = vld [vmem:[%s13653_s4 + $0xa24] ss:$8 sps:$4 sm:$0xff]  }
 0x294   : > { %9911 = vmatpush2.bf16.msra.mxu0 %v11689_v30  ;;  %v11760_v30 = vld [vmem:[%s13653_s4 + $0xb24] ss:$8 sps:$4 sm:$0xff]  }
 0x295   : > { %9952 = vmatpush2.bf16.msra.mxu1 %v11692_v40  ;;  %9912 = vmatprep.subr.bf16.mxu0 %v11697_v41  ;;  %v11755_v40 = vld [vmem:[%s13653_s4 + $0xa20] ss:$8 sps:$4 sm:$0xff]  }
 0x296   : > { %9953 = vmatprep.subr.bf16.mxu1 %v11700_v42  ;;  %v11758_v41 = vld [vmem:[%s13653_s4 + $0xb20] ss:$8 sps:$4 sm:$0xff]   ;;  %v11763_v42 = vld [vmem:[%s13653_s4 + $0xa14] ss:$8 sps:$4 sm:$0xff]  }
 0x298   : > { %9913 = vmatpush2.bf16.msra.mxu0 %v11695_v43  ;;  %v11766_v43 = vld [vmem:[%s13653_s4 + $0xb14] ss:$8 sps:$4 sm:$0xff]  }
 0x299   : > { %9954 = vmatpush2.bf16.msra.mxu1 %v11698_v45  ;;  %9914 = vmatprep.subr.bf16.mxu0 %v11703_v46  ;;  %v11761_v45 = vld [vmem:[%s13653_s4 + $0xa10] ss:$8 sps:$4 sm:$0xff]  }
 0x29a   : > { %9955 = vmatprep.subr.bf16.mxu1 %v11706_v47  ;;  %v11764_v46 = vld [vmem:[%s13653_s4 + $0xb10] ss:$8 sps:$4 sm:$0xff]   ;;  %v11769_v47 = vld [vmem:[%s13653_s4 + $0xa04] ss:$8 sps:$4 sm:$0xff]  }
 0x29c   : > { %9915 = vmatpush2.bf16.msra.mxu0 %v11701_v48  ;;  %v11772_v48 = vld [vmem:[%s13653_s4 + $0xb04] ss:$8 sps:$4 sm:$0xff]  }
 0x29d   : > { %9956 = vmatpush2.bf16.msra.mxu1 %v11704_v49  ;;  %9916 = vmatprep.subr.bf16.mxu0 %v11709_v51  ;;  %v11767_v49 = vld [vmem:[%s13653_s4 + $0xa00] ss:$8 sps:$4 sm:$0xff]  }
 0x29e   : > { %9957 = vmatprep.subr.bf16.mxu1 %v11712_v52  ;;  %v11770_v51 = vld [vmem:[%s13653_s4 + $0xb00] ss:$8 sps:$4 sm:$0xff]   ;;  %v11775_v52 = vld [vmem:[%s13653_s4 + $0xaf4] ss:$8 sps:$4 sm:$0xff]  }
 0x2a0   : > { %9917 = vmatpush2.bf16.msra.mxu0 %v11707_v53  ;;  %v11773_v53 = vld [vmem:[%s13653_s4 + $0xaf0] ss:$8 sps:$4 sm:$0xff]  }
 0x2a1   : > { %9958 = vmatpush2.bf16.msra.mxu1 %v11710_v54  ;;  %9918 = vmatprep.subr.bf16.mxu0 %v11715_v55  ;;  %v11776_v54 = vld [vmem:[%s13653_s4 + $0xbf0] ss:$8 sps:$4 sm:$0xff]   ;;  %v11781_v55 = vld [vmem:[%s13653_s4 + $0xae4] ss:$8 sps:$4 sm:$0xff]  }
 0x2a2   : > { %9959 = vmatprep.subr.bf16.mxu1 %v11718_v56  ;;  %v11784_v56 = vld [vmem:[%s13653_s4 + $0xbe4] ss:$8 sps:$4 sm:$0xff]  }
 0x2a4   : > { %9919 = vmatpush2.bf16.msra.mxu0 %v11713_v32  ;;  %v11779_v32 = vld [vmem:[%s13653_s4 + $0xae0] ss:$8 sps:$4 sm:$0xff]  }
 0x2a5   : > { %9960 = vmatpush2.bf16.msra.mxu1 %v11716_v59  ;;  %9920 = vmatprep.subr.bf16.mxu0 %v11721_v60  ;;  %v11782_v59 = vld [vmem:[%s13653_s4 + $0xbe0] ss:$8 sps:$4 sm:$0xff]   ;;  %v11787_v60 = vld [vmem:[%s13653_s4 + $0xad4] ss:$8 sps:$4 sm:$0xff]  }
 0x2a6   : > { %9961 = vmatprep.subr.bf16.mxu1 %v11724_v61  ;;  %v11790_v61 = vld [vmem:[%s13653_s4 + $0xbd4] ss:$8 sps:$4 sm:$0xff]  }
 0x2a8   : > { %9921 = vmatpush2.bf16.msra.mxu0 %v11719_v1  ;;  %v11793_v1 = vld [vmem:[%s13653_s4 + $0xac4] ss:$8 sps:$4 sm:$0xff]  }
 0x2a9   : > { %9962 = vmatpush2.bf16.msra.mxu1 %v11722_v2  ;;  %9972 = vmatprep.subr.bf16.mxu0 %v11727_v3  ;;  %v11796_v2 = vld [vmem:[%s13653_s4 + $0xbc4] ss:$8 sps:$4 sm:$0xff]   ;;  %v11791_v3 = vld [vmem:[%s13653_s4 + $0xac0] ss:$8 sps:$4 sm:$0xff]  }
 0x2aa   : > { %10013 = vmatprep.subr.bf16.mxu1 %v11730_v4  ;;  %v11794_v4 = vld [vmem:[%s13653_s4 + $0xbc0] ss:$8 sps:$4 sm:$0xff]  }
 0x2ab   : > { %v9678_v14 = vpop.f32.mrf.mxu0  ;;  %9923 = vmatmul.mubr.bf16.vlgmr.msra.gmra.mxu0 %v6198_v0  ;;  %v11788_v0 = vld [vmem:[%s13653_s4 + $0xbd0] ss:$8 sps:$4 sm:$0xff]  }
 0x2ac   : > { %v9719_v15 = vpop.f32.mrf.mxu1  ;;  %9964 = vmatmul.mubr.bf16.vlgmr.msra.gmra.mxu1 %v6220_v9  ;;  %v9679_v16 = vadd.f32 %v9678_v14, %v13969_v58  ;;  %9973 = vmatpush1.bf16.msra.mxu0 %v11725_v5  ;;  %v11799_v5 = vld [vmem:[%s13653_s4 + $0xab4] ss:$8 sps:$4 sm:$0xff]   ;;  %v11800_v9 = vld [vmem:[%s13653_s4 + $0xbb0] ss:$8 sps:$4 sm:$0xff]  }
 0x2ad   : > { %10014 = vmatpush1.bf16.msra.mxu1 %v11728_v6  ;;  %v9680_v17 = vpop.f32.mrf.mxu0  ;;  %9974 = vmatprep.subr.bf16.mxu0 %v11733_v36  ;;  %v11802_v6 = vld [vmem:[%s13653_s4 + $0xbb4] ss:$8 sps:$4 sm:$0xff]   ;;  %v11805_v36 = vld [vmem:[%s13653_s4 + $0xaa4] ss:$8 sps:$4 sm:$0xff]  }
 0x2ae   : > { %v9721_v18 = vpop.f32.mrf.mxu1  ;;  %10015 = vmatprep.subr.bf16.mxu1 %v11736_v10  ;;  %v14050_v21 = vadd.f32 %v9719_v15, %v9679_v16  ;;  %v9681_v22 = vadd.f32 %v9680_v17, %v13973_v63  ;;  %10004 = vmatprep.mubr.bf16.mxu0 %v6219_v8  ;;  %v11745_v63 = vld [vmem:[%s13653_s4 + $0xa44] ss:$8 sps:$4 sm:$0xff]   ;;  %v11797_v8 = vld [vmem:[%s13653_s4 + $0xab0] ss:$8 sps:$4 sm:$0xff]   ;;  %v11811_v14 = vld [vmem:[%s13653_s4 + $0xa94] ss:$8 sps:$4 sm:$0xff]  }
 0x2af   : > { %10045 = vmatprep.mubr.bf16.mxu1 %v6223_v13  ;;  %v9682_v58 = vpop.f32.mrf.mxu0  ;;  %v11808_v10 = vld [vmem:[%s13653_s4 + $0xba4] ss:$8 sps:$4 sm:$0xff]   ;;  %v11806_v13 = vld [vmem:[%s13653_s4 + $0xba0] ss:$8 sps:$4 sm:$0xff]   ;;  %v11814_v15 = vld [vmem:[%s13653_s4 + $0xb94] ss:$8 sps:$4 sm:$0xff]  }
 0x2b0   : > { %v9723_v25 = vpop.f32.mrf.mxu1  ;;  %v14055_v27 = vadd.f32 %v9721_v18, %v9681_v22  ;;  %9975 = vmatpush1.bf16.msra.mxu0 %v11731_v11  ;;  %v14100_v11 = vld [vmem:[%s13641_s24 + $0x18] sm:$0xff]  ;;  %v11818_v58 = vld [vmem:[%s13653_s4 + $0xb80] ss:$8 sps:$4 sm:$0xff]  }
 0x2b1   : > { %10016 = vmatpush1.bf16.msra.mxu1 %v11734_v12  ;;  %v9683_v28 = vpop.f32.mrf.mxu0  ;;  %9976 = vmatprep.subr.bf16.mxu0 %v11739_v19  ;;  %v11803_v12 = vld [vmem:[%s13653_s4 + $0xaa0] ss:$8 sps:$4 sm:$0xff]   ;;  %v14108_v16 = vrot.slane %v14100_v11, %v13703_v50  ;;  %v11809_v17 = vld [vmem:[%s13653_s4 + $0xa90] ss:$8 sps:$4 sm:$0xff]   ;;  %v11817_v19 = vld [vmem:[%s13653_s4 + $0xa84] ss:$8 sps:$4 sm:$0xff]  }
 0x2b2   : > { %v9724_v7 = vpop.f32.mrf.mxu1  ;;  %10017 = vmatprep.subr.bf16.mxu1 %v11742_v20  ;;  %v11812_v18 = vld [vmem:[%s13653_s4 + $0xb90] ss:$8 sps:$4 sm:$0xff]   ;;  %v11820_v20 = vld [vmem:[%s13653_s4 + $0xb84] ss:$8 sps:$4 sm:$0xff]   ;;  %v11824_v25 = vld [vmem:[%s13653_s4 + $0xc74] ss:$8 sps:$4 sm:$0xff]  }
 0x2b3   : > { %v6239_v22 = vcombine.high %v14108_v16, %v14108_v16  ;;  %v11827_v28 = vld [vmem:[%s13653_s4 + $0xd74] ss:$8 sps:$4 sm:$0xff]   ;;  %v11822_v7 = vld [vmem:[%s13653_s4 + $0xc70] ss:$8 sps:$4 sm:$0xff]  }
 0x2b4   : > { %9977 = vmatpush1.bf16.msra.mxu0 %v11737_v23  ;;  %v6205_v23 = vrot.slane %v14026_v57, %v13703_v50  ;;  %v11830_v57 = vld [vmem:[%s13653_s4 + $0xc64] ss:$8 sps:$4 sm:$0xff]  }
 0x2b5   : > { %10018 = vmatpush1.bf16.msra.mxu1 %v11740_v24  ;;  %9978 = vmatprep.subr.bf16.mxu0 %v11745_v63  ;;  %v11815_v24 = vld [vmem:[%s13653_s4 + $0xa80] ss:$8 sps:$4 sm:$0xff]   ;;  %v11825_v63 = vld [vmem:[%s13653_s4 + $0xd70] ss:$8 sps:$4 sm:$0xff]  }
 0x2b6   : > { %10019 = vmatprep.subr.bf16.mxu1 %v11748_v29  ;;  %v6261_v29 = vrot.slane %v6239_v22, %v13703_v50  ;;  %v11887_v22 = vld [vmem:[%s13653_s4 + $0xdd4] ss:$8 sps:$4 sm:$0xff]  }
 0x2b8   : > { %9979 = vmatpush1.bf16.msra.mxu0 %v11743_v31  ;;  %v6221_v31 = vcombine.high %v6205_v23, %v6205_v23 }
 0x2b9   : > { %10020 = vmatpush1.bf16.msra.mxu1 %v11746_v33  ;;  %9980 = vmatprep.subr.bf16.mxu0 %v11751_v34  ;;  %v11833_v33 = vld [vmem:[%s13653_s4 + $0xd64] ss:$8 sps:$4 sm:$0xff]   ;;  %v6271_v34 = vcombine.high %v6261_v29, %v6261_v29 }
 0x2ba   : > { %10021 = vmatprep.subr.bf16.mxu1 %v11754_v35 }
 0x2bc   : > { %9981 = vmatpush1.bf16.msra.mxu0 %v11749_v37 }
 0x2bd   : > { %10022 = vmatpush1.bf16.msra.mxu1 %v11752_v38  ;;  %9982 = vmatprep.subr.bf16.mxu0 %v11757_v39  ;;  %v11828_v39 = vld [vmem:[%s13653_s4 + $0xc60] ss:$8 sps:$4 sm:$0xff]  }
 0x2be   : > { %10023 = vmatprep.subr.bf16.mxu1 %v11760_v30  ;;  %v11831_v30 = vld [vmem:[%s13653_s4 + $0xd60] ss:$8 sps:$4 sm:$0xff]  }
 0x2c0   : > { %9983 = vmatpush1.bf16.msra.mxu0 %v11755_v40 }
 0x2c1   : > { %10024 = vmatpush1.bf16.msra.mxu1 %v11758_v41  ;;  %9984 = vmatprep.subr.bf16.mxu0 %v11763_v42  ;;  %v11836_v42 = vld [vmem:[%s13653_s4 + $0xc54] ss:$8 sps:$4 sm:$0xff]  }
 0x2c2   : > { %10025 = vmatprep.subr.bf16.mxu1 %v11766_v43  ;;  %v11839_v43 = vld [vmem:[%s13653_s4 + $0xd54] ss:$8 sps:$4 sm:$0xff]  }
 0x2c4   : > { %9985 = vmatpush1.bf16.msra.mxu0 %v11761_v45 }
 0x2c5   : > { %10026 = vmatpush1.bf16.msra.mxu1 %v11764_v46  ;;  %9986 = vmatprep.subr.bf16.mxu0 %v11769_v47 }
 0x2c6   : > { %10027 = vmatprep.subr.bf16.mxu1 %v11772_v48 }
 0x2c8   : > { %9987 = vmatpush1.bf16.msra.mxu0 %v11767_v49  ;;  %v11834_v49 = vld [vmem:[%s13653_s4 + $0xc50] ss:$8 sps:$4 sm:$0xff]  }
 0x2c9   : > { %10028 = vmatpush1.bf16.msra.mxu1 %v11770_v51  ;;  %9988 = vmatprep.subr.bf16.mxu0 %v11775_v52  ;;  %v11837_v51 = vld [vmem:[%s13653_s4 + $0xd50] ss:$8 sps:$4 sm:$0xff]  }
 0x2ca   : > { %10029 = vmatprep.subr.bf16.mxu1 %v11778_v26 }
 0x2cc   : > { %9989 = vmatpush2.bf16.msra.mxu0 %v11773_v53  ;;  %v11845_v53 = vld [vmem:[%s13653_s4 + $0xd44] ss:$8 sps:$4 sm:$0xff]  }
 0x2cd   : > { %10030 = vmatpush2.bf16.msra.mxu1 %v11776_v54  ;;  %9990 = vmatprep.subr.bf16.mxu0 %v11781_v55  ;;  %v11840_v54 = vld [vmem:[%s13653_s4 + $0xc40] ss:$8 sps:$4 sm:$0xff]  }
 0x2ce   : > { %10031 = vmatprep.subr.bf16.mxu1 %v11784_v56  ;;  %v11843_v55 = vld [vmem:[%s13653_s4 + $0xd40] ss:$8 sps:$4 sm:$0xff]   ;;  %v11848_v56 = vld [vmem:[%s13653_s4 + $0xc34] ss:$8 sps:$4 sm:$0xff]  }
 0x2d0   : > { %9991 = vmatpush2.bf16.msra.mxu0 %v11779_v32  ;;  %v11851_v32 = vld [vmem:[%s13653_s4 + $0xd34] ss:$8 sps:$4 sm:$0xff]  }
 0x2d1   : > { %10032 = vmatpush2.bf16.msra.mxu1 %v11782_v59  ;;  %9992 = vmatprep.subr.bf16.mxu0 %v11787_v60  ;;  %v11846_v59 = vld [vmem:[%s13653_s4 + $0xc30] ss:$8 sps:$4 sm:$0xff]  }
 0x2d2   : > { %10033 = vmatprep.subr.bf16.mxu1 %v11790_v61  ;;  %v11849_v60 = vld [vmem:[%s13653_s4 + $0xd30] ss:$8 sps:$4 sm:$0xff]   ;;  %v11854_v61 = vld [vmem:[%s13653_s4 + $0xc24] ss:$8 sps:$4 sm:$0xff]  }
 0x2d4   : > { %9993 = vmatpush2.bf16.msra.mxu0 %v11785_v62  ;;  %v11857_v62 = vld [vmem:[%s13653_s4 + $0xd24] ss:$8 sps:$4 sm:$0xff]  }
 0x2d5   : > { %10034 = vmatpush2.bf16.msra.mxu1 %v11788_v0  ;;  %9994 = vmatprep.subr.bf16.mxu0 %v11793_v1  ;;  %v11852_v0 = vld [vmem:[%s13653_s4 + $0xc20] ss:$8 sps:$4 sm:$0xff]  }
 0x2d6   : > { %10035 = vmatprep.subr.bf16.mxu1 %v11796_v2  ;;  %v11855_v1 = vld [vmem:[%s13653_s4 + $0xd20] ss:$8 sps:$4 sm:$0xff]   ;;  %v11860_v2 = vld [vmem:[%s13653_s4 + $0xc14] ss:$8 sps:$4 sm:$0xff]  }
 0x2d8   : > { %9995 = vmatpush2.bf16.msra.mxu0 %v11791_v3  ;;  %v11863_v3 = vld [vmem:[%s13653_s4 + $0xd14] ss:$8 sps:$4 sm:$0xff]  }
 0x2d9   : > { %10036 = vmatpush2.bf16.msra.mxu1 %v11794_v4  ;;  %9996 = vmatprep.subr.bf16.mxu0 %v11799_v5  ;;  %v11858_v4 = vld [vmem:[%s13653_s4 + $0xc10] ss:$8 sps:$4 sm:$0xff]  }
 0x2da   : > { %10037 = vmatprep.subr.bf16.mxu1 %v11802_v6  ;;  %v11861_v5 = vld [vmem:[%s13653_s4 + $0xd10] ss:$8 sps:$4 sm:$0xff]   ;;  %v11866_v6 = vld [vmem:[%s13653_s4 + $0xc04] ss:$8 sps:$4 sm:$0xff]  }
 0x2dc   : > { %9997 = vmatpush2.bf16.msra.mxu0 %v11797_v8  ;;  %v11869_v8 = vld [vmem:[%s13653_s4 + $0xd04] ss:$8 sps:$4 sm:$0xff]  }
 0x2dd   : > { %10038 = vmatpush2.bf16.msra.mxu1 %v11800_v9  ;;  %9998 = vmatprep.subr.bf16.mxu0 %v11805_v36  ;;  %v11864_v9 = vld [vmem:[%s13653_s4 + $0xc00] ss:$8 sps:$4 sm:$0xff]  }
 0x2de   : > { %10039 = vmatprep.subr.bf16.mxu1 %v11808_v10  ;;  %v11867_v36 = vld [vmem:[%s13653_s4 + $0xd00] ss:$8 sps:$4 sm:$0xff]   ;;  %v11872_v10 = vld [vmem:[%s13653_s4 + $0xcf4] ss:$8 sps:$4 sm:$0xff]  }
 0x2e0   : > { %9999 = vmatpush2.bf16.msra.mxu0 %v11803_v12  ;;  %v11875_v12 = vld [vmem:[%s13653_s4 + $0xdf4] ss:$8 sps:$4 sm:$0xff]  }
 0x2e1   : > { %10040 = vmatpush2.bf16.msra.mxu1 %v11806_v13  ;;  %10000 = vmatprep.subr.bf16.mxu0 %v11811_v14  ;;  %v11870_v13 = vld [vmem:[%s13653_s4 + $0xcf0] ss:$8 sps:$4 sm:$0xff]  }
 0x2e2   : > { %10041 = vmatprep.subr.bf16.mxu1 %v11814_v15  ;;  %v11873_v14 = vld [vmem:[%s13653_s4 + $0xdf0] ss:$8 sps:$4 sm:$0xff]   ;;  %v11878_v15 = vld [vmem:[%s13653_s4 + $0xce4] ss:$8 sps:$4 sm:$0xff]  }
 0x2e4   : > { %10001 = vmatpush2.bf16.msra.mxu0 %v11809_v17  ;;  %v11881_v17 = vld [vmem:[%s13653_s4 + $0xde4] ss:$8 sps:$4 sm:$0xff]  }
 0x2e5   : > { %10042 = vmatpush2.bf16.msra.mxu1 %v11812_v18  ;;  %10002 = vmatprep.subr.bf16.mxu0 %v11817_v19  ;;  %v11876_v18 = vld [vmem:[%s13653_s4 + $0xce0] ss:$8 sps:$4 sm:$0xff]  }
 0x2e6   : > { %10043 = vmatprep.subr.bf16.mxu1 %v11820_v20  ;;  %v11879_v19 = vld [vmem:[%s13653_s4 + $0xde0] ss:$8 sps:$4 sm:$0xff]   ;;  %v11884_v20 = vld [vmem:[%s13653_s4 + $0xcd4] ss:$8 sps:$4 sm:$0xff]  }
 0x2e8   : > { %10003 = vmatpush2.bf16.msra.mxu0 %v11815_v24  ;;  %v11885_v24 = vld [vmem:[%s13653_s4 + $0xdd0] ss:$8 sps:$4 sm:$0xff]  }
 0x2e9   : > { %10044 = vmatpush2.bf16.msra.mxu1 %v11818_v58  ;;  %10054 = vmatprep.subr.bf16.mxu0 %v11824_v25  ;;  %v11890_v58 = vld [vmem:[%s13653_s4 + $0xcc4] ss:$8 sps:$4 sm:$0xff]  }
 0x2ea   : > { %10095 = vmatprep.subr.bf16.mxu1 %v11827_v28  ;;  %v11893_v25 = vld [vmem:[%s13653_s4 + $0xdc4] ss:$8 sps:$4 sm:$0xff]   ;;  %v11888_v28 = vld [vmem:[%s13653_s4 + $0xcc0] ss:$8 sps:$4 sm:$0xff]  }
 0x2eb   : > { %v9760_v35 = vpop.f32.mrf.mxu0  ;;  %10005 = vmatmul.mubr.bf16.vlgmr.msra.gmra.mxu0 %v6205_v23  ;;  %v11882_v23 = vld [vmem:[%s13653_s4 + $0xcd0] ss:$8 sps:$4 sm:$0xff]  }
 0x2ec   : > { %v9801_v37 = vpop.f32.mrf.mxu1  ;;  %10046 = vmatmul.mubr.bf16.vlgmr.msra.gmra.mxu1 %v6221_v31  ;;  %v9761_v38 = vadd.f32 %v9760_v35, %v14050_v21  ;;  %10055 = vmatpush1.bf16.msra.mxu0 %v11822_v7  ;;  %v11891_v7 = vld [vmem:[%s13653_s4 + $0xdc0] ss:$8 sps:$4 sm:$0xff]   ;;  %v11894_v31 = vld [vmem:[%s13653_s4 + $0xcb0] ss:$8 sps:$4 sm:$0xff]   ;;  %v6224_v35 = vcombine.high %v14100_v11, %v14100_v11 }
 0x2ed   : > { %10096 = vmatpush1.bf16.msra.mxu1 %v11825_v63  ;;  %v9762_v40 = vpop.f32.mrf.mxu0  ;;  %10056 = vmatprep.subr.bf16.mxu0 %v11830_v57  ;;  %v11896_v63 = vld [vmem:[%s13653_s4 + $0xcb4] ss:$8 sps:$4 sm:$0xff]   ;;  %v11897_v57 = vld [vmem:[%s13653_s4 + $0xdb0] ss:$8 sps:$4 sm:$0xff]  }
 0x2ee   : > { %v9803_v41 = vpop.f32.mrf.mxu1  ;;  %10097 = vmatprep.subr.bf16.mxu1 %v11833_v33  ;;  %v14132_v45 = vadd.f32 %v9801_v37, %v9761_v38  ;;  %v9763_v46 = vadd.f32 %v9762_v40, %v14055_v27  ;;  %10086 = vmatprep.mubr.bf16.mxu0 %v6261_v29  ;;  %v11842_v27 = vld [vmem:[%s13653_s4 + $0xc44] ss:$8 sps:$4 sm:$0xff]   ;;  %v11899_v29 = vld [vmem:[%s13653_s4 + $0xdb4] ss:$8 sps:$4 sm:$0xff]   ;;  %v11900_v37 = vld [vmem:[%s13653_s4 + $0xca0] ss:$8 sps:$4 sm:$0xff]   ;;  %v14188_v40 = vrot.slane %v6224_v35, %v13703_v50 }
 0x2ef   : > { %10127 = vmatprep.mubr.bf16.mxu1 %v6271_v34  ;;  %v9764_v21 = vpop.f32.mrf.mxu0  ;;  %v11902_v33 = vld [vmem:[%s13653_s4 + $0xca4] ss:$8 sps:$4 sm:$0xff]   ;;  %v11903_v38 = vld [vmem:[%s13653_s4 + $0xda0] ss:$8 sps:$4 sm:$0xff]   ;;  %v11906_v11 = vld [vmem:[%s13653_s4 + $0xc90] ss:$8 sps:$4 sm:$0xff]  }
 0x2f0   : > { %v9805_v47 = vpop.f32.mrf.mxu1  ;;  %v14135_v48 = vadd.f32 %v9803_v41, %v9763_v46  ;;  %10057 = vmatpush1.bf16.msra.mxu0 %v11828_v39  ;;  %v11905_v34 = vld [vmem:[%s13653_s4 + $0xda4] ss:$8 sps:$4 sm:$0xff]   ;;  %v11908_v39 = vld [vmem:[%s13653_s4 + $0xc94] ss:$8 sps:$4 sm:$0xff]   ;;  %v11909_v41 = vld [vmem:[%s13653_s4 + $0xd90] ss:$8 sps:$4 sm:$0xff]   ;;  %v6240_v46 = vcombine.high %v14188_v40, %v14188_v40  ;;  %v6247_v21 = vrot.slane %v14108_v16, %v13703_v50 }
 0x2f1   : > { %10098 = vmatpush1.bf16.msra.mxu1 %v11831_v30  ;;  %v9765_v52 = vpop.f32.mrf.mxu0  ;;  %10058 = vmatprep.subr.bf16.mxu0 %v11836_v42  ;;  %v11911_v30 = vld [vmem:[%s13653_s4 + $0xd94] ss:$8 sps:$4 sm:$0xff]   ;;  %v11914_v42 = vld [vmem:[%s13653_s4 + $0xc84] ss:$8 sps:$4 sm:$0xff]   ;;  %v11912_v47 = vld [vmem:[%s13653_s4 + $0xc80] ss:$8 sps:$4 sm:$0xff]  }
 0x2f2   : > { %v9806_v26 = vpop.f32.mrf.mxu1  ;;  %10099 = vmatprep.subr.bf16.mxu1 %v11839_v43  ;;  %v11917_v43 = vld [vmem:[%s13653_s4 + $0xd84] ss:$8 sps:$4 sm:$0xff]   ;;  %v11923_v52 = vld [vmem:[%s13653_s4 + $0xf74] ss:$8 sps:$4 sm:$0xff]  }
 0x2f3   : > { %v6268_v26 = vrot.slane %v6240_v46, %v13703_v50  ;;  %v11926_v16 = vld [vmem:[%s13653_s4 + $0xe64] ss:$8 sps:$4 sm:$0xff]   ;;  %v11971_v35 = vld [vmem:[%s13653_s4 + $0xff4] ss:$8 sps:$4 sm:$0xff]   ;;  %v11978_v46 = vld [vmem:[%s13653_s4 + $0xed0] ss:$8 sps:$4 sm:$0xff]  }
 0x2f4   : > { %10059 = vmatpush1.bf16.msra.mxu0 %v11834_v49  ;;  %v11915_v49 = vld [vmem:[%s13653_s4 + $0xd80] ss:$8 sps:$4 sm:$0xff]  }
 0x2f5   : > { %10100 = vmatpush1.bf16.msra.mxu1 %v11837_v51  ;;  %10060 = vmatprep.subr.bf16.mxu0 %v11842_v27  ;;  %v11920_v51 = vld [vmem:[%s13653_s4 + $0xe74] ss:$8 sps:$4 sm:$0xff]   ;;  %v6269_v27 = vcombine.high %v6247_v21, %v6247_v21 }
 0x2f6   : > { %10101 = vmatprep.subr.bf16.mxu1 %v11845_v53  ;;  %v11918_v53 = vld [vmem:[%s13653_s4 + $0xe70] ss:$8 sps:$4 sm:$0xff]  }
 0x2f8   : > { %10061 = vmatpush1.bf16.msra.mxu0 %v11840_v54  ;;  %v11921_v54 = vld [vmem:[%s13653_s4 + $0xf70] ss:$8 sps:$4 sm:$0xff]  }
 0x2f9   : > { %10102 = vmatpush1.bf16.msra.mxu1 %v11843_v55  ;;  %10062 = vmatprep.subr.bf16.mxu0 %v11848_v56  ;;  %v11929_v55 = vld [vmem:[%s13653_s4 + $0xf64] ss:$8 sps:$4 sm:$0xff]   ;;  %v6272_v56 = vcombine.high %v6268_v26, %v6268_v26 }
 0x2fa   : > { %10103 = vmatprep.subr.bf16.mxu1 %v11851_v32 }
 0x2fc   : > { %10063 = vmatpush1.bf16.msra.mxu0 %v11846_v59 }
 0x2fd   : > { %10104 = vmatpush1.bf16.msra.mxu1 %v11849_v60  ;;  %10064 = vmatprep.subr.bf16.mxu0 %v11854_v61  ;;  %v11924_v61 = vld [vmem:[%s13653_s4 + $0xe60] ss:$8 sps:$4 sm:$0xff]  }
 0x2fe   : > { %10105 = vmatprep.subr.bf16.mxu1 %v11857_v62  ;;  %v11927_v62 = vld [vmem:[%s13653_s4 + $0xf60] ss:$8 sps:$4 sm:$0xff]  }
 0x300   : > { %10065 = vmatpush1.bf16.msra.mxu0 %v11852_v0 }
 0x301   : > { %10106 = vmatpush1.bf16.msra.mxu1 %v11855_v1  ;;  %10066 = vmatprep.subr.bf16.mxu0 %v11860_v2  ;;  %v11932_v2 = vld [vmem:[%s13653_s4 + $0xe54] ss:$8 sps:$4 sm:$0xff]  }
 0x302   : > { %10107 = vmatprep.subr.bf16.mxu1 %v11863_v3  ;;  %v11935_v3 = vld [vmem:[%s13653_s4 + $0xf54] ss:$8 sps:$4 sm:$0xff]  }
 0x304   : > { %10067 = vmatpush1.bf16.msra.mxu0 %v11858_v4 }
 0x305   : > { %10108 = vmatpush1.bf16.msra.mxu1 %v11861_v5  ;;  %10068 = vmatprep.subr.bf16.mxu0 %v11866_v6 }
 0x306   : > { %10109 = vmatprep.subr.bf16.mxu1 %v11869_v8 }
 0x308   : > { %10069 = vmatpush1.bf16.msra.mxu0 %v11864_v9  ;;  %v11930_v9 = vld [vmem:[%s13653_s4 + $0xe50] ss:$8 sps:$4 sm:$0xff]  }
 0x309   : > { %10110 = vmatpush1.bf16.msra.mxu1 %v11867_v36  ;;  %10070 = vmatprep.subr.bf16.mxu0 %v11872_v10  ;;  %v11933_v36 = vld [vmem:[%s13653_s4 + $0xf50] ss:$8 sps:$4 sm:$0xff]  }
 0x30a   : > { %10111 = vmatprep.subr.bf16.mxu1 %v11875_v12 }
 0x30c   : > { %10071 = vmatpush2.bf16.msra.mxu0 %v11870_v13  ;;  %v11941_v13 = vld [vmem:[%s13653_s4 + $0xf44] ss:$8 sps:$4 sm:$0xff]  }
 0x30d   : > { %10112 = vmatpush2.bf16.msra.mxu1 %v11873_v14  ;;  %10072 = vmatprep.subr.bf16.mxu0 %v11878_v15  ;;  %v11936_v14 = vld [vmem:[%s13653_s4 + $0xe40] ss:$8 sps:$4 sm:$0xff]  }
 0x30e   : > { %10113 = vmatprep.subr.bf16.mxu1 %v11881_v17  ;;  %v11939_v15 = vld [vmem:[%s13653_s4 + $0xf40] ss:$8 sps:$4 sm:$0xff]   ;;  %v11944_v17 = vld [vmem:[%s13653_s4 + $0xe34] ss:$8 sps:$4 sm:$0xff]  }
 0x310   : > { %10073 = vmatpush2.bf16.msra.mxu0 %v11876_v18  ;;  %v11947_v18 = vld [vmem:[%s13653_s4 + $0xf34] ss:$8 sps:$4 sm:$0xff]  }
 0x311   : > { %10114 = vmatpush2.bf16.msra.mxu1 %v11879_v19  ;;  %10074 = vmatprep.subr.bf16.mxu0 %v11884_v20  ;;  %v11942_v19 = vld [vmem:[%s13653_s4 + $0xe30] ss:$8 sps:$4 sm:$0xff]  }
 0x312   : > { %10115 = vmatprep.subr.bf16.mxu1 %v11887_v22  ;;  %v11945_v20 = vld [vmem:[%s13653_s4 + $0xf30] ss:$8 sps:$4 sm:$0xff]   ;;  %v11950_v22 = vld [vmem:[%s13653_s4 + $0xe24] ss:$8 sps:$4 sm:$0xff]  }
 0x314   : > { %10075 = vmatpush2.bf16.msra.mxu0 %v11882_v23  ;;  %v11953_v23 = vld [vmem:[%s13653_s4 + $0xf24] ss:$8 sps:$4 sm:$0xff]  }
 0x315   : > { %10116 = vmatpush2.bf16.msra.mxu1 %v11885_v24  ;;  %10076 = vmatprep.subr.bf16.mxu0 %v11890_v58  ;;  %v11948_v24 = vld [vmem:[%s13653_s4 + $0xe20] ss:$8 sps:$4 sm:$0xff]  }
 0x316   : > { %10117 = vmatprep.subr.bf16.mxu1 %v11893_v25  ;;  %v11951_v58 = vld [vmem:[%s13653_s4 + $0xf20] ss:$8 sps:$4 sm:$0xff]   ;;  %v11956_v25 = vld [vmem:[%s13653_s4 + $0xe14] ss:$8 sps:$4 sm:$0xff]  }
 0x318   : > { %10077 = vmatpush2.bf16.msra.mxu0 %v11888_v28  ;;  %v11959_v28 = vld [vmem:[%s13653_s4 + $0xf14] ss:$8 sps:$4 sm:$0xff]  }
 0x319   : > { %10118 = vmatpush2.bf16.msra.mxu1 %v11891_v7  ;;  %10078 = vmatprep.subr.bf16.mxu0 %v11896_v63  ;;  %v11954_v7 = vld [vmem:[%s13653_s4 + $0xe10] ss:$8 sps:$4 sm:$0xff]  }
 0x31a   : > { %10119 = vmatprep.subr.bf16.mxu1 %v11899_v29  ;;  %v11957_v63 = vld [vmem:[%s13653_s4 + $0xf10] ss:$8 sps:$4 sm:$0xff]   ;;  %v11962_v29 = vld [vmem:[%s13653_s4 + $0xe04] ss:$8 sps:$4 sm:$0xff]  }
 0x31c   : > { %10079 = vmatpush2.bf16.msra.mxu0 %v11894_v31  ;;  %v11965_v31 = vld [vmem:[%s13653_s4 + $0xf04] ss:$8 sps:$4 sm:$0xff]  }
 0x31d   : > { %10120 = vmatpush2.bf16.msra.mxu1 %v11897_v57  ;;  %10080 = vmatprep.subr.bf16.mxu0 %v11902_v33  ;;  %v11960_v57 = vld [vmem:[%s13653_s4 + $0xe00] ss:$8 sps:$4 sm:$0xff]  }
 0x31e   : > { %10121 = vmatprep.subr.bf16.mxu1 %v11905_v34  ;;  %v11963_v33 = vld [vmem:[%s13653_s4 + $0xf00] ss:$8 sps:$4 sm:$0xff]   ;;  %v11968_v34 = vld [vmem:[%s13653_s4 + $0xef4] ss:$8 sps:$4 sm:$0xff]  }
 0x320   : > { %10081 = vmatpush2.bf16.msra.mxu0 %v11900_v37  ;;  %v11966_v37 = vld [vmem:[%s13653_s4 + $0xef0] ss:$8 sps:$4 sm:$0xff]  }
 0x321   : > { %10122 = vmatpush2.bf16.msra.mxu1 %v11903_v38  ;;  %10082 = vmatprep.subr.bf16.mxu0 %v11908_v39  ;;  %v11969_v38 = vld [vmem:[%s13653_s4 + $0xff0] ss:$8 sps:$4 sm:$0xff]   ;;  %v11974_v39 = vld [vmem:[%s13653_s4 + $0xee4] ss:$8 sps:$4 sm:$0xff]  }
 0x322   : > { %10123 = vmatprep.subr.bf16.mxu1 %v11911_v30  ;;  %v11977_v30 = vld [vmem:[%s13653_s4 + $0xfe4] ss:$8 sps:$4 sm:$0xff]  }
 0x324   : > { %10083 = vmatpush2.bf16.msra.mxu0 %v11906_v11  ;;  %v11972_v11 = vld [vmem:[%s13653_s4 + $0xee0] ss:$8 sps:$4 sm:$0xff]  }
 0x325   : > { %10124 = vmatpush2.bf16.msra.mxu1 %v11909_v41  ;;  %10084 = vmatprep.subr.bf16.mxu0 %v11914_v42  ;;  %v11975_v41 = vld [vmem:[%s13653_s4 + $0xfe0] ss:$8 sps:$4 sm:$0xff]   ;;  %v11980_v42 = vld [vmem:[%s13653_s4 + $0xed4] ss:$8 sps:$4 sm:$0xff]  }
 0x326   : > { %10125 = vmatprep.subr.bf16.mxu1 %v11917_v43  ;;  %v11983_v43 = vld [vmem:[%s13653_s4 + $0xfd4] ss:$8 sps:$4 sm:$0xff]  }
 0x328   : > { %10085 = vmatpush2.bf16.msra.mxu0 %v11912_v47  ;;  %v11986_v47 = vld [vmem:[%s13653_s4 + $0xec4] ss:$8 sps:$4 sm:$0xff]  }
 0x329   : > { %10126 = vmatpush2.bf16.msra.mxu1 %v11915_v49  ;;  %10136 = vmatprep.subr.bf16.mxu0 %v11920_v51  ;;  %v11989_v49 = vld [vmem:[%s13653_s4 + $0xfc4] ss:$8 sps:$4 sm:$0xff]   ;;  %v11984_v51 = vld [vmem:[%s13653_s4 + $0xec0] ss:$8 sps:$4 sm:$0xff]  }
 0x32a   : > { %10177 = vmatprep.subr.bf16.mxu1 %v11923_v52  ;;  %v11987_v52 = vld [vmem:[%s13653_s4 + $0xfc0] ss:$8 sps:$4 sm:$0xff]  }
 0x32b   : > { %v9842_v32 = vpop.f32.mrf.mxu0  ;;  %10087 = vmatmul.mubr.bf16.vlgmr.msra.gmra.mxu0 %v6247_v21  ;;  %v11981_v21 = vld [vmem:[%s13653_s4 + $0xfd0] ss:$8 sps:$4 sm:$0xff]  }
 0x32c   : > { %v9883_v59 = vpop.f32.mrf.mxu1  ;;  %10128 = vmatmul.mubr.bf16.vlgmr.msra.gmra.mxu1 %v6269_v27  ;;  %v9843_v60 = vadd.f32 %v9842_v32, %v14132_v45  ;;  %10137 = vmatpush1.bf16.msra.mxu0 %v11918_v53  ;;  %v11995_v27 = vld [vmem:[%s13653_s4 + $0xfb4] ss:$8 sps:$4 sm:$0xff]   ;;  %v11990_v53 = vld [vmem:[%s13653_s4 + $0xeb0] ss:$8 sps:$4 sm:$0xff]   ;;  %v11996_v32 = vld [vmem:[%s13653_s4 + $0xea0] ss:$8 sps:$4 sm:$0xff]  }
 0x32d   : > { %10178 = vmatpush1.bf16.msra.mxu1 %v11921_v54  ;;  %v9844_v0 = vpop.f32.mrf.mxu0  ;;  %10138 = vmatprep.subr.bf16.mxu0 %v11926_v16  ;;  %v11993_v54 = vld [vmem:[%s13653_s4 + $0xfb0] ss:$8 sps:$4 sm:$0xff]   ;;  %v11998_v16 = vld [vmem:[%s13653_s4 + $0xea4] ss:$8 sps:$4 sm:$0xff]  }
 0x32e   : > { %v9885_v1 = vpop.f32.mrf.mxu1  ;;  %10179 = vmatprep.subr.bf16.mxu1 %v11929_v55  ;;  %v14212_v4 = vadd.f32 %v9883_v59, %v9843_v60  ;;  %v9845_v5 = vadd.f32 %v9844_v0, %v14135_v48  ;;  %10168 = vmatprep.mubr.bf16.mxu0 %v6268_v26  ;;  %v11938_v48 = vld [vmem:[%s13653_s4 + $0xe44] ss:$8 sps:$4 sm:$0xff]   ;;  %v11992_v26 = vld [vmem:[%s13653_s4 + $0xeb4] ss:$8 sps:$4 sm:$0xff]   ;;  %v11999_v59 = vld [vmem:[%s13653_s4 + $0xfa0] ss:$8 sps:$4 sm:$0xff]  }
 0x32f   : > { %10209 = vmatprep.mubr.bf16.mxu1 %v6272_v56  ;;  %v9846_v45 = vpop.f32.mrf.mxu0  ;;  %v12001_v55 = vld [vmem:[%s13653_s4 + $0xfa4] ss:$8 sps:$4 sm:$0xff]   ;;  %v14262_v56 = vld [vmem:[%s13641_s24 + $0x20] sm:$0xff]  ;;  %v12002_v0 = vld [vmem:[%s13653_s4 + $0xe90] ss:$8 sps:$4 sm:$0xff]  }
 0x330   : > { %v9887_v6 = vpop.f32.mrf.mxu1  ;;  %v14215_v8 = vadd.f32 %v9885_v1, %v9845_v5  ;;  %10139 = vmatpush1.bf16.msra.mxu0 %v11924_v61  ;;  %v12004_v60 = vld [vmem:[%s13653_s4 + $0xe94] ss:$8 sps:$4 sm:$0xff]   ;;  %v12005_v1 = vld [vmem:[%s13653_s4 + $0xf90] ss:$8 sps:$4 sm:$0xff]   ;;  %v6254_v45 = vrot.slane %v14188_v40, %v13703_v50  ;;  %v12023_v40 = vld [vmem:[%s13653_s4 + $0x1064] ss:$8 sps:$4 sm:$0xff]  }
 0x331   : > { %10180 = vmatpush1.bf16.msra.mxu1 %v11927_v62  ;;  %v9847_v10 = vpop.f32.mrf.mxu0  ;;  %10140 = vmatprep.subr.bf16.mxu0 %v11932_v2  ;;  %v12007_v61 = vld [vmem:[%s13653_s4 + $0xf94] ss:$8 sps:$4 sm:$0xff]   ;;  %v14270_v62 = vrot.slane %v14262_v56, %v13703_v50  ;;  %v12010_v2 = vld [vmem:[%s13653_s4 + $0xe84] ss:$8 sps:$4 sm:$0xff]   ;;  %v12008_v6 = vld [vmem:[%s13653_s4 + $0xe80] ss:$8 sps:$4 sm:$0xff]  }
 0x332   : > { %v9888_v12 = vpop.f32.mrf.mxu1  ;;  %10181 = vmatprep.subr.bf16.mxu1 %v11935_v3  ;;  %v12013_v3 = vld [vmem:[%s13653_s4 + $0xf84] ss:$8 sps:$4 sm:$0xff]   ;;  %v12020_v10 = vld [vmem:[%s13653_s4 + $0x1174] ss:$8 sps:$4 sm:$0xff]  }
 0x333   : > { %v6288_v5 = vcombine.high %v14270_v62, %v14270_v62 }
 0x334   : > { %10141 = vmatpush1.bf16.msra.mxu0 %v11930_v9  ;;  %v12011_v9 = vld [vmem:[%s13653_s4 + $0xf80] ss:$8 sps:$4 sm:$0xff]  }
 0x335   : > { %10182 = vmatpush1.bf16.msra.mxu1 %v11933_v36  ;;  %10142 = vmatprep.subr.bf16.mxu0 %v11938_v48  ;;  %v12017_v36 = vld [vmem:[%s13653_s4 + $0x1074] ss:$8 sps:$4 sm:$0xff]   ;;  %v6310_v12 = vrot.slane %v6288_v5, %v13703_v50  ;;  %v6270_v48 = vcombine.high %v6254_v45, %v6254_v45 }
 0x336   : > { %10183 = vmatprep.subr.bf16.mxu1 %v11941_v13  ;;  %v12015_v13 = vld [vmem:[%s13653_s4 + $0x1070] ss:$8 sps:$4 sm:$0xff]   ;;  %v12080_v5 = vld [vmem:[%s13653_s4 + $0x11d4] ss:$8 sps:$4 sm:$0xff]  }
 0x338   : > { %10143 = vmatpush1.bf16.msra.mxu0 %v11936_v14  ;;  %v12018_v14 = vld [vmem:[%s13653_s4 + $0x1170] ss:$8 sps:$4 sm:$0xff]  }
 0x339   : > { %10184 = vmatpush1.bf16.msra.mxu1 %v11939_v15  ;;  %10144 = vmatprep.subr.bf16.mxu0 %v11944_v17  ;;  %v12026_v15 = vld [vmem:[%s13653_s4 + $0x1164] ss:$8 sps:$4 sm:$0xff]   ;;  %v6320_v17 = vcombine.high %v6310_v12, %v6310_v12 }
 0x33a   : > { %10185 = vmatprep.subr.bf16.mxu1 %v11947_v18 }
 0x33c   : > { %10145 = vmatpush1.bf16.msra.mxu0 %v11942_v19 }
 0x33d   : > { %10186 = vmatpush1.bf16.msra.mxu1 %v11945_v20  ;;  %10146 = vmatprep.subr.bf16.mxu0 %v11950_v22  ;;  %v12021_v22 = vld [vmem:[%s13653_s4 + $0x1060] ss:$8 sps:$4 sm:$0xff]  }
 0x33e   : > { %10187 = vmatprep.subr.bf16.mxu1 %v11953_v23  ;;  %v12024_v23 = vld [vmem:[%s13653_s4 + $0x1160] ss:$8 sps:$4 sm:$0xff]  }
 0x340   : > { %10147 = vmatpush1.bf16.msra.mxu0 %v11948_v24 }
 0x341   : > { %10188 = vmatpush1.bf16.msra.mxu1 %v11951_v58  ;;  %10148 = vmatprep.subr.bf16.mxu0 %v11956_v25  ;;  %v12029_v25 = vld [vmem:[%s13653_s4 + $0x1054] ss:$8 sps:$4 sm:$0xff]  }
 0x342   : > { %10189 = vmatprep.subr.bf16.mxu1 %v11959_v28  ;;  %v12032_v28 = vld [vmem:[%s13653_s4 + $0x1154] ss:$8 sps:$4 sm:$0xff]  }
 0x344   : > { %10149 = vmatpush1.bf16.msra.mxu0 %v11954_v7 }
 0x345   : > { %10190 = vmatpush1.bf16.msra.mxu1 %v11957_v63  ;;  %10150 = vmatprep.subr.bf16.mxu0 %v11962_v29 }
 0x346   : > { %10191 = vmatprep.subr.bf16.mxu1 %v11965_v31 }
 0x348   : > { %10151 = vmatpush1.bf16.msra.mxu0 %v11960_v57  ;;  %v12027_v57 = vld [vmem:[%s13653_s4 + $0x1050] ss:$8 sps:$4 sm:$0xff]  }
 0x349   : > { %10192 = vmatpush1.bf16.msra.mxu1 %v11963_v33  ;;  %10152 = vmatprep.subr.bf16.mxu0 %v11968_v34  ;;  %v12030_v33 = vld [vmem:[%s13653_s4 + $0x1150] ss:$8 sps:$4 sm:$0xff]  }
 0x34a   : > { %10193 = vmatprep.subr.bf16.mxu1 %v11971_v35 }
 0x34c   : > { %10153 = vmatpush2.bf16.msra.mxu0 %v11966_v37  ;;  %v12038_v37 = vld [vmem:[%s13653_s4 + $0x1144] ss:$8 sps:$4 sm:$0xff]  }
 0x34d   : > { %10194 = vmatpush2.bf16.msra.mxu1 %v11969_v38  ;;  %10154 = vmatprep.subr.bf16.mxu0 %v11974_v39  ;;  %v12033_v38 = vld [vmem:[%s13653_s4 + $0x1040] ss:$8 sps:$4 sm:$0xff]  }
 0x34e   : > { %10195 = vmatprep.subr.bf16.mxu1 %v11977_v30  ;;  %v12036_v39 = vld [vmem:[%s13653_s4 + $0x1140] ss:$8 sps:$4 sm:$0xff]   ;;  %v12041_v30 = vld [vmem:[%s13653_s4 + $0x1034] ss:$8 sps:$4 sm:$0xff]  }
 0x350   : > { %10155 = vmatpush2.bf16.msra.mxu0 %v11972_v11  ;;  %v12044_v11 = vld [vmem:[%s13653_s4 + $0x1134] ss:$8 sps:$4 sm:$0xff]  }
 0x351   : > { %10196 = vmatpush2.bf16.msra.mxu1 %v11975_v41  ;;  %10156 = vmatprep.subr.bf16.mxu0 %v11980_v42  ;;  %v12039_v41 = vld [vmem:[%s13653_s4 + $0x1030] ss:$8 sps:$4 sm:$0xff]  }
 0x352   : > { %10197 = vmatprep.subr.bf16.mxu1 %v11983_v43  ;;  %v12042_v42 = vld [vmem:[%s13653_s4 + $0x1130] ss:$8 sps:$4 sm:$0xff]   ;;  %v12047_v43 = vld [vmem:[%s13653_s4 + $0x1024] ss:$8 sps:$4 sm:$0xff]  }
 0x354   : > { %10157 = vmatpush2.bf16.msra.mxu0 %v11978_v46  ;;  %v12050_v46 = vld [vmem:[%s13653_s4 + $0x1124] ss:$8 sps:$4 sm:$0xff]  }
 0x355   : > { %10198 = vmatpush2.bf16.msra.mxu1 %v11981_v21  ;;  %10158 = vmatprep.subr.bf16.mxu0 %v11986_v47  ;;  %v12045_v21 = vld [vmem:[%s13653_s4 + $0x1020] ss:$8 sps:$4 sm:$0xff]  }
 0x356   : > { %10199 = vmatprep.subr.bf16.mxu1 %v11989_v49  ;;  %v12048_v47 = vld [vmem:[%s13653_s4 + $0x1120] ss:$8 sps:$4 sm:$0xff]   ;;  %v12053_v49 = vld [vmem:[%s13653_s4 + $0x1014] ss:$8 sps:$4 sm:$0xff]  }
 0x358   : > { %10159 = vmatpush2.bf16.msra.mxu0 %v11984_v51  ;;  %v12056_v51 = vld [vmem:[%s13653_s4 + $0x1114] ss:$8 sps:$4 sm:$0xff]  }
 0x359   : > { %10200 = vmatpush2.bf16.msra.mxu1 %v11987_v52  ;;  %10160 = vmatprep.subr.bf16.mxu0 %v11992_v26  ;;  %v12051_v52 = vld [vmem:[%s13653_s4 + $0x1010] ss:$8 sps:$4 sm:$0xff]  }
 0x35a   : > { %10201 = vmatprep.subr.bf16.mxu1 %v11995_v27  ;;  %v12054_v26 = vld [vmem:[%s13653_s4 + $0x1110] ss:$8 sps:$4 sm:$0xff]   ;;  %v12059_v27 = vld [vmem:[%s13653_s4 + $0x1004] ss:$8 sps:$4 sm:$0xff]  }
 0x35c   : > { %10161 = vmatpush2.bf16.msra.mxu0 %v11990_v53  ;;  %v12062_v53 = vld [vmem:[%s13653_s4 + $0x1104] ss:$8 sps:$4 sm:$0xff]  }
 0x35d   : > { %10202 = vmatpush2.bf16.msra.mxu1 %v11993_v54  ;;  %10162 = vmatprep.subr.bf16.mxu0 %v11998_v16  ;;  %v12057_v54 = vld [vmem:[%s13653_s4 + $0x1000] ss:$8 sps:$4 sm:$0xff]  }
 0x35e   : > { %10203 = vmatprep.subr.bf16.mxu1 %v12001_v55  ;;  %v12060_v16 = vld [vmem:[%s13653_s4 + $0x1100] ss:$8 sps:$4 sm:$0xff]   ;;  %v12065_v55 = vld [vmem:[%s13653_s4 + $0x10f4] ss:$8 sps:$4 sm:$0xff]  }
 0x360   : > { %10163 = vmatpush2.bf16.msra.mxu0 %v11996_v32  ;;  %v12068_v32 = vld [vmem:[%s13653_s4 + $0x11f4] ss:$8 sps:$4 sm:$0xff]  }
 0x361   : > { %10204 = vmatpush2.bf16.msra.mxu1 %v11999_v59  ;;  %10164 = vmatprep.subr.bf16.mxu0 %v12004_v60  ;;  %v12063_v59 = vld [vmem:[%s13653_s4 + $0x10f0] ss:$8 sps:$4 sm:$0xff]  }
 0x362   : > { %10205 = vmatprep.subr.bf16.mxu1 %v12007_v61  ;;  %v12066_v60 = vld [vmem:[%s13653_s4 + $0x11f0] ss:$8 sps:$4 sm:$0xff]   ;;  %v12071_v61 = vld [vmem:[%s13653_s4 + $0x10e4] ss:$8 sps:$4 sm:$0xff]  }
 0x364   : > { %10165 = vmatpush2.bf16.msra.mxu0 %v12002_v0  ;;  %v12074_v0 = vld [vmem:[%s13653_s4 + $0x11e4] ss:$8 sps:$4 sm:$0xff]  }
 0x365   : > { %10206 = vmatpush2.bf16.msra.mxu1 %v12005_v1  ;;  %10166 = vmatprep.subr.bf16.mxu0 %v12010_v2  ;;  %v12069_v1 = vld [vmem:[%s13653_s4 + $0x10e0] ss:$8 sps:$4 sm:$0xff]  }
 0x366   : > { %10207 = vmatprep.subr.bf16.mxu1 %v12013_v3  ;;  %v12072_v2 = vld [vmem:[%s13653_s4 + $0x11e0] ss:$8 sps:$4 sm:$0xff]   ;;  %v12077_v3 = vld [vmem:[%s13653_s4 + $0x10d4] ss:$8 sps:$4 sm:$0xff]  }
 0x368   : > { %10167 = vmatpush2.bf16.msra.mxu0 %v12008_v6  ;;  %v12078_v6 = vld [vmem:[%s13653_s4 + $0x11d0] ss:$8 sps:$4 sm:$0xff]  }
 0x369   : > { %10208 = vmatpush2.bf16.msra.mxu1 %v12011_v9  ;;  %10218 = vmatprep.subr.bf16.mxu0 %v12017_v36  ;;  %v12083_v9 = vld [vmem:[%s13653_s4 + $0x10c4] ss:$8 sps:$4 sm:$0xff]  }
 0x36a   : > { %10259 = vmatprep.subr.bf16.mxu1 %v12020_v10  ;;  %v12086_v36 = vld [vmem:[%s13653_s4 + $0x11c4] ss:$8 sps:$4 sm:$0xff]   ;;  %v12081_v10 = vld [vmem:[%s13653_s4 + $0x10c0] ss:$8 sps:$4 sm:$0xff]  }
 0x36b   : > { %v9924_v18 = vpop.f32.mrf.mxu0  ;;  %10169 = vmatmul.mubr.bf16.vlgmr.msra.gmra.mxu0 %v6254_v45  ;;  %v12075_v45 = vld [vmem:[%s13653_s4 + $0x10d0] ss:$8 sps:$4 sm:$0xff]  }
 0x36c   : > { %v9965_v19 = vpop.f32.mrf.mxu1  ;;  %10210 = vmatmul.mubr.bf16.vlgmr.msra.gmra.mxu1 %v6270_v48  ;;  %v9925_v20 = vadd.f32 %v9924_v18, %v14212_v4  ;;  %10219 = vmatpush1.bf16.msra.mxu0 %v12015_v13  ;;  %v12089_v48 = vld [vmem:[%s13653_s4 + $0x10b4] ss:$8 sps:$4 sm:$0xff]   ;;  %v6273_v18 = vcombine.high %v14262_v56, %v14262_v56  ;;  %v12099_v56 = vld [vmem:[%s13653_s4 + $0x1090] ss:$8 sps:$4 sm:$0xff]  }
 0x36d   : > { %10260 = vmatpush1.bf16.msra.mxu1 %v12018_v14  ;;  %v9926_v24 = vpop.f32.mrf.mxu0  ;;  %10220 = vmatprep.subr.bf16.mxu0 %v12023_v40  ;;  %v12092_v13 = vld [vmem:[%s13653_s4 + $0x11b4] ss:$8 sps:$4 sm:$0xff]   ;;  %v12087_v14 = vld [vmem:[%s13653_s4 + $0x10b0] ss:$8 sps:$4 sm:$0xff]  }
 0x36e   : > { %v9967_v58 = vpop.f32.mrf.mxu1  ;;  %10261 = vmatprep.subr.bf16.mxu1 %v12026_v15  ;;  %v14294_v7 = vadd.f32 %v9965_v19, %v9925_v20  ;;  %v9927_v63 = vadd.f32 %v9926_v24, %v14215_v8  ;;  %10250 = vmatprep.mubr.bf16.mxu0 %v6310_v12  ;;  %v12035_v8 = vld [vmem:[%s13653_s4 + $0x1044] ss:$8 sps:$4 sm:$0xff]   ;;  %v12084_v12 = vld [vmem:[%s13653_s4 + $0x11c0] ss:$8 sps:$4 sm:$0xff]   ;;  %v12090_v40 = vld [vmem:[%s13653_s4 + $0x11b0] ss:$8 sps:$4 sm:$0xff]   ;;  %v14350_v24 = vrot.slane %v6273_v18, %v13703_v50 }
 0x36f   : > { %10291 = vmatprep.mubr.bf16.mxu1 %v6320_v17  ;;  %v9928_v4 = vpop.f32.mrf.mxu0  ;;  %v12095_v15 = vld [vmem:[%s13653_s4 + $0x10a4] ss:$8 sps:$4 sm:$0xff]   ;;  %v12093_v19 = vld [vmem:[%s13653_s4 + $0x10a0] ss:$8 sps:$4 sm:$0xff]   ;;  %v12164_v18 = vld [vmem:[%s13653_s4 + $0x13f4] ss:$8 sps:$4 sm:$0xff]  }
 0x370   : > { %v9969_v29 = vpop.f32.mrf.mxu1  ;;  %v14297_v31 = vadd.f32 %v9967_v58, %v9927_v63  ;;  %10221 = vmatpush1.bf16.msra.mxu0 %v12021_v22  ;;  %v12098_v17 = vld [vmem:[%s13653_s4 + $0x11a4] ss:$8 sps:$4 sm:$0xff]   ;;  %v12096_v20 = vld [vmem:[%s13653_s4 + $0x11a0] ss:$8 sps:$4 sm:$0xff]   ;;  %v12101_v22 = vld [vmem:[%s13653_s4 + $0x1094] ss:$8 sps:$4 sm:$0xff]   ;;  %v6289_v63 = vcombine.high %v14350_v24, %v14350_v24  ;;  %v6296_v4 = vrot.slane %v14270_v62, %v13703_v50 }
 0x371   : > { %10262 = vmatpush1.bf16.msra.mxu1 %v12024_v23  ;;  %v9929_v34 = vpop.f32.mrf.mxu0  ;;  %10222 = vmatprep.subr.bf16.mxu0 %v12029_v25  ;;  %v12104_v23 = vld [vmem:[%s13653_s4 + $0x1194] ss:$8 sps:$4 sm:$0xff]   ;;  %v12102_v58 = vld [vmem:[%s13653_s4 + $0x1190] ss:$8 sps:$4 sm:$0xff]   ;;  %v12107_v25 = vld [vmem:[%s13653_s4 + $0x1084] ss:$8 sps:$4 sm:$0xff]  }
 0x372   : > { %v9970_v35 = vpop.f32.mrf.mxu1  ;;  %10263 = vmatprep.subr.bf16.mxu1 %v12032_v28  ;;  %v12110_v28 = vld [vmem:[%s13653_s4 + $0x1184] ss:$8 sps:$4 sm:$0xff]   ;;  %v12105_v29 = vld [vmem:[%s13653_s4 + $0x1080] ss:$8 sps:$4 sm:$0xff]   ;;  %v12116_v34 = vld [vmem:[%s13653_s4 + $0x1374] ss:$8 sps:$4 sm:$0xff]  }
 0x373   : > { %v6317_v35 = vrot.slane %v6289_v63, %v13703_v50  ;;  %v12119_v62 = vld [vmem:[%s13653_s4 + $0x1264] ss:$8 sps:$4 sm:$0xff]   ;;  %v12171_v63 = vld [vmem:[%s13653_s4 + $0x12d0] ss:$8 sps:$4 sm:$0xff]  }
 0x374   : > { %10223 = vmatpush1.bf16.msra.mxu0 %v12027_v57  ;;  %v12108_v57 = vld [vmem:[%s13653_s4 + $0x1180] ss:$8 sps:$4 sm:$0xff]  }
 0x375   : > { %10264 = vmatpush1.bf16.msra.mxu1 %v12030_v33  ;;  %10224 = vmatprep.subr.bf16.mxu0 %v12035_v8  ;;  %v12113_v33 = vld [vmem:[%s13653_s4 + $0x1274] ss:$8 sps:$4 sm:$0xff]   ;;  %v6318_v8 = vcombine.high %v6296_v4, %v6296_v4 }
 0x376   : > { %10265 = vmatprep.subr.bf16.mxu1 %v12038_v37  ;;  %v12111_v37 = vld [vmem:[%s13653_s4 + $0x1270] ss:$8 sps:$4 sm:$0xff]  }
 0x378   : > { %10225 = vmatpush1.bf16.msra.mxu0 %v12033_v38  ;;  %v12114_v38 = vld [vmem:[%s13653_s4 + $0x1370] ss:$8 sps:$4 sm:$0xff]  }
 0x379   : > { %10266 = vmatpush1.bf16.msra.mxu1 %v12036_v39  ;;  %10226 = vmatprep.subr.bf16.mxu0 %v12041_v30  ;;  %v12122_v39 = vld [vmem:[%s13653_s4 + $0x1364] ss:$8 sps:$4 sm:$0xff]   ;;  %v6321_v30 = vcombine.high %v6317_v35, %v6317_v35 }
 0x37a   : > { %10267 = vmatprep.subr.bf16.mxu1 %v12044_v11 }
 0x37c   : > { %10227 = vmatpush1.bf16.msra.mxu0 %v12039_v41 }
 0x37d   : > { %10268 = vmatpush1.bf16.msra.mxu1 %v12042_v42  ;;  %10228 = vmatprep.subr.bf16.mxu0 %v12047_v43  ;;  %v12117_v43 = vld [vmem:[%s13653_s4 + $0x1260] ss:$8 sps:$4 sm:$0xff]  }
 0x37e   : > { %10269 = vmatprep.subr.bf16.mxu1 %v12050_v46  ;;  %v12120_v46 = vld [vmem:[%s13653_s4 + $0x1360] ss:$8 sps:$4 sm:$0xff]  }
 0x380   : > { %10229 = vmatpush1.bf16.msra.mxu0 %v12045_v21 }
 0x381   : > { %10270 = vmatpush1.bf16.msra.mxu1 %v12048_v47  ;;  %10230 = vmatprep.subr.bf16.mxu0 %v12053_v49  ;;  %v12125_v49 = vld [vmem:[%s13653_s4 + $0x1254] ss:$8 sps:$4 sm:$0xff]  }
 0x382   : > { %10271 = vmatprep.subr.bf16.mxu1 %v12056_v51  ;;  %v12128_v51 = vld [vmem:[%s13653_s4 + $0x1354] ss:$8 sps:$4 sm:$0xff]  }
 0x384   : > { %10231 = vmatpush1.bf16.msra.mxu0 %v12051_v52 }
 0x385   : > { %10272 = vmatpush1.bf16.msra.mxu1 %v12054_v26  ;;  %10232 = vmatprep.subr.bf16.mxu0 %v12059_v27 }
 0x386   : > { %10273 = vmatprep.subr.bf16.mxu1 %v12062_v53 }
 0x388   : > { %10233 = vmatpush1.bf16.msra.mxu0 %v12057_v54  ;;  %v12123_v54 = vld [vmem:[%s13653_s4 + $0x1250] ss:$8 sps:$4 sm:$0xff]  }
 0x389   : > { %10274 = vmatpush1.bf16.msra.mxu1 %v12060_v16  ;;  %10234 = vmatprep.subr.bf16.mxu0 %v12065_v55  ;;  %v12126_v16 = vld [vmem:[%s13653_s4 + $0x1350] ss:$8 sps:$4 sm:$0xff]  }
 0x38a   : > { %10275 = vmatprep.subr.bf16.mxu1 %v12068_v32 }
 0x38c   : > { %10235 = vmatpush2.bf16.msra.mxu0 %v12063_v59  ;;  %v12134_v59 = vld [vmem:[%s13653_s4 + $0x1344] ss:$8 sps:$4 sm:$0xff]  }
 0x38d   : > { %10276 = vmatpush2.bf16.msra.mxu1 %v12066_v60  ;;  %10236 = vmatprep.subr.bf16.mxu0 %v12071_v61  ;;  %v12129_v60 = vld [vmem:[%s13653_s4 + $0x1240] ss:$8 sps:$4 sm:$0xff]  }
 0x38e   : > { %10277 = vmatprep.subr.bf16.mxu1 %v12074_v0  ;;  %v12132_v61 = vld [vmem:[%s13653_s4 + $0x1340] ss:$8 sps:$4 sm:$0xff]   ;;  %v12137_v0 = vld [vmem:[%s13653_s4 + $0x1234] ss:$8 sps:$4 sm:$0xff]  }
 0x390   : > { %10237 = vmatpush2.bf16.msra.mxu0 %v12069_v1  ;;  %v12140_v1 = vld [vmem:[%s13653_s4 + $0x1334] ss:$8 sps:$4 sm:$0xff]  }
 0x391   : > { %10278 = vmatpush2.bf16.msra.mxu1 %v12072_v2  ;;  %10238 = vmatprep.subr.bf16.mxu0 %v12077_v3  ;;  %v12135_v2 = vld [vmem:[%s13653_s4 + $0x1230] ss:$8 sps:$4 sm:$0xff]  }
 0x392   : > { %10279 = vmatprep.subr.bf16.mxu1 %v12080_v5  ;;  %v12138_v3 = vld [vmem:[%s13653_s4 + $0x1330] ss:$8 sps:$4 sm:$0xff]   ;;  %v12143_v5 = vld [vmem:[%s13653_s4 + $0x1224] ss:$8 sps:$4 sm:$0xff]  }
 0x394   : > { %10239 = vmatpush2.bf16.msra.mxu0 %v12075_v45  ;;  %v12146_v45 = vld [vmem:[%s13653_s4 + $0x1324] ss:$8 sps:$4 sm:$0xff]  }
 0x395   : > { %10280 = vmatpush2.bf16.msra.mxu1 %v12078_v6  ;;  %10240 = vmatprep.subr.bf16.mxu0 %v12083_v9  ;;  %v12141_v6 = vld [vmem:[%s13653_s4 + $0x1220] ss:$8 sps:$4 sm:$0xff]  }
 0x396   : > { %10281 = vmatprep.subr.bf16.mxu1 %v12086_v36  ;;  %v12144_v9 = vld [vmem:[%s13653_s4 + $0x1320] ss:$8 sps:$4 sm:$0xff]   ;;  %v12149_v36 = vld [vmem:[%s13653_s4 + $0x1214] ss:$8 sps:$4 sm:$0xff]  }
 0x398   : > { %10241 = vmatpush2.bf16.msra.mxu0 %v12081_v10  ;;  %v12152_v10 = vld [vmem:[%s13653_s4 + $0x1314] ss:$8 sps:$4 sm:$0xff]  }
 0x399   : > { %10282 = vmatpush2.bf16.msra.mxu1 %v12084_v12  ;;  %10242 = vmatprep.subr.bf16.mxu0 %v12089_v48  ;;  %v12147_v12 = vld [vmem:[%s13653_s4 + $0x1210] ss:$8 sps:$4 sm:$0xff]  }
 0x39a   : > { %10283 = vmatprep.subr.bf16.mxu1 %v12092_v13  ;;  %v12150_v48 = vld [vmem:[%s13653_s4 + $0x1310] ss:$8 sps:$4 sm:$0xff]   ;;  %v12155_v13 = vld [vmem:[%s13653_s4 + $0x1204] ss:$8 sps:$4 sm:$0xff]  }
 0x39c   : > { %10243 = vmatpush2.bf16.msra.mxu0 %v12087_v14  ;;  %v12158_v14 = vld [vmem:[%s13653_s4 + $0x1304] ss:$8 sps:$4 sm:$0xff]  }
 0x39d   : > { %10284 = vmatpush2.bf16.msra.mxu1 %v12090_v40  ;;  %10244 = vmatprep.subr.bf16.mxu0 %v12095_v15  ;;  %v12153_v40 = vld [vmem:[%s13653_s4 + $0x1200] ss:$8 sps:$4 sm:$0xff]  }
 0x39e   : > { %10285 = vmatprep.subr.bf16.mxu1 %v12098_v17  ;;  %v12156_v15 = vld [vmem:[%s13653_s4 + $0x1300] ss:$8 sps:$4 sm:$0xff]   ;;  %v12161_v17 = vld [vmem:[%s13653_s4 + $0x12f4] ss:$8 sps:$4 sm:$0xff]  }
 0x3a0   : > { %10245 = vmatpush2.bf16.msra.mxu0 %v12093_v19  ;;  %v12159_v19 = vld [vmem:[%s13653_s4 + $0x12f0] ss:$8 sps:$4 sm:$0xff]  }
 0x3a1   : > { %10286 = vmatpush2.bf16.msra.mxu1 %v12096_v20  ;;  %10246 = vmatprep.subr.bf16.mxu0 %v12101_v22  ;;  %v12162_v20 = vld [vmem:[%s13653_s4 + $0x13f0] ss:$8 sps:$4 sm:$0xff]   ;;  %v12167_v22 = vld [vmem:[%s13653_s4 + $0x12e4] ss:$8 sps:$4 sm:$0xff]  }
 0x3a2   : > { %10287 = vmatprep.subr.bf16.mxu1 %v12104_v23  ;;  %v12170_v23 = vld [vmem:[%s13653_s4 + $0x13e4] ss:$8 sps:$4 sm:$0xff]  }
 0x3a4   : > { %10247 = vmatpush2.bf16.msra.mxu0 %v12099_v56  ;;  %v12165_v56 = vld [vmem:[%s13653_s4 + $0x12e0] ss:$8 sps:$4 sm:$0xff]  }
 0x3a5   : > { %10288 = vmatpush2.bf16.msra.mxu1 %v12102_v58  ;;  %10248 = vmatprep.subr.bf16.mxu0 %v12107_v25  ;;  %v12168_v58 = vld [vmem:[%s13653_s4 + $0x13e0] ss:$8 sps:$4 sm:$0xff]   ;;  %v12173_v25 = vld [vmem:[%s13653_s4 + $0x12d4] ss:$8 sps:$4 sm:$0xff]  }
 0x3a6   : > { %10289 = vmatprep.subr.bf16.mxu1 %v12110_v28  ;;  %v12176_v28 = vld [vmem:[%s13653_s4 + $0x13d4] ss:$8 sps:$4 sm:$0xff]  }
 0x3a8   : > { %10249 = vmatpush2.bf16.msra.mxu0 %v12105_v29  ;;  %v12179_v29 = vld [vmem:[%s13653_s4 + $0x12c4] ss:$8 sps:$4 sm:$0xff]  }
 0x3a9   : > { %10290 = vmatpush2.bf16.msra.mxu1 %v12108_v57  ;;  %10300 = vmatprep.subr.bf16.mxu0 %v12113_v33  ;;  %v12182_v57 = vld [vmem:[%s13653_s4 + $0x13c4] ss:$8 sps:$4 sm:$0xff]   ;;  %v12177_v33 = vld [vmem:[%s13653_s4 + $0x12c0] ss:$8 sps:$4 sm:$0xff]  }
 0x3aa   : > { %10341 = vmatprep.subr.bf16.mxu1 %v12116_v34  ;;  %v12180_v34 = vld [vmem:[%s13653_s4 + $0x13c0] ss:$8 sps:$4 sm:$0xff]  }
 0x3ab   : > { %v10006_v11 = vpop.f32.mrf.mxu0  ;;  %10251 = vmatmul.mubr.bf16.vlgmr.msra.gmra.mxu0 %v6296_v4  ;;  %v12174_v4 = vld [vmem:[%s13653_s4 + $0x13d0] ss:$8 sps:$4 sm:$0xff]  }
 0x3ac   : > { %v10047_v41 = vpop.f32.mrf.mxu1  ;;  %10292 = vmatmul.mubr.bf16.vlgmr.msra.gmra.mxu1 %v6318_v8  ;;  %v10007_v42 = vadd.f32 %v10006_v11, %v14294_v7  ;;  %10301 = vmatpush1.bf16.msra.mxu0 %v12111_v37  ;;  %v12188_v8 = vld [vmem:[%s13653_s4 + $0x13b4] ss:$8 sps:$4 sm:$0xff]   ;;  %v12183_v37 = vld [vmem:[%s13653_s4 + $0x12b0] ss:$8 sps:$4 sm:$0xff]   ;;  %v12192_v11 = vld [vmem:[%s13653_s4 + $0x13a0] ss:$8 sps:$4 sm:$0xff]  }
 0x3ad   : > { %10342 = vmatpush1.bf16.msra.mxu1 %v12114_v38  ;;  %v10008_v21 = vpop.f32.mrf.mxu0  ;;  %10302 = vmatprep.subr.bf16.mxu0 %v12119_v62  ;;  %v12186_v38 = vld [vmem:[%s13653_s4 + $0x13b0] ss:$8 sps:$4 sm:$0xff]   ;;  %v12191_v62 = vld [vmem:[%s13653_s4 + $0x12a4] ss:$8 sps:$4 sm:$0xff]  }
 0x3ae   : > { %v10049_v47 = vpop.f32.mrf.mxu1  ;;  %10343 = vmatprep.subr.bf16.mxu1 %v12122_v39  ;;  %v14374_v52 = vadd.f32 %v10047_v41, %v10007_v42  ;;  %v10009_v26 = vadd.f32 %v10008_v21, %v14297_v31  ;;  %10332 = vmatprep.mubr.bf16.mxu0 %v6317_v35  ;;  %v12131_v31 = vld [vmem:[%s13653_s4 + $0x1244] ss:$8 sps:$4 sm:$0xff]   ;;  %v12185_v35 = vld [vmem:[%s13653_s4 + $0x12b4] ss:$8 sps:$4 sm:$0xff]  }
 0x3af   : > { %10373 = vmatprep.mubr.bf16.mxu1 %v6321_v30  ;;  %v10010_v7 = vpop.f32.mrf.mxu0  ;;  %v12194_v39 = vld [vmem:[%s13653_s4 + $0x13a4] ss:$8 sps:$4 sm:$0xff]   ;;  %v12189_v30 = vld [vmem:[%s13653_s4 + $0x12a0] ss:$8 sps:$4 sm:$0xff]   ;;  %v12197_v41 = vld [vmem:[%s13653_s4 + $0x1294] ss:$8 sps:$4 sm:$0xff]  }
 0x3b0   : > { %v10051_v27 = vpop.f32.mrf.mxu1  ;;  %v14377_v53 = vadd.f32 %v10049_v47, %v10009_v26  ;;  %10303 = vmatpush1.bf16.msra.mxu0 %v12117_v43  ;;  %v12200_v42 = vld [vmem:[%s13653_s4 + $0x1394] ss:$8 sps:$4 sm:$0xff]   ;;  %v12195_v43 = vld [vmem:[%s13653_s4 + $0x1290] ss:$8 sps:$4 sm:$0xff]   ;;  %v12203_v21 = vld [vmem:[%s13653_s4 + $0x1284] ss:$8 sps:$4 sm:$0xff]  }
 0x3b1   : > { %10344 = vmatpush1.bf16.msra.mxu1 %v12120_v46  ;;  %v10011_v55 = vpop.f32.mrf.mxu0  ;;  %10304 = vmatprep.subr.bf16.mxu0 %v12125_v49  ;;  %v12198_v46 = vld [vmem:[%s13653_s4 + $0x1390] ss:$8 sps:$4 sm:$0xff]   ;;  %v12206_v47 = vld [vmem:[%s13653_s4 + $0x1384] ss:$8 sps:$4 sm:$0xff]   ;;  %v6303_v49 = vrot.slane %v14350_v24, %v13703_v50  ;;  %v12204_v26 = vld [vmem:[%s13653_s4 + $0x1380] ss:$8 sps:$4 sm:$0xff]  }
 0x3b2   : > { %v10052_v32 = vpop.f32.mrf.mxu1  ;;  %10345 = vmatprep.subr.bf16.mxu1 %v12128_v51  ;;  %v12201_v51 = vld [vmem:[%s13653_s4 + $0x1280] ss:$8 sps:$4 sm:$0xff]  }
 0x3b3   : > { %v6319_v7 = vcombine.high %v6303_v49, %v6303_v49 }
 0x3b4   : > { %10305 = vmatpush1.bf16.msra.mxu0 %v12123_v54 }
 0x3b5   : > { %10346 = vmatpush1.bf16.msra.mxu1 %v12126_v16  ;;  %10306 = vmatprep.subr.bf16.mxu0 %v12131_v31 }
 0x3b6   : > { %10347 = vmatprep.subr.bf16.mxu1 %v12134_v59 }
 0x3b8   : > { %10307 = vmatpush1.bf16.msra.mxu0 %v12129_v60 }
 0x3b9   : > { %10348 = vmatpush1.bf16.msra.mxu1 %v12132_v61  ;;  %10308 = vmatprep.subr.bf16.mxu0 %v12137_v0 }
 0x3ba   : > { %10349 = vmatprep.subr.bf16.mxu1 %v12140_v1 }
 0x3bc   : > { %10309 = vmatpush1.bf16.msra.mxu0 %v12135_v2 }
 0x3bd   : > { %10350 = vmatpush1.bf16.msra.mxu1 %v12138_v3  ;;  %10310 = vmatprep.subr.bf16.mxu0 %v12143_v5 }
 0x3be   : > { %10351 = vmatprep.subr.bf16.mxu1 %v12146_v45 }
 0x3c0   : > { %10311 = vmatpush1.bf16.msra.mxu0 %v12141_v6 }
 0x3c1   : > { %10352 = vmatpush1.bf16.msra.mxu1 %v12144_v9  ;;  %10312 = vmatprep.subr.bf16.mxu0 %v12149_v36 }
 0x3c2   : > { %10353 = vmatprep.subr.bf16.mxu1 %v12152_v10 }
 0x3c4   : > { %10313 = vmatpush1.bf16.msra.mxu0 %v12147_v12 }
 0x3c5   : > { %10354 = vmatpush1.bf16.msra.mxu1 %v12150_v48  ;;  %10314 = vmatprep.subr.bf16.mxu0 %v12155_v13 }
 0x3c6   : > { %10355 = vmatprep.subr.bf16.mxu1 %v12158_v14 }
 0x3c8   : > { %10315 = vmatpush1.bf16.msra.mxu0 %v12153_v40 }
 0x3c9   : > { %10356 = vmatpush1.bf16.msra.mxu1 %v12156_v15  ;;  %10316 = vmatprep.subr.bf16.mxu0 %v12161_v17 }
 0x3ca   : > { %10357 = vmatprep.subr.bf16.mxu1 %v12164_v18 }
 0x3cc   : > { %10317 = vmatpush2.bf16.msra.mxu0 %v12159_v19 }
 0x3cd   : > { %10358 = vmatpush2.bf16.msra.mxu1 %v12162_v20  ;;  %10318 = vmatprep.subr.bf16.mxu0 %v12167_v22 }
 0x3ce   : > { %10359 = vmatprep.subr.bf16.mxu1 %v12170_v23 }
 0x3d0   : > { %10319 = vmatpush2.bf16.msra.mxu0 %v12165_v56  ;;  %v12266_v56 = vmov 1983009808  }
 0x3d1   : > { %10360 = vmatpush2.bf16.msra.mxu1 %v12168_v58  ;;  %10320 = vmatprep.subr.bf16.mxu0 %v12173_v25  ;;  %v10386_v58 = vunpack.c.l.s4 %v12266_v56 }
 0x3d2   : > { %10361 = vmatprep.subr.bf16.mxu1 %v12176_v28 }
 0x3d4   : > { %10321 = vmatpush2.bf16.msra.mxu0 %v12171_v63 }
 0x3d5   : > { %10362 = vmatpush2.bf16.msra.mxu1 %v12174_v4  ;;  %10322 = vmatprep.subr.bf16.mxu0 %v12179_v29  ;;  %v10387_v29 = vunpack.c.0.s8 %v10386_v58 }
 0x3d6   : > { %10363 = vmatprep.subr.bf16.mxu1 %v12182_v57 }
 0x3d8   : > { %10323 = vmatpush2.bf16.msra.mxu0 %v12177_v33 }
 0x3d9   : > { %10364 = vmatpush2.bf16.msra.mxu1 %v12180_v34  ;;  %10324 = vmatprep.subr.bf16.mxu0 %v12185_v35 }
 0x3da   : > { %10365 = vmatprep.subr.bf16.mxu1 %v12188_v8 }
 0x3dc   : > { %10325 = vmatpush2.bf16.msra.mxu0 %v12183_v37 }
 0x3dd   : > { %10366 = vmatpush2.bf16.msra.mxu1 %v12186_v38  ;;  %10326 = vmatprep.subr.bf16.mxu0 %v12191_v62  ;;  %v10390_v62 = vsub.s32 %v10387_v29, %v13695_v44 }
 0x3de   : > { %10367 = vmatprep.subr.bf16.mxu1 %v12194_v39 }
 0x3e0   : > { %10327 = vmatpush2.bf16.msra.mxu0 %v12189_v30 }
 0x3e1   : > { %10368 = vmatpush2.bf16.msra.mxu1 %v12192_v11  ;;  %10328 = vmatprep.subr.bf16.mxu0 %v12197_v41  ;;  %v5426_v41 = vld [vmem:[#allocation2] sm:$0xf] }
 0x3e2   : > { %10369 = vmatprep.subr.bf16.mxu1 %v12200_v42 }
 0x3e4   : > { %10329 = vmatpush2.bf16.msra.mxu0 %v12195_v43 }
 0x3e5   : > { %10370 = vmatpush2.bf16.msra.mxu1 %v12198_v46  ;;  %10330 = vmatprep.subr.bf16.mxu0 %v12203_v21 }
 0x3e6   : > { %10371 = vmatprep.subr.bf16.mxu1 %v12206_v47 }
 0x3e8   : > { %10331 = vmatpush2.bf16.msra.mxu0 %v12201_v51 }
 0x3e9   : > { %10372 = vmatpush2.bf16.msra.mxu1 %v12204_v26 }
 0x3eb   : > { %v10088_v27 = vpop.f32.mrf.mxu0  ;;  %10333 = vmatmul.mubr.bf16.vlgmr.msra.gmra.mxu0 %v6303_v49 }
 0x3ec   : > { %v10129_v54 = vpop.f32.mrf.mxu1  ;;  %10374 = vmatmul.mubr.bf16.vlgmr.msra.gmra.mxu1 %v6319_v7  ;;  %v10089_v16 = vadd.f32 %v10088_v27, %v14374_v52 }
 0x3ed   : > { %v10090_v55 = vpop.f32.mrf.mxu0 }
 0x3ee   : > { %v10131_v32 = vpop.f32.mrf.mxu1  ;;  %v10130_v31 = vadd.f32 %v10129_v54, %v10089_v16  ;;  %v10091_v50 = vadd.f32 %v10090_v55, %v14377_v53 }
 0x3ef   : > { %v10092_v24 = vpop.f32.mrf.mxu0 }
 0x3f0   : > { %v10133_v59 = vpop.f32.mrf.mxu1  ;;  %v10132_v60 = vadd.f32 %v10131_v32, %v10091_v50 }
 0x3f1   : > { %v10093_v61 = vpop.f32.mrf.mxu0 }
 0x3f2   : > { %v10134_v0 = vpop.f32.mrf.mxu1 }
 0x42b   : > { %v10170_v1 = vpop.f32.mrf.mxu0 }
 0x42c   : > { %v10211_v2 = vpop.f32.mrf.mxu1  ;;  %v10171_v3 = vadd.f32 %v10170_v1, %v10130_v31 }
 0x42d   : > { %v10172_v5 = vpop.f32.mrf.mxu0 }
 0x42e   : > { %v10213_v45 = vpop.f32.mrf.mxu1  ;;  %v10212_v6 = vadd.f32 %v10211_v2, %v10171_v3  ;;  %v10173_v9 = vadd.f32 %v10172_v5, %v10132_v60 }
 0x42f   : > { %v10174_v36 = vpop.f32.mrf.mxu0 }
 0x430   : > { %v10215_v10 = vpop.f32.mrf.mxu1  ;;  %v10214_v52 = vadd.f32 %v10213_v45, %v10173_v9 }
 0x431   : > { %v10175_v12 = vpop.f32.mrf.mxu0 }
 0x432   : > { %v10216_v48 = vpop.f32.mrf.mxu1 }
 0x46b   : > { %v10252_v13 = vpop.f32.mrf.mxu0 }
 0x46c   : > { %v10293_v14 = vpop.f32.mrf.mxu1  ;;  %v10253_v53 = vadd.f32 %v10252_v13, %v10212_v6 }
 0x46d   : > { %v10254_v40 = vpop.f32.mrf.mxu0 }
 0x46e   : > { %v10295_v15 = vpop.f32.mrf.mxu1  ;;  %v10294_v17 = vadd.f32 %v10293_v14, %v10253_v53  ;;  %v10255_v23 = vadd.f32 %v10254_v40, %v10214_v52 }
 0x46f   : > { %v10256_v18 = vpop.f32.mrf.mxu0 }
 0x470   : > { %v10297_v19 = vpop.f32.mrf.mxu1  ;;  %v10296_v63 = vadd.f32 %v10295_v15, %v10255_v23 }
 0x471   : > { %v10257_v20 = vpop.f32.mrf.mxu0 }
 0x472   : > { %v10298_v22 = vpop.f32.mrf.mxu1 }
 0x4ab   : > { %v10334_v25 = vpop.f32.mrf.mxu0 }
 0x4ac   : > { %v10375_v28 = vpop.f32.mrf.mxu1  ;;  %v10335_v4 = vadd.f32 %v10334_v25, %v10294_v17 }
 0x4ad   : > { %v10336_v57 = vpop.f32.mrf.mxu0 }
 0x4ae   : > { %v10377_v33 = vpop.f32.mrf.mxu1  ;;  %v10337_v34 = vadd.f32 %v10336_v57, %v10296_v63  ;;  %v10376_v37 = vadd.f32 %v10375_v28, %v10335_v4 }
 0x4af   : > { %v10338_v35 = vpop.f32.mrf.mxu0 }
 0x4b0   : > { %v10379_v8 = vpop.f32.mrf.mxu1  ;;  %v10378_v38 = vadd.f32 %v10377_v33, %v10337_v34 }
 0x4b1   : > { %v10339_v39 = vpop.f32.mrf.mxu0 }
 0x4b2   : > { %v10380_v30 = vpop.f32.mrf.mxu1  ;;  %v10384_v11 = vcombine.low %v10376_v37, %v10378_v38 }
 0x4b4   : > { %v10391_v42 = vrot.slane %v10384_v11, %v10390_v62  ;;  %10398 = sbr.rel (%p11178_p13) target bundleno = 1222 (0x4c6), region = 92 }
 0x4b6   : > { %v10393_v43 = vadd.f32 %v10391_v42, %v5426_v41 }
 0x4b8   : > { %10394 = vst [vmem:[#allocation2] sm:$0xf] %v10393_v43 }
 0x4b9   : > { %v10400_v46 = vld [vmem:[%s5413_s28] sm:$0x3]  ;;  %v10404_v21 = vsub.s32 0, %v13695_v44  ;;  %v10408_v47 = vsub.s32 1, %v13695_v44 }
 0x4bb   : > { %v10405_v49 = vrot.slane %v10400_v46, %v10404_v21  ;;  %v10409_v51 = vrot.slane %v10400_v46, %v10408_v47 }
 0x4bd   : > { %v10410_v26 = vcombine.low %v10405_v49, %v10409_v51 }
 0x4bf   : > { %v10399_v7 = vld [vmem:[#allocation2] sm:$0xf]  ;;  %v10417_v27 = vrot.slane %v10410_v26, %v10390_v62 }
 0x4c1   : > { %v10419_v54 = vadd.f32 %v10417_v27, %v10399_v7 }
 0x4c3   : > { %v10420_v16 = vmax.f32 %v10419_v54, 0.0 }
 0x4c5   : > { %10421 = vst [vmem:[%s13651_s15] sm:$0xf] %v10420_v16 }
 0x4c6 PF: > { %s13_s18 = sadd.s32 1, %s12262_s18   ;;  %s14472_s12 = smov %s12242_s13 }
 0x4c7   : > { %p10_p0 = scmp.ge.s32.totalorder %s13_s18, 10   ;;  %s14473_s13 = smov %s12338_s25 }
 0x4c8   : > { %s14474_s14 = smov %s12254_s16  ;;  %s14475_s15 = smov %s12258_s17 }
 0x4c9   : > { %s14476_s16 = smov %s14479_s19  ;;  %s14477_s17 = smov %s14483_s20 }
 0x4ca   :  { %12 = sbr.rel (!%p10_p0) target bundleno = 4 (0x4), region = 139 }

</bundles_post_ra>
